<compile_context>
chip_gen: v5e
topology: v5e:2x2
jax: 0.10.0
libtpu: 0.0.40
codegen_flags: <defaults>
</compile_context>

<pallas_src>
import functools
import math

import jax
import jax.numpy as jnp
from jax.experimental import pallas as pl
from jax.experimental.pallas import tpu as pltpu


# ----------------------------------------------------------------------------
# Fused Pallas kernel: one batch slab (T*N rows) per grid step
# ----------------------------------------------------------------------------
def _st_att_kernel(xc_ref, wqkv_ref, bqkv_ref, bias_s_ref, bias_t_ref,
                   wp1_ref, bp1_ref, wp2_ref, bp2_ref,
                   wz_ref, bz_ref, w19_ref, b19_ref, w20_ref, b20_ref,
                   o_ref, *, K, d):
    f32 = jnp.float32
    bf16 = jnp.bfloat16
    D = K * d

    def mm(a, w_ref):                 # a @ W, bf16 operands, f32 accumulation
        return jax.lax.dot_general(a.astype(bf16), w_ref[...],
                                   (((1,), (0,)), ((), ())),
                                   preferred_element_type=f32)

    xc = xc_ref[...]                                               # [TN, 2D] f32

    # Fused QKV projections (fc7,8,9,12,13,14) + relu. 1/sqrt(d) is already
    # folded into the two query projections; store the result as bf16 so every
    # downstream matmul feeds the MXU native-rate operands.
    qkv = jnp.maximum(mm(xc, wqkv_ref) + bqkv_ref[...], 0.0).astype(bf16)  # [TN,6D]

    def attention(base, bias_ref):
        # All groups of one branch as a masked full-row softmax over the slab;
        # static loop over the K heads (head h = lane slice [h*d, (h+1)*d)).
        heads = []
        for h in range(K):
            q = qkv[:, base + h * d: base + (h + 1) * d]
            k = qkv[:, base + D + h * d: base + D + (h + 1) * d]
            v = qkv[:, base + 2 * D + h * d: base + 2 * D + (h + 1) * d]
            s = jax.lax.dot_general(q, k, (((1,), (1,)), ((), ())),
                                    preferred_element_type=f32)    # [TN, TN] f32
            s = s + bias_ref[...]                 # group mask as additive bias
            s = s - jnp.max(s, axis=-1, keepdims=True)
            p = jnp.exp(s)                        # softmax math stays f32
            p = p * pl.reciprocal(jnp.sum(p, axis=-1, keepdims=True),
                                  approx=True)
            heads.append(jax.lax.dot_general(p.astype(bf16), v,
                                             (((1,), (0,)), ((), ())),
                                             preferred_element_type=f32))
        return jnp.concatenate(heads, axis=-1)                     # [TN, D] f32

    att = jnp.concatenate([attention(0, bias_s_ref),        # spatial  (q|k|v @ 0..3D)
                           attention(3 * D, bias_t_ref)],    # temporal (q|k|v @ 3D..6D)
                          axis=-1)                                 # [TN, 2D]

    # fc10/fc15 (block-diagonal) + relu, then fc11/fc16 (block-diagonal).
    h1 = jnp.maximum(mm(att, wp1_ref) + bp1_ref[...], 0.0)         # [TN, 2D]
    h2 = mm(h1, wp2_ref) + bp2_ref[...]                            # [TN, 2D] = [HS | HT]

    # Gated fusion: sigmoid(fc17(HS)+fc18(HT)) == sigmoid([HS|HT] @ [W17;W18] + b17+b18)
    z = jax.nn.sigmoid(mm(h2, wz_ref) + bz_ref[...])               # [TN, D]
    hs, ht = h2[:, 0:D], h2[:, D:2 * D]
    hg = z * hs + (1.0 - z) * ht
    hg = jnp.maximum(mm(hg, w19_ref) + b19_ref[...], 0.0)          # fc19 + relu
    hg = mm(hg, w20_ref) + b20_ref[...]                            # fc20

    # Residual: X is the first D columns of the concatenated [X | STE] input.
    o_ref[...] = (xc[:, 0:D] + hg).astype(o_ref.dtype)


# ----------------------------------------------------------------------------
# Wrapper: pack/fold weights, build additive masks, call the kernel (grid=(B,))
# ----------------------------------------------------------------------------
@functools.partial(jax.jit, static_argnames=("K", "d"))
def st_att_model(p, X, STE, *, K, d):
    B, T, N, D = X.shape
    assert D == K * d
    TN = T * N
    M = B * TN
    bf16 = jnp.bfloat16

    Xc = jnp.concatenate([X, STE], axis=-1).reshape(M, 2 * D).astype(jnp.float32)

    # QKV weights (fc7..9 spatial, fc12..14 temporal); fold 1/sqrt(d) into the
    # two query projections (weights AND biases) — exact since relu(c*x)=c*relu(x).
    scale = 1.0 / math.sqrt(d)
    w7, b7 = p["fc7"][0] * scale, p["fc7"][1] * scale
    w12, b12 = p["fc12"][0] * scale, p["fc12"][1] * scale
    Wqkv = jnp.concatenate([w7, p["fc8"][0], p["fc9"][0],
                            w12, p["fc13"][0], p["fc14"][0]], axis=1)     # [2D, 6D]
    bqkv = jnp.concatenate([b7, p["fc8"][1], p["fc9"][1],
                            b12, p["fc13"][1], p["fc14"][1]]).reshape(1, 6 * D)

    def blockdiag(w1, w2):
        z = jnp.zeros_like(w1)
        return jnp.block([[w1, z], [z, w2]])

    Wp1 = blockdiag(p["fc10"][0], p["fc15"][0])                           # [2D, 2D]
    bp1 = jnp.concatenate([p["fc10"][1], p["fc15"][1]]).reshape(1, 2 * D)
    Wp2 = blockdiag(p["fc11"][0], p["fc16"][0])                           # [2D, 2D]
    bp2 = jnp.concatenate([p["fc11"][1], p["fc16"][1]]).reshape(1, 2 * D)
    Wz = jnp.concatenate([p["fc17"][0], p["fc18"][0]], axis=0)            # [2D, D]
    bz = (p["fc17"][1] + p["fc18"][1]).reshape(1, D)
    W19, b19 = p["fc19"][0], p["fc19"][1].reshape(1, D)
    W20, b20 = p["fc20"][0], p["fc20"][1].reshape(1, D)

    # MXU operands in bf16 (f32 accumulation in the kernel); biases stay f32.
    Wqkv, Wp1, Wp2, Wz, W19, W20 = (w.astype(bf16)
                                    for w in (Wqkv, Wp1, Wp2, Wz, W19, W20))

    # Additive group masks (identical for every batch): within a slab, row
    # r = t*N + n. Spatial mixes rows with equal t, temporal with equal n.
    r = jnp.arange(TN, dtype=jnp.int32)
    t_id, n_id = r // N, r % N
    bias_s = jnp.where(t_id[:, None] == t_id[None, :], 0.0, -1e9).astype(jnp.float32)
    bias_t = jnp.where(n_id[:, None] == n_id[None, :], 0.0, -1e9).astype(jnp.float32)

    full = lambda *shape: pl.BlockSpec(shape, lambda b: (0,) * len(shape))

    out = pl.pallas_call(
        functools.partial(_st_att_kernel, K=K, d=d),
        out_shape=jax.ShapeDtypeStruct((M, D), X.dtype),
        grid_spec=pltpu.PrefetchScalarGridSpec(
            num_scalar_prefetch=0,
            grid=(B,),
            in_specs=[
                pl.BlockSpec((TN, 2 * D), lambda b: (b, 0)),   # Xc (per-batch slab)
                full(2 * D, 6 * D), full(1, 6 * D),            # Wqkv, bqkv
                full(TN, TN), full(TN, TN),                    # bias_s, bias_t
                full(2 * D, 2 * D), full(1, 2 * D),            # Wp1, bp1
                full(2 * D, 2 * D), full(1, 2 * D),            # Wp2, bp2
                full(2 * D, D), full(1, D),                    # Wz, bz
                full(D, D), full(1, D),                        # W19, b19
                full(D, D), full(1, D),                        # W20, b20
            ],
            out_specs=pl.BlockSpec((TN, D), lambda b: (b, 0)),
        ),
        compiler_params=pltpu.CompilerParams(
            dimension_semantics=("parallel",)),
    )(Xc, Wqkv, bqkv, bias_s, bias_t, Wp1, bp1, Wp2, bp2,
      Wz, bz, W19, b19, W20, b20)
    return out.reshape(B, T, N, D)


# ----------------------------------------------------------------------------
# Pure-JAX f32 reference (independent formulation, sanity check only)
# ----------------------------------------------------------------------------
def split_heads(x, K, d):
    B, T, N, _ = x.shape
    x = x.reshape(B, T, N, K, d)
    x = jnp.transpose(x, (3, 0, 1, 2, 4))
    return x.reshape(K * B, T, N, d)


def merge_heads(x, K):
    KB, T, N, d = x.shape
    B = KB // K
    x = x.reshape(K, B, T, N, d)
    x = jnp.transpose(x, (1, 2, 3, 0, 4))
    return x.reshape(B, T, N, K * d)


def _ref_linear(x, w, b, act=None):
    y = x @ w + b
    return jnp.maximum(y, 0.0) if act == "relu" else y


def _ref_softmax_attn(q, k, v, d):
    s = jnp.einsum("...ld,...md->...lm", q, k) / math.sqrt(d)
    s = s - jnp.max(s, axis=-1, keepdims=True)
    p = jnp.exp(s)
    p = p / jnp.sum(p, axis=-1, keepdims=True)
    return jnp.einsum("...lm,...md->...ld", p, v)


def ref_forward(p, X, STE, K, d):
    Xc = jnp.concatenate([X, STE], axis=-1)
    q = split_heads(_ref_linear(Xc, *p["fc7"], "relu"), K, d)
    k = split_heads(_ref_linear(Xc, *p["fc8"], "relu"), K, d)
    v = split_heads(_ref_linear(Xc, *p["fc9"], "relu"), K, d)
    hs = merge_heads(_ref_softmax_attn(q, k, v, d), K)
    HS = _ref_linear(_ref_linear(hs, *p["fc10"], "relu"), *p["fc11"])
    q = split_heads(_ref_linear(Xc, *p["fc12"], "relu"), K, d)
    k = split_heads(_ref_linear(Xc, *p["fc13"], "relu"), K, d)
    v = split_heads(_ref_linear(Xc, *p["fc14"], "relu"), K, d)
    q, k, v = (jnp.transpose(a, (0, 2, 1, 3)) for a in (q, k, v))
    ht = jnp.transpose(_ref_softmax_attn(q, k, v, d), (0, 2, 1, 3))
    ht = merge_heads(ht, K)
    HT = _ref_linear(_ref_linear(ht, *p["fc15"], "relu"), *p["fc16"])
    z = jax.nn.sigmoid(_ref_linear(HS, *p["fc17"]) + _ref_linear(HT, *p["fc18"]))
    H = z * HS + (1.0 - z) * HT
    H = _ref_linear(_ref_linear(H, *p["fc19"], "relu"), *p["fc20"])
    return X + H


# ----------------------------------------------------------------------------
# Deterministic parameter init (torch.nn.Linear default: U(+-1/sqrt(in)))
# ----------------------------------------------------------------------------
def _init_linear(key, in_dim, out_dim):
    kw, kb = jax.random.split(key)
    bound = 1.0 / math.sqrt(in_dim)
    w = jax.random.uniform(kw, (in_dim, out_dim), jnp.float32, -bound, bound)
    b = jax.random.uniform(kb, (out_dim,), jnp.float32, -bound, bound)
    return w, b


def init_params(key, K, d):
    D = K * d
    shapes = {
        "fc7": (2 * D, D), "fc8": (2 * D, D), "fc9": (2 * D, D),
        "fc10": (D, D), "fc11": (D, D),
        "fc12": (2 * D, D), "fc13": (2 * D, D), "fc14": (2 * D, D),
        "fc15": (D, D), "fc16": (D, D),
        "fc17": (D, D), "fc18": (D, D), "fc19": (D, D), "fc20": (D, D),
    }
    keys = jax.random.split(key, len(shapes))
    return {name: _init_linear(k, *sh)
            for (name, sh), k in zip(shapes.items(), keys)}


# ----------------------------------------------------------------------------
if __name__ == "__main__":
    K, d = 4, 8
    D = K * d          # 32
    B, T, N = 2, 8, 16

    root = jax.random.PRNGKey(0)
    kx, kste, kp = jax.random.split(root, 3)
    X = jax.random.normal(kx, (B, T, N, D), jnp.float32)
    STE = jax.random.normal(kste, (B, T, N, D), jnp.float32)
    params = init_params(kp, K, d)

    out = st_att_model(params, X, STE, K=K, d=d)
    out = jax.block_until_ready(out)

    assert out.shape == (B, T, N, D)
    assert bool(jnp.all(jnp.isfinite(out)))

    ref = jax.block_until_ready(ref_forward(params, X, STE, K, d))
    assert bool(jnp.allclose(out, ref, atol=1e-1, rtol=1e-1)), "mismatch vs reference"

    print("KERNEL_OK")
</pallas_src>

<mosaic_0001>
module attributes {stable_mosaic.version = 11 : i64} {
  func.func @_st_att_kernel(%arg0: i32, %arg1: memref<128x64xf32, #tpu.memory_space<vmem>>, %arg2: memref<64x192xbf16, #tpu.memory_space<vmem>>, %arg3: memref<1x192xf32, #tpu.memory_space<vmem>>, %arg4: memref<128x128xf32, #tpu.memory_space<vmem>>, %arg5: memref<128x128xf32, #tpu.memory_space<vmem>>, %arg6: memref<64x64xbf16, #tpu.memory_space<vmem>>, %arg7: memref<1x64xf32, #tpu.memory_space<vmem>>, %arg8: memref<64x64xbf16, #tpu.memory_space<vmem>>, %arg9: memref<1x64xf32, #tpu.memory_space<vmem>>, %arg10: memref<64x32xbf16, #tpu.memory_space<vmem>>, %arg11: memref<1x32xf32, #tpu.memory_space<vmem>>, %arg12: memref<32x32xbf16, #tpu.memory_space<vmem>>, %arg13: memref<1x32xf32, #tpu.memory_space<vmem>>, %arg14: memref<32x32xbf16, #tpu.memory_space<vmem>>, %arg15: memref<1x32xf32, #tpu.memory_space<vmem>>, %arg16: memref<128x32xf32, #tpu.memory_space<vmem>>) attributes {dimension_semantics = [#tpu.dimension_semantics<parallel>], iteration_bounds = array<i64: 2>, scalar_prefetch = 0 : i64, scratch_operands = 0 : i64, tpu.core_type = #tpu.core_type<tc>, window_params = [{transform_indices = @transform_0, window_bounds = array<i64: 128, 64>}, {pipeline_mode = #tpu.pipeline_mode<synchronous>, transform_indices = @transform_1, window_bounds = array<i64: 64, 192>}, {pipeline_mode = #tpu.pipeline_mode<synchronous>, transform_indices = @transform_2, window_bounds = array<i64: 1, 192>}, {pipeline_mode = #tpu.pipeline_mode<synchronous>, transform_indices = @transform_3, window_bounds = array<i64: 128, 128>}, {pipeline_mode = #tpu.pipeline_mode<synchronous>, transform_indices = @transform_4, window_bounds = array<i64: 128, 128>}, {pipeline_mode = #tpu.pipeline_mode<synchronous>, transform_indices = @transform_5, window_bounds = array<i64: 64, 64>}, {pipeline_mode = #tpu.pipeline_mode<synchronous>, transform_indices = @transform_6, window_bounds = array<i64: 1, 64>}, {pipeline_mode = #tpu.pipeline_mode<synchronous>, transform_indices = @transform_7, window_bounds = array<i64: 64, 64>}, {pipeline_mode = #tpu.pipeline_mode<synchronous>, transform_indices = @transform_8, window_bounds = array<i64: 1, 64>}, {pipeline_mode = #tpu.pipeline_mode<synchronous>, transform_indices = @transform_9, window_bounds = array<i64: 64, 32>}, {pipeline_mode = #tpu.pipeline_mode<synchronous>, transform_indices = @transform_10, window_bounds = array<i64: 1, 32>}, {pipeline_mode = #tpu.pipeline_mode<synchronous>, transform_indices = @transform_11, window_bounds = array<i64: 32, 32>}, {pipeline_mode = #tpu.pipeline_mode<synchronous>, transform_indices = @transform_12, window_bounds = array<i64: 1, 32>}, {pipeline_mode = #tpu.pipeline_mode<synchronous>, transform_indices = @transform_13, window_bounds = array<i64: 32, 32>}, {pipeline_mode = #tpu.pipeline_mode<synchronous>, transform_indices = @transform_14, window_bounds = array<i64: 1, 32>}, {transform_indices = @transform_15, window_bounds = array<i64: 128, 32>}]} {
    %c0 = arith.constant 0 : index
    %c0_0 = arith.constant 0 : index
    %0 = vector.load %arg1[%c0, %c0_0] : memref<128x64xf32, #tpu.memory_space<vmem>>, vector<128x64xf32>
    %1 = arith.truncf %0 : vector<128x64xf32> to vector<128x64xbf16>
    %c0_1 = arith.constant 0 : index
    %c0_2 = arith.constant 0 : index
    %2 = vector.load %arg2[%c0_1, %c0_2] : memref<64x192xbf16, #tpu.memory_space<vmem>>, vector<64x192xbf16>
    %cst = arith.constant dense<0.000000e+00> : vector<128x192xf32>
    %3 = tpu.matmul %1, %2, %cst {dimension_numbers = #tpu.dot_dimension_numbers<[1], [0], [0], [1], [0, 0, 1, 1], [], []>} : vector<128x64xbf16>, vector<64x192xbf16>, vector<128x192xf32> -> vector<128x192xf32>
    %c0_3 = arith.constant 0 : index
    %c0_4 = arith.constant 0 : index
    %4 = vector.load %arg3[%c0_3, %c0_4] : memref<1x192xf32, #tpu.memory_space<vmem>>, vector<1x192xf32>
    %5 = vector.broadcast %4 : vector<1x192xf32> to vector<128x192xf32>
    %6 = arith.addf %3, %5 : vector<128x192xf32>
    %cst_5 = arith.constant 0.000000e+00 : f32
    %7 = vector.broadcast %cst_5 : f32 to vector<128x192xf32>
    %8 = arith.maximumf %6, %7 : vector<128x192xf32>
    %9 = arith.truncf %8 : vector<128x192xf32> to vector<128x192xbf16>
    %10 = vector.extract_strided_slice %9 {offsets = [0, 0], sizes = [128, 8], strides = [1, 1]} : vector<128x192xbf16> to vector<128x8xbf16>
    %11 = vector.extract_strided_slice %9 {offsets = [0, 32], sizes = [128, 8], strides = [1, 1]} : vector<128x192xbf16> to vector<128x8xbf16>
    %12 = vector.extract_strided_slice %9 {offsets = [0, 64], sizes = [128, 8], strides = [1, 1]} : vector<128x192xbf16> to vector<128x8xbf16>
    %cst_6 = arith.constant dense<0.000000e+00> : vector<128x128xf32>
    %13 = tpu.matmul %10, %11, %cst_6 {dimension_numbers = #tpu.dot_dimension_numbers<[1], [1], [0], [0], [0, 0, 1, 0], [], []>} : vector<128x8xbf16>, vector<128x8xbf16>, vector<128x128xf32> -> vector<128x128xf32>
    %c0_7 = arith.constant 0 : index
    %c0_8 = arith.constant 0 : index
    %14 = vector.load %arg4[%c0_7, %c0_8] : memref<128x128xf32, #tpu.memory_space<vmem>>, vector<128x128xf32>
    %15 = arith.addf %13, %14 : vector<128x128xf32>
    %cst_9 = arith.constant dense<0xFF800000> : vector<128xf32>
    %16 = vector.multi_reduction <maximumf>, %15, %cst_9 [1] : vector<128x128xf32> to vector<128xf32>
    %17 = vector.shape_cast %16 : vector<128xf32> to vector<128x1xf32>
    %18 = vector.broadcast %17 : vector<128x1xf32> to vector<128x128xf32>
    %19 = arith.subf %15, %18 : vector<128x128xf32>
    %20 = math.exp %19 : vector<128x128xf32>
    %cst_10 = arith.constant dense<0.000000e+00> : vector<128xf32>
    %21 = vector.multi_reduction <add>, %20, %cst_10 [1] : vector<128x128xf32> to vector<128xf32>
    %22 = vector.shape_cast %21 : vector<128xf32> to vector<128x1xf32>
    %23 = tpu.reciprocal %22 {approx = true} : vector<128x1xf32> -> vector<128x1xf32>
    %24 = vector.broadcast %23 : vector<128x1xf32> to vector<128x128xf32>
    %25 = arith.mulf %20, %24 : vector<128x128xf32>
    %26 = arith.truncf %25 : vector<128x128xf32> to vector<128x128xbf16>
    %cst_11 = arith.constant dense<0.000000e+00> : vector<128x8xf32>
    %27 = tpu.matmul %26, %12, %cst_11 {dimension_numbers = #tpu.dot_dimension_numbers<[1], [0], [0], [1], [0, 0, 1, 1], [], []>} : vector<128x128xbf16>, vector<128x8xbf16>, vector<128x8xf32> -> vector<128x8xf32>
    %28 = vector.extract_strided_slice %9 {offsets = [0, 8], sizes = [128, 8], strides = [1, 1]} : vector<128x192xbf16> to vector<128x8xbf16>
    %29 = vector.extract_strided_slice %9 {offsets = [0, 40], sizes = [128, 8], strides = [1, 1]} : vector<128x192xbf16> to vector<128x8xbf16>
    %30 = vector.extract_strided_slice %9 {offsets = [0, 72], sizes = [128, 8], strides = [1, 1]} : vector<128x192xbf16> to vector<128x8xbf16>
    %cst_12 = arith.constant dense<0.000000e+00> : vector<128x128xf32>
    %31 = tpu.matmul %28, %29, %cst_12 {dimension_numbers = #tpu.dot_dimension_numbers<[1], [1], [0], [0], [0, 0, 1, 0], [], []>} : vector<128x8xbf16>, vector<128x8xbf16>, vector<128x128xf32> -> vector<128x128xf32>
    %c0_13 = arith.constant 0 : index
    %c0_14 = arith.constant 0 : index
    %32 = vector.load %arg4[%c0_13, %c0_14] : memref<128x128xf32, #tpu.memory_space<vmem>>, vector<128x128xf32>
    %33 = arith.addf %31, %32 : vector<128x128xf32>
    %cst_15 = arith.constant dense<0xFF800000> : vector<128xf32>
    %34 = vector.multi_reduction <maximumf>, %33, %cst_15 [1] : vector<128x128xf32> to vector<128xf32>
    %35 = vector.shape_cast %34 : vector<128xf32> to vector<128x1xf32>
    %36 = vector.broadcast %35 : vector<128x1xf32> to vector<128x128xf32>
    %37 = arith.subf %33, %36 : vector<128x128xf32>
    %38 = math.exp %37 : vector<128x128xf32>
    %cst_16 = arith.constant dense<0.000000e+00> : vector<128xf32>
    %39 = vector.multi_reduction <add>, %38, %cst_16 [1] : vector<128x128xf32> to vector<128xf32>
    %40 = vector.shape_cast %39 : vector<128xf32> to vector<128x1xf32>
    %41 = tpu.reciprocal %40 {approx = true} : vector<128x1xf32> -> vector<128x1xf32>
    %42 = vector.broadcast %41 : vector<128x1xf32> to vector<128x128xf32>
    %43 = arith.mulf %38, %42 : vector<128x128xf32>
    %44 = arith.truncf %43 : vector<128x128xf32> to vector<128x128xbf16>
    %cst_17 = arith.constant dense<0.000000e+00> : vector<128x8xf32>
    %45 = tpu.matmul %44, %30, %cst_17 {dimension_numbers = #tpu.dot_dimension_numbers<[1], [0], [0], [1], [0, 0, 1, 1], [], []>} : vector<128x128xbf16>, vector<128x8xbf16>, vector<128x8xf32> -> vector<128x8xf32>
    %46 = vector.extract_strided_slice %9 {offsets = [0, 16], sizes = [128, 8], strides = [1, 1]} : vector<128x192xbf16> to vector<128x8xbf16>
    %47 = vector.extract_strided_slice %9 {offsets = [0, 48], sizes = [128, 8], strides = [1, 1]} : vector<128x192xbf16> to vector<128x8xbf16>
    %48 = vector.extract_strided_slice %9 {offsets = [0, 80], sizes = [128, 8], strides = [1, 1]} : vector<128x192xbf16> to vector<128x8xbf16>
    %cst_18 = arith.constant dense<0.000000e+00> : vector<128x128xf32>
    %49 = tpu.matmul %46, %47, %cst_18 {dimension_numbers = #tpu.dot_dimension_numbers<[1], [1], [0], [0], [0, 0, 1, 0], [], []>} : vector<128x8xbf16>, vector<128x8xbf16>, vector<128x128xf32> -> vector<128x128xf32>
    %c0_19 = arith.constant 0 : index
    %c0_20 = arith.constant 0 : index
    %50 = vector.load %arg4[%c0_19, %c0_20] : memref<128x128xf32, #tpu.memory_space<vmem>>, vector<128x128xf32>
    %51 = arith.addf %49, %50 : vector<128x128xf32>
    %cst_21 = arith.constant dense<0xFF800000> : vector<128xf32>
    %52 = vector.multi_reduction <maximumf>, %51, %cst_21 [1] : vector<128x128xf32> to vector<128xf32>
    %53 = vector.shape_cast %52 : vector<128xf32> to vector<128x1xf32>
    %54 = vector.broadcast %53 : vector<128x1xf32> to vector<128x128xf32>
    %55 = arith.subf %51, %54 : vector<128x128xf32>
    %56 = math.exp %55 : vector<128x128xf32>
    %cst_22 = arith.constant dense<0.000000e+00> : vector<128xf32>
    %57 = vector.multi_reduction <add>, %56, %cst_22 [1] : vector<128x128xf32> to vector<128xf32>
    %58 = vector.shape_cast %57 : vector<128xf32> to vector<128x1xf32>
    %59 = tpu.reciprocal %58 {approx = true} : vector<128x1xf32> -> vector<128x1xf32>
    %60 = vector.broadcast %59 : vector<128x1xf32> to vector<128x128xf32>
    %61 = arith.mulf %56, %60 : vector<128x128xf32>
    %62 = arith.truncf %61 : vector<128x128xf32> to vector<128x128xbf16>
    %cst_23 = arith.constant dense<0.000000e+00> : vector<128x8xf32>
    %63 = tpu.matmul %62, %48, %cst_23 {dimension_numbers = #tpu.dot_dimension_numbers<[1], [0], [0], [1], [0, 0, 1, 1], [], []>} : vector<128x128xbf16>, vector<128x8xbf16>, vector<128x8xf32> -> vector<128x8xf32>
    %64 = vector.extract_strided_slice %9 {offsets = [0, 24], sizes = [128, 8], strides = [1, 1]} : vector<128x192xbf16> to vector<128x8xbf16>
    %65 = vector.extract_strided_slice %9 {offsets = [0, 56], sizes = [128, 8], strides = [1, 1]} : vector<128x192xbf16> to vector<128x8xbf16>
    %66 = vector.extract_strided_slice %9 {offsets = [0, 88], sizes = [128, 8], strides = [1, 1]} : vector<128x192xbf16> to vector<128x8xbf16>
    %cst_24 = arith.constant dense<0.000000e+00> : vector<128x128xf32>
    %67 = tpu.matmul %64, %65, %cst_24 {dimension_numbers = #tpu.dot_dimension_numbers<[1], [1], [0], [0], [0, 0, 1, 0], [], []>} : vector<128x8xbf16>, vector<128x8xbf16>, vector<128x128xf32> -> vector<128x128xf32>
    %c0_25 = arith.constant 0 : index
    %c0_26 = arith.constant 0 : index
    %68 = vector.load %arg4[%c0_25, %c0_26] : memref<128x128xf32, #tpu.memory_space<vmem>>, vector<128x128xf32>
    %69 = arith.addf %67, %68 : vector<128x128xf32>
    %cst_27 = arith.constant dense<0xFF800000> : vector<128xf32>
    %70 = vector.multi_reduction <maximumf>, %69, %cst_27 [1] : vector<128x128xf32> to vector<128xf32>
    %71 = vector.shape_cast %70 : vector<128xf32> to vector<128x1xf32>
    %72 = vector.broadcast %71 : vector<128x1xf32> to vector<128x128xf32>
    %73 = arith.subf %69, %72 : vector<128x128xf32>
    %74 = math.exp %73 : vector<128x128xf32>
    %cst_28 = arith.constant dense<0.000000e+00> : vector<128xf32>
    %75 = vector.multi_reduction <add>, %74, %cst_28 [1] : vector<128x128xf32> to vector<128xf32>
    %76 = vector.shape_cast %75 : vector<128xf32> to vector<128x1xf32>
    %77 = tpu.reciprocal %76 {approx = true} : vector<128x1xf32> -> vector<128x1xf32>
    %78 = vector.broadcast %77 : vector<128x1xf32> to vector<128x128xf32>
    %79 = arith.mulf %74, %78 : vector<128x128xf32>
    %80 = arith.truncf %79 : vector<128x128xf32> to vector<128x128xbf16>
    %cst_29 = arith.constant dense<0.000000e+00> : vector<128x8xf32>
    %81 = tpu.matmul %80, %66, %cst_29 {dimension_numbers = #tpu.dot_dimension_numbers<[1], [0], [0], [1], [0, 0, 1, 1], [], []>} : vector<128x128xbf16>, vector<128x8xbf16>, vector<128x8xf32> -> vector<128x8xf32>
    %82 = tpu.concatenate %27, %45, %63, %81 in 1 : vector<128x8xf32>, vector<128x8xf32>, vector<128x8xf32>, vector<128x8xf32> -> vector<128x32xf32>
    %83 = vector.extract_strided_slice %9 {offsets = [0, 96], sizes = [128, 8], strides = [1, 1]} : vector<128x192xbf16> to vector<128x8xbf16>
    %84 = vector.extract_strided_slice %9 {offsets = [0, 128], sizes = [128, 8], strides = [1, 1]} : vector<128x192xbf16> to vector<128x8xbf16>
    %85 = vector.extract_strided_slice %9 {offsets = [0, 160], sizes = [128, 8], strides = [1, 1]} : vector<128x192xbf16> to vector<128x8xbf16>
    %cst_30 = arith.constant dense<0.000000e+00> : vector<128x128xf32>
    %86 = tpu.matmul %83, %84, %cst_30 {dimension_numbers = #tpu.dot_dimension_numbers<[1], [1], [0], [0], [0, 0, 1, 0], [], []>} : vector<128x8xbf16>, vector<128x8xbf16>, vector<128x128xf32> -> vector<128x128xf32>
    %c0_31 = arith.constant 0 : index
    %c0_32 = arith.constant 0 : index
    %87 = vector.load %arg5[%c0_31, %c0_32] : memref<128x128xf32, #tpu.memory_space<vmem>>, vector<128x128xf32>
    %88 = arith.addf %86, %87 : vector<128x128xf32>
    %cst_33 = arith.constant dense<0xFF800000> : vector<128xf32>
    %89 = vector.multi_reduction <maximumf>, %88, %cst_33 [1] : vector<128x128xf32> to vector<128xf32>
    %90 = vector.shape_cast %89 : vector<128xf32> to vector<128x1xf32>
    %91 = vector.broadcast %90 : vector<128x1xf32> to vector<128x128xf32>
    %92 = arith.subf %88, %91 : vector<128x128xf32>
    %93 = math.exp %92 : vector<128x128xf32>
    %cst_34 = arith.constant dense<0.000000e+00> : vector<128xf32>
    %94 = vector.multi_reduction <add>, %93, %cst_34 [1] : vector<128x128xf32> to vector<128xf32>
    %95 = vector.shape_cast %94 : vector<128xf32> to vector<128x1xf32>
    %96 = tpu.reciprocal %95 {approx = true} : vector<128x1xf32> -> vector<128x1xf32>
    %97 = vector.broadcast %96 : vector<128x1xf32> to vector<128x128xf32>
    %98 = arith.mulf %93, %97 : vector<128x128xf32>
    %99 = arith.truncf %98 : vector<128x128xf32> to vector<128x128xbf16>
    %cst_35 = arith.constant dense<0.000000e+00> : vector<128x8xf32>
    %100 = tpu.matmul %99, %85, %cst_35 {dimension_numbers = #tpu.dot_dimension_numbers<[1], [0], [0], [1], [0, 0, 1, 1], [], []>} : vector<128x128xbf16>, vector<128x8xbf16>, vector<128x8xf32> -> vector<128x8xf32>
    %101 = vector.extract_strided_slice %9 {offsets = [0, 104], sizes = [128, 8], strides = [1, 1]} : vector<128x192xbf16> to vector<128x8xbf16>
    %102 = vector.extract_strided_slice %9 {offsets = [0, 136], sizes = [128, 8], strides = [1, 1]} : vector<128x192xbf16> to vector<128x8xbf16>
    %103 = vector.extract_strided_slice %9 {offsets = [0, 168], sizes = [128, 8], strides = [1, 1]} : vector<128x192xbf16> to vector<128x8xbf16>
    %cst_36 = arith.constant dense<0.000000e+00> : vector<128x128xf32>
    %104 = tpu.matmul %101, %102, %cst_36 {dimension_numbers = #tpu.dot_dimension_numbers<[1], [1], [0], [0], [0, 0, 1, 0], [], []>} : vector<128x8xbf16>, vector<128x8xbf16>, vector<128x128xf32> -> vector<128x128xf32>
    %c0_37 = arith.constant 0 : index
    %c0_38 = arith.constant 0 : index
    %105 = vector.load %arg5[%c0_37, %c0_38] : memref<128x128xf32, #tpu.memory_space<vmem>>, vector<128x128xf32>
    %106 = arith.addf %104, %105 : vector<128x128xf32>
    %cst_39 = arith.constant dense<0xFF800000> : vector<128xf32>
    %107 = vector.multi_reduction <maximumf>, %106, %cst_39 [1] : vector<128x128xf32> to vector<128xf32>
    %108 = vector.shape_cast %107 : vector<128xf32> to vector<128x1xf32>
    %109 = vector.broadcast %108 : vector<128x1xf32> to vector<128x128xf32>
    %110 = arith.subf %106, %109 : vector<128x128xf32>
    %111 = math.exp %110 : vector<128x128xf32>
    %cst_40 = arith.constant dense<0.000000e+00> : vector<128xf32>
    %112 = vector.multi_reduction <add>, %111, %cst_40 [1] : vector<128x128xf32> to vector<128xf32>
    %113 = vector.shape_cast %112 : vector<128xf32> to vector<128x1xf32>
    %114 = tpu.reciprocal %113 {approx = true} : vector<128x1xf32> -> vector<128x1xf32>
    %115 = vector.broadcast %114 : vector<128x1xf32> to vector<128x128xf32>
    %116 = arith.mulf %111, %115 : vector<128x128xf32>
    %117 = arith.truncf %116 : vector<128x128xf32> to vector<128x128xbf16>
    %cst_41 = arith.constant dense<0.000000e+00> : vector<128x8xf32>
    %118 = tpu.matmul %117, %103, %cst_41 {dimension_numbers = #tpu.dot_dimension_numbers<[1], [0], [0], [1], [0, 0, 1, 1], [], []>} : vector<128x128xbf16>, vector<128x8xbf16>, vector<128x8xf32> -> vector<128x8xf32>
    %119 = vector.extract_strided_slice %9 {offsets = [0, 112], sizes = [128, 8], strides = [1, 1]} : vector<128x192xbf16> to vector<128x8xbf16>
    %120 = vector.extract_strided_slice %9 {offsets = [0, 144], sizes = [128, 8], strides = [1, 1]} : vector<128x192xbf16> to vector<128x8xbf16>
    %121 = vector.extract_strided_slice %9 {offsets = [0, 176], sizes = [128, 8], strides = [1, 1]} : vector<128x192xbf16> to vector<128x8xbf16>
    %cst_42 = arith.constant dense<0.000000e+00> : vector<128x128xf32>
    %122 = tpu.matmul %119, %120, %cst_42 {dimension_numbers = #tpu.dot_dimension_numbers<[1], [1], [0], [0], [0, 0, 1, 0], [], []>} : vector<128x8xbf16>, vector<128x8xbf16>, vector<128x128xf32> -> vector<128x128xf32>
    %c0_43 = arith.constant 0 : index
    %c0_44 = arith.constant 0 : index
    %123 = vector.load %arg5[%c0_43, %c0_44] : memref<128x128xf32, #tpu.memory_space<vmem>>, vector<128x128xf32>
    %124 = arith.addf %122, %123 : vector<128x128xf32>
    %cst_45 = arith.constant dense<0xFF800000> : vector<128xf32>
    %125 = vector.multi_reduction <maximumf>, %124, %cst_45 [1] : vector<128x128xf32> to vector<128xf32>
    %126 = vector.shape_cast %125 : vector<128xf32> to vector<128x1xf32>
    %127 = vector.broadcast %126 : vector<128x1xf32> to vector<128x128xf32>
    %128 = arith.subf %124, %127 : vector<128x128xf32>
    %129 = math.exp %128 : vector<128x128xf32>
    %cst_46 = arith.constant dense<0.000000e+00> : vector<128xf32>
    %130 = vector.multi_reduction <add>, %129, %cst_46 [1] : vector<128x128xf32> to vector<128xf32>
    %131 = vector.shape_cast %130 : vector<128xf32> to vector<128x1xf32>
    %132 = tpu.reciprocal %131 {approx = true} : vector<128x1xf32> -> vector<128x1xf32>
    %133 = vector.broadcast %132 : vector<128x1xf32> to vector<128x128xf32>
    %134 = arith.mulf %129, %133 : vector<128x128xf32>
    %135 = arith.truncf %134 : vector<128x128xf32> to vector<128x128xbf16>
    %cst_47 = arith.constant dense<0.000000e+00> : vector<128x8xf32>
    %136 = tpu.matmul %135, %121, %cst_47 {dimension_numbers = #tpu.dot_dimension_numbers<[1], [0], [0], [1], [0, 0, 1, 1], [], []>} : vector<128x128xbf16>, vector<128x8xbf16>, vector<128x8xf32> -> vector<128x8xf32>
    %137 = vector.extract_strided_slice %9 {offsets = [0, 120], sizes = [128, 8], strides = [1, 1]} : vector<128x192xbf16> to vector<128x8xbf16>
    %138 = vector.extract_strided_slice %9 {offsets = [0, 152], sizes = [128, 8], strides = [1, 1]} : vector<128x192xbf16> to vector<128x8xbf16>
    %139 = vector.extract_strided_slice %9 {offsets = [0, 184], sizes = [128, 8], strides = [1, 1]} : vector<128x192xbf16> to vector<128x8xbf16>
    %cst_48 = arith.constant dense<0.000000e+00> : vector<128x128xf32>
    %140 = tpu.matmul %137, %138, %cst_48 {dimension_numbers = #tpu.dot_dimension_numbers<[1], [1], [0], [0], [0, 0, 1, 0], [], []>} : vector<128x8xbf16>, vector<128x8xbf16>, vector<128x128xf32> -> vector<128x128xf32>
    %c0_49 = arith.constant 0 : index
    %c0_50 = arith.constant 0 : index
    %141 = vector.load %arg5[%c0_49, %c0_50] : memref<128x128xf32, #tpu.memory_space<vmem>>, vector<128x128xf32>
    %142 = arith.addf %140, %141 : vector<128x128xf32>
    %cst_51 = arith.constant dense<0xFF800000> : vector<128xf32>
    %143 = vector.multi_reduction <maximumf>, %142, %cst_51 [1] : vector<128x128xf32> to vector<128xf32>
    %144 = vector.shape_cast %143 : vector<128xf32> to vector<128x1xf32>
    %145 = vector.broadcast %144 : vector<128x1xf32> to vector<128x128xf32>
    %146 = arith.subf %142, %145 : vector<128x128xf32>
    %147 = math.exp %146 : vector<128x128xf32>
    %cst_52 = arith.constant dense<0.000000e+00> : vector<128xf32>
    %148 = vector.multi_reduction <add>, %147, %cst_52 [1] : vector<128x128xf32> to vector<128xf32>
    %149 = vector.shape_cast %148 : vector<128xf32> to vector<128x1xf32>
    %150 = tpu.reciprocal %149 {approx = true} : vector<128x1xf32> -> vector<128x1xf32>
    %151 = vector.broadcast %150 : vector<128x1xf32> to vector<128x128xf32>
    %152 = arith.mulf %147, %151 : vector<128x128xf32>
    %153 = arith.truncf %152 : vector<128x128xf32> to vector<128x128xbf16>
    %cst_53 = arith.constant dense<0.000000e+00> : vector<128x8xf32>
    %154 = tpu.matmul %153, %139, %cst_53 {dimension_numbers = #tpu.dot_dimension_numbers<[1], [0], [0], [1], [0, 0, 1, 1], [], []>} : vector<128x128xbf16>, vector<128x8xbf16>, vector<128x8xf32> -> vector<128x8xf32>
    %155 = tpu.concatenate %100, %118, %136, %154 in 1 : vector<128x8xf32>, vector<128x8xf32>, vector<128x8xf32>, vector<128x8xf32> -> vector<128x32xf32>
    %156 = tpu.concatenate %82, %155 in 1 : vector<128x32xf32>, vector<128x32xf32> -> vector<128x64xf32>
    %157 = arith.truncf %156 : vector<128x64xf32> to vector<128x64xbf16>
    %c0_54 = arith.constant 0 : index
    %c0_55 = arith.constant 0 : index
    %158 = vector.load %arg6[%c0_54, %c0_55] : memref<64x64xbf16, #tpu.memory_space<vmem>>, vector<64x64xbf16>
    %cst_56 = arith.constant dense<0.000000e+00> : vector<128x64xf32>
    %159 = tpu.matmul %157, %158, %cst_56 {dimension_numbers = #tpu.dot_dimension_numbers<[1], [0], [0], [1], [0, 0, 1, 1], [], []>} : vector<128x64xbf16>, vector<64x64xbf16>, vector<128x64xf32> -> vector<128x64xf32>
    %c0_57 = arith.constant 0 : index
    %c0_58 = arith.constant 0 : index
    %160 = vector.load %arg7[%c0_57, %c0_58] : memref<1x64xf32, #tpu.memory_space<vmem>>, vector<1x64xf32>
    %161 = vector.broadcast %160 : vector<1x64xf32> to vector<128x64xf32>
    %162 = arith.addf %159, %161 : vector<128x64xf32>
    %cst_59 = arith.constant 0.000000e+00 : f32
    %163 = vector.broadcast %cst_59 : f32 to vector<128x64xf32>
    %164 = arith.maximumf %162, %163 : vector<128x64xf32>
    %165 = arith.truncf %164 : vector<128x64xf32> to vector<128x64xbf16>
    %c0_60 = arith.constant 0 : index
    %c0_61 = arith.constant 0 : index
    %166 = vector.load %arg8[%c0_60, %c0_61] : memref<64x64xbf16, #tpu.memory_space<vmem>>, vector<64x64xbf16>
    %cst_62 = arith.constant dense<0.000000e+00> : vector<128x64xf32>
    %167 = tpu.matmul %165, %166, %cst_62 {dimension_numbers = #tpu.dot_dimension_numbers<[1], [0], [0], [1], [0, 0, 1, 1], [], []>} : vector<128x64xbf16>, vector<64x64xbf16>, vector<128x64xf32> -> vector<128x64xf32>
    %c0_63 = arith.constant 0 : index
    %c0_64 = arith.constant 0 : index
    %168 = vector.load %arg9[%c0_63, %c0_64] : memref<1x64xf32, #tpu.memory_space<vmem>>, vector<1x64xf32>
    %169 = vector.broadcast %168 : vector<1x64xf32> to vector<128x64xf32>
    %170 = arith.addf %167, %169 : vector<128x64xf32>
    %171 = arith.truncf %170 : vector<128x64xf32> to vector<128x64xbf16>
    %c0_65 = arith.constant 0 : index
    %c0_66 = arith.constant 0 : index
    %172 = vector.load %arg10[%c0_65, %c0_66] : memref<64x32xbf16, #tpu.memory_space<vmem>>, vector<64x32xbf16>
    %cst_67 = arith.constant dense<0.000000e+00> : vector<128x32xf32>
    %173 = tpu.matmul %171, %172, %cst_67 {dimension_numbers = #tpu.dot_dimension_numbers<[1], [0], [0], [1], [0, 0, 1, 1], [], []>} : vector<128x64xbf16>, vector<64x32xbf16>, vector<128x32xf32> -> vector<128x32xf32>
    %c0_68 = arith.constant 0 : index
    %c0_69 = arith.constant 0 : index
    %174 = vector.load %arg11[%c0_68, %c0_69] : memref<1x32xf32, #tpu.memory_space<vmem>>, vector<1x32xf32>
    %175 = vector.broadcast %174 : vector<1x32xf32> to vector<128x32xf32>
    %176 = arith.addf %173, %175 : vector<128x32xf32>
    %177 = arith.negf %176 : vector<128x32xf32>
    %178 = math.exp %177 : vector<128x32xf32>
    %cst_70 = arith.constant 1.000000e+00 : f32
    %179 = vector.broadcast %cst_70 : f32 to vector<128x32xf32>
    %180 = arith.addf %179, %178 : vector<128x32xf32>
    %181 = arith.divf %179, %180 : vector<128x32xf32>
    %182 = vector.extract_strided_slice %170 {offsets = [0, 0], sizes = [128, 32], strides = [1, 1]} : vector<128x64xf32> to vector<128x32xf32>
    %183 = vector.extract_strided_slice %170 {offsets = [0, 32], sizes = [128, 32], strides = [1, 1]} : vector<128x64xf32> to vector<128x32xf32>
    %184 = arith.mulf %181, %182 : vector<128x32xf32>
    %cst_71 = arith.constant 1.000000e+00 : f32
    %185 = vector.broadcast %cst_71 : f32 to vector<128x32xf32>
    %186 = arith.subf %185, %181 : vector<128x32xf32>
    %187 = arith.mulf %186, %183 : vector<128x32xf32>
    %188 = arith.addf %184, %187 : vector<128x32xf32>
    %189 = arith.truncf %188 : vector<128x32xf32> to vector<128x32xbf16>
    %c0_72 = arith.constant 0 : index
    %c0_73 = arith.constant 0 : index
    %190 = vector.load %arg12[%c0_72, %c0_73] : memref<32x32xbf16, #tpu.memory_space<vmem>>, vector<32x32xbf16>
    %cst_74 = arith.constant dense<0.000000e+00> : vector<128x32xf32>
    %191 = tpu.matmul %189, %190, %cst_74 {dimension_numbers = #tpu.dot_dimension_numbers<[1], [0], [0], [1], [0, 0, 1, 1], [], []>} : vector<128x32xbf16>, vector<32x32xbf16>, vector<128x32xf32> -> vector<128x32xf32>
    %c0_75 = arith.constant 0 : index
    %c0_76 = arith.constant 0 : index
    %192 = vector.load %arg13[%c0_75, %c0_76] : memref<1x32xf32, #tpu.memory_space<vmem>>, vector<1x32xf32>
    %193 = vector.broadcast %192 : vector<1x32xf32> to vector<128x32xf32>
    %194 = arith.addf %191, %193 : vector<128x32xf32>
    %cst_77 = arith.constant 0.000000e+00 : f32
    %195 = vector.broadcast %cst_77 : f32 to vector<128x32xf32>
    %196 = arith.maximumf %194, %195 : vector<128x32xf32>
    %197 = arith.truncf %196 : vector<128x32xf32> to vector<128x32xbf16>
    %c0_78 = arith.constant 0 : index
    %c0_79 = arith.constant 0 : index
    %198 = vector.load %arg14[%c0_78, %c0_79] : memref<32x32xbf16, #tpu.memory_space<vmem>>, vector<32x32xbf16>
    %cst_80 = arith.constant dense<0.000000e+00> : vector<128x32xf32>
    %199 = tpu.matmul %197, %198, %cst_80 {dimension_numbers = #tpu.dot_dimension_numbers<[1], [0], [0], [1], [0, 0, 1, 1], [], []>} : vector<128x32xbf16>, vector<32x32xbf16>, vector<128x32xf32> -> vector<128x32xf32>
    %c0_81 = arith.constant 0 : index
    %c0_82 = arith.constant 0 : index
    %200 = vector.load %arg15[%c0_81, %c0_82] : memref<1x32xf32, #tpu.memory_space<vmem>>, vector<1x32xf32>
    %201 = vector.broadcast %200 : vector<1x32xf32> to vector<128x32xf32>
    %202 = arith.addf %199, %201 : vector<128x32xf32>
    %203 = vector.extract_strided_slice %0 {offsets = [0, 0], sizes = [128, 32], strides = [1, 1]} : vector<128x64xf32> to vector<128x32xf32>
    %204 = arith.addf %203, %202 : vector<128x32xf32>
    %c0_83 = arith.constant 0 : index
    %c0_84 = arith.constant 0 : index
    %205 = vector.load %arg16[%c0_83, %c0_84] : memref<128x32xf32, #tpu.memory_space<vmem>>, vector<128x32xf32>
    tpu.vector_store %arg16[%c0_83, %c0_84], %204 {strides = array<i32>} : memref<128x32xf32, #tpu.memory_space<vmem>>, vector<128x32xf32>,
    return
  }
  func.func @transform_0(%arg0: i32) -> (i32, i32) {
    %c0_i32 = arith.constant 0 : i32
    %c0_i32_0 = arith.constant 0 : i32
    return %arg0, %c0_i32 : i32, i32
  }
  func.func @transform_1(%arg0: i32) -> (i32, i32) {
    %c0_i32 = arith.constant 0 : i32
    %c0_i32_0 = arith.constant 0 : i32
    %c0_i32_1 = arith.constant 0 : i32
    return %c0_i32, %c0_i32_0 : i32, i32
  }
  func.func @transform_2(%arg0: i32) -> (i32, i32) {
    %c0_i32 = arith.constant 0 : i32
    %c0_i32_0 = arith.constant 0 : i32
    %c0_i32_1 = arith.constant 0 : i32
    return %c0_i32, %c0_i32_0 : i32, i32
  }
  func.func @transform_3(%arg0: i32) -> (i32, i32) {
    %c0_i32 = arith.constant 0 : i32
    %c0_i32_0 = arith.constant 0 : i32
    %c0_i32_1 = arith.constant 0 : i32
    return %c0_i32, %c0_i32_0 : i32, i32
  }
  func.func @transform_4(%arg0: i32) -> (i32, i32) {
    %c0_i32 = arith.constant 0 : i32
    %c0_i32_0 = arith.constant 0 : i32
    %c0_i32_1 = arith.constant 0 : i32
    return %c0_i32, %c0_i32_0 : i32, i32
  }
  func.func @transform_5(%arg0: i32) -> (i32, i32) {
    %c0_i32 = arith.constant 0 : i32
    %c0_i32_0 = arith.constant 0 : i32
    %c0_i32_1 = arith.constant 0 : i32
    return %c0_i32, %c0_i32_0 : i32, i32
  }
  func.func @transform_6(%arg0: i32) -> (i32, i32) {
    %c0_i32 = arith.constant 0 : i32
    %c0_i32_0 = arith.constant 0 : i32
    %c0_i32_1 = arith.constant 0 : i32
    return %c0_i32, %c0_i32_0 : i32, i32
  }
  func.func @transform_7(%arg0: i32) -> (i32, i32) {
    %c0_i32 = arith.constant 0 : i32
    %c0_i32_0 = arith.constant 0 : i32
    %c0_i32_1 = arith.constant 0 : i32
    return %c0_i32, %c0_i32_0 : i32, i32
  }
  func.func @transform_8(%arg0: i32) -> (i32, i32) {
    %c0_i32 = arith.constant 0 : i32
    %c0_i32_0 = arith.constant 0 : i32
    %c0_i32_1 = arith.constant 0 : i32
    return %c0_i32, %c0_i32_0 : i32, i32
  }
  func.func @transform_9(%arg0: i32) -> (i32, i32) {
    %c0_i32 = arith.constant 0 : i32
    %c0_i32_0 = arith.constant 0 : i32
    %c0_i32_1 = arith.constant 0 : i32
    return %c0_i32, %c0_i32_0 : i32, i32
  }
  func.func @transform_10(%arg0: i32) -> (i32, i32) {
    %c0_i32 = arith.constant 0 : i32
    %c0_i32_0 = arith.constant 0 : i32
    %c0_i32_1 = arith.constant 0 : i32
    return %c0_i32, %c0_i32_0 : i32, i32
  }
  func.func @transform_11(%arg0: i32) -> (i32, i32) {
    %c0_i32 = arith.constant 0 : i32
    %c0_i32_0 = arith.constant 0 : i32
    %c0_i32_1 = arith.constant 0 : i32
    return %c0_i32, %c0_i32_0 : i32, i32
  }
  func.func @transform_12(%arg0: i32) -> (i32, i32) {
    %c0_i32 = arith.constant 0 : i32
    %c0_i32_0 = arith.constant 0 : i32
    %c0_i32_1 = arith.constant 0 : i32
    return %c0_i32, %c0_i32_0 : i32, i32
  }
  func.func @transform_13(%arg0: i32) -> (i32, i32) {
    %c0_i32 = arith.constant 0 : i32
    %c0_i32_0 = arith.constant 0 : i32
    %c0_i32_1 = arith.constant 0 : i32
    return %c0_i32, %c0_i32_0 : i32, i32
  }
  func.func @transform_14(%arg0: i32) -> (i32, i32) {
    %c0_i32 = arith.constant 0 : i32
    %c0_i32_0 = arith.constant 0 : i32
    %c0_i32_1 = arith.constant 0 : i32
    return %c0_i32, %c0_i32_0 : i32, i32
  }
  func.func @transform_15(%arg0: i32) -> (i32, i32) {
    %c0_i32 = arith.constant 0 : i32
    %c0_i32_0 = arith.constant 0 : i32
    return %arg0, %c0_i32 : i32, i32
  }
}

</mosaic_0001>

<bundles_post_ra>
// kernel: st_att_model.1
= control target key start
LH: loop header
LB: loop body
LE: loop exit
PB: predicated region body
PF: predicated region fallthrough
CT: control target
= control target key end

     0   :  { %s10010_s0 = inlined_call_operand.vmem [shape: f32[256,64], index: 0, kind: input, shape index: {}]   ;;  %s10011_s1 = inlined_call_operand.vmem [shape: bf16[64,192], index: 1, kind: input, shape index: {}]   ;;  %s10012_s2 = inlined_call_operand.vmem [shape: f32[1,192], index: 2, kind: input, shape index: {}]   ;;  %s10013_s3 = inlined_call_operand.vmem [shape: f32[128,128], index: 3, kind: input, shape index: {}]   ;;  %s10014_s4 = inlined_call_operand.vmem [shape: f32[128,128], index: 4, kind: input, shape index: {}]   ;;  %s10015_s5 = inlined_call_operand.vmem [shape: bf16[64,64], index: 5, kind: input, shape index: {}]   ;;  %s10016_s6 = inlined_call_operand.vmem [shape: f32[1,64], index: 6, kind: input, shape index: {}]   ;;  %s10017_s7 = inlined_call_operand.vmem [shape: bf16[64,64], index: 7, kind: input, shape index: {}]   ;;  %s10018_s8 = inlined_call_operand.vmem [shape: f32[1,64], index: 8, kind: input, shape index: {}]   ;;  %s10019_s9 = inlined_call_operand.vmem [shape: bf16[64,32], index: 9, kind: input, shape index: {}]   ;;  %s10020_s10 = inlined_call_operand.vmem [shape: f32[1,32], index: 10, kind: input, shape index: {}]   ;;  %s10021_s11 = inlined_call_operand.vmem [shape: bf16[32,32], index: 11, kind: input, shape index: {}]   ;;  %s10022_s12 = inlined_call_operand.vmem [shape: f32[1,32], index: 12, kind: input, shape index: {}]   ;;  %s10023_s13 = inlined_call_operand.vmem [shape: bf16[32,32], index: 13, kind: input, shape index: {}]   ;;  %s10024_s14 = inlined_call_operand.vmem [shape: f32[1,32], index: 14, kind: input, shape index: {}]   ;;  %s10025_s15 = inlined_call_operand.hbm [shape: f32[256,32], index: 15, kind: output, shape index: {}]  }
   0x1   :  { %10069 = sst [smem:[#allocation72_spill]] %s10010_s0 }
   0x2   :  { %10070 = sst [smem:[#allocation73_spill]] %s10011_s1 }
   0x3   :  { %20 = vsyncpa [#allocation3], 0 }
   0x4   :  { %22 = vsyncpa [#allocation3 + $0x1], 0  ;;  %s6744_s18 = smov 0   ;;  %s6746_s19 = smov 0  }
   0x5   :  { %s6748_s20 = smov 0   ;;  %s6750_s21 = smov 0  }
   0x6 LB: > { %10071 = sst [smem:[#allocation5_spill]] %s6634_s18  ;;  %s6765_s22 = sadd.s32 4294967295, %s6646_s21   ;;  %s6646_s21 = sphi %s6750_s21, %s10272_s21   ;;  %s6642_s20 = sphi %s6748_s20, %s10274_s20   ;;  %s6638_s19 = sphi %s6746_s19, %s10276_s19   ;;  %s6634_s18 = sphi %s6744_s18, %s10275_s18  }
   0x7   : > { %10072 = sst [smem:[#allocation6_spill]] %s6642_s20  ;;  %s5333_s23 = sadd.s32 4294967294, %s6646_s21  }
   0x8   : > { %10073 = sst [smem:[#allocation7_spill]] %s6646_s21  ;;  %s6769_s24 = sadd.s32 1, %s6646_s21  }
   0x9   : > { %10074 = sst [smem:[#allocation8_spill]] %s6769_s24  ;;  %s355_s25 = sadd.s32 1, %s6642_s20 }
   0xa   : > { %s352_s26 = ssub.s32 %s6646_s21, %s6769_s24  ;;  %p365_p0 = scmp.ne.s32.totalorder %s6642_s20, %s6638_s19 }
   0xb   : > { %p353_p1 = scmp.eq.s32.totalorder %s352_s26, 0  ;;  %p366_p2 = scmp.eq.s32.totalorder %s6765_s22, 1 }
   0xc   : > { %p371_p3 = scmp.ne.s32.totalorder %s6638_s19, %s6634_s18  ;;  %p372_p4 = scmp.eq.s32.totalorder %s5333_s23, 1 }
   0xd   : > { %s6780_s27 = scalar_select %p353_p1, %s6642_s20, %s355_s25  }
   0xe   : > { %p6782_p5 = por %p366_p2, %p365_p0  ;;  %p6786_p6 = por %p372_p4, %p371_p3 }
   0xf   : > { %10075 = sst [smem:[#allocation9_spill]] %s6780_s27  ;;  %p5336_p7 = scmp.ge.s32.totalorder %s6646_s21, 1 }
  0x10   : > { %s10077_s29 = scalar_select %p6786_p6, 1, 0 }
  0x11   : > { %p441_p8 = scmp.lt.s32.totalorder %s6646_s21, 3 }
  0x12   : > { %10078 = sst [smem:[#allocation10_spill]] %s10077_s29 }
  0x13   : > { %p442_p9 = pnand %p5336_p7, %p441_p8 }
  0x15   : > { %445 = sbr.rel (%p442_p9) target bundleno = 4076 (0xfec), region = 80 }
  0x1a   : > { %s10079_s1 = sld [smem:[#allocation73_spill]]  ;;  %s5338_s25 = sshll.u32 %s6765_s22, 4  ;;  %vm575_vm0 = vcmask 523264   ;;  %v529_v48 = vld [vmem:[%s10012_s2] sm:$0x3]  ;;  %vm818_vm1 = vcmask 64512  }
  0x1b   : > { %p490_p10 = scmp.lt.s32.totalorder %s5338_s25, 31  ;;  %s10080_s0 = sld [smem:[#allocation72_spill]]  ;;  %v6881_v49 = vperm.slane %v529_v48, 0  ;;  %v6883_v51 = vperm.slane %v529_v48, 1  ;;  %vm2411_vm2 = vcmask 130048   ;;  %vm2428_vm3 = vcmask 195584  }
  0x1c   : > { %s6649_s20 = smov 120   ;;  %s10065_s24 = smov 96   ;;  %vm4189_vm4 = vcmask 261120  }
  0x1d   : > { %s10278_s25 = smov (!%p490_p10, %s5338_s25), 31  ;;  %s10050_s27 = smov 80  }
  0x1e   : > { %s5339_s23 = sshll.u32 %s10278_s25, 3  ;;  %s6648_s25 = smov 104  }
  0x1f   : > { %s10052_s29 = smov 88   ;;  %s6653_s30 = smov 112  }
  0x20   : > { %v5366_v0 = vld [vmem:[%s10079_s1 + $0x30] sm:$0xf]  ;;  %v5584_v1 = vld [vmem:[%s10079_s1 + $0x34] sm:$0xf0]  ;;  %v5583_v2 = vld [vmem:[%s10079_s1 + $0x34] sm:$0xf] }
  0x21   : > { %v5367_v3 = vor.u32 %v5584_v1, %v5366_v0  ;;  %v5368_v4 = vld [vmem:[%s10079_s1 + $0x38] sm:$0xf0]  ;;  %v5358_v5 = vld [vmem:[%s10079_s1 + $0x20] sm:$0xf]  ;;  %v5582_v6 = vld [vmem:[%s10079_s1 + $0x24] sm:$0xf0]  ;;  %s6844_s26 = scalar_lea.vmem %s10080_s0, %s5339_s23 }
  0x22   : > { %v5371_v7 = vor.u32 %v5583_v2, %v5368_v4  ;;  %v5581_v8 = vld [vmem:[%s10079_s1 + $0x24] sm:$0xf]  ;;  %v5360_v9 = vld [vmem:[%s10079_s1 + $0x28] sm:$0xf0]  ;;  %v5359_v10 = vor.u32 %v5582_v6, %v5358_v5  ;;  %v5350_v12 = vld [vmem:[%s10079_s1 + $0x10] sm:$0xf] }
  0x23   : > { %604 = vmatpush.bf16.msra.mxu0 %v5367_v3  ;;  %v5363_v11 = vor.u32 %v5581_v8, %v5360_v9  ;;  %v5580_v13 = vld [vmem:[%s10079_s1 + $0x14] sm:$0xf0]  ;;  %v5579_v14 = vld [vmem:[%s10079_s1 + $0x14] sm:$0xf]  ;;  %v5352_v15 = vld [vmem:[%s10079_s1 + $0x18] sm:$0xf0] }
  0x24   : > { %653 = vmatpush.bf16.msra.mxu1 %v5371_v7  ;;  %v5351_v16 = vor.u32 %v5580_v13, %v5350_v12  ;;  %v5355_v17 = vor.u32 %v5579_v14, %v5352_v15  ;;  %v5342_v18 = vld [vmem:[%s10079_s1] sm:$0xf]  ;;  %v5578_v19 = vld [vmem:[%s10079_s1 + $0x4] sm:$0xf0]  ;;  %v5577_v20 = vld [vmem:[%s10079_s1 + $0x4] sm:$0xf] }
  0x25   : > { %v5344_v21 = vld [vmem:[%s10079_s1 + $0x8] sm:$0xf0]  ;;  %v5343_v22 = vor.u32 %v5578_v19, %v5342_v18  ;;  %v497_v24 = vld [vmem:[%s6844_s26] sm:$0xff]  ;;  %v499_v27 = vld [vmem:[%s6844_s26 + $0x10] sm:$0xff]  ;;  %s6654_s16 = smov 64   ;;  %s10048_s17 = smov 72  }
  0x26   : > { %v5347_v23 = vor.u32 %v5577_v20, %v5344_v21  ;;  %v498_v25 = vld [vmem:[%s6844_s26 + $0x8] sm:$0xff]  ;;  %v500_v28 = vld [vmem:[%s6844_s26 + $0x18] sm:$0xff]  ;;  %v501_v30 = vld [vmem:[%s6844_s26 + $0x20] sm:$0xff]  ;;  %s6656_s23 = smov 56   ;;  %s6657_s18 = smov 32  }
  0x27   : > { %605 = vmatpush.bf16.msra.mxu0 %v5359_v10  ;;  %v513_v26 = vpack.c.bf16 %v498_v25, %v497_v24  ;;  %v514_v29 = vpack.c.bf16 %v500_v28, %v499_v27  ;;  %v502_v31 = vld [vmem:[%s6844_s26 + $0x28] sm:$0xff]  ;;  %v503_v33 = vld [vmem:[%s6844_s26 + $0x30] sm:$0xff]  ;;  %v504_v34 = vld [vmem:[%s6844_s26 + $0x38] sm:$0xff]  ;;  %s10067_s21 = smov 24  }
  0x28   : > { %654 = vmatpush.bf16.msra.mxu1 %v5363_v11  ;;  %v515_v32 = vpack.c.bf16 %v502_v31, %v501_v30  ;;  %v516_v35 = vpack.c.bf16 %v504_v34, %v503_v33  ;;  %v505_v36 = vld [vmem:[%s6844_s26 + $0x40] sm:$0xff]  ;;  %v506_v37 = vld [vmem:[%s6844_s26 + $0x48] sm:$0xff]  ;;  %v507_v39 = vld [vmem:[%s6844_s26 + $0x50] sm:$0xff] }
  0x29   : > { %v517_v38 = vpack.c.bf16 %v506_v37, %v505_v36  ;;  %v508_v40 = vld [vmem:[%s6844_s26 + $0x58] sm:$0xff]  ;;  %v509_v42 = vld [vmem:[%s6844_s26 + $0x60] sm:$0xff]  ;;  %v510_v43 = vld [vmem:[%s6844_s26 + $0x68] sm:$0xff] }
  0x2a   : > { %v518_v41 = vpack.c.bf16 %v508_v40, %v507_v39  ;;  %v519_v44 = vpack.c.bf16 %v510_v43, %v509_v42  ;;  %v511_v45 = vld [vmem:[%s6844_s26 + $0x70] sm:$0xff]  ;;  %v512_v46 = vld [vmem:[%s6844_s26 + $0x78] sm:$0xff] }
  0x2b   : > { %606 = vmatpush.bf16.msra.mxu0 %v5351_v16  ;;  %v520_v47 = vpack.c.bf16 %v512_v46, %v511_v45 }
  0x2c   : > { %655 = vmatpush.bf16.msra.mxu1 %v5355_v17 }
  0x2f   : > { %607 = vmatpush.bf16.msra.mxu0 %v5343_v22 }
  0x30   : > { %656 = vmatpush.bf16.msra.mxu1 %v5347_v23 }
  0x32   : > { %5372 = vmatmul.msk.bf16.vlgmr.msra.gmra.mxu0 %vm575_vm0, %v513_v26 }
  0x33   : > { %5380 = vmatmul.msk.bf16.vlgmr.msra.gmra.mxu1 %vm575_vm0, %v513_v26 }
  0x42   : > { %5373 = vmatmul.msk.bf16.gmra.mxu0 %vm575_vm0, %v514_v29 }
  0x43   : > { %5381 = vmatmul.msk.bf16.gmra.mxu1 %vm575_vm0, %v514_v29 }
  0x52   : > { %5374 = vmatmul.msk.bf16.gmra.mxu0 %vm575_vm0, %v515_v32 }
  0x53   : > { %5382 = vmatmul.msk.bf16.gmra.mxu1 %vm575_vm0, %v515_v32 }
  0x62   : > { %5375 = vmatmul.msk.bf16.gmra.mxu0 %vm575_vm0, %v516_v35 }
  0x63   : > { %5383 = vmatmul.msk.bf16.gmra.mxu1 %vm575_vm0, %v516_v35 }
  0x72   : > { %5376 = vmatmul.msk.bf16.gmra.mxu0 %vm575_vm0, %v517_v38 }
  0x73   : > { %5384 = vmatmul.msk.bf16.gmra.mxu1 %vm575_vm0, %v517_v38 }
  0x82   : > { %5377 = vmatmul.msk.bf16.gmra.mxu0 %vm575_vm0, %v518_v41 }
  0x83   : > { %5385 = vmatmul.msk.bf16.gmra.mxu1 %vm575_vm0, %v518_v41 }
  0x92   : > { %5378 = vmatmul.msk.bf16.gmra.mxu0 %vm575_vm0, %v519_v44 }
  0x93   : > { %5386 = vmatmul.msk.bf16.gmra.mxu1 %vm575_vm0, %v519_v44 }
  0xa2   : > { %5379 = vmatmul.msk.bf16.gmra.mxu0 %vm575_vm0, %v520_v47 }
  0xa3   : > { %5387 = vmatmul.msk.bf16.gmra.mxu1 %vm575_vm0, %v520_v47 }
  0xaf   : > { %v609_v50 = vpop.f32.mrf.mxu0 }
  0xb0   : > { %v658_v52 = vpop.f32.mrf.mxu1  ;;  %v610_v53 = vadd.f32 %v609_v50, %v6881_v49 }
  0xb1   : > { %v659_v54 = vadd.f32 %v658_v52, %v6883_v51 }
  0xb2   : > { %v698_v55 = vmax.f32 %v610_v53, 0.0 }
  0xb3   : > { %v699_v56 = vmax.f32 %v659_v54, 0.0 }
  0xb5   : > { %v730_v62 = vpack.c.bf16 %v699_v56, %v698_v55 }
  0xb7   : > { %v611_v57 = vpop.f32.mrf.mxu0  ;;  %v778_v1 = vunpack.c.l.b16 %v730_v62  ;;  %v2477_v2 = vunpack.c.h.b16 %v730_v62 }
  0xb8   : > { %v612_v58 = vadd.f32 %v611_v57, %v6881_v49  ;;  %v660_v59 = vpop.f32.mrf.mxu1 }
  0xb9   : > { %v661_v60 = vadd.f32 %v660_v59, %v6883_v51 }
  0xba   : > { %v700_v61 = vmax.f32 %v612_v58, 0.0 }
  0xbb   : > { %v701_v63 = vmax.f32 %v661_v60, 0.0 }
  0xbd   : > { %v731_v0 = vpack.c.bf16 %v701_v63, %v700_v61 }
  0xbf   : > { %v779_v3 = vunpack.c.l.b16 %v731_v0  ;;  %v2478_v4 = vunpack.c.h.b16 %v731_v0  ;;  %v614_v5 = vpop.f32.mrf.mxu0 }
  0xc0   : > { %v663_v6 = vpop.f32.mrf.mxu1  ;;  %v615_v9 = vadd.f32 %v614_v5, %v6881_v49 }
  0xc1   : > { %v6889_v7 = vpack.c.b16 %v779_v3, %v778_v1  ;;  %v6891_v8 = vpack.c.b16 %v2478_v4, %v2477_v2  ;;  %v664_v10 = vadd.f32 %v663_v6, %v6883_v51 }
  0xc2   : > { %v702_v11 = vmax.f32 %v615_v9, 0.0 }
  0xc3   : > { %10081 = vst [vmem:[#allocation11_spill] sm:$0xff] %v6889_v7  ;;  %1849 = vrot.lane.b32.xlu0 %v6889_v7, %s6648_s25  ;;  %1141 = vrot.lane.b32.xlu2 %v6889_v7, %s6649_s20  ;;  %v703_v12 = vmax.f32 %v664_v10, 0.0 }
  0xc4   : > { %10082 = vst [vmem:[#allocation12_spill] sm:$0xff] %v6891_v8  ;;  %802 = vrot.lane.b32.xlu1 %v6889_v7, %s10065_s24 }
  0xc5   : > { %v732_v16 = vpack.c.bf16 %v703_v12, %v702_v11 }
  0xc7   : > { %v616_v13 = vpop.f32.mrf.mxu0  ;;  %v780_v20 = vunpack.c.l.b16 %v732_v16  ;;  %v2479_v21 = vunpack.c.h.b16 %v732_v16 }
  0xc8   : > { %v617_v14 = vadd.f32 %v616_v13, %v6881_v49  ;;  %v665_v15 = vpop.f32.mrf.mxu1 }
  0xc9   : > { %v666_v17 = vadd.f32 %v665_v15, %v6883_v51 }
  0xca   : > { %v704_v18 = vmax.f32 %v617_v14, 0.0 }
  0xcb   : > { %v705_v19 = vmax.f32 %v666_v17, 0.0  ;;  %1511 = vrot.lane.b32.xlu2 %v6889_v7, %s10050_s27 }
  0xcc   : > { %1157 = vrot.lane.b32.xlu1 %v6889_v7, %s10052_s29 }
  0xcd   : > { %v733_v22 = vpack.c.bf16 %v705_v19, %v704_v18 }
  0xcf   : > { %v781_v23 = vunpack.c.l.b16 %v733_v22  ;;  %v2480_v24 = vunpack.c.h.b16 %v733_v22  ;;  %v619_v25 = vpop.f32.mrf.mxu0 }
  0xd0   : > { %v668_v26 = vpop.f32.mrf.mxu1  ;;  %v620_v29 = vadd.f32 %v619_v25, %v6881_v49 }
  0xd1   : > { %v6907_v27 = vpack.c.b16 %v781_v23, %v780_v20  ;;  %v6909_v28 = vpack.c.b16 %v2480_v24, %v2479_v21  ;;  %v669_v30 = vadd.f32 %v668_v26, %v6883_v51 }
  0xd2   : > { %v706_v31 = vmax.f32 %v620_v29, 0.0 }
  0xd3   : > { %10083 = vst [vmem:[#allocation13_spill] sm:$0xff] %v6907_v27  ;;  %804 = vrot.lane.b32.xlu0 %v6907_v27, %s10065_s24  ;;  %1495 = vrot.lane.b32.xlu2 %v6889_v7, %s6653_s30  ;;  %v707_v32 = vmax.f32 %v669_v30, 0.0 }
  0xd4   : > { %10084 = vst [vmem:[#allocation14_spill] sm:$0xff] %v6909_v28  ;;  %1068 = vrot.lane.b32.xlu1 %v6889_v7, %s6654_s16 }
  0xd5   : > { %v734_v36 = vpack.c.bf16 %v707_v32, %v706_v31 }
  0xd7   : > { %v621_v33 = vpop.f32.mrf.mxu0  ;;  %v2481_v40 = vunpack.c.h.b16 %v734_v36  ;;  %v782_v48 = vunpack.c.l.b16 %v734_v36 }
  0xd8   : > { %v622_v34 = vadd.f32 %v621_v33, %v6881_v49  ;;  %v670_v35 = vpop.f32.mrf.mxu1 }
  0xd9   : > { %v671_v37 = vadd.f32 %v670_v35, %v6883_v51 }
  0xda   : > { %v708_v38 = vmax.f32 %v622_v34, 0.0 }
  0xdb   : > { %v709_v39 = vmax.f32 %v671_v37, 0.0  ;;  %1070 = vrot.lane.b32.xlu0 %v6907_v27, %s6654_s16  ;;  %1865 = vrot.lane.b32.xlu2 %v6889_v7, %s10048_s17 }
  0xdc   : > { %1159 = vrot.lane.b32.xlu1 %v6907_v27, %s10052_s29 }
  0xdd   : > { %v735_v41 = vpack.c.bf16 %v709_v39, %v708_v38 }
  0xdf   : > { %v2482_v42 = vunpack.c.h.b16 %v735_v41  ;;  %v624_v43 = vpop.f32.mrf.mxu0  ;;  %v783_v50 = vunpack.c.l.b16 %v735_v41 }
  0xe0   : > { %v673_v44 = vpop.f32.mrf.mxu1  ;;  %v625_v46 = vadd.f32 %v624_v43, %v6881_v49 }
  0xe1   : > { %v6927_v45 = vpack.c.b16 %v2482_v42, %v2481_v40  ;;  %v674_v47 = vadd.f32 %v673_v44, %v6883_v51  ;;  %v6937_v54 = vpack.c.b16 %v783_v50, %v782_v48 }
  0xe2   : > { %v710_v52 = vmax.f32 %v625_v46, 0.0 }
  0xe3   : > { %10085 = vst [vmem:[#allocation15_spill] sm:$0xff] %v6927_v45  ;;  %1867 = vrot.lane.b32.xlu0 %v6907_v27, %s10048_s17  ;;  %1143 = vrot.lane.b32.xlu2 %v6907_v27, %s6649_s20  ;;  %v711_v53 = vmax.f32 %v674_v47, 0.0 }
  0xe4   : > { %1497 = vrot.lane.b32.xlu1 %v6907_v27, %s6653_s30  ;;  %10086 = vst [vmem:[#allocation16_spill] sm:$0xff] %v6937_v54 }
  0xe5   : > { %v736_v58 = vpack.c.bf16 %v711_v53, %v710_v52 }
  0xe7   : > { %v626_v55 = vpop.f32.mrf.mxu0  ;;  %v784_v62 = vunpack.c.l.b16 %v736_v58  ;;  %v2483_v63 = vunpack.c.h.b16 %v736_v58 }
  0xe8   : > { %v627_v56 = vadd.f32 %v626_v55, %v6881_v49  ;;  %v675_v57 = vpop.f32.mrf.mxu1 }
  0xe9   : > { %v676_v59 = vadd.f32 %v675_v57, %v6883_v51 }
  0xea   : > { %v712_v60 = vmax.f32 %v627_v56, 0.0 }
  0xeb   : > { %v713_v61 = vmax.f32 %v676_v59, 0.0  ;;  %1869 = vrot.lane.b32.xlu0 %v6937_v54, %s10048_s17  ;;  %1513 = vrot.lane.b32.xlu2 %v6907_v27, %s10050_s27 }
  0xec   : > { %1851 = vrot.lane.b32.xlu1 %v6907_v27, %s6648_s25 }
  0xed   : > { %v737_v0 = vpack.c.bf16 %v713_v61, %v712_v60 }
  0xef   : > { %v785_v1 = vunpack.c.l.b16 %v737_v0  ;;  %v2484_v2 = vunpack.c.h.b16 %v737_v0  ;;  %v629_v3 = vpop.f32.mrf.mxu0 }
  0xf0   : > { %v678_v4 = vpop.f32.mrf.mxu1  ;;  %v630_v9 = vadd.f32 %v629_v3, %v6881_v49 }
  0xf1   : > { %v6947_v5 = vpack.c.b16 %v785_v1, %v784_v62  ;;  %v6949_v6 = vpack.c.b16 %v2484_v2, %v2483_v63  ;;  %v679_v10 = vadd.f32 %v678_v4, %v6883_v51 }
  0xf2   : > { %v714_v11 = vmax.f32 %v630_v9, 0.0 }
  0xf3   : > { %10087 = vst [vmem:[#allocation17_spill] sm:$0xff] %v6947_v5  ;;  %806 = vrot.lane.b32.xlu2 %v6937_v54, %s10065_s24  ;;  %1163 = vrot.lane.b32.xlu0 %v6947_v5, %s10052_s29  ;;  %v715_v12 = vmax.f32 %v679_v10, 0.0 }
  0xf4   : > { %10088 = vst [vmem:[#allocation18_spill] sm:$0xff] %v6949_v6  ;;  %1161 = vrot.lane.b32.xlu1 %v6937_v54, %s10052_s29 }
  0xf5   : > { %v738_v18 = vpack.c.bf16 %v715_v12, %v714_v11 }
  0xf7   : > { %v631_v13 = vpop.f32.mrf.mxu0  ;;  %v2485_v20 = vunpack.c.h.b16 %v738_v18  ;;  %v786_v30 = vunpack.c.l.b16 %v738_v18 }
  0xf8   : > { %v632_v14 = vadd.f32 %v631_v13, %v6881_v49  ;;  %v680_v15 = vpop.f32.mrf.mxu1 }
  0xf9   : > { %v681_v16 = vadd.f32 %v680_v15, %v6883_v51 }
  0xfa   : > { %v716_v17 = vmax.f32 %v632_v14, 0.0 }
  0xfb   : > { %v717_v19 = vmax.f32 %v681_v16, 0.0  ;;  %1145 = vrot.lane.b32.xlu2 %v6937_v54, %s6649_s20  ;;  %1074 = vrot.lane.b32.xlu0 %v6947_v5, %s6654_s16 }
  0xfc   : > { %1072 = vrot.lane.b32.xlu1 %v6937_v54, %s6654_s16 }
  0xfd   : > { %v739_v21 = vpack.c.bf16 %v717_v19, %v716_v17 }
  0xff   : > { %v2486_v22 = vunpack.c.h.b16 %v739_v21  ;;  %v634_v23 = vpop.f32.mrf.mxu0  ;;  %v787_v31 = vunpack.c.l.b16 %v739_v21 }
 0x100   : > { %v683_v24 = vpop.f32.mrf.mxu1  ;;  %v635_v26 = vadd.f32 %v634_v23, %v6881_v49 }
 0x101   : > { %v6967_v25 = vpack.c.b16 %v2486_v22, %v2485_v20  ;;  %v684_v29 = vadd.f32 %v683_v24, %v6883_v51  ;;  %v6977_v35 = vpack.c.b16 %v787_v31, %v786_v30 }
 0x102   : > { %v718_v32 = vmax.f32 %v635_v26, 0.0 }
 0x103   : > { %10089 = vst [vmem:[#allocation19_spill] sm:$0xff] %v6967_v25  ;;  %1515 = vrot.lane.b32.xlu2 %v6937_v54, %s10050_s27  ;;  %1501 = vrot.lane.b32.xlu0 %v6947_v5, %s6653_s30  ;;  %v719_v33 = vmax.f32 %v684_v29, 0.0 }
 0x104   : > { %1855 = vrot.lane.b32.xlu1 %v6947_v5, %s6648_s25 }
 0x105   : > { %v740_v38 = vpack.c.bf16 %v719_v33, %v718_v32 }
 0x107   : > { %v636_v34 = vpop.f32.mrf.mxu0  ;;  %v788_v42 = vunpack.c.l.b16 %v740_v38  ;;  %v2487_v43 = vunpack.c.h.b16 %v740_v38 }
 0x108   : > { %v637_v36 = vadd.f32 %v636_v34, %v6881_v49  ;;  %v685_v37 = vpop.f32.mrf.mxu1 }
 0x109   : > { %v686_v39 = vadd.f32 %v685_v37, %v6883_v51 }
 0x10a   : > { %v720_v40 = vmax.f32 %v637_v36, 0.0 }
 0x10b   : > { %v721_v41 = vmax.f32 %v686_v39, 0.0  ;;  %1499 = vrot.lane.b32.xlu2 %v6937_v54, %s6653_s30  ;;  %1076 = vrot.lane.b32.xlu0 %v6977_v35, %s6654_s16 }
 0x10c   : > { %810 = vrot.lane.b32.xlu1 %v6977_v35, %s10065_s24 }
 0x10d   : > { %v741_v44 = vpack.c.bf16 %v721_v41, %v720_v40 }
 0x10f   : > { %v789_v46 = vunpack.c.l.b16 %v741_v44  ;;  %v2488_v47 = vunpack.c.h.b16 %v741_v44  ;;  %v639_v48 = vpop.f32.mrf.mxu0 }
 0x110   : > { %v688_v50 = vpop.f32.mrf.mxu1  ;;  %v640_v55 = vadd.f32 %v639_v48, %v6881_v49 }
 0x111   : > { %v6987_v52 = vpack.c.b16 %v789_v46, %v788_v42  ;;  %v6989_v53 = vpack.c.b16 %v2488_v47, %v2487_v43  ;;  %v689_v56 = vadd.f32 %v688_v50, %v6883_v51 }
 0x112   : > { %v722_v57 = vmax.f32 %v640_v55, 0.0 }
 0x113   : > { %10090 = vst [vmem:[#allocation20_spill] sm:$0xff] %v6989_v53  ;;  %1853 = vrot.lane.b32.xlu2 %v6937_v54, %s6648_s25  ;;  %1432 = vrot.lane.b32.xlu0 %v6987_v52, %s6656_s23  ;;  %v723_v58 = vmax.f32 %v689_v56, 0.0 }
 0x114   : > { %1149 = vrot.lane.b32.xlu1 %v6977_v35, %s6649_s20 }
 0x115   : > { %v742_v62 = vpack.c.bf16 %v723_v58, %v722_v57 }
 0x117   : > { %v641_v59 = vpop.f32.mrf.mxu0  ;;  %v790_v2 = vunpack.c.l.b16 %v742_v62  ;;  %v2489_v3 = vunpack.c.h.b16 %v742_v62 }
 0x118   : > { %v642_v60 = vadd.f32 %v641_v59, %v6881_v49  ;;  %v690_v61 = vpop.f32.mrf.mxu1 }
 0x119   : > { %v691_v63 = vadd.f32 %v690_v61, %v6883_v51 }
 0x11a   : > { %v724_v0 = vmax.f32 %v642_v60, 0.0 }
 0x11b   : > { %v725_v1 = vmax.f32 %v691_v63, 0.0  ;;  %808 = vrot.lane.b32.xlu2 %v6947_v5, %s10065_s24 }
 0x11c   : > { %1519 = vrot.lane.b32.xlu1 %v6977_v35, %s10050_s27 }
 0x11d   : > { %v743_v4 = vpack.c.bf16 %v725_v1, %v724_v0  ;;  %v7005_v9 = vpop.permute.xlu2 %1141 }
 0x11f   : > { %v791_v10 = vunpack.c.l.b16 %v743_v4  ;;  %v2490_v11 = vunpack.c.h.b16 %v743_v4  ;;  %v644_v14 = vpop.f32.mrf.mxu0 }
 0x120   : > { %v693_v15 = vpop.f32.mrf.mxu1  ;;  %v645_v20 = vadd.f32 %v644_v14, %v6881_v49 }
 0x121   : > { %v7007_v12 = vpack.c.b16 %v791_v10, %v790_v2  ;;  %v7009_v13 = vpack.c.b16 %v2490_v11, %v2489_v3  ;;  %v694_v21 = vadd.f32 %v693_v15, %v6883_v51 }
 0x122   : > { %v726_v24 = vmax.f32 %v645_v20, 0.0 }
 0x123   : > { %10091 = vst [vmem:[#allocation21_spill] sm:$0xff] %v7009_v13  ;;  %814 = vrot.lane.b32.xlu0 %v7007_v12, %s10065_s24  ;;  %1147 = vrot.lane.b32.xlu2 %v6947_v5, %s6649_s20  ;;  %v727_v26 = vmax.f32 %v694_v21, 0.0 }
 0x124   : > { %1873 = vrot.lane.b32.xlu1 %v6977_v35, %s10048_s17 }
 0x125   : > { %v7017_v16 = vpop.permute.xlu2 %1511 }
 0x127   : > { %v646_v17 = vpop.f32.mrf.mxu0 }
 0x128   : > { %v695_v18 = vpop.f32.mrf.mxu1  ;;  %v647_v22 = vadd.f32 %v646_v17, %v6881_v49  ;;  %v744_v49 = vpack.c.bf16 %v727_v26, %v726_v24 }
 0x129   : > { %v696_v23 = vadd.f32 %v695_v18, %v6883_v51 }
 0x12a   : > { %v728_v29 = vmax.f32 %v647_v22, 0.0  ;;  %v792_v51 = vunpack.c.l.b16 %v744_v49  ;;  %v2491_v47 = vunpack.c.h.b16 %v744_v49 }
 0x12b   : > { %1169 = vrot.lane.b32.xlu0 %v7007_v12, %s10052_s29  ;;  %1517 = vrot.lane.b32.xlu2 %v6947_v5, %s10050_s27  ;;  %v729_v30 = vmax.f32 %v696_v23, 0.0 }
 0x12c   : > { %1503 = vrot.lane.b32.xlu1 %v6977_v35, %s6653_s30 }
 0x12d   : > { %v7025_v19 = vpop.permute.xlu2 %1495  ;;  %v745_v33 = vpack.c.bf16 %v729_v30, %v728_v29 }
 0x12e   : > { %10092 = vst [vmem:[#allocation22_spill] sm:$0xff] %v7025_v19 }
 0x12f   : > { %v793_v34 = vunpack.c.l.b16 %v745_v33  ;;  %v2492_v48 = vunpack.c.h.b16 %v745_v33 }
 0x131   : > { %v7053_v39 = vpack.c.b16 %v793_v34, %v792_v51  ;;  %v7091_v57 = vpack.c.b16 %v2492_v48, %v2491_v47 }
 0x133   : > { %1877 = vrot.lane.b32.xlu0 %v7007_v12, %s10048_s17  ;;  %1871 = vrot.lane.b32.xlu2 %v6947_v5, %s10048_s17  ;;  %10094 = vst [vmem:[#allocation24_spill] sm:$0xff] %v7091_v57 }
 0x134   : > { %812 = vrot.lane.b32.xlu1 %v6987_v52, %s10065_s24 }
 0x135   : > { %v7037_v31 = vpop.permute.xlu2 %1865  ;;  %v7047_v36 = vpop.permute.xlu0 %1849 }
 0x136   : > { %v7039_v32 = vpop.permute.xlu1 %802 }
 0x13b   : > { %1153 = vrot.lane.b32.xlu0 %v7007_v12, %s6649_s20  ;;  %1165 = vrot.lane.b32.xlu2 %v6977_v35, %s10052_s29 }
 0x13c   : > { %1167 = vrot.lane.b32.xlu1 %v6987_v52, %s10052_s29 }
 0x13d   : > { %v7049_v37 = vpop.permute.xlu2 %1143 }
 0x13e   : > { %v7051_v38 = vpop.permute.xlu1 %1157 }
 0x143   : > { %816 = vrot.lane.b32.xlu0 %v7053_v39, %s10065_s24  ;;  %1857 = vrot.lane.b32.xlu2 %v6977_v35, %s6648_s25 }
 0x144   : > { %1505 = vrot.lane.b32.xlu1 %v6987_v52, %s6653_s30 }
 0x145   : > { %v7061_v40 = vpop.permute.xlu0 %804  ;;  %v7063_v41 = vpop.permute.xlu2 %1513 }
 0x146   : > { %v7065_v42 = vpop.permute.xlu1 %1068 }
 0x14b   : > { %1082 = vrot.lane.b32.xlu0 %v7053_v39, %s6654_s16  ;;  %1078 = vrot.lane.b32.xlu2 %v6987_v52, %s6654_s16 }
 0x14c   : > { %1859 = vrot.lane.b32.xlu1 %v6987_v52, %s6648_s25 }
 0x14d   : > { %v7073_v43 = vpop.permute.xlu0 %1070  ;;  %v7075_v44 = vpop.permute.xlu2 %806 }
 0x14e   : > { %v7077_v46 = vpop.permute.xlu1 %1159 }
 0x153   : > { %1879 = vrot.lane.b32.xlu0 %v7053_v39, %s10048_s17  ;;  %1521 = vrot.lane.b32.xlu2 %v6987_v52, %s10050_s27 }
 0x154   : > { %2849 = vrot.lane.b32.xlu1 %v6989_v53, %s6649_s20 }
 0x155   : > { %v7085_v50 = vpop.permute.xlu0 %1867  ;;  %v7087_v55 = vpop.permute.xlu2 %1145 }
 0x156   : > { %v7089_v56 = vpop.permute.xlu1 %1497 }
 0x157   : > { %10093 = vst [vmem:[#allocation23_spill] sm:$0xff] %v7089_v56 }
 0x15b   : > { %2853 = vrot.lane.b32.xlu0 %v7091_v57, %s6649_s20  ;;  %1151 = vrot.lane.b32.xlu2 %v6987_v52, %s6649_s20 }
 0x15c   : > { %1080 = vrot.lane.b32.xlu1 %v7007_v12, %s6654_s16  ;;  %s10170_s16 = smov 72  }
 0x15d   : > { %v7099_v58 = vpop.permute.xlu0 %1869  ;;  %v7101_v59 = vpop.permute.xlu2 %1515 }
 0x15e   : > { %v7103_v60 = vpop.permute.xlu1 %1851 }
 0x163   : > { %1424 = vrot.lane.b32.xlu0 %v6907_v27, %s6656_s23  ;;  %1875 = vrot.lane.b32.xlu2 %v6987_v52, %s10048_s17  ;;  %s6659_s17 = smov 48  }
 0x164   : > { %2851 = vrot.lane.b32.xlu1 %v7009_v13, %s6649_s20 }
 0x165   : > { %v7111_v61 = vpop.permute.xlu2 %1499  ;;  %v7113_v62 = vpop.permute.xlu0 %1163 }
 0x166   : > { %10095 = vst [vmem:[#allocation25_spill] sm:$0xff] %v7111_v61  ;;  %v7115_v63 = vpop.permute.xlu1 %1161 }
 0x16b   : > { %2841 = vrot.lane.b32.xlu0 %v6909_v28, %s6649_s20  ;;  %1523 = vrot.lane.b32.xlu2 %v7007_v12, %s10050_s27 }
 0x16c   : > { %1434 = vrot.lane.b32.xlu1 %v7007_v12, %s6656_s23 }
 0x16d   : > { %v7123_v0 = vpop.permute.xlu2 %1853  ;;  %v7125_v1 = vpop.permute.xlu0 %1074 }
 0x16e   : > { %v7127_v2 = vpop.permute.xlu1 %1072 }
 0x173   : > { %2839 = vrot.lane.b32.xlu0 %v6891_v8, %s6649_s20  ;;  %1507 = vrot.lane.b32.xlu2 %v7007_v12, %s6653_s30 }
 0x174   : > { %1155 = vrot.lane.b32.xlu1 %v7053_v39, %s6649_s20 }
 0x175   : > { %v7135_v3 = vpop.permute.xlu2 %808  ;;  %v7139_v10 = vpop.permute.xlu0 %1501 }
 0x176   : > { %v7137_v4 = vpop.permute.xlu1 %1855  ;;  %10096 = vst [vmem:[#allocation26_spill] sm:$0xff] %v7139_v10 }
 0x17b   : > { %2465 = vrot.lane.b32.xlu0 %v6937_v54, %s6657_s18  ;;  %1171 = vrot.lane.b32.xlu2 %v7053_v39, %s10052_s29 }
 0x17c   : > { %1436 = vrot.lane.b32.xlu1 %v7053_v39, %s6656_s23 }
 0x17d   : > { %v7147_v11 = vpop.permute.xlu2 %1147  ;;  %v7149_v15 = vpop.permute.xlu0 %1076 }
 0x17e   : > { %v811_v14 = vpop.permute.xlu1 %810 }
 0x17f   : > { %v856_v13 = vsel %vm818_vm1, %v811_v14, 0 }
 0x183   : > { %2825 = vrot.lane.b32.xlu0 %v6907_v27, %s10067_s21  ;;  %1525 = vrot.lane.b32.xlu2 %v7053_v39, %s10050_s27  ;;  %s10068_s27 = smov 8  }
 0x184   : > { %1509 = vrot.lane.b32.xlu1 %v7053_v39, %s6653_s30 }
 0x185   : > { %v7157_v17 = vpop.permute.xlu2 %1517  ;;  %v7165_v20 = vpop.permute.xlu0 %1432 }
 0x186   : > { %v7159_v18 = vpop.permute.xlu1 %1149 }
 0x18b   : > { %2469 = vrot.lane.b32.xlu0 %v6977_v35, %s6657_s18  ;;  %2847 = vrot.lane.b32.xlu2 %v6967_v25, %s6649_s20 }
 0x18c   : > { %1430 = vrot.lane.b32.xlu1 %v6977_v35, %s6656_s23 }
 0x18d   : > { %v7169_v21 = vpop.permute.xlu2 %1871 }
 0x18e   : > { %v7171_v22 = vpop.permute.xlu1 %1519 }
 0x193   : > { %1428 = vrot.lane.b32.xlu2 %v6947_v5, %s6656_s23 }
 0x194   : > { %1426 = vrot.lane.b32.xlu1 %v6937_v54, %s6656_s23 }
 0x195   : > { %v815_v23 = vpop.permute.xlu0 %814  ;;  %v7177_v24 = vpop.permute.xlu2 %1165 }
 0x196   : > { %v7179_v26 = vpop.permute.xlu1 %1873  ;;  %v862_v25 = vsel %vm818_vm1, %v815_v23, 0 }
 0x19b   : > { %1861 = vrot.lane.b32.xlu2 %v7007_v12, %s6648_s25 }
 0x19c   : > { %2463 = vrot.lane.b32.xlu1 %v6907_v27, %s6657_s18 }
 0x19d   : > { %v1170_v29 = vpop.permute.xlu0 %1169  ;;  %v7185_v30 = vpop.permute.xlu2 %1857 }
 0x19e   : > { %v7187_v49 = vpop.permute.xlu1 %1503 }
 0x19f   : > { %10097 = vst [vmem:[#allocation27_spill] sm:$0xff] %v7187_v49 }
 0x1a3   : > { %2845 = vrot.lane.b32.xlu2 %v6949_v6, %s6649_s20 }
 0x1a4   : > { %2823 = vrot.lane.b32.xlu1 %v6889_v7, %s10067_s21 }
 0x1a5   : > { %v7193_v33 = vpop.permute.xlu0 %1877  ;;  %v7195_v51 = vpop.permute.xlu2 %1078 }
 0x1a6   : > { %v813_v34 = vpop.permute.xlu1 %812 }
 0x1ab   : > { %2843 = vrot.lane.b32.xlu2 %v6927_v45, %s6649_s20  ;;  %s6660_s20 = smov 40  }
 0x1ac   : > { %2467 = vrot.lane.b32.xlu1 %v6947_v5, %s6657_s18 }
 0x1ad   : > { %v7201_v47 = vpop.permute.xlu0 %1153  ;;  %v7203_v48 = vpop.permute.xlu2 %1521 }
 0x1ae   : > { %v1168_v49 = vpop.permute.xlu1 %1167 }
 0x1b3   : > { %2461 = vrot.lane.b32.xlu2 %v6889_v7, %s6657_s18 }
 0x1b4   : > { %2827 = vrot.lane.b32.xlu1 %v6937_v54, %s10067_s21 }
 0x1b5   : > { %v817_v10 = vpop.permute.xlu0 %816  ;;  %v7209_v61 = vpop.permute.xlu2 %1151 }
 0x1b6   : > { %v7211_v56 = vpop.permute.xlu1 %1505  ;;  %v865_v19 = vsel %vm818_vm1, %v817_v10, 0 }
 0x1b7   : > { %10098 = vst [vmem:[#allocation28_spill] sm:$0xff] %v7211_v56  ;;  %867 = vmatpush.bf16.xpose.msra.mxu2 %v865_v19  ;;  %v859_v19 = vsel %vm818_vm1, %v813_v34, 0 }
 0x1bb   : > { %1422 = vrot.lane.b32.xlu2 %v6889_v7, %s6656_s23  ;;  %s10149_s23 = smov 88  }
 0x1bd   : > { %v1083_v8 = vpop.permute.xlu0 %1082  ;;  %v7216_v28 = vpop.permute.xlu2 %1875 }
 0x1be   : > { %v7218_v45 = vpop.permute.xlu1 %1859  ;;  %5602 = vmatpush.bf16.msra.mxu3 %v1083_v8 }
 0x1bf   : > { %10099 = vst [vmem:[#allocation29_spill] sm:$0xff] %v7218_v45  ;;  %868 = vmatpush.bf16.xpose.msra.mxu2 %v862_v25  ;;  %v853_v45 = vsel %vm818_vm1, %v7135_v3, 0 }
 0x1c3   : > { %1863 = vrot.lane.b32.xlu2 %v7053_v39, %s6648_s25 }
 0x1c5   : > { %v1524_v6 = vpop.permute.xlu2 %1523 }
 0x1c6   : > { %v7223_v56 = vpop.permute.xlu1 %2849 }
 0x1c7   : > { %869 = vmatpush.bf16.xpose.msra.mxu2 %v859_v19 }
 0x1cb   : > { %3207 = vrot.lane.b32.xlu2 %v7091_v57, %s6653_s30  ;;  %v1210_v57 = vsel %vm818_vm1, %v7177_v24, 0 }
 0x1cd   : > { %v7228_v10 = vpop.permute.xlu2 %1507 }
 0x1ce   : > { %10100 = vst [vmem:[#allocation30_spill] sm:$0xff] %v7228_v10  ;;  %v1081_v53 = vpop.permute.xlu1 %1080  ;;  %v1216_v10 = vsel %vm818_vm1, %v1170_v29, 0 }
 0x1cf   : > { %5603 = vmatpush.bf16.msra.mxu3 %v1081_v53  ;;  %870 = vmatpush.bf16.xpose.msra.mxu2 %v856_v13  ;;  %v850_v13 = vsel %vm818_vm1, %v7075_v44, 0  ;;  %v1213_v44 = vsel %vm818_vm1, %v1168_v49, 0 }
 0x1d3   : > { %5604 = vmatpush.bf16.msra.mxu3 %v7195_v51 }
 0x1d5   : > { %v1172_v25 = vpop.permute.xlu2 %1171 }
 0x1d6   : > { %v7232_v23 = vpop.permute.xlu1 %2851  ;;  %v1219_v34 = vsel %vm818_vm1, %v1172_v25, 0 }
 0x1d7   : > { %5605 = vmatpush.bf16.msra.mxu3 %v7149_v15  ;;  %871 = vmatpush.bf16.xpose.msra.mxu2 %v853_v45  ;;  %v847_v45 = vsel %vm818_vm1, %v7061_v40, 0  ;;  %v1570_v40 = vsel %vm818_vm1, %v1524_v6, 0  ;;  %v1567_v6 = vsel %vm818_vm1, %v7203_v48, 0  ;;  %v1558_v48 = vsel %vm818_vm1, %v7101_v59, 0 }
 0x1d8   : > { %1221 = vmatpush.bf16.xpose.msrb.mxu0 %v1219_v34  ;;  %v1921_v59 = vsel %vm818_vm1, %v7216_v28, 0  ;;  %v1912_v28 = vsel %vm818_vm1, %v7099_v58, 0 }
 0x1db   : > { %5606 = vmatpush.bf16.msra.mxu3 %v7125_v1 }
 0x1dd   : > { %v1526_v19 = vpop.permute.xlu2 %1525 }
 0x1de   : > { %v1435_v14 = vpop.permute.xlu1 %1434  ;;  %v1573_v34 = vsel %vm818_vm1, %v1526_v19, 0  ;;  %v1880_v19 = vpop.permute.xlu0 %1879 }
 0x1df   : > { %5607 = vmatpush.bf16.msra.mxu3 %v7127_v2  ;;  %872 = vmatpush.bf16.xpose.msra.mxu2 %v850_v13  ;;  %v844_v13 = vsel %vm818_vm1, %v7039_v32, 0  ;;  %v1207_v32 = vsel %vm818_vm1, %v7113_v62, 0 }
 0x1e0   : > { %1222 = vmatpush.bf16.xpose.msrb.mxu0 %v1216_v10 }
 0x1e3   : > { %5608 = vmatpush.bf16.msra.mxu3 %v7073_v43 }
 0x1e5   : > { %v7244_v3 = vpop.permute.xlu2 %2847 }
 0x1e6   : > { %v7246_v25 = vpop.permute.xlu1 %1155  ;;  %v2854_v62 = vpop.permute.xlu0 %2853 }
 0x1e7   : > { %5609 = vmatpush.bf16.msra.mxu3 %v7065_v42  ;;  %873 = vmatpush.bf16.xpose.msra.mxu2 %v847_v45 }
 0x1e8   : > { %1223 = vmatpush.bf16.xpose.msrb.mxu0 %v1213_v44 }
 0x1eb   : > { %1575 = vmatpush.bf16.xpose.msrb.mxu3 %v1573_v34  ;;  %v7364_v34 = vld [vmem:[%s10013_s3] sm:$0xff] }
 0x1ed   : > { %v1429_v29 = vpop.permute.xlu2 %1428 }
 0x1ee   : > { %v1437_v10 = vpop.permute.xlu1 %1436 }
 0x1ef   : > { %1446 = vmatpush.bf16.msrb.mxu1 %v1437_v10  ;;  %874 = vmatpush.bf16.xpose.msra.mxu2 %v844_v13 }
 0x1f0   : > { %1224 = vmatpush.bf16.xpose.msrb.mxu0 %v1210_v57  ;;  %v1204_v57 = vsel %vm818_vm1, %v7115_v63, 0  ;;  %v1201_v63 = vsel %vm818_vm1, %v7077_v46, 0  ;;  %v1927_v46 = vsel %vm818_vm1, %v1880_v19, 0 }
 0x1f3   : > { %1576 = vmatpush.bf16.xpose.msrb.mxu3 %v1570_v40  ;;  %1447 = vmatpush.bf16.msrb.mxu1 %v1435_v14 }
 0x1f5   : > { %v7258_v49 = vpop.permute.xlu2 %1861 }
 0x1f6   : > { %v7260_v45 = vpop.permute.xlu1 %1509  ;;  %5388 = vmatmul.msk.bf16.vlgmr.msra.gmra.mxu2 %vm818_vm1, %v6889_v7 }
 0x1f7   : > { %1092 = vmatpush.bf16.msrb.mxu2 %v1083_v8  ;;  %10101 = vst [vmem:[#allocation31_spill] sm:$0xff] %v7260_v45  ;;  %1448 = vmatpush.bf16.msrb.mxu1 %v7165_v20  ;;  %v1564_v20 = vsel %vm818_vm1, %v7171_v22, 0  ;;  %v1561_v22 = vsel %vm818_vm1, %v7157_v17, 0 }
 0x1f8   : > { %1225 = vmatpush.bf16.xpose.msrb.mxu0 %v1207_v32 }
 0x1fb   : > { %1093 = vmatpush.bf16.msrb.mxu2 %v1081_v53  ;;  %1577 = vmatpush.bf16.xpose.msrb.mxu3 %v1567_v6  ;;  %v7383_v6 = vld [vmem:[%s10013_s3 + $0x20] sm:$0xff] }
 0x1fd   : > { %v7271_v8 = vpop.permute.xlu2 %2845 }
 0x1fe   : > { %v1431_v53 = vpop.permute.xlu1 %1430  ;;  %v2889_v58 = vsel %vm818_vm1, %v7271_v8, 0 }
 0x1ff   : > { %1094 = vmatpush.bf16.msrb.mxu2 %v7195_v51  ;;  %1449 = vmatpush.bf16.msrb.mxu1 %v1431_v53  ;;  %v1198_v51 = vsel %vm818_vm1, %v7051_v38, 0  ;;  %v1924_v38 = vsel %vm818_vm1, %v7193_v33, 0 }
 0x200   : > { %1226 = vmatpush.bf16.xpose.msrb.mxu0 %v1204_v57 }
 0x203   : > { %1095 = vmatpush.bf16.msrb.mxu2 %v7149_v15  ;;  %1578 = vmatpush.bf16.xpose.msrb.mxu3 %v1564_v20 }
 0x204   : > { %1450 = vmatpush.bf16.msrb.mxu1 %v1429_v29 }
 0x205   : > { %v2844_v24 = vpop.permute.xlu2 %2843 }
 0x206   : > { %v1427_v15 = vpop.permute.xlu1 %1426  ;;  %5389 = vmatmul.msk.bf16.gmra.mxu2 %vm818_vm1, %v6907_v27 }
 0x207   : > { %1096 = vmatpush.bf16.msrb.mxu2 %v7125_v1  ;;  %v1425_v1 = vpop.permute.xlu0 %1424 }
 0x208   : > { %1451 = vmatpush.bf16.msrb.mxu1 %v1427_v15  ;;  %1227 = vmatpush.bf16.xpose.msrb.mxu0 %v1201_v63 }
 0x20b   : > { %1097 = vmatpush.bf16.msrb.mxu2 %v7127_v2  ;;  %1579 = vmatpush.bf16.xpose.msrb.mxu3 %v1561_v22 }
 0x20c   : > { %1452 = vmatpush.bf16.msrb.mxu1 %v1425_v1 }
 0x20d   : > { %v7287_v2 = vpop.permute.xlu2 %2461 }
 0x20e   : > { %10102 = vst [vmem:[#allocation32_spill] sm:$0xff] %v7287_v2 }
 0x20f   : > { %1098 = vmatpush.bf16.msrb.mxu2 %v7073_v43  ;;  %v1552_v43 = vsel %vm818_vm1, %v7017_v16, 0  ;;  %v1909_v16 = vsel %vm818_vm1, %v7085_v50, 0  ;;  %v2895_v50 = vsel %vm818_vm1, %v7223_v56, 0 }
 0x210   : > { %1228 = vmatpush.bf16.xpose.msrb.mxu0 %v1198_v51 }
 0x213   : > { %1099 = vmatpush.bf16.msrb.mxu2 %v7065_v42  ;;  %1580 = vmatpush.bf16.xpose.msrb.mxu3 %v1558_v48  ;;  %v1555_v42 = vsel %vm818_vm1, %v7063_v41, 0  ;;  %v1915_v41 = vsel %vm818_vm1, %v7169_v21, 0  ;;  %v2901_v21 = vsel %vm818_vm1, %v2854_v62, 0 }
 0x215   : > { %v1423_v17 = vpop.permute.xlu2 %1422 }
 0x216   : > { %5390 = vmatmul.msk.bf16.gmra.mxu2 %vm818_vm1, %v6937_v54  ;;  %1453 = vmatpush.bf16.msrb.mxu1 %v1423_v17 }
 0x217   : > { %5396 = vmatmul.msk.bf16.vlgmr.msrb.gmra.mxu0 %vm818_vm1, %v7005_v9  ;;  %v1918_v9 = vsel %vm818_vm1, %v7179_v26, 0 }
 0x218   : > { %1929 = vmatpush.bf16.xpose.msra.mxu0 %v1927_v46  ;;  %v752_v46 = vld [vmem:[%s10013_s3 + $0x30] sm:$0xff] }
 0x21b   : > { %1581 = vmatpush.bf16.xpose.msrb.mxu3 %v1555_v42  ;;  %v7429_v42 = vld [vmem:[%s10013_s3 + $0x28] sm:$0xff] }
 0x220   : > { %1930 = vmatpush.bf16.xpose.msra.mxu0 %v1924_v38 }
 0x223   : > { %1582 = vmatpush.bf16.xpose.msrb.mxu3 %v1552_v43 }
 0x226   : > { %5391 = vmatmul.msk.bf16.gmra.mxu2 %vm818_vm1, %v6947_v5 }
 0x227   : > { %5397 = vmatmul.msk.bf16.gmra.mxu0 %vm818_vm1, %v7049_v37  ;;  %v1906_v37 = vsel %vm818_vm1, %v7037_v31, 0  ;;  %v2892_v31 = vsel %vm818_vm1, %v7244_v3, 0 }
 0x228   : > { %1931 = vmatpush.bf16.xpose.msra.mxu0 %v1921_v59 }
 0x230   : > { %1932 = vmatpush.bf16.xpose.msra.mxu0 %v1918_v9 }
 0x236   : > { %5392 = vmatmul.msk.bf16.gmra.mxu2 %vm818_vm1, %v6977_v35 }
 0x237   : > { %5398 = vmatmul.msk.bf16.gmra.mxu0 %vm818_vm1, %v7087_v55  ;;  %v2898_v55 = vsel %vm818_vm1, %v7232_v23, 0 }
 0x238   : > { %1933 = vmatpush.bf16.xpose.msra.mxu0 %v1915_v41 }
 0x240   : > { %1934 = vmatpush.bf16.xpose.msra.mxu0 %v1912_v28 }
 0x246   : > { %5393 = vmatmul.msk.bf16.gmra.mxu2 %vm818_vm1, %v6987_v52 }
 0x247   : > { %5399 = vmatmul.msk.bf16.gmra.mxu0 %vm818_vm1, %v7147_v11  ;;  %v2886_v11 = vsel %vm818_vm1, %v2844_v24, 0  ;;  %v7403_v24 = vld [vmem:[%s10013_s3 + $0x18] sm:$0xff] }
 0x248   : > { %1935 = vmatpush.bf16.xpose.msra.mxu0 %v1909_v16  ;;  %v753_v16 = vld [vmem:[%s10013_s3 + $0x38] sm:$0xff] }
 0x250   : > { %1936 = vmatpush.bf16.xpose.msra.mxu0 %v1906_v37 }
 0x256   : > { %5394 = vmatmul.msk.bf16.gmra.mxu2 %vm818_vm1, %v7007_v12 }
 0x257   : > { %5400 = vmatmul.msk.bf16.gmra.mxu0 %vm818_vm1, %v7159_v18  ;;  %v2842_v18 = vpop.permute.xlu0 %2841 }
 0x258   : > { %2903 = vmatpush.bf16.xpose.msrb.mxu0 %v2901_v21  ;;  %v2883_v26 = vsel %vm818_vm1, %v2842_v18, 0 }
 0x25f   : > { %v2840_v33 = vpop.permute.xlu0 %2839 }
 0x260   : > { %2904 = vmatpush.bf16.xpose.msrb.mxu0 %v2898_v55  ;;  %v2880_v14 = vsel %vm818_vm1, %v2840_v33, 0 }
 0x266   : > { %5395 = vmatmul.msk.bf16.gmra.mxu2 %vm818_vm1, %v7053_v39 }
 0x267   : > { %5401 = vmatmul.msk.bf16.gmra.mxu0 %vm818_vm1, %v7209_v61  ;;  %v7352_v61 = vld [vmem:[%s10013_s3 + $0x8] sm:$0xff] }
 0x268   : > { %2905 = vmatpush.bf16.xpose.msrb.mxu0 %v2895_v50 }
 0x270   : > { %2906 = vmatpush.bf16.xpose.msrb.mxu0 %v2892_v31  ;;  %v754_v31 = vld [vmem:[%s10013_s3 + $0x40] sm:$0xff] }
 0x277   : > { %5402 = vmatmul.msk.bf16.gmra.mxu0 %vm818_vm1, %v7201_v47 }
 0x278   : > { %2907 = vmatpush.bf16.xpose.msrb.mxu0 %v2889_v58 }
 0x279   : > { %v876_v56 = vpop.f32.mrf.mxu2 }
 0x280   : > { %2908 = vmatpush.bf16.xpose.msrb.mxu0 %v2886_v11 }
 0x281   : > { %v878_v23 = vpop.f32.mrf.mxu2 }
 0x282   : > { %v7356_v3 = vadd.f32 %v878_v23, %v7352_v61 }
 0x284   : > { %918 = vmax.xlane.f32.xlu1 %v7356_v3 }
 0x287   : > { %5403 = vmatmul.msk.bf16.gmra.mxu0 %vm818_vm1, %v7246_v25  ;;  %v7373_v25 = vadd.f32 %v876_v56, %v7364_v34  ;;  %v755_v56 = vld [vmem:[%s10013_s3 + $0x48] sm:$0xff] }
 0x288   : > { %2909 = vmatpush.bf16.xpose.msrb.mxu0 %v2883_v26 }
 0x289   : > { %v881_v47 = vpop.f32.mrf.mxu2 }
 0x290   : > { %2910 = vmatpush.bf16.xpose.msrb.mxu0 %v2880_v14 }
 0x291   : > { %v883_v44 = vpop.f32.mrf.mxu2 }
 0x292   : > { %v7417_v51 = vadd.f32 %v883_v44, %v7403_v24 }
 0x294   : > { %v1230_v29 = vpop.f32.mrf.mxu0 }
 0x295   : > { %v7367_v10 = vadd.f32 %v1230_v29, %v7364_v34 }
 0x297   : > { %1270 = vmax.xlane.f32.xlu0 %v7367_v10  ;;  %5412 = vmatmul.msk.bf16.vlgmr.msra.gmra.mxu0 %vm818_vm1, %v7047_v36  ;;  %v7388_v36 = vld [vmem:[%s10013_s3 + $0x10] sm:$0xff] }
 0x298   : > { %v7406_v15 = vadd.f32 %v881_v47, %v7388_v36  ;;  %v756_v47 = vld [vmem:[%s10013_s3 + $0x50] sm:$0xff] }
 0x299   : > { %v886_v13 = vpop.f32.mrf.mxu2 }
 0x29a   : > { %v7391_v53 = vadd.f32 %v886_v13, %v7383_v6  ;;  %v10103_v13 = vld [vmem:[#allocation29_spill] sm:$0xff] }
 0x29c   : > { %v1232_v40 = vpop.f32.mrf.mxu0 }
 0x29d   : > { %v7376_v19 = vadd.f32 %v1232_v40, %v7352_v61 }
 0x29f   : > { %1272 = vmax.xlane.f32.xlu2 %v7376_v19  ;;  %916 = vmax.xlane.f32.xlu0 %v7373_v25 }
 0x2a1   : > { %v888_v32 = vpop.f32.mrf.mxu2 }
 0x2a2   : > { %v7441_v41 = vadd.f32 %v888_v32, %v7429_v42  ;;  %v758_v32 = vld [vmem:[%s10013_s3 + $0x60] sm:$0xff] }
 0x2a4   : > { %v1235_v8 = vpop.f32.mrf.mxu0 }
 0x2a5   : > { %v7394_v57 = vadd.f32 %v1235_v8, %v7388_v36  ;;  %v7490_v8 = vpop.permute.xlu1 %2463 }
 0x2a6   : > { %10104 = vst [vmem:[#allocation29_spill] sm:$0xff] %v7490_v8 }
 0x2a7   : > { %1274 = vmax.xlane.f32.xlu1 %v7394_v57  ;;  %924 = vmax.xlane.f32.xlu2 %v7391_v53 }
 0x2a8   : > { %5413 = vmatmul.msk.bf16.gmra.mxu0 %vm818_vm1, %v7103_v60 }
 0x2a9   : > { %v891_v20 = vpop.f32.mrf.mxu2 }
 0x2aa   : > { %v7431_v38 = vadd.f32 %v891_v20, %v752_v46 }
 0x2ac   : > { %v1237_v62 = vpop.f32.mrf.mxu0 }
 0x2ad   : > { %v7409_v63 = vadd.f32 %v1237_v62, %v7403_v24  ;;  %v757_v62 = vld [vmem:[%s10013_s3 + $0x58] sm:$0xff] }
 0x2af   : > { %920 = vmax.xlane.f32.xlu1 %v7406_v15  ;;  %1276 = vmax.xlane.f32.xlu0 %v7409_v63 }
 0x2b1   : > { %v893_v22 = vpop.f32.mrf.mxu2 }
 0x2b2   : > { %v7452_v55 = vadd.f32 %v893_v22, %v753_v16 }
 0x2b4   : > { %v1240_v1 = vpop.f32.mrf.mxu0 }
 0x2b5   : > { %v7414_v60 = vadd.f32 %v1240_v1, %v7383_v6 }
 0x2b7   : > { %922 = vmax.xlane.f32.xlu1 %v7417_v51  ;;  %1278 = vmax.xlane.f32.xlu0 %v7414_v60 }
 0x2b8   : > { %5414 = vmatmul.msk.bf16.gmra.mxu0 %vm818_vm1, %v7123_v0 }
 0x2b9   : > { %v896_v48 = vpop.f32.mrf.mxu2 }
 0x2ba   : > { %v7459_v58 = vadd.f32 %v896_v48, %v754_v31  ;;  %v761_v48 = vld [vmem:[%s10013_s3 + $0x78] sm:$0xff] }
 0x2bc   : > { %v1242_v17 = vpop.f32.mrf.mxu0 }
 0x2bd   : > { %v7434_v43 = vadd.f32 %v1242_v17, %v7429_v42 }
 0x2bf   : > { %928 = vmax.xlane.f32.xlu1 %v7431_v38  ;;  %1280 = vmax.xlane.f32.xlu2 %v7434_v43 }
 0x2c1   : > { %v898_v0 = vpop.f32.mrf.mxu2 }
 0x2c2   : > { %v7472_v23 = vadd.f32 %v898_v0, %v755_v56  ;;  %v759_v0 = vld [vmem:[%s10013_s3 + $0x68] sm:$0xff] }
 0x2c4   : > { %v1245_v59 = vpop.f32.mrf.mxu0 }
 0x2c5   : > { %v7438_v9 = vadd.f32 %v1245_v59, %v752_v46  ;;  %v7510_v59 = vpop.permute.xlu0 %2465 }
 0x2c6   : > { %10105 = vst [vmem:[#allocation33_spill] sm:$0xff] %v7510_v59 }
 0x2c7   : > { %926 = vmax.xlane.f32.xlu2 %v7441_v41  ;;  %1282 = vmax.xlane.f32.xlu0 %v7438_v9 }
 0x2c8   : > { %5415 = vmatmul.msk.bf16.gmra.mxu0 %vm818_vm1, %v7137_v4 }
 0x2c9   : > { %v901_v28 = vpop.f32.mrf.mxu2 }
 0x2ca   : > { %v7479_v44 = vadd.f32 %v901_v28, %v756_v47  ;;  %v2824_v28 = vpop.permute.xlu1 %2823 }
 0x2cc   : > { %v1247_v37 = vpop.f32.mrf.mxu0 }
 0x2cd   : > { %v7450_v21 = vadd.f32 %v1247_v37, %v753_v16 }
 0x2cf   : > { %1284 = vmax.xlane.f32.xlu1 %v7450_v21  ;;  %930 = vmax.xlane.f32.xlu2 %v7452_v55 }
 0x2d1   : > { %v903_v50 = vpop.f32.mrf.mxu2 }
 0x2d2   : > { %v7512_v16 = vadd.f32 %v903_v50, %v757_v62 }
 0x2d4   : > { %v1250_v4 = vpop.f32.mrf.mxu0 }
 0x2d5   : > { %v7461_v11 = vadd.f32 %v1250_v4, %v754_v31 }
 0x2d7   : > { %932 = vmax.xlane.f32.xlu2 %v7459_v58  ;;  %1286 = vmax.xlane.f32.xlu0 %v7461_v11 }
 0x2d8   : > { %5416 = vmatmul.msk.bf16.gmra.mxu0 %vm818_vm1, %v7185_v30 }
 0x2d9   : > { %v906_v18 = vpop.f32.mrf.mxu2 }
 0x2da   : > { %v7495_v22 = vadd.f32 %v906_v18, %v758_v32  ;;  %v2826_v18 = vpop.permute.xlu0 %2825 }
 0x2dc   : > { %v1252_v26 = vpop.f32.mrf.mxu0 }
 0x2dd   : > { %v7470_v33 = vadd.f32 %v1252_v26, %v755_v56  ;;  %v7522_v56 = vpop.permute.xlu1 %2467  ;;  %v1864_v26 = vpop.permute.xlu2 %1863 }
 0x2de   : > { %10106 = vst [vmem:[#allocation34_spill] sm:$0xff] %v7522_v56 }
 0x2df   : > { %1288 = vmax.xlane.f32.xlu1 %v7470_v33  ;;  %934 = vmax.xlane.f32.xlu0 %v7472_v23 }
 0x2e1   : > { %v908_v14 = vpop.f32.mrf.mxu2 }
 0x2e2   : > { %v7514_v37 = vadd.f32 %v908_v14, %v759_v0  ;;  %v7529_v14 = vpop.permute.xlu0 %2469 }
 0x2e3   : > { %10107 = vst [vmem:[#allocation35_spill] sm:$0xff] %v7529_v14 }
 0x2e4   : > { %v1255_v30 = vpop.f32.mrf.mxu0 }
 0x2e5   : > { %v7481_v29 = vadd.f32 %v1255_v30, %v756_v47  ;;  %v2828_v30 = vpop.permute.xlu1 %2827 }
 0x2e7   : > { %936 = vmax.xlane.f32.xlu1 %v7479_v44  ;;  %1290 = vmax.xlane.f32.xlu0 %v7481_v29 }
 0x2e8   : > { %5417 = vmatmul.msk.bf16.gmra.mxu0 %vm818_vm1, %v10103_v13  ;;  %v7531_v13 = vpop.permute.xlu2 %3207 }
 0x2e9   : > { %v911_v40 = vpop.f32.mrf.mxu2  ;;  %10108 = vst [vmem:[#allocation36_spill] sm:$0xff] %v7531_v13 }
 0x2ec   : > { %v1257_v20 = vpop.f32.mrf.mxu0 }
 0x2ed   : > { %v7497_v1 = vadd.f32 %v1257_v20, %v757_v62 }
 0x2ef   : > { %1292 = vmax.xlane.f32.xlu2 %v7497_v1  ;;  %940 = vmax.xlane.f32.xlu0 %v7495_v22 }
 0x2f1   : > { %v913_v46 = vpop.f32.mrf.mxu2 }
 0x2f2   : > { %v7504_v17 = vadd.f32 %v913_v46, %v761_v48 }
 0x2f4   : > { %946 = vmax.xlane.f32.xlu1 %v7504_v17  ;;  %v1260_v31 = vpop.f32.mrf.mxu0 }
 0x2f5   : > { %v7520_v4 = vadd.f32 %v1260_v31, %v758_v32  ;;  %v760_v32 = vld [vmem:[%s10013_s3 + $0x70] sm:$0xff] }
 0x2f7   : > { %938 = vmax.xlane.f32.xlu2 %v7512_v16  ;;  %942 = vmax.xlane.f32.xlu0 %v7514_v37  ;;  %v919_v62 = vpop.xlane.xlu1 %918 }
 0x2f8   : > { %5418 = vmatmul.msk.bf16.gmra.mxu0 %vm818_vm1, %v7258_v49 }
 0x2fc   : > { %v1262_v50 = vpop.f32.mrf.mxu0 }
 0x2fd   : > { %v7525_v47 = vadd.f32 %v1262_v50, %v759_v0 }
 0x2ff   : > { %1294 = vmax.xlane.f32.xlu2 %v7520_v4 }
 0x304   : > { %v1265_v49 = vpop.f32.mrf.mxu0 }
 0x305   : > { %v7536_v20 = vadd.f32 %v1265_v49, %v760_v32 }
 0x307   : > { %1296 = vmax.xlane.f32.xlu2 %v7525_v47  ;;  %10109 = vst [vmem:[#allocation37_spill] sm:$0xff] %v7536_v20 }
 0x308   : > { %5419 = vmatmul.msk.bf16.gmra.mxu0 %vm818_vm1, %v1864_v26  ;;  %v7540_v26 = vadd.f32 %v911_v40, %v760_v32 }
 0x30a   : > { %v1271_v46 = vpop.xlane.xlu0 %1270 }
 0x30b   : > { %v1302_v14 = vsub.f32 %v7367_v10, %v1271_v46 }
 0x30c   : > { %v1267_v7 = vpop.f32.mrf.mxu0 }
 0x30d   : > { %v1318_v56 = vmul.f32 1.442695, %v1302_v14 }
 0x30f   : > { %1298 = vmax.xlane.f32.xlu2 %v7536_v20 }
 0x312   : > { %v1273_v0 = vpop.xlane.xlu2 %1272  ;;  %v917_v59 = vpop.xlane.xlu0 %916 }
 0x313   : > { %v1303_v31 = vsub.f32 %v7376_v19, %v1273_v0  ;;  %v7548_v19 = vadd.f32 %v1267_v7, %v761_v48  ;;  %v948_v10 = vsub.f32 %v7373_v25, %v917_v59  ;;  %v949_v7 = vsub.f32 %v7356_v3, %v919_v62 }
 0x315   : > { %v1320_v50 = vmul.f32 1.442695, %v1303_v31  ;;  %v966_v25 = vmul.f32 1.442695, %v949_v7 }
 0x317   : > { %5960 = vpow2.f32 %v1320_v50  ;;  %944 = vmax.xlane.f32.xlu2 %v7540_v26 }
 0x318   : > { %5428 = vmatmul.msk.bf16.vlgmr.msrb.gmra.mxu0 %vm818_vm1, %v2824_v28  ;;  %5962 = vpow2.f32 %v1318_v56  ;;  %v964_v28 = vmul.f32 1.442695, %v948_v10 }
 0x31a   : > { %v1275_v49 = vpop.xlane.xlu1 %1274 }
 0x31b   : > { %v1304_v27 = vsub.f32 %v7394_v57, %v1275_v49 }
 0x31d   : > { %v7546_v8 = vpop.eup %5960  ;;  %v1322_v2 = vmul.f32 1.442695, %v1304_v27  ;;  %v7562_v27 = vpop.xlane.xlu2 %924 }
 0x31e   : > { %1352 = vadd.xlane.f32.xlu0 %v7546_v8  ;;  %v7554_v32 = vpop.eup %5962 }
 0x31f   : > { %1300 = vmax.xlane.f32.xlu2 %v7548_v19  ;;  %5964 = vpow2.f32 %v1322_v2 }
 0x320   : > { %5966 = vpow2.f32 %v964_v28 }
 0x322   : > { %v921_v40 = vpop.xlane.xlu1 %920  ;;  %v1277_v2 = vpop.xlane.xlu0 %1276 }
 0x323   : > { %v950_v14 = vsub.f32 %v7406_v15, %v921_v40  ;;  %v1305_v59 = vsub.f32 %v7409_v63, %v1277_v2 }
 0x325   : > { %v968_v57 = vmul.f32 1.442695, %v950_v14  ;;  %v7556_v46 = vpop.eup %5964  ;;  %v1324_v62 = vmul.f32 1.442695, %v1305_v59 }
 0x326   : > { %1354 = vadd.xlane.f32.xlu1 %v7556_v46  ;;  %v7564_v15 = vpop.eup %5966 }
 0x327   : > { %1350 = vadd.xlane.f32.xlu2 %v7554_v32  ;;  %5968 = vpow2.f32 %v968_v57 }
 0x328   : > { %5429 = vmatmul.msk.bf16.gmra.mxu0 %vm818_vm1, %v2826_v18  ;;  %5970 = vpow2.f32 %v966_v25 }
 0x32a   : > { %v7571_v56 = vpop.xlane.xlu1 %922  ;;  %v1279_v0 = vpop.xlane.xlu0 %1278 }
 0x32b   : > { %v1306_v49 = vsub.f32 %v7414_v60, %v1279_v0 }
 0x32d   : > { %v7566_v48 = vpop.eup %5968  ;;  %v1326_v40 = vmul.f32 1.442695, %v1306_v49 }
 0x32e   : > { %1000 = vadd.xlane.f32.xlu0 %v7566_v48  ;;  %v7574_v50 = vpop.eup %5970 }
 0x32f   : > { %996 = vadd.xlane.f32.xlu2 %v7564_v15 }
 0x332   : > { %v1281_v3 = vpop.xlane.xlu2 %1280  ;;  %v7579_v10 = vpop.xlane.xlu1 %928 }
 0x333   : > { %v1307_v18 = vsub.f32 %v7434_v43, %v1281_v3 }
 0x335   : > { %v1328_v31 = vmul.f32 1.442695, %v1307_v18 }
 0x337   : > { %5972 = vpow2.f32 %v1328_v31  ;;  %998 = vadd.xlane.f32.xlu2 %v7574_v50 }
 0x338   : > { %5974 = vpow2.f32 %v1324_v62  ;;  %5430 = vmatmul.msk.bf16.gmra.mxu0 %vm818_vm1, %v2828_v30 }
 0x339   : > { %5976 = vpow2.f32 %v1326_v40 }
 0x33a   : > { %v7581_v63 = vpop.xlane.xlu2 %926  ;;  %v1283_v28 = vpop.xlane.xlu0 %1282 }
 0x33b   : > { %v1308_v57 = vsub.f32 %v7438_v9, %v1283_v28 }
 0x33d   : > { %v7583_v43 = vpop.eup %5972  ;;  %v1330_v7 = vmul.f32 1.442695, %v1308_v57 }
 0x33e   : > { %v7585_v14 = vpop.eup %5974  ;;  %1360 = vadd.xlane.f32.xlu1 %v7583_v43 }
 0x33f   : > { %1356 = vadd.xlane.f32.xlu2 %v7585_v14  ;;  %v7593_v59 = vpop.eup %5976  ;;  %5978 = vpow2.f32 %v1330_v7 }
 0x342   : > { %v7590_v60 = vpop.xlane.xlu2 %930  ;;  %v1285_v30 = vpop.xlane.xlu1 %1284 }
 0x343   : > { %v1309_v2 = vsub.f32 %v7450_v21, %v1285_v30 }
 0x345   : > { %v1332_v25 = vmul.f32 1.442695, %v1309_v2  ;;  %v7598_v0 = vpop.eup %5978 }
 0x347   : > { %1358 = vadd.xlane.f32.xlu2 %v7593_v59  ;;  %5980 = vpow2.f32 %v1332_v25 }
 0x34a   : > { %v933_v3 = vpop.xlane.xlu2 %932  ;;  %v1287_v18 = vpop.xlane.xlu0 %1286 }
 0x34b   : > { %v956_v9 = vsub.f32 %v7459_v58, %v933_v3  ;;  %v1310_v62 = vsub.f32 %v7461_v11, %v1287_v18 }
 0x34d   : > { %v980_v31 = vmul.f32 1.442695, %v956_v9  ;;  %v1334_v49 = vmul.f32 1.442695, %v1310_v62  ;;  %v7600_v40 = vpop.eup %5980 }
 0x34e   : > { %1364 = vadd.xlane.f32.xlu0 %v7600_v40 }
 0x34f   : > { %5982 = vpow2.f32 %v980_v31  ;;  %1362 = vadd.xlane.f32.xlu2 %v7598_v0 }
 0x350   : > { %5984 = vpow2.f32 %v1334_v49 }
 0x352   : > { %v935_v21 = vpop.xlane.xlu0 %934  ;;  %v1289_v28 = vpop.xlane.xlu1 %1288 }
 0x353   : > { %v957_v57 = vsub.f32 %v7472_v23, %v935_v21  ;;  %v1311_v58 = vsub.f32 %v7470_v33, %v1289_v28 }
 0x355   : > { %v7606_v30 = vpop.eup %5982  ;;  %v982_v11 = vmul.f32 1.442695, %v957_v57  ;;  %v1336_v7 = vmul.f32 1.442695, %v1311_v58 }
 0x356   : > { %v7608_v2 = vpop.eup %5984  ;;  %1012 = vadd.xlane.f32.xlu0 %v7606_v30 }
 0x357   : > { %5986 = vpow2.f32 %v982_v11  ;;  %1366 = vadd.xlane.f32.xlu2 %v7608_v2 }
 0x358   : > { %5988 = vpow2.f32 %v1336_v7 }
 0x35a   : > { %v1291_v25 = vpop.xlane.xlu0 %1290  ;;  %v937_v3 = vpop.xlane.xlu1 %936 }
 0x35b   : > { %v958_v18 = vsub.f32 %v7479_v44, %v937_v3  ;;  %v1312_v62 = vsub.f32 %v7481_v29, %v1291_v25  ;;  %v951_v44 = vsub.f32 %v7417_v51, %v7571_v56 }
 0x35d   : > { %v7613_v9 = vpop.eup %5986  ;;  %v984_v23 = vmul.f32 1.442695, %v958_v18  ;;  %v1338_v21 = vmul.f32 1.442695, %v1312_v62  ;;  %v970_v29 = vmul.f32 1.442695, %v951_v44 }
 0x35e   : > { %v7615_v33 = vpop.eup %5988 }
 0x35f   : > { %1368 = vadd.xlane.f32.xlu0 %v7615_v33  ;;  %1014 = vadd.xlane.f32.xlu2 %v7613_v9  ;;  %5990 = vpow2.f32 %v984_v23 }
 0x360   : > { %5992 = vpow2.f32 %v1338_v21 }
 0x362   : > { %v1293_v31 = vpop.xlane.xlu2 %1292  ;;  %v941_v49 = vpop.xlane.xlu0 %940 }
 0x363   : > { %v960_v28 = vsub.f32 %v7495_v22, %v941_v49  ;;  %v1313_v44 = vsub.f32 %v7497_v1, %v1293_v31  ;;  %v10112_v31 = vld [vmem:[#allocation21_spill] sm:$0xff] }
 0x365   : > { %v988_v57 = vmul.f32 1.442695, %v960_v28  ;;  %v7621_v58 = vpop.eup %5990 }
 0x366   : > { %v7628_v18 = vpop.eup %5992 }
 0x367   : > { %1016 = vadd.xlane.f32.xlu0 %v7621_v58  ;;  %5994 = vpow2.f32 %v988_v57  ;;  %v947_v22 = vpop.xlane.xlu1 %946  ;;  %v1938_v57 = vpop.f32.mrf.mxu0 }
 0x368   : > { %5996 = vpow2.f32 %v970_v29  ;;  %v963_v51 = vsub.f32 %v7504_v17, %v947_v22  ;;  %v7650_v29 = vadd.f32 %v1938_v57, %v7364_v34 }
 0x36a   : > { %v939_v11 = vpop.xlane.xlu2 %938  ;;  %v943_v7 = vpop.xlane.xlu0 %942  ;;  %10110 = vst [vmem:[#allocation38_spill] sm:$0xff] %v7650_v29 }
 0x36b   : > { %v959_v25 = vsub.f32 %v7512_v16, %v939_v11  ;;  %v961_v3 = vsub.f32 %v7514_v37, %v943_v7  ;;  %v994_v37 = vmul.f32 1.442695, %v963_v51  ;;  %v1340_v11 = vmul.f32 1.442695, %v1313_v44  ;;  %v10113_v51 = vld [vmem:[#allocation20_spill] sm:$0xff] }
 0x36d   : > { %v986_v23 = vmul.f32 1.442695, %v959_v25  ;;  %v990_v62 = vmul.f32 1.442695, %v961_v3  ;;  %v7630_v49 = vpop.eup %5994 }
 0x36e   : > { %1020 = vadd.xlane.f32.xlu2 %v7630_v49  ;;  %v7637_v16 = vpop.eup %5996 }
 0x36f   : > { %5998 = vpow2.f32 %v986_v23  ;;  %1370 = vadd.xlane.f32.xlu0 %v7628_v18  ;;  %v1940_v25 = vpop.f32.mrf.mxu0 }
 0x370   : > { %6000 = vpow2.f32 %v990_v62  ;;  %v7659_v22 = vadd.f32 %v1940_v25, %v7352_v61 }
 0x371   : > { %6002 = vpow2.f32 %v994_v37 }
 0x372   : > { %v7635_v56 = vpop.xlane.xlu2 %1294  ;;  %6004 = vpow2.f32 %v1340_v11  ;;  %10111 = vst [vmem:[#allocation39_spill] sm:$0xff] %v7659_v22 }
 0x375   : > { %v7639_v21 = vpop.eup %5998 }
 0x376   : > { %v7641_v28 = vpop.eup %6000  ;;  %1018 = vadd.xlane.f32.xlu1 %v7639_v21  ;;  %1002 = vadd.xlane.f32.xlu2 %v7637_v16 }
 0x377   : > { %1022 = vadd.xlane.f32.xlu0 %v7641_v28  ;;  %v7652_v7 = vpop.eup %6002 }
 0x378   : > { %v7661_v1 = vpop.eup %6004 }
 0x37a   : > { %v7647_v17 = vpop.xlane.xlu2 %1296 }
 0x37e   : > { %1978 = vmax.xlane.f32.xlu1 %v7650_v29 }
 0x37f   : > { %1026 = vadd.xlane.f32.xlu0 %v7652_v7 }
 0x382   : > { %v7656_v3 = vpop.xlane.xlu2 %1298 }
 0x386   : > { %1980 = vmax.xlane.f32.xlu1 %v7659_v22 }
 0x387   : > { %1372 = vadd.xlane.f32.xlu0 %v7661_v1 }
 0x38a   : > { %v945_v34 = vpop.xlane.xlu2 %944 }
 0x38e   : > { %3205 = vrot.lane.b32.xlu2 %v10112_v31, %s6653_s30 }
 0x391   : > { %v1353_v62 = vpop.xlane.xlu0 %1352 }
 0x392   : > { %v7667_v23 = vpop.xlane.xlu2 %1300  ;;  %6006 = vrcp.f32 %v1353_v62 }
 0x396   : > { %3203 = vrot.lane.b32.xlu2 %v10113_v51, %s6653_s30 }
 0x398   : > { %v6007_v61 = vpop.eup %6006 }
 0x399   : > { %v1399_v25 = vmul.f32 %v6007_v61, %v7546_v8  ;;  %v1355_v62 = vpop.xlane.xlu1 %1354 }
 0x39a   : > { %v1351_v37 = vpop.xlane.xlu2 %1350 }
 0x39b   : > { %2471 = vrot.lane.b32.xlu0 %v6987_v52, %s6657_s18  ;;  %6008 = vrcp.f32 %v1351_v37  ;;  %v952_v37 = vsub.f32 %v7391_v53, %v7562_v27 }
 0x39d   : > { %v972_v8 = vmul.f32 1.442695, %v952_v37 }
 0x39f   : > { %2829 = vrot.lane.b32.xlu1 %v6947_v5, %s10067_s21 }
 0x3a1   : > { %v6009_v57 = vpop.eup %6008  ;;  %v7684_v53 = vpop.xlane.xlu0 %1000 }
 0x3a2   : > { %v997_v44 = vpop.xlane.xlu2 %996  ;;  %v1398_v11 = vmul.f32 %v6009_v57, %v7554_v32 }
 0x3a3   : > { %6010 = vrcp.f32 %v997_v44  ;;  %v962_v44 = vsub.f32 %v7540_v26, %v945_v34  ;;  %v1315_v34 = vsub.f32 %v7525_v47, %v7647_v17 }
 0x3a4   : > { %v1414_v29 = vpack.c.bf16 %v1399_v25, %v1398_v11  ;;  %v1943_v25 = vpop.f32.mrf.mxu0 }
 0x3a5   : > { %v7707_v47 = vadd.f32 %v1943_v25, %v7388_v36  ;;  %v10114_v36 = vld [vmem:[#allocation24_spill] sm:$0xff] }
 0x3a6   : > { %1454 = vmatmul.bf16.vlgmr.msrb.gmra.mxu1 %v1414_v29  ;;  %v953_v29 = vsub.f32 %v7441_v41, %v7581_v63  ;;  %v992_v41 = vmul.f32 1.442695, %v962_v44 }
 0x3a8   : > { %v974_v57 = vmul.f32 1.442695, %v953_v29 }
 0x3a9   : > { %v6011_v45 = vpop.eup %6010 }
 0x3aa   : > { %v999_v22 = vpop.xlane.xlu2 %998  ;;  %v1044_v13 = vmul.f32 %v6011_v45, %v7564_v15 }
 0x3ab   : > { %6012 = vrcp.f32 %v999_v22 }
 0x3ac   : > { %6014 = vrcp.f32 %v1355_v62  ;;  %v1344_v62 = vmul.f32 1.442695, %v1315_v34 }
 0x3b1   : > { %v6013_v54 = vpop.eup %6012 }
 0x3b2   : > { %v1357_v5 = vpop.xlane.xlu2 %1356  ;;  %v1045_v20 = vmul.f32 %v6013_v54, %v7574_v50  ;;  %v6015_v22 = vpop.eup %6014 }
 0x3b3   : > { %6016 = vrcp.f32 %v1357_v5  ;;  %v1400_v45 = vmul.f32 %v6015_v22, %v7556_v46 }
 0x3b4   : > { %v1060_v32 = vpack.c.bf16 %v1045_v20, %v1044_v13  ;;  %6018 = vpow2.f32 %v972_v8  ;;  %v1314_v13 = vsub.f32 %v7520_v4, %v7635_v56  ;;  %v1361_v20 = vpop.xlane.xlu1 %1360 }
 0x3b5   : > { %6020 = vpow2.f32 %v974_v57  ;;  %v1945_v57 = vpop.f32.mrf.mxu0 }
 0x3b6   : > { %1100 = vmatmul.bf16.vlgmr.msrb.gmra.mxu2 %v1060_v32  ;;  %v1342_v26 = vmul.f32 1.442695, %v1314_v13 }
 0x3b9   : > { %v6017_v61 = vpop.eup %6016 }
 0x3ba   : > { %v1359_v27 = vpop.xlane.xlu2 %1358  ;;  %v1401_v54 = vmul.f32 %v6017_v61, %v7585_v14  ;;  %v7690_v15 = vpop.eup %6018 }
 0x3bb   : > { %6022 = vrcp.f32 %v1359_v27  ;;  %v7693_v63 = vpop.eup %6020  ;;  %v7714_v27 = vadd.f32 %v1945_v57, %v7403_v24  ;;  %v2547_v24 = vsel %vm818_vm1, %v10114_v36, 0 }
 0x3bc   : > { %v1415_v5 = vpack.c.bf16 %v1401_v54, %v1400_v45  ;;  %6024 = vrcp.f32 %v1361_v20 }
 0x3bd   : > { %6026 = vpow2.f32 %v992_v41 }
 0x3be   : > { %1459 = vmatmul.bf16.gmra.mxu1 %v1415_v5  ;;  %6028 = vpow2.f32 %v1342_v26 }
 0x3bf   : > { %1004 = vadd.xlane.f32.xlu2 %v7690_v15  ;;  %6030 = vpow2.f32 %v1344_v62 }
 0x3c1   : > { %v1365_v50 = vpop.xlane.xlu0 %1364  ;;  %v6023_v14 = vpop.eup %6022 }
 0x3c2   : > { %v1363_v46 = vpop.xlane.xlu2 %1362  ;;  %v6025_v4 = vpop.eup %6024  ;;  %v1402_v11 = vmul.f32 %v6023_v14, %v7593_v59  ;;  %6032 = vrcp.f32 %v1365_v50 }
 0x3c3   : > { %v7698_v56 = vpop.eup %6026  ;;  %v1403_v8 = vmul.f32 %v6025_v4, %v7583_v43  ;;  %6034 = vrcp.f32 %v1363_v46 }
 0x3c4   : > { %v7703_v29 = vpop.eup %6028 }
 0x3c5   : > { %1006 = vadd.xlane.f32.xlu0 %v7693_v63  ;;  %v1416_v22 = vpack.c.bf16 %v1403_v8, %v1402_v11  ;;  %v7710_v61 = vpop.eup %6030 }
 0x3c8   : > { %v6033_v43 = vpop.eup %6032 }
 0x3c9   : > { %1024 = vadd.xlane.f32.xlu1 %v7698_v56  ;;  %v1013_v37 = vpop.xlane.xlu0 %1012  ;;  %v6035_v44 = vpop.eup %6034  ;;  %v1405_v5 = vmul.f32 %v6033_v43, %v7600_v40 }
 0x3ca   : > { %v1367_v32 = vpop.xlane.xlu2 %1366  ;;  %6036 = vrcp.f32 %v1013_v37  ;;  %v1404_v54 = vmul.f32 %v6035_v44, %v7598_v0 }
 0x3cc   : > { %v1417_v50 = vpack.c.bf16 %v1405_v5, %v1404_v54  ;;  %v10116_v5 = vld [vmem:[#allocation19_spill] sm:$0xff] }
 0x3cd   : > { %1374 = vadd.xlane.f32.xlu0 %v7703_v29 }
 0x3ce   : > { %1464 = vmatmul.bf16.gmra.mxu1 %v1416_v22  ;;  %v2541_v22 = vsel %vm818_vm1, %v10113_v51, 0 }
 0x3d0   : > { %v6037_v45 = vpop.eup %6036 }
 0x3d1   : > { %1982 = vmax.xlane.f32.xlu1 %v7707_v47  ;;  %v1052_v20 = vmul.f32 %v6037_v45, %v7606_v30 }
 0x3d2   : > { %v1369_v59 = vpop.xlane.xlu0 %1368  ;;  %v1015_v17 = vpop.xlane.xlu2 %1014 }
 0x3d3   : > { %6038 = vrcp.f32 %v1015_v17 }
 0x3d4   : > { %6040 = vrcp.f32 %v1369_v59 }
 0x3d5   : > { %1376 = vadd.xlane.f32.xlu0 %v7710_v61  ;;  %6042 = vrcp.f32 %v1367_v32 }
 0x3d7   : > { %3561 = vrot.lane.b32.xlu2 %v10114_v36, %s6648_s25 }
 0x3d9   : > { %1984 = vmax.xlane.f32.xlu1 %v7714_v27  ;;  %v6039_v13 = vpop.eup %6038 }
 0x3da   : > { %v1017_v41 = vpop.xlane.xlu0 %1016  ;;  %v1053_v26 = vmul.f32 %v6039_v13, %v7613_v9  ;;  %v6041_v14 = vpop.eup %6040  ;;  %v2544_v9 = vsel %vm818_vm1, %v10112_v31, 0  ;;  %v2538_v13 = vsel %vm818_vm1, %v10116_v5, 0 }
 0x3db   : > { %v6043_v30 = vpop.eup %6042  ;;  %6044 = vrcp.f32 %v1017_v41  ;;  %v1407_v34 = vmul.f32 %v6041_v14, %v7615_v33  ;;  %v954_v14 = vsub.f32 %v7431_v38, %v7579_v10 }
 0x3dc   : > { %v1064_v46 = vpack.c.bf16 %v1053_v26, %v1052_v20  ;;  %6046 = vrcp.f32 %v7684_v53  ;;  %v1406_v62 = vmul.f32 %v6043_v30, %v7608_v2  ;;  %v10115_v53 = vld [vmem:[#allocation18_spill] sm:$0xff] }
 0x3dd   : > { %v2535_v20 = vsel %vm818_vm1, %v10115_v53, 0 }
 0x3de   : > { %1469 = vmatmul.bf16.gmra.mxu1 %v1417_v50  ;;  %1120 = vmatmul.bf16.vlgmr.msra.gmra.mxu3 %v1064_v46  ;;  %v1418_v37 = vpack.c.bf16 %v1407_v34, %v1406_v62  ;;  %v976_v34 = vmul.f32 1.442695, %v954_v14 }
 0x3df   : > { %2549 = vmatpush.bf16.xpose.msra.mxu3 %v2547_v24  ;;  %1790 = vrot.lane.b32.xlu2 %v7053_v39, %s6659_s17 }
 0x3e1   : > { %v1021_v0 = vpop.xlane.xlu2 %1020  ;;  %v6045_v32 = vpop.eup %6044 }
 0x3e2   : > { %v1371_v40 = vpop.xlane.xlu0 %1370  ;;  %v6047_v8 = vpop.eup %6046  ;;  %v1054_v17 = vmul.f32 %v6045_v32, %v7621_v58 }
 0x3e3   : > { %v1046_v2 = vmul.f32 %v6047_v8, %v7566_v48 }
 0x3e7   : > { %2550 = vmatpush.bf16.xpose.msra.mxu3 %v2544_v9  ;;  %2473 = vrot.lane.b32.xlu2 %v7007_v12, %s6657_s18  ;;  %v10117_v9 = vld [vmem:[#allocation15_spill] sm:$0xff] }
 0x3e9   : > { %3559 = vrot.lane.b32.xlu0 %v10112_v31, %s6648_s25  ;;  %v1019_v4 = vpop.xlane.xlu1 %1018  ;;  %v1003_v11 = vpop.xlane.xlu2 %1002 }
 0x3ea   : > { %v1023_v25 = vpop.xlane.xlu0 %1022  ;;  %6048 = vrcp.f32 %v1019_v4  ;;  %v955_v4 = vsub.f32 %v7452_v55, %v7590_v60 }
 0x3eb   : > { %6050 = vrcp.f32 %v1003_v11  ;;  %v10118_v11 = vld [vmem:[#allocation14_spill] sm:$0xff] }
 0x3ec   : > { %6052 = vrcp.f32 %v1023_v25  ;;  %v2529_v25 = vsel %vm818_vm1, %v10118_v11, 0 }
 0x3ed   : > { %6054 = vrcp.f32 %v1021_v0 }
 0x3ee   : > { %1474 = vmatmul.bf16.gmra.mxu1 %v1418_v37  ;;  %6056 = vrcp.f32 %v1371_v40  ;;  %v10119_v37 = vld [vmem:[#allocation12_spill] sm:$0xff] }
 0x3ef   : > { %2551 = vmatpush.bf16.xpose.msra.mxu3 %v2541_v22  ;;  %3199 = vrot.lane.b32.xlu2 %v10115_v53, %s6653_s30  ;;  %v2526_v32 = vsel %vm818_vm1, %v10119_v37, 0 }
 0x3f0   : > { %v6049_v33 = vpop.eup %6048 }
 0x3f1   : > { %v6051_v59 = vpop.eup %6050  ;;  %v1055_v43 = vmul.f32 %v6049_v33, %v7639_v21  ;;  %v7785_v8 = vpop.permute.xlu2 %3205 }
 0x3f2   : > { %v7742_v57 = vpop.xlane.xlu0 %1026  ;;  %2831 = vrot.lane.b32.xlu1 %v6977_v35, %s10067_s21  ;;  %v1047_v44 = vmul.f32 %v6051_v59, %v7637_v16  ;;  %v6053_v21 = vpop.eup %6052 }
 0x3f3   : > { %v1065_v45 = vpack.c.bf16 %v1055_v43, %v1054_v17  ;;  %v6055_v48 = vpop.eup %6054  ;;  %v7752_v16 = vpop.xlane.xlu1 %1978  ;;  %v1057_v26 = vmul.f32 %v6053_v21, %v7641_v28  ;;  %v2532_v28 = vsel %vm818_vm1, %v10117_v9, 0 }
 0x3f4   : > { %v1061_v54 = vpack.c.bf16 %v1047_v44, %v1046_v2  ;;  %v6057_v41 = vpop.eup %6056  ;;  %v1056_v46 = vmul.f32 %v6055_v48, %v7630_v49 }
 0x3f5   : > { %1125 = vmatmul.bf16.gmra.mxu3 %v1065_v45  ;;  %v1408_v24 = vmul.f32 %v6057_v41, %v7628_v18  ;;  %v1948_v18 = vpop.f32.mrf.mxu0 }
 0x3f6   : > { %1105 = vmatmul.bf16.gmra.mxu2 %v1061_v54  ;;  %v1066_v40 = vpack.c.bf16 %v1057_v26, %v1056_v46  ;;  %v7788_v22 = vadd.f32 %v1948_v18, %v7383_v6  ;;  %v10122_v18 = vld [vmem:[#allocation22_spill] sm:$0xff] }
 0x3f7   : > { %2552 = vmatpush.bf16.xpose.msra.mxu3 %v2538_v13 }
 0x3f9   : > { %v7790_v33 = vpop.permute.xlu2 %3203 }
 0x3fa   : > { %v1373_v58 = vpop.xlane.xlu0 %1372  ;;  %3201 = vrot.lane.b32.xlu1 %v10116_v5, %s6653_s30 }
 0x3fb   : > { %6058 = vrcp.f32 %v1373_v58  ;;  %v7766_v49 = vpop.xlane.xlu1 %1980 }
 0x3fc   : > { %6060 = vpow2.f32 %v976_v34 }
 0x3fd   : > { %v1950_v62 = vpop.f32.mrf.mxu0 }
 0x3fe   : > { %v7781_v60 = vadd.f32 %v1950_v62, %v7429_v42  ;;  %v10123_v62 = vld [vmem:[#allocation16_spill] sm:$0xff] }
 0x3ff   : > { %2553 = vmatpush.bf16.xpose.msra.mxu3 %v2535_v20 }
 0x401   : > { %v6059_v50 = vpop.eup %6058 }
 0x402   : > { %1788 = vrot.lane.b32.xlu1 %v7007_v12, %s6659_s17  ;;  %v1409_v0 = vmul.f32 %v6059_v50, %v7661_v1  ;;  %v978_v1 = vmul.f32 1.442695, %v955_v4  ;;  %v7772_v10 = vpop.eup %6060  ;;  %v10121_v4 = vld [vmem:[#allocation36_spill] sm:$0xff] }
 0x404   : > { %v1419_v30 = vpack.c.bf16 %v1409_v0, %v1408_v24  ;;  %6062 = vpow2.f32 %v978_v1  ;;  %v3252_v1 = vsel %vm818_vm1, %v7785_v8, 0 }
 0x405   : > { %1130 = vmatmul.bf16.gmra.mxu3 %v1066_v40  ;;  %v10120_v40 = vld [vmem:[#allocation37_spill] sm:$0xff] }
 0x406   : > { %1479 = vmatmul.bf16.gmra.mxu1 %v1419_v30  ;;  %v1316_v14 = vsub.f32 %v10120_v40, %v7656_v3 }
 0x407   : > { %2554 = vmatpush.bf16.xpose.msra.mxu3 %v2532_v28 }
 0x408   : > { %v1346_v34 = vmul.f32 1.442695, %v1316_v14 }
 0x40a   : > { %v7778_v55 = vpop.eup %6062 }
 0x40d   : > { %v7795_v59 = vpop.permute.xlu0 %2471 }
 0x40f   : > { %2555 = vmatpush.bf16.xpose.msra.mxu3 %v2529_v25 }
 0x411   : > { %v2830_v38 = vpop.permute.xlu1 %2829 }
 0x412   : > { %5431 = vmatmul.msk.bf16.gmra.mxu0 %vm818_vm1, %v2830_v38 }
 0x413   : > { %1008 = vadd.xlane.f32.xlu0 %v7772_v10 }
 0x417   : > { %2556 = vmatpush.bf16.xpose.msra.mxu3 %v2526_v32  ;;  %v10124_v32 = vld [vmem:[#allocation23_spill] sm:$0xff] }
 0x418   : > { %1010 = vadd.xlane.f32.xlu2 %v7778_v55 }
 0x41b   : > { %1988 = vmax.xlane.f32.xlu0 %v7781_v60 }
 0x42c   : > { %1986 = vmax.xlane.f32.xlu1 %v7788_v22 }
 0x42f   : > { %1786 = vrot.lane.b32.xlu0 %v6987_v52, %s6659_s17 }
 0x430   : > { %2144 = vrot.lane.b32.xlu2 %v7053_v39, %s6660_s20 }
 0x432   : > { %v1005_v42 = vpop.xlane.xlu2 %1004 }
 0x433   : > { %6064 = vrcp.f32 %v1005_v42  ;;  %v3249_v42 = vsel %vm818_vm1, %v7790_v33, 0 }
 0x437   : > { %3557 = vrot.lane.b32.xlu0 %v10113_v51, %s6648_s25 }
 0x438   : > { %v1007_v6 = vpop.xlane.xlu0 %1006  ;;  %2833 = vrot.lane.b32.xlu2 %v6987_v52, %s10067_s21 }
 0x439   : > { %6066 = vrcp.f32 %v1007_v6  ;;  %v6065_v44 = vpop.eup %6064 }
 0x43a   : > { %6068 = vrcp.f32 %v7742_v57  ;;  %v3562_v17 = vpop.permute.xlu2 %3561  ;;  %v1048_v13 = vmul.f32 %v6065_v44, %v7690_v15 }
 0x43b   : > { %v7805_v43 = vsel %vm818_vm1, %v3562_v17, 0  ;;  %v10125_v17 = vld [vmem:[#allocation17_spill] sm:$0xff] }
 0x43c   : > { %v1025_v2 = vpop.xlane.xlu1 %1024  ;;  %3611 = vmatpush.bf16.xpose.msra.mxu0 %v7805_v43 }
 0x43d   : > { %6070 = vrcp.f32 %v1025_v2 }
 0x43f   : > { %v6067_v45 = vpop.eup %6066 }
 0x440   : > { %v1375_v54 = vpop.xlane.xlu0 %1374  ;;  %v1049_v58 = vmul.f32 %v6067_v45, %v7693_v63  ;;  %v6069_v21 = vpop.eup %6068 }
 0x441   : > { %v1059_v26 = vmul.f32 %v6069_v21, %v7652_v7  ;;  %6072 = vrcp.f32 %v1375_v54  ;;  %v1317_v7 = vsub.f32 %v7548_v19, %v7667_v23  ;;  %v10126_v54 = vld [vmem:[#allocation25_spill] sm:$0xff] }
 0x442   : > { %v1062_v48 = vpack.c.bf16 %v1049_v58, %v1048_v13  ;;  %v1791_v20 = vpop.permute.xlu2 %1790  ;;  %v10127_v58 = vld [vmem:[#allocation26_spill] sm:$0xff] }
 0x443   : > { %v6071_v41 = vpop.eup %6070  ;;  %1800 = vmatpush.bf16.msra.mxu2 %v1791_v20  ;;  %v1348_v28 = vmul.f32 1.442695, %v1317_v7 }
 0x444   : > { %1110 = vmatmul.bf16.gmra.mxu2 %v1062_v48  ;;  %v1058_v57 = vmul.f32 %v6071_v41, %v7698_v56  ;;  %v7820_v0 = vpop.xlane.xlu1 %1982 }
 0x445   : > { %3197 = vrot.lane.b32.xlu1 %v10117_v9, %s6653_s30 }
 0x446   : > { %v1067_v50 = vpack.c.bf16 %v1059_v26, %v1058_v57 }
 0x447   : > { %v6073_v15 = vpop.eup %6072 }
 0x448   : > { %v1377_v46 = vpop.xlane.xlu0 %1376  ;;  %1135 = vmatmul.bf16.gmra.mxu3 %v1067_v50  ;;  %v1410_v24 = vmul.f32 %v6073_v15, %v7703_v29  ;;  %v3255_v29 = vsel %vm818_vm1, %v10121_v4, 0  ;;  %v1953_v15 = vpop.f32.mrf.mxu0 }
 0x449   : > { %6074 = vrcp.f32 %v1377_v46 }
 0x44a   : > { %6076 = vpow2.f32 %v1348_v28  ;;  %v7853_v8 = vpop.permute.xlu2 %2473  ;;  %v10132_v28 = vld [vmem:[#allocation28_spill] sm:$0xff] }
 0x44b   : > { %6078 = vpow2.f32 %v1346_v34 }
 0x44c   : > { %v7830_v23 = vpop.xlane.xlu1 %1984 }
 0x44d   : > { %2142 = vrot.lane.b32.xlu1 %v7007_v12, %s6660_s20 }
 0x44f   : > { %v6075_v63 = vpop.eup %6074 }
 0x450   : > { %v1411_v56 = vmul.f32 %v6075_v63, %v7710_v61  ;;  %v7838_v61 = vpop.eup %6076  ;;  %v10129_v63 = vld [vmem:[#allocation27_spill] sm:$0xff]  ;;  %v1955_v14 = vpop.f32.mrf.mxu0 }
 0x451   : > { %v7842_v25 = vpop.eup %6078 }
 0x452   : > { %v1420_v30 = vpack.c.bf16 %v1411_v56, %v1410_v24  ;;  %v3200_v45 = vpop.permute.xlu2 %3199 }
 0x453   : > { %v3243_v33 = vsel %vm818_vm1, %v3200_v45, 0 }
 0x454   : > { %1484 = vmatmul.bf16.gmra.mxu1 %v1420_v30 }
 0x455   : > { %2140 = vrot.lane.b32.xlu1 %v6987_v52, %s6660_s20 }
 0x458   : > { %5404 = vmatmul.msk.bf16.vlgmr.msrb.gmra.mxu3 %vm818_vm1, %v10122_v18 }
 0x459   : > { %3257 = vmatpush.bf16.xpose.msrb.mxu3 %v3255_v29 }
 0x45b   : > { %v3560_v19 = vpop.permute.xlu0 %3559 }
 0x45c   : > { %v7833_v3 = vsel %vm818_vm1, %v3560_v19, 0  ;;  %v7908_v19 = vld [vmem:[%s10013_s3 + $0x30] sm:$0xff] }
 0x45d   : > { %3612 = vmatpush.bf16.xpose.msra.mxu0 %v7833_v3  ;;  %2138 = vrot.lane.b32.xlu1 %v6977_v35, %s6660_s20 }
 0x461   : > { %1380 = vadd.xlane.f32.xlu0 %v7838_v61  ;;  %3258 = vmatpush.bf16.xpose.msrb.mxu3 %v3252_v1  ;;  %v7873_v20 = vpop.f32.mrf.mxu3  ;;  %v7911_v1 = vadd.f32 %v7908_v19, %v1953_v15  ;;  %v6538_v15 = vld [vmem:[%s10013_s3] sm:$0xff] }
 0x462   : > { %1378 = vadd.xlane.f32.xlu2 %v7842_v25  ;;  %10128 = vst [vmem:[#allocation21_spill] sm:$0xff] %v7873_v20 }
 0x464   : > { %v2832_v38 = vpop.permute.xlu1 %2831 }
 0x465   : > { %1780 = vrot.lane.b32.xlu1 %v10123_v62, %s6659_s17  ;;  %5432 = vmatmul.msk.bf16.gmra.mxu0 %vm818_vm1, %v2832_v38 }
 0x468   : > { %5405 = vmatmul.msk.bf16.gmra.mxu3 %vm818_vm1, %v10124_v32  ;;  %v10134_v32 = vld [vmem:[#allocation30_spill] sm:$0xff] }
 0x469   : > { %3259 = vmatpush.bf16.xpose.msrb.mxu3 %v3249_v42  ;;  %v7881_v7 = vpop.f32.mrf.mxu3 }
 0x46a   : > { %10130 = vst [vmem:[#allocation20_spill] sm:$0xff] %v7881_v7 }
 0x46c   : > { %v3202_v6 = vpop.permute.xlu1 %3201 }
 0x46d   : > { %2136 = vrot.lane.b32.xlu1 %v10125_v17, %s6660_s20  ;;  %v3246_v2 = vsel %vm818_vm1, %v3202_v6, 0 }
 0x471   : > { %3260 = vmatpush.bf16.xpose.msrb.mxu3 %v3246_v2 }
 0x474   : > { %v1789_v44 = vpop.permute.xlu1 %1788 }
 0x475   : > { %1782 = vrot.lane.b32.xlu0 %v10125_v17, %s6659_s17  ;;  %1801 = vmatpush.bf16.msra.mxu2 %v1789_v44 }
 0x478   : > { %5406 = vmatmul.msk.bf16.gmra.mxu3 %vm818_vm1, %v10126_v54  ;;  %v7892_v30 = vpop.f32.mrf.mxu3  ;;  %v10137_v54 = vld [vmem:[#allocation31_spill] sm:$0xff] }
 0x479   : > { %3261 = vmatpush.bf16.xpose.msrb.mxu3 %v3243_v33  ;;  %10131 = vst [vmem:[#allocation24_spill] sm:$0xff] %v7892_v30 }
 0x47a   : > { %1784 = vrot.lane.b32.xlu2 %v6977_v35, %s6659_s17 }
 0x47d   : > { %3195 = vrot.lane.b32.xlu0 %v10118_v11, %s6653_s30 }
 0x480   : > { %v7901_v29 = vpop.f32.mrf.mxu3 }
 0x481   : > { %10133 = vst [vmem:[#allocation18_spill] sm:$0xff] %v7901_v29 }
 0x482   : > { %3555 = vrot.lane.b32.xlu2 %v10116_v5, %s6648_s25 }
 0x486   : > { %v1009_v13 = vpop.xlane.xlu0 %1008 }
 0x487   : > { %6080 = vrcp.f32 %v1009_v13 }
 0x488   : > { %5407 = vmatmul.msk.bf16.gmra.mxu3 %vm818_vm1, %v10127_v58  ;;  %v7917_v6 = vpop.f32.mrf.mxu3 }
 0x489   : > { %10135 = vst [vmem:[#allocation19_spill] sm:$0xff] %v7917_v6 }
 0x48a   : > { %2475 = vrot.lane.b32.xlu2 %v7053_v39, %s6657_s18 }
 0x48b   : > { %v1011_v21 = vpop.xlane.xlu2 %1010 }
 0x48c   : > { %6082 = vrcp.f32 %v1011_v21 }
 0x48d   : > { %v6081_v48 = vpop.eup %6080 }
 0x48e   : > { %v1050_v26 = vmul.f32 %v6081_v48, %v7772_v10  ;;  %v7879_v24 = vpop.xlane.xlu0 %1988  ;;  %v7887_v10 = vld [vmem:[%s10013_s3 + $0x38] sm:$0xff] }
 0x490   : > { %v7921_v44 = vpop.f32.mrf.mxu3 }
 0x491   : > { %10136 = vst [vmem:[#allocation15_spill] sm:$0xff] %v7921_v44 }
 0x492   : > { %v6083_v41 = vpop.eup %6082 }
 0x493   : > { %v2145_v57 = vpop.permute.xlu2 %2144  ;;  %v1051_v50 = vmul.f32 %v6083_v41, %v7778_v55  ;;  %v7890_v55 = vadd.f32 %v7887_v10, %v1955_v14 }
 0x494   : > { %2154 = vmatpush.bf16.msra.mxu1 %v2145_v57  ;;  %v10140_v57 = vld [vmem:[#allocation32_spill] sm:$0xff] }
 0x495   : > { %v1063_v46 = vpack.c.bf16 %v1051_v50, %v1050_v26 }
 0x497   : > { %1115 = vmatmul.bf16.gmra.mxu2 %v1063_v46 }
 0x498   : > { %5408 = vmatmul.msk.bf16.gmra.mxu3 %vm818_vm1, %v10129_v63 }
 0x49b   : > { %v2834_v56 = vpop.permute.xlu2 %2833 }
 0x49c   : > { %5433 = vmatmul.msk.bf16.gmra.mxu0 %vm818_vm1, %v2834_v56 }
 0x49f   : > { %v7903_v18 = vpop.xlane.xlu1 %1986 }
 0x4a1   : > { %v1787_v40 = vpop.permute.xlu0 %1786 }
 0x4a2   : > { %1802 = vmatpush.bf16.msra.mxu2 %v1787_v40 }
 0x4a7   : > { %1992 = vmax.xlane.f32.xlu0 %v7890_v55 }
 0x4a8   : > { %5409 = vmatmul.msk.bf16.gmra.mxu3 %vm818_vm1, %v10132_v28 }
 0x4a9   : > { %v3558_v34 = vpop.permute.xlu0 %3557 }
 0x4aa   : > { %v7898_v4 = vsel %vm818_vm1, %v3558_v34, 0 }
 0x4ab   : > { %3613 = vmatpush.bf16.xpose.msra.mxu0 %v7898_v4 }
 0x4b3   : > { %1990 = vmax.xlane.f32.xlu2 %v7911_v1 }
 0x4b7   : > { %v3198_v38 = vpop.permute.xlu1 %3197 }
 0x4b8   : > { %5410 = vmatmul.msk.bf16.gmra.mxu3 %vm818_vm1, %v10134_v32  ;;  %v3240_v42 = vsel %vm818_vm1, %v3198_v38, 0  ;;  %v6539_v32 = vld [vmem:[%s10013_s3 + $0x8] sm:$0xff] }
 0x4b9   : > { %3262 = vmatpush.bf16.xpose.msrb.mxu3 %v3240_v42 }
 0x4bb   : > { %2835 = vrot.lane.b32.xlu0 %v7007_v12, %s10067_s21 }
 0x4bf   : > { %v2143_v2 = vpop.permute.xlu1 %2142 }
 0x4c0   : > { %2155 = vmatpush.bf16.msra.mxu1 %v2143_v2 }
 0x4c7   : > { %v2141_v45 = vpop.permute.xlu1 %2140 }
 0x4c8   : > { %5411 = vmatmul.msk.bf16.gmra.mxu3 %vm818_vm1, %v10137_v54  ;;  %2156 = vmatpush.bf16.msra.mxu1 %v2141_v45  ;;  %v10141_v45 = vld [vmem:[#allocation29_spill] sm:$0xff] }
 0x4cb   : > { %v7925_v33 = vpop.f32.mrf.mxu3 }
 0x4cc   : > { %10138 = vst [vmem:[#allocation14_spill] sm:$0xff] %v7925_v33 }
 0x4cf   : > { %v2139_v13 = vpop.permute.xlu1 %2138 }
 0x4d0   : > { %2157 = vmatpush.bf16.msra.mxu1 %v2139_v13 }
 0x4d3   : > { %v7927_v58 = vpop.f32.mrf.mxu3 }
 0x4d4   : > { %10139 = vst [vmem:[#allocation12_spill] sm:$0xff] %v7927_v58  ;;  %v1381_v21 = vpop.xlane.xlu0 %1380 }
 0x4d5   : > { %6084 = vrcp.f32 %v1381_v21  ;;  %v1379_v48 = vpop.xlane.xlu2 %1378 }
 0x4d6   : > { %6086 = vrcp.f32 %v1379_v48 }
 0x4d7   : > { %v1781_v41 = vpop.permute.xlu1 %1780 }
 0x4d8   : > { %5420 = vmatmul.msk.bf16.vlgmr.msra.gmra.mxu3 %vm818_vm1, %v10140_v57  ;;  %v6540_v57 = vld [vmem:[%s10013_s3 + $0x18] sm:$0xff] }
 0x4db   : > { %v6085_v26 = vpop.eup %6084  ;;  %v1584_v50 = vpop.f32.mrf.mxu3 }
 0x4dc   : > { %v6087_v46 = vpop.eup %6086  ;;  %v7934_v63 = vadd.f32 %v6538_v15, %v1584_v50  ;;  %v1413_v56 = vmul.f32 %v6085_v26, %v7838_v61  ;;  %v10142_v50 = vld [vmem:[#allocation33_spill] sm:$0xff] }
 0x4dd   : > { %v1785_v40 = vpop.permute.xlu2 %1784  ;;  %v1412_v14 = vmul.f32 %v6087_v46, %v7842_v25  ;;  %v6541_v46 = vld [vmem:[%s10013_s3 + $0x20] sm:$0xff] }
 0x4de   : > { %1803 = vmatpush.bf16.msra.mxu2 %v1785_v40  ;;  %1624 = vmax.xlane.f32.xlu1 %v7934_v63 }
 0x4df   : > { %v2137_v28 = vpop.permute.xlu1 %2136  ;;  %v1421_v34 = vpack.c.bf16 %v1413_v56, %v1412_v14  ;;  %v10143_v56 = vld [vmem:[#allocation13_spill] sm:$0xff]  ;;  %v10144_v14 = vld [vmem:[#allocation39_spill] sm:$0xff] }
 0x4e0   : > { %2158 = vmatpush.bf16.msra.mxu1 %v2137_v28  ;;  %v2011_v28 = vsub.f32 %v10144_v14, %v7766_v49  ;;  %v10146_v49 = vld [vmem:[#allocation11_spill] sm:$0xff] }
 0x4e1   : > { %1489 = vmatmul.bf16.gmra.mxu1 %v1421_v34  ;;  %v10145_v34 = vld [vmem:[#allocation34_spill] sm:$0xff] }
 0x4e3   : > { %v1586_v38 = vpop.f32.mrf.mxu3 }
 0x4e4   : > { %v7942_v42 = vadd.f32 %v6539_v32, %v1586_v38  ;;  %v2028_v38 = vmul.f32 1.442695, %v2011_v28  ;;  %v8024_v28 = vld [vmem:[%s10013_s3 + $0x40] sm:$0xff] }
 0x4e5   : > { %v3556_v2 = vpop.permute.xlu2 %3555 }
 0x4e6   : > { %v7945_v61 = vsel %vm818_vm1, %v3556_v2, 0  ;;  %1626 = vmax.xlane.f32.xlu2 %v7942_v42  ;;  %6088 = vpow2.f32 %v2028_v38 }
 0x4e7   : > { %3614 = vmatpush.bf16.xpose.msra.mxu0 %v7945_v61  ;;  %v1783_v25 = vpop.permute.xlu0 %1782 }
 0x4e8   : > { %1804 = vmatpush.bf16.msra.mxu2 %v1783_v25  ;;  %5421 = vmatmul.msk.bf16.gmra.mxu3 %vm818_vm1, %v10141_v45  ;;  %v10147_v45 = vld [vmem:[#allocation35_spill] sm:$0xff] }
 0x4eb   : > { %v1589_v54 = vpop.f32.mrf.mxu3 }
 0x4ec   : > { %1805 = vmatpush.bf16.msra.mxu2 %v1781_v41  ;;  %v7982_v25 = vpop.eup %6088 }
 0x4ef   : > { %v3196_v13 = vpop.permute.xlu0 %3195 }
 0x4f0   : > { %v3237_v21 = vsel %vm818_vm1, %v3196_v13, 0 }
 0x4f1   : > { %3263 = vmatpush.bf16.xpose.msrb.mxu3 %v3237_v21 }
 0x4f3   : > { %v1591_v48 = vpop.f32.mrf.mxu3 }
 0x4f4   : > { %v7955_v26 = vadd.f32 %v6540_v57, %v1591_v48  ;;  %v6543_v48 = vld [vmem:[%s10013_s3 + $0x28] sm:$0xff] }
 0x4f6   : > { %1630 = vmax.xlane.f32.xlu0 %v7955_v26 }
 0x4f7   : > { %3553 = vrot.lane.b32.xlu1 %v10115_v53, %s6648_s25 }
 0x4f8   : > { %5422 = vmatmul.msk.bf16.gmra.mxu3 %vm818_vm1, %v10142_v50  ;;  %v10148_v50 = vld [vmem:[#allocation38_spill] sm:$0xff] }
 0x4fb   : > { %v1594_v41 = vpop.f32.mrf.mxu3 }
 0x4fc   : > { %v7965_v15 = vadd.f32 %v6541_v46, %v1594_v41  ;;  %v2010_v41 = vsub.f32 %v10148_v50, %v7752_v16 }
 0x4fe   : > { %1632 = vmax.xlane.f32.xlu0 %v7965_v15  ;;  %1778 = vrot.lane.b32.xlu2 %v10143_v56, %s6659_s17  ;;  %v2026_v14 = vmul.f32 1.442695, %v2010_v41 }
 0x500   : > { %6090 = vpow2.f32 %v2026_v14 }
 0x503   : > { %v1596_v40 = vpop.f32.mrf.mxu3 }
 0x504   : > { %v8002_v57 = vadd.f32 %v6543_v48, %v1596_v40 }
 0x506   : > { %3193 = vrot.lane.b32.xlu2 %v10119_v37, %s6653_s30 }
 0x508   : > { %5423 = vmatmul.msk.bf16.gmra.mxu3 %vm818_vm1, %v10145_v34 }
 0x50b   : > { %v1599_v32 = vpop.f32.mrf.mxu3 }
 0x50c   : > { %v7977_v2 = vadd.f32 %v7908_v19, %v1599_v32  ;;  %v6542_v19 = vld [vmem:[%s10013_s3 + $0x10] sm:$0xff] }
 0x50d   : > { %v7994_v13 = vadd.f32 %v6542_v19, %v1589_v54 }
 0x50e   : > { %1636 = vmax.xlane.f32.xlu0 %v7977_v2  ;;  %2134 = vrot.lane.b32.xlu2 %v10123_v62, %s6660_s20 }
 0x513   : > { %v1601_v54 = vpop.f32.mrf.mxu3 }
 0x514   : > { %v8013_v40 = vadd.f32 %v7887_v10, %v1601_v54  ;;  %v2476_v10 = vpop.permute.xlu2 %2475 }
 0x516   : > { %2060 = vadd.xlane.f32.xlu0 %v7982_v25  ;;  %1776 = vrot.lane.b32.xlu2 %v10146_v49, %s6659_s17  ;;  %s6661_s17 = smov 16  }
 0x518   : > { %5424 = vmatmul.msk.bf16.gmra.mxu3 %vm818_vm1, %v10147_v45 }
 0x51a   : > { %v7997_v21 = vpop.xlane.xlu0 %1992 }
 0x51b   : > { %v1604_v16 = vpop.f32.mrf.mxu3 }
 0x51c   : > { %v8027_v34 = vadd.f32 %v8024_v28, %v1604_v16 }
 0x51e   : > { %2132 = vrot.lane.b32.xlu2 %v10143_v56, %s6660_s20 }
 0x521   : > { %1628 = vmax.xlane.f32.xlu1 %v7994_v13 }
 0x523   : > { %v1606_v54 = vpop.f32.mrf.mxu3 }
 0x526   : > { %v8031_v38 = vpop.xlane.xlu2 %1990 }
 0x528   : > { %5425 = vmatmul.msk.bf16.gmra.mxu3 %vm818_vm1, %v7795_v59  ;;  %v8016_v59 = vpop.eup %6090 }
 0x529   : > { %1634 = vmax.xlane.f32.xlu1 %v8002_v57 }
 0x52a   : > { %3177 = vrot.lane.b32.xlu0 %v10146_v49, %s6661_s17 }
 0x52d   : > { %v2836_v46 = vpop.permute.xlu0 %2835 }
 0x52e   : > { %5434 = vmatmul.msk.bf16.gmra.mxu0 %vm818_vm1, %v2836_v46 }
 0x531   : > { %1638 = vmax.xlane.f32.xlu1 %v8013_v40 }
 0x538   : > { %5426 = vmatmul.msk.bf16.gmra.mxu3 %vm818_vm1, %v7853_v8 }
 0x539   : > { %2058 = vadd.xlane.f32.xlu1 %v8016_v59 }
 0x541   : > { %1640 = vmax.xlane.f32.xlu1 %v8027_v34 }
 0x548   : > { %5427 = vmatmul.msk.bf16.gmra.mxu3 %vm818_vm1, %v2476_v10 }
 0x551   : > { %v1625_v32 = vpop.xlane.xlu1 %1624 }
 0x552   : > { %v1656_v8 = vsub.f32 %v7934_v63, %v1625_v32  ;;  %v6545_v63 = vld [vmem:[%s10013_s3 + $0x48] sm:$0xff] }
 0x553   : > { %v8043_v14 = vadd.f32 %v6545_v63, %v1606_v54 }
 0x554   : > { %v1672_v45 = vmul.f32 1.442695, %v1656_v8 }
 0x556   : > { %6092 = vpow2.f32 %v1672_v45 }
 0x559   : > { %v1627_v19 = vpop.xlane.xlu2 %1626 }
 0x55a   : > { %v1657_v48 = vsub.f32 %v7942_v42, %v1627_v19  ;;  %3551 = vrot.lane.b32.xlu1 %v10117_v9, %s6648_s25 }
 0x55c   : > { %v8037_v50 = vpop.eup %6092  ;;  %v1674_v41 = vmul.f32 1.442695, %v1657_v48 }
 0x55d   : > { %1704 = vadd.xlane.f32.xlu2 %v8037_v50 }
 0x55e   : > { %6094 = vpow2.f32 %v1674_v41 }
 0x561   : > { %v1779_v46 = vpop.permute.xlu2 %1778 }
 0x562   : > { %1806 = vmatpush.bf16.msra.mxu2 %v1779_v46 }
 0x564   : > { %v8045_v16 = vpop.eup %6094 }
 0x565   : > { %1706 = vadd.xlane.f32.xlu0 %v8045_v16  ;;  %1642 = vmax.xlane.f32.xlu2 %v8043_v14 }
 0x569   : > { %v3194_v42 = vpop.permute.xlu2 %3193  ;;  %v3554_v10 = vpop.permute.xlu1 %3553 }
 0x56a   : > { %v3234_v32 = vsel %vm818_vm1, %v3194_v42, 0  ;;  %v3597_v8 = vsel %vm818_vm1, %v3554_v10, 0  ;;  %v1631_v19 = vpop.xlane.xlu0 %1630 }
 0x56b   : > { %3264 = vmatpush.bf16.xpose.msrb.mxu3 %v3234_v32  ;;  %3615 = vmatpush.bf16.xpose.msra.mxu0 %v3597_v8  ;;  %v1659_v48 = vsub.f32 %v7955_v26, %v1631_v19 }
 0x56d   : > { %v1678_v41 = vmul.f32 1.442695, %v1659_v48 }
 0x56f   : > { %6096 = vpow2.f32 %v1678_v41 }
 0x571   : > { %v2135_v45 = vpop.permute.xlu2 %2134 }
 0x572   : > { %2159 = vmatpush.bf16.msra.mxu1 %v2135_v45  ;;  %v8057_v42 = vpop.xlane.xlu0 %1632  ;;  %v1958_v45 = vpop.f32.mrf.mxu0 }
 0x573   : > { %5610 = vmatpush.bf16.xpose.msra.mxu3 %v7805_v43 }
 0x575   : > { %v8059_v43 = vpop.eup %6096 }
 0x579   : > { %v1777_v54 = vpop.permute.xlu2 %1776 }
 0x57a   : > { %1807 = vmatpush.bf16.msra.mxu2 %v1777_v54  ;;  %v1609_v54 = vpop.f32.mrf.mxu3 }
 0x57b   : > { %5611 = vmatpush.bf16.xpose.msra.mxu3 %v7833_v3 }
 0x57d   : > { %2130 = vrot.lane.b32.xlu2 %v10146_v49, %s6660_s20 }
 0x581   : > { %v2133_v46 = vpop.permute.xlu2 %2132  ;;  %v8063_v3 = vpop.xlane.xlu0 %1636 }
 0x582   : > { %2160 = vmatpush.bf16.msra.mxu1 %v2133_v46  ;;  %v6546_v46 = vld [vmem:[%s10013_s3 + $0x50] sm:$0xff] }
 0x583   : > { %5612 = vmatpush.bf16.xpose.msra.mxu3 %v7898_v4 }
 0x584   : > { %1710 = vadd.xlane.f32.xlu1 %v8059_v43 }
 0x589   : > { %v2061_v26 = vpop.xlane.xlu0 %2060 }
 0x58b   : > { %5613 = vmatpush.bf16.xpose.msra.mxu3 %v7945_v61  ;;  %v1960_v61 = vpop.f32.mrf.mxu0 }
 0x58c   : > { %v8075_v41 = vadd.f32 %v6545_v63, %v1960_v61  ;;  %v6547_v63 = vld [vmem:[%s10013_s3 + $0x58] sm:$0xff] }
 0x593   : > { %5614 = vmatpush.bf16.xpose.msra.mxu3 %v3597_v8  ;;  %v8073_v8 = vadd.f32 %v8024_v28, %v1958_v45  ;;  %v1611_v28 = vpop.f32.mrf.mxu3  ;;  %v2012_v45 = vsub.f32 %v7707_v47, %v7820_v0  ;;  %v2013_v0 = vsub.f32 %v7714_v27, %v7830_v23 }
 0x594   : > { %v1629_v10 = vpop.xlane.xlu1 %1628 }
 0x595   : > { %v1658_v4 = vsub.f32 %v7994_v13, %v1629_v10  ;;  %v8082_v10 = vadd.f32 %v6546_v46, %v1609_v54  ;;  %v2030_v61 = vmul.f32 1.442695, %v2012_v45  ;;  %v2032_v44 = vmul.f32 1.442695, %v2013_v0 }
 0x597   : > { %v1676_v32 = vmul.f32 1.442695, %v1658_v4 }
 0x599   : > { %6098 = vpow2.f32 %v1676_v32  ;;  %v8090_v32 = vadd.f32 %v6547_v63, %v1611_v28 }
 0x59a   : > { %6100 = vpow2.f32 %v2030_v61 }
 0x59c   : > { %v3178_v19 = vpop.permute.xlu0 %3177  ;;  %v1635_v13 = vpop.xlane.xlu1 %1634 }
 0x59d   : > { %2837 = vrot.lane.b32.xlu1 %v7053_v39, %s10067_s21  ;;  %5436 = vmatmul.msk.bf16.vlgmr.msrb.gmra.mxu3 %vm818_vm1, %v3178_v19 }
 0x59f   : > { %v8069_v48 = vpop.eup %6098 }
 0x5a0   : > { %1708 = vadd.xlane.f32.xlu0 %v8069_v48  ;;  %v8099_v33 = vpop.eup %6100 }
 0x5a4   : > { %v8085_v4 = vpop.xlane.xlu1 %1638 }
 0x5a6   : > { %1994 = vmax.xlane.f32.xlu2 %v8073_v8 }
 0x5a8   : > { %1996 = vmax.xlane.f32.xlu0 %v8075_v41 }
 0x5ac   : > { %v2059_v19 = vpop.xlane.xlu1 %2058 }
 0x5ad   : > { %6102 = vrcp.f32 %v2059_v19  ;;  %v1660_v19 = vsub.f32 %v7965_v15, %v8057_v42  ;;  %v6548_v42 = vld [vmem:[%s10013_s3 + $0x60] sm:$0xff] }
 0x5ae   : > { %1644 = vmax.xlane.f32.xlu2 %v8082_v10  ;;  %6104 = vrcp.f32 %v2061_v26 }
 0x5b3   : > { %v6103_v6 = vpop.eup %6102 }
 0x5b4   : > { %v8097_v54 = vpop.xlane.xlu1 %1640  ;;  %v6105_v30 = vpop.eup %6104  ;;  %v2106_v29 = vmul.f32 %v6103_v6, %v8016_v59 }
 0x5b5   : > { %v2107_v26 = vmul.f32 %v6105_v30, %v7982_v25  ;;  %v1661_v30 = vsub.f32 %v8002_v57, %v1635_v13  ;;  %v1614_v59 = vpop.f32.mrf.mxu3  ;;  %v2014_v57 = vsub.f32 %v7788_v22, %v7903_v18  ;;  %v8146_v22 = vld [vmem:[%s10013_s3 + $0x68] sm:$0xff] }
 0x5b6   : > { %1646 = vmax.xlane.f32.xlu2 %v8090_v32  ;;  %v8137_v13 = vadd.f32 %v6548_v42, %v1614_v59 }
 0x5bc   : > { %3549 = vrot.lane.b32.xlu0 %v10118_v11, %s6648_s25 }
 0x5c7   : > { %2062 = vadd.xlane.f32.xlu1 %v8099_v33 }
 0x5cc   : > { %v3552_v58 = vpop.permute.xlu1 %3551 }
 0x5cd   : > { %v3594_v28 = vsel %vm818_vm1, %v3552_v58, 0 }
 0x5ce   : > { %3547 = vrot.lane.b32.xlu2 %v10119_v37, %s6648_s25  ;;  %3616 = vmatpush.bf16.xpose.msra.mxu0 %v3594_v28  ;;  %s10169_s25 = smov 80  }
 0x5cf   : > { %5615 = vmatpush.bf16.xpose.msra.mxu3 %v3594_v28 }
 0x5d0   : > { %v1705_v47 = vpop.xlane.xlu2 %1704 }
 0x5d1   : > { %6106 = vrcp.f32 %v1705_v47  ;;  %v2122_v47 = vpack.c.bf16 %v2107_v26, %v2106_v29 }
 0x5d7   : > { %v6107_v58 = vpop.eup %6106 }
 0x5d8   : > { %v1707_v45 = vpop.xlane.xlu0 %1706  ;;  %v8107_v61 = vpop.xlane.xlu2 %1642  ;;  %v1752_v27 = vmul.f32 %v6107_v58, %v8037_v50 }
 0x5d9   : > { %6108 = vrcp.f32 %v1707_v45  ;;  %v1680_v45 = vmul.f32 1.442695, %v1660_v19  ;;  %v1616_v58 = vpop.f32.mrf.mxu3  ;;  %v1662_v19 = vsub.f32 %v7977_v2, %v8063_v3  ;;  %v1663_v2 = vsub.f32 %v8013_v40, %v8085_v4 }
 0x5da   : > { %6110 = vpow2.f32 %v2032_v44  ;;  %v1682_v44 = vmul.f32 1.442695, %v1661_v30  ;;  %v8149_v18 = vadd.f32 %v8146_v22, %v1616_v58  ;;  %v2016_v30 = vsub.f32 %v7911_v1, %v8031_v38 }
 0x5db   : > { %6112 = vpow2.f32 %v1680_v45  ;;  %v1686_v3 = vmul.f32 1.442695, %v1663_v2 }
 0x5dc   : > { %6114 = vpow2.f32 %v1682_v44 }
 0x5df   : > { %v6109_v20 = vpop.eup %6108 }
 0x5e0   : > { %v1753_v23 = vmul.f32 %v6109_v20, %v8045_v16  ;;  %3179 = vrot.lane.b32.xlu1 %v10143_v56, %s6661_s17  ;;  %v2131_v28 = vpop.permute.xlu2 %2130  ;;  %v8117_v6 = vpop.eup %6110 }
 0x5e1   : > { %2161 = vmatpush.bf16.msra.mxu1 %v2131_v28  ;;  %v8121_v15 = vpop.eup %6112  ;;  %v1963_v20 = vpop.f32.mrf.mxu0 }
 0x5e2   : > { %v1768_v0 = vpack.c.bf16 %v1753_v23, %v1752_v27  ;;  %v8124_v25 = vadd.f32 %v6546_v46, %v1963_v20  ;;  %v8126_v29 = vpop.eup %6114  ;;  %v2034_v46 = vmul.f32 1.442695, %v2014_v57  ;;  %v1619_v58 = vpop.f32.mrf.mxu3 }
 0x5e4   : > { %1808 = vmatmul.bf16.vlgmr.msra.gmra.mxu2 %v1768_v0  ;;  %2162 = vmatmul.bf16.vlgmr.msra.gmra.mxu1 %v2122_v47  ;;  %6116 = vpow2.f32 %v2034_v46 }
 0x5e6   : > { %2064 = vadd.xlane.f32.xlu0 %v8117_v6 }
 0x5e9   : > { %v1965_v50 = vpop.f32.mrf.mxu0 }
 0x5ea   : > { %v8132_v16 = vadd.f32 %v6547_v63, %v1965_v50  ;;  %v1684_v63 = vmul.f32 1.442695, %v1662_v19  ;;  %v8152_v27 = vpop.eup %6116  ;;  %v1621_v19 = vpop.f32.mrf.mxu3 }
 0x5ec   : > { %6118 = vpow2.f32 %v1684_v63 }
 0x5ee   : > { %1712 = vadd.xlane.f32.xlu0 %v8121_v15 }
 0x5f1   : > { %v1968_v59 = vpop.f32.mrf.mxu0 }
 0x5f2   : > { %v8158_v28 = vpop.eup %6118  ;;  %v8172_v57 = vadd.f32 %v6548_v42, %v1968_v59  ;;  %v2015_v42 = vsub.f32 %v7781_v60, %v7879_v24  ;;  %v1665_v60 = vsub.f32 %v8043_v14, %v8107_v61  ;;  %v2017_v14 = vsub.f32 %v7890_v55, %v7997_v21 }
 0x5f6   : > { %1998 = vmax.xlane.f32.xlu0 %v8124_v25 }
 0x5f7   : > { %1714 = vadd.xlane.f32.xlu2 %v8126_v29  ;;  %v1711_v26 = vpop.xlane.xlu1 %1710 }
 0x5f8   : > { %6120 = vrcp.f32 %v1711_v26 }
 0x5f9   : > { %6122 = vpow2.f32 %v1686_v3 }
 0x5fe   : > { %2000 = vmax.xlane.f32.xlu0 %v8132_v16  ;;  %v6121_v0 = vpop.eup %6120 }
 0x5ff   : > { %1648 = vmax.xlane.f32.xlu2 %v8137_v13  ;;  %v8163_v45 = vpop.eup %6122  ;;  %v1755_v20 = vmul.f32 %v6121_v0, %v8059_v43 }
 0x607   : > { %1650 = vmax.xlane.f32.xlu2 %v8149_v18 }
 0x60a   : > { %2066 = vadd.xlane.f32.xlu1 %v8152_v27 }
 0x60f   : > { %v2838_v23 = vpop.permute.xlu1 %2837 }
 0x610   : > { %5435 = vmatmul.msk.bf16.gmra.mxu0 %vm818_vm1, %v2838_v23  ;;  %v1970_v23 = vpop.f32.mrf.mxu0 }
 0x612   : > { %1716 = vadd.xlane.f32.xlu1 %v8158_v28  ;;  %3531 = vrot.lane.b32.xlu0 %v10146_v49, %s10068_s27  ;;  %v2038_v49 = vmul.f32 1.442695, %v2016_v30 }
 0x613   : > { %v1709_v47 = vpop.xlane.xlu0 %1708 }
 0x614   : > { %6124 = vrcp.f32 %v1709_v47  ;;  %v2036_v47 = vmul.f32 1.442695, %v2015_v42 }
 0x615   : > { %6126 = vpow2.f32 %v2038_v49 }
 0x618   : > { %v8203_v30 = vpop.f32.mrf.mxu0 }
 0x619   : > { %v1995_v40 = vpop.xlane.xlu2 %1994 }
 0x61a   : > { %v6125_v4 = vpop.eup %6124  ;;  %1718 = vadd.xlane.f32.xlu1 %v8163_v45  ;;  %v2018_v49 = vsub.f32 %v8073_v8, %v1995_v40 }
 0x61b   : > { %v1754_v44 = vmul.f32 %v6125_v4, %v8069_v48  ;;  %v1997_v1 = vpop.xlane.xlu0 %1996  ;;  %v8179_v38 = vpop.eup %6126  ;;  %v1664_v48 = vsub.f32 %v8027_v34, %v8097_v54  ;;  %v1690_v34 = vmul.f32 1.442695, %v1665_v60  ;;  %v8245_v60 = vld [vmem:[%s10014_s4] sm:$0xff] }
 0x61c   : > { %v2042_v21 = vmul.f32 1.442695, %v2018_v49 }
 0x61d   : > { %v1769_v50 = vpack.c.bf16 %v1755_v20, %v1754_v44  ;;  %v1688_v26 = vmul.f32 1.442695, %v1664_v48  ;;  %v2040_v44 = vmul.f32 1.442695, %v2017_v14  ;;  %v8211_v20 = vadd.f32 %v8146_v22, %v1970_v23  ;;  %v6551_v22 = vld [vmem:[%s10013_s3 + $0x70] sm:$0xff]  ;;  %v2558_v23 = vpop.f32.mrf.mxu3 }
 0x61e   : > { %v8225_v42 = vadd.f32 %v6551_v22, %v1619_v58 }
 0x61f   : > { %3181 = vrot.lane.b32.xlu2 %v10123_v62, %s6661_s17  ;;  %1813 = vmatmul.bf16.gmra.mxu2 %v1769_v50  ;;  %6128 = vpow2.f32 %v1688_v26 }
 0x620   : > { %6130 = vpow2.f32 %v2036_v47  ;;  %v1975_v59 = vpop.f32.mrf.mxu0 }
 0x621   : > { %v8174_v46 = vpop.xlane.xlu2 %1644  ;;  %6132 = vpow2.f32 %v1690_v34 }
 0x622   : > { %2002 = vmax.xlane.f32.xlu1 %v8172_v57  ;;  %6134 = vpow2.f32 %v2040_v44 }
 0x623   : > { %6136 = vpow2.f32 %v2042_v21 }
 0x625   : > { %v8198_v0 = vpop.eup %6128 }
 0x626   : > { %v8201_v4 = vpop.eup %6130 }
 0x627   : > { %3533 = vrot.lane.b32.xlu2 %v10143_v56, %s10068_s27  ;;  %v6550_v56 = vld [vmem:[%s10013_s3 + $0x78] sm:$0xff]  ;;  %v8208_v61 = vpop.eup %6132 }
 0x628   : > { %v8192_v3 = vadd.f32 %v6550_v56, %v1621_v19  ;;  %v8215_v50 = vadd.f32 %v6550_v56, %v1975_v59  ;;  %v8219_v55 = vpop.eup %6134  ;;  %v2019_v19 = vsub.f32 %v8075_v41, %v1997_v1 }
 0x629   : > { %v8181_v43 = vpop.xlane.xlu2 %1646 }
 0x62a   : > { %2070 = vadd.xlane.f32.xlu1 %v8179_v38  ;;  %v2044_v40 = vmul.f32 1.442695, %v2019_v19 }
 0x62e   : > { %v3550_v63 = vpop.permute.xlu0 %3549 }
 0x62f   : > { %v3591_v2 = vsel %vm818_vm1, %v3550_v63, 0  ;;  %v8230_v63 = vpop.eup %6136 }
 0x630   : > { %3617 = vmatpush.bf16.xpose.msra.mxu0 %v3591_v2  ;;  %5616 = vmatpush.bf16.xpose.msra.mxu3 %v3591_v2 }
 0x631   : > { %v3548_v24 = vpop.permute.xlu2 %3547 }
 0x632   : > { %1654 = vmax.xlane.f32.xlu1 %v8192_v3  ;;  %v3588_v54 = vsel %vm818_vm1, %v3548_v24, 0  ;;  %v8248_v24 = vadd.f32 %v2558_v23, %v8245_v60  ;;  %v8272_v23 = vld [vmem:[%s10014_s4 + $0x8] sm:$0xff] }
 0x638   : > { %3618 = vmatpush.bf16.xpose.msra.mxu0 %v3588_v54  ;;  %5617 = vmatpush.bf16.xpose.msra.mxu3 %v3588_v54 }
 0x63a   : > { %1720 = vadd.xlane.f32.xlu1 %v8198_v0  ;;  %v2063_v48 = vpop.xlane.xlu1 %2062 }
 0x63b   : > { %6138 = vrcp.f32 %v2063_v48 }
 0x63c   : > { %2068 = vadd.xlane.f32.xlu0 %v8201_v4  ;;  %6140 = vpow2.f32 %v2044_v40  ;;  %v1666_v40 = vsub.f32 %v8082_v10, %v8174_v46 }
 0x641   : > { %v6139_v2 = vpop.eup %6138 }
 0x642   : > { %1722 = vadd.xlane.f32.xlu1 %v8208_v61  ;;  %v8233_v58 = vpop.eup %6140  ;;  %v2108_v41 = vmul.f32 %v6139_v2, %v8099_v33  ;;  %v1692_v2 = vmul.f32 1.442695, %v1666_v40 }
 0x644   : > { %2004 = vmax.xlane.f32.xlu0 %v8211_v20 }
 0x64a   : > { %2008 = vmax.xlane.f32.xlu1 %v8215_v50 }
 0x64c   : > { %2072 = vadd.xlane.f32.xlu0 %v8219_v55 }
 0x650   : > { %1652 = vmax.xlane.f32.xlu2 %v8225_v42 }
 0x652   : > { %v3180_v8 = vpop.permute.xlu1 %3179 }
 0x653   : > { %5437 = vmatmul.msk.bf16.gmra.mxu3 %vm818_vm1, %v3180_v8 }
 0x658   : > { %2074 = vadd.xlane.f32.xlu2 %v8230_v63 }
 0x659   : > { %v2065_v26 = vpop.xlane.xlu0 %2064 }
 0x65a   : > { %6142 = vrcp.f32 %v2065_v26 }
 0x660   : > { %v6143_v56 = vpop.eup %6142  ;;  %3183 = vrot.lane.b32.xlu0 %v10125_v17, %s6661_s17  ;;  %2076 = vadd.xlane.f32.xlu2 %v8233_v58 }
 0x661   : > { %v2109_v1 = vmul.f32 %v6143_v56, %v8117_v6  ;;  %v1713_v34 = vpop.xlane.xlu0 %1712  ;;  %v8267_v56 = vadd.f32 %v6551_v22, %v8203_v30 }
 0x662   : > { %6144 = vrcp.f32 %v1713_v34 }
 0x663   : > { %3535 = vrot.lane.b32.xlu1 %v10123_v62, %s10068_s27  ;;  %v2123_v47 = vpack.c.bf16 %v2109_v1, %v2108_v41  ;;  %v2560_v41 = vpop.f32.mrf.mxu3 }
 0x664   : > { %v8276_v10 = vadd.f32 %v2560_v41, %v8272_v23 }
 0x665   : > { %2167 = vmatmul.bf16.gmra.mxu1 %v2123_v47 }
 0x668   : > { %2598 = vmax.xlane.f32.xlu2 %v8248_v24  ;;  %v6145_v6 = vpop.eup %6144 }
 0x669   : > { %v1999_v14 = vpop.xlane.xlu0 %1998  ;;  %v1756_v44 = vmul.f32 %v6145_v6, %v8121_v15 }
 0x66a   : > { %v1715_v33 = vpop.xlane.xlu2 %1714  ;;  %v2020_v15 = vsub.f32 %v8124_v25, %v1999_v14  ;;  %v1667_v25 = vsub.f32 %v8090_v32, %v8181_v43 }
 0x66b   : > { %6146 = vrcp.f32 %v1715_v33 }
 0x66c   : > { %v2046_v1 = vmul.f32 1.442695, %v2020_v15  ;;  %6148 = vpow2.f32 %v1692_v2  ;;  %v1694_v22 = vmul.f32 1.442695, %v1667_v25 }
 0x671   : > { %v6147_v54 = vpop.eup %6146  ;;  %v2001_v21 = vpop.xlane.xlu0 %2000 }
 0x672   : > { %v8251_v62 = vpop.xlane.xlu2 %1648  ;;  %v1757_v59 = vmul.f32 %v6147_v54, %v8126_v29  ;;  %v2021_v30 = vsub.f32 %v8132_v16, %v2001_v21  ;;  %v8282_v47 = vpop.eup %6148 }
 0x673   : > { %v2912_v21 = vpop.f32.mrf.mxu0  ;;  %v1668_v15 = vsub.f32 %v8137_v13, %v8251_v62 }
 0x674   : > { %v1770_v49 = vpack.c.bf16 %v1757_v59, %v1756_v44  ;;  %v2048_v33 = vmul.f32 1.442695, %v2021_v30  ;;  %v8293_v44 = vpop.f32.mrf.mxu3 }
 0x676   : > { %1818 = vmatmul.bf16.gmra.mxu2 %v1770_v49 }
 0x67a   : > { %v8255_v48 = vpop.xlane.xlu2 %1650 }
 0x67b   : > { %v2914_v2 = vpop.f32.mrf.mxu0  ;;  %v1669_v13 = vsub.f32 %v8149_v18, %v8255_v48 }
 0x67d   : > { %v8257_v19 = vpop.xlane.xlu1 %2066  ;;  %v1698_v25 = vmul.f32 1.442695, %v1669_v13 }
 0x680   : > { %3185 = vrot.lane.b32.xlu2 %v6977_v35, %s6661_s17 }
 0x682   : > { %v3182_v8 = vpop.permute.xlu2 %3181 }
 0x683   : > { %5438 = vmatmul.msk.bf16.gmra.mxu3 %vm818_vm1, %v3182_v8 }
 0x684   : > { %v3532_v26 = vpop.permute.xlu0 %3531 }
 0x685   : > { %5444 = vmatmul.msk.bf16.vlgmr.msra.gmra.mxu0 %vm818_vm1, %v3532_v26  ;;  %v1717_v29 = vpop.xlane.xlu1 %1716  ;;  %v8302_v26 = vadd.f32 %v2912_v21, %v8245_v60  ;;  %v1696_v60 = vmul.f32 1.442695, %v1668_v15  ;;  %v2917_v21 = vpop.f32.mrf.mxu0 }
 0x686   : > { %6150 = vrcp.f32 %v1717_v29 }
 0x687   : > { %6152 = vpow2.f32 %v2046_v1  ;;  %v8319_v1 = vadd.f32 %v2914_v2, %v8272_v23 }
 0x68a   : > { %2006 = vmax.xlane.f32.xlu0 %v8267_v56  ;;  %v3534_v32 = vpop.permute.xlu2 %3533 }
 0x68c   : > { %v6151_v34 = vpop.eup %6150 }
 0x68d   : > { %2600 = vmax.xlane.f32.xlu1 %v8276_v10  ;;  %v1719_v46 = vpop.xlane.xlu1 %1718  ;;  %v8285_v6 = vpop.eup %6152  ;;  %v1758_v16 = vmul.f32 %v6151_v34, %v8158_v28 }
 0x68e   : > { %6154 = vrcp.f32 %v1719_v46  ;;  %v2565_v28 = vpop.f32.mrf.mxu3 }
 0x68f   : > { %6156 = vpow2.f32 %v1694_v22 }
 0x690   : > { %6158 = vpow2.f32 %v2048_v33 }
 0x691   : > { %6160 = vpow2.f32 %v1696_v60 }
 0x692   : > { %1724 = vadd.xlane.f32.xlu0 %v8282_v47  ;;  %6162 = vrcp.f32 %v8257_v19 }
 0x694   : > { %v6155_v54 = vpop.eup %6154 }
 0x695   : > { %2078 = vadd.xlane.f32.xlu1 %v8285_v6  ;;  %5445 = vmatmul.msk.bf16.gmra.mxu0 %vm818_vm1, %v3534_v32  ;;  %v8289_v43 = vpop.xlane.xlu1 %2002  ;;  %v1759_v14 = vmul.f32 %v6155_v54, %v8163_v45  ;;  %v8295_v49 = vpop.eup %6156  ;;  %v8307_v45 = vld [vmem:[%s10014_s4 + $0x18] sm:$0xff] }
 0x696   : > { %v8298_v8 = vpop.eup %6158  ;;  %v8313_v29 = vadd.f32 %v2565_v28, %v8307_v45 }
 0x697   : > { %v1771_v59 = vpack.c.bf16 %v1759_v14, %v1758_v16  ;;  %v8325_v30 = vpop.eup %6160 }
 0x698   : > { %v6163_v22 = vpop.eup %6162 }
 0x699   : > { %1823 = vmatmul.bf16.gmra.mxu2 %v1771_v59  ;;  %v2110_v48 = vmul.f32 %v6163_v22, %v8152_v27  ;;  %v8338_v59 = vld [vmem:[%s10014_s4 + $0x10] sm:$0xff] }
 0x69a   : > { %1726 = vadd.xlane.f32.xlu0 %v8295_v49 }
 0x69d   : > { %2080 = vadd.xlane.f32.xlu1 %v8298_v8  ;;  %v2071_v40 = vpop.xlane.xlu1 %2070 }
 0x6a2   : > { %2952 = vmax.xlane.f32.xlu0 %v8302_v26 }
 0x6a5   : > { %2604 = vmax.xlane.f32.xlu1 %v8313_v29  ;;  %v8316_v41 = vpop.xlane.xlu1 %1654 }
 0x6a9   : > { %2954 = vmax.xlane.f32.xlu2 %v8319_v1 }
 0x6ad   : > { %v1721_v62 = vpop.xlane.xlu1 %1720 }
 0x6af   : > { %v2069_v46 = vpop.xlane.xlu0 %2068 }
 0x6b0   : > { %6164 = vrcp.f32 %v2069_v46 }
 0x6b1   : > { %1728 = vadd.xlane.f32.xlu2 %v8325_v30  ;;  %6166 = vpow2.f32 %v1698_v25 }
 0x6b2   : > { %6168 = vrcp.f32 %v1721_v62 }
 0x6b5   : > { %v1723_v34 = vpop.xlane.xlu1 %1722 }
 0x6b6   : > { %v6165_v33 = vpop.eup %6164  ;;  %6170 = vrcp.f32 %v1723_v34  ;;  %3537 = vrot.lane.b32.xlu0 %v10125_v17, %s10068_s27  ;;  %v8355_v34 = vpop.f32.mrf.mxu1 }
 0x6b7   : > { %v2005_v18 = vpop.xlane.xlu0 %2004  ;;  %v2111_v19 = vmul.f32 %v6165_v33, %v8201_v4  ;;  %v8332_v54 = vpop.eup %6166  ;;  %6172 = vrcp.f32 %v2071_v40  ;;  %v8345_v4 = vadd.f32 %v2917_v21, %v8338_v59 }
 0x6b8   : > { %v6169_v16 = vpop.eup %6168 }
 0x6b9   : > { %1730 = vadd.xlane.f32.xlu2 %v8332_v54  ;;  %v2124_v32 = vpack.c.bf16 %v2111_v19, %v2110_v48  ;;  %v1760_v17 = vmul.f32 %v6169_v16, %v8198_v0 }
 0x6bb   : > { %2172 = vmatmul.bf16.gmra.mxu1 %v2124_v32 }
 0x6bc   : > { %v6171_v14 = vpop.eup %6170 }
 0x6bd   : > { %v1761_v27 = vmul.f32 %v6171_v14, %v8208_v61  ;;  %v6173_v60 = vpop.eup %6172  ;;  %v8352_v25 = vpop.xlane.xlu1 %2008 }
 0x6be   : > { %3187 = vrot.lane.b32.xlu1 %v6987_v52, %s6661_s17  ;;  %v2112_v0 = vmul.f32 %v6173_v60, %v8179_v38  ;;  %v2022_v38 = vsub.f32 %v8172_v57, %v8289_v43  ;;  %v2919_v57 = vpop.f32.mrf.mxu0 }
 0x6bf   : > { %v2073_v28 = vpop.xlane.xlu0 %2072  ;;  %v1772_v15 = vpack.c.bf16 %v1761_v27, %v1760_v17  ;;  %v8368_v17 = vadd.f32 %v8293_v44, %v8338_v59  ;;  %v8370_v27 = vpop.f32.mrf.mxu1 }
 0x6c0   : > { %6174 = vrcp.f32 %v2073_v28  ;;  %v2050_v14 = vmul.f32 1.442695, %v2022_v38 }
 0x6c1   : > { %2956 = vmax.xlane.f32.xlu2 %v8345_v4  ;;  %1828 = vmatmul.bf16.gmra.mxu2 %v1772_v15 }
 0x6c3   : > { %v8348_v2 = vpop.xlane.xlu2 %1652 }
 0x6c6   : > { %v6175_v13 = vpop.eup %6174 }
 0x6c7   : > { %v2113_v61 = vmul.f32 %v6175_v13, %v8219_v55  ;;  %v8399_v13 = vld [vmem:[%s10014_s4 + $0x28] sm:$0xff] }
 0x6c9   : > { %v2125_v40 = vpack.c.bf16 %v2113_v61, %v2112_v0 }
 0x6cb   : > { %v2075_v62 = vpop.xlane.xlu2 %2074  ;;  %2177 = vmatmul.bf16.gmra.mxu1 %v2125_v40 }
 0x6cc   : > { %6176 = vrcp.f32 %v2075_v62 }
 0x6d2   : > { %v3184_v46 = vpop.permute.xlu0 %3183  ;;  %v6177_v48 = vpop.eup %6176 }
 0x6d3   : > { %v2077_v22 = vpop.xlane.xlu2 %2076  ;;  %5439 = vmatmul.msk.bf16.gmra.mxu3 %vm818_vm1, %v3184_v46  ;;  %v2114_v32 = vmul.f32 %v6177_v48, %v8230_v63  ;;  %v8411_v48 = vpop.f32.mrf.mxu1 }
 0x6d4   : > { %6178 = vrcp.f32 %v2077_v22 }
 0x6d5   : > { %v3536_v33 = vpop.permute.xlu1 %3535  ;;  %6180 = vpow2.f32 %v2050_v14 }
 0x6d6   : > { %5446 = vmatmul.msk.bf16.gmra.mxu0 %vm818_vm1, %v3536_v33 }
 0x6d9   : > { %3539 = vrot.lane.b32.xlu2 %v6977_v35, %s10068_s27  ;;  %v2023_v35 = vsub.f32 %v8211_v20, %v2005_v18  ;;  %v2568_v20 = vpop.f32.mrf.mxu3  ;;  %v8388_v18 = vld [vmem:[%s10014_s4 + $0x20] sm:$0xff] }
 0x6da   : > { %v6179_v55 = vpop.eup %6178 }
 0x6db   : > { %v8362_v19 = vpop.xlane.xlu2 %2598  ;;  %v2115_v16 = vmul.f32 %v6179_v55, %v8233_v58  ;;  %v2052_v63 = vmul.f32 1.442695, %v2023_v35  ;;  %v8376_v58 = vadd.f32 %v2919_v57, %v8307_v45  ;;  %v8378_v28 = vpop.eup %6180  ;;  %v8391_v45 = vadd.f32 %v2568_v20, %v8388_v18 }
 0x6dc   : > { %v1671_v20 = vsub.f32 %v8192_v3, %v8316_v41 }
 0x6dd   : > { %v2126_v21 = vpack.c.bf16 %v2115_v16, %v2114_v32  ;;  %6182 = vpow2.f32 %v2052_v63  ;;  %v8419_v63 = vpop.f32.mrf.mxu1 }
 0x6df   : > { %2182 = vmatmul.bf16.gmra.mxu1 %v2126_v21 }
 0x6e0   : > { %2602 = vmax.xlane.f32.xlu0 %v8368_v17 }
 0x6e1   : > { %v2570_v15 = vpop.f32.mrf.mxu3 }
 0x6e2   : > { %v8402_v0 = vadd.f32 %v2570_v15, %v8399_v13 }
 0x6e3   : > { %v3186_v43 = vpop.permute.xlu2 %3185  ;;  %v8382_v44 = vpop.eup %6182 }
 0x6e4   : > { %5440 = vmatmul.msk.bf16.gmra.mxu3 %vm818_vm1, %v3186_v43 }
 0x6e8   : > { %2958 = vmax.xlane.f32.xlu1 %v8376_v58  ;;  %2082 = vadd.xlane.f32.xlu0 %v8378_v28 }
 0x6f0   : > { %2084 = vadd.xlane.f32.xlu0 %v8382_v44 }
 0x6f8   : > { %2606 = vmax.xlane.f32.xlu0 %v8391_v45 }
 0x6fd   : > { %v8394_v60 = vpop.xlane.xlu0 %2006 }
 0x700   : > { %v8404_v61 = vpop.xlane.xlu1 %2600 }
 0x701   : > { %3189 = vrot.lane.b32.xlu1 %v7007_v12, %s6661_s17 }
 0x702   : > { %2608 = vmax.xlane.f32.xlu2 %v8402_v0 }
 0x705   : > { %v1725_v40 = vpop.xlane.xlu0 %1724 }
 0x706   : > { %6184 = vrcp.f32 %v1725_v40 }
 0x708   : > { %v2079_v62 = vpop.xlane.xlu1 %2078 }
 0x70c   : > { %2764 = vrot.lane.b32.xlu0 %v10114_v36, %s10065_s24  ;;  %v6185_v33 = vpop.eup %6184 }
 0x70d   : > { %v1727_v46 = vpop.xlane.xlu0 %1726  ;;  %v1762_v32 = vmul.f32 %v6185_v33, %v8282_v47  ;;  %v1702_v47 = vmul.f32 1.442695, %v1671_v20 }
 0x70e   : > { %6186 = vrcp.f32 %v1727_v46 }
 0x70f   : > { %6188 = vrcp.f32 %v2079_v62 }
 0x710   : > { %v2081_v22 = vpop.xlane.xlu1 %2080 }
 0x711   : > { %6190 = vrcp.f32 %v2081_v22 }
 0x712   : > { %6192 = vpow2.f32 %v1702_v47 }
 0x714   : > { %v6187_v38 = vpop.eup %6186 }
 0x715   : > { %v6189_v55 = vpop.eup %6188  ;;  %v1763_v16 = vmul.f32 %v6187_v38, %v8295_v49  ;;  %v8425_v49 = vpop.xlane.xlu0 %2952 }
 0x716   : > { %v2116_v35 = vmul.f32 %v6189_v55, %v8285_v6 }
 0x717   : > { %v6191_v14 = vpop.eup %6190  ;;  %v1773_v21 = vpack.c.bf16 %v1763_v16, %v1762_v32 }
 0x718   : > { %v2117_v57 = vmul.f32 %v6191_v14, %v8298_v8  ;;  %v1670_v8 = vsub.f32 %v8225_v42, %v8348_v2  ;;  %v8429_v40 = vpop.xlane.xlu1 %2604  ;;  %v8432_v46 = vpop.eup %6192 }
 0x719   : > { %1833 = vmatmul.bf16.gmra.mxu2 %v1773_v21  ;;  %v2922_v42 = vpop.f32.mrf.mxu0 }
 0x71a   : > { %2762 = vrot.lane.b32.xlu2 %v10112_v31, %s10065_s24  ;;  %v2127_v43 = vpack.c.bf16 %v2117_v57, %v2116_v35  ;;  %v1700_v22 = vmul.f32 1.442695, %v1670_v8  ;;  %v8444_v21 = vadd.f32 %v2922_v42, %v8388_v18  ;;  %v2025_v35 = vsub.f32 %v8215_v50, %v8352_v25 }
 0x71b   : > { %v2024_v42 = vsub.f32 %v8267_v56, %v8394_v60 }
 0x71c   : > { %v8423_v15 = vpop.xlane.xlu2 %2954  ;;  %2187 = vmatmul.bf16.gmra.mxu1 %v2127_v43 }
 0x721   : > { %v2924_v43 = vpop.f32.mrf.mxu0 }
 0x724   : > { %v1729_v6 = vpop.xlane.xlu2 %1728 }
 0x725   : > { %6194 = vrcp.f32 %v1729_v6  ;;  %v8471_v6 = vpop.f32.mrf.mxu1 }
 0x728   : > { %v3538_v62 = vpop.permute.xlu0 %3537 }
 0x729   : > { %5447 = vmatmul.msk.bf16.gmra.mxu0 %vm818_vm1, %v3538_v62 }
 0x72b   : > { %1734 = vadd.xlane.f32.xlu1 %v8432_v46  ;;  %v6195_v33 = vpop.eup %6194 }
 0x72c   : > { %v1731_v3 = vpop.xlane.xlu2 %1730  ;;  %v1764_v55 = vmul.f32 %v6195_v33, %v8325_v30  ;;  %v2056_v30 = vmul.f32 1.442695, %v2025_v35  ;;  %v2054_v35 = vmul.f32 1.442695, %v2024_v42 }
 0x72d   : > { %6196 = vrcp.f32 %v1731_v3 }
 0x72e   : > { %6198 = vpow2.f32 %v1700_v22 }
 0x72f   : > { %6200 = vpow2.f32 %v2056_v30 }
 0x730   : > { %v3188_v41 = vpop.permute.xlu1 %3187 }
 0x731   : > { %5441 = vmatmul.msk.bf16.gmra.mxu3 %vm818_vm1, %v3188_v41 }
 0x733   : > { %v6197_v38 = vpop.eup %6196 }
 0x734   : > { %v8436_v2 = vpop.xlane.xlu2 %2956  ;;  %v1765_v32 = vmul.f32 %v6197_v38, %v8332_v54  ;;  %v8440_v16 = vpop.eup %6198  ;;  %v8451_v54 = vadd.f32 %v2924_v43, %v8399_v13 }
 0x735   : > { %v8456_v20 = vpop.eup %6200  ;;  %v8477_v38 = vpop.f32.mrf.mxu1 }
 0x736   : > { %1732 = vadd.xlane.f32.xlu0 %v8440_v16  ;;  %v1774_v14 = vpack.c.bf16 %v1765_v32, %v1764_v55  ;;  %10150 = vst [vmem:[#allocation37_spill] sm:$0xff] %v8477_v38  ;;  %v2630_v32 = vsub.f32 %v8248_v24, %v8362_v19 }
 0x738   : > { %1838 = vmatmul.bf16.gmra.mxu2 %v1774_v14 }
 0x73c   : > { %v3540_v57 = vpop.permute.xlu2 %3539 }
 0x73d   : > { %5448 = vmatmul.msk.bf16.gmra.mxu0 %vm818_vm1, %v3540_v57  ;;  %v2646_v57 = vmul.f32 1.442695, %v2630_v32 }
 0x73e   : > { %2960 = vmax.xlane.f32.xlu0 %v8444_v21 }
 0x743   : > { %2962 = vmax.xlane.f32.xlu2 %v8451_v54 }
 0x744   : > { %2760 = vrot.lane.b32.xlu1 %v10113_v51, %s10065_s24 }
 0x74b   : > { %2088 = vadd.xlane.f32.xlu2 %v8456_v20 }
 0x74c   : > { %3116 = vrot.lane.b32.xlu1 %v10112_v31, %s10149_s23 }
 0x752   : > { %3118 = vrot.lane.b32.xlu0 %v10114_v36, %s10149_s23 }
 0x753   : > { %v8463_v50 = vpop.xlane.xlu0 %2602 }
 0x754   : > { %3114 = vrot.lane.b32.xlu1 %v10113_v51, %s10149_s23 }
 0x75a   : > { %3541 = vrot.lane.b32.xlu0 %v6987_v52, %s10068_s27 }
 0x75b   : > { %v2083_v25 = vpop.xlane.xlu0 %2082  ;;  %v8473_v22 = vpop.xlane.xlu1 %2958 }
 0x75c   : > { %6202 = vrcp.f32 %v2083_v25  ;;  %v8503_v25 = vld [vmem:[%s10014_s4 + $0x38] sm:$0xff] }
 0x762   : > { %v6203_v8 = vpop.eup %6202 }
 0x763   : > { %v2085_v47 = vpop.xlane.xlu0 %2084  ;;  %2758 = vrot.lane.b32.xlu2 %v10116_v5, %s10065_s24  ;;  %v2118_v3 = vmul.f32 %v6203_v8, %v8378_v28  ;;  %v2573_v28 = vpop.f32.mrf.mxu3 }
 0x764   : > { %6204 = vrcp.f32 %v2085_v47 }
 0x765   : > { %6206 = vpow2.f32 %v2054_v35  ;;  %v2631_v35 = vsub.f32 %v8276_v10, %v8404_v61 }
 0x766   : > { %6208 = vpow2.f32 %v2646_v57 }
 0x76a   : > { %v6205_v62 = vpop.eup %6204 }
 0x76b   : > { %v2119_v41 = vmul.f32 %v6205_v62, %v8382_v44  ;;  %v8482_v55 = vpop.xlane.xlu0 %2606  ;;  %v2451_v44 = vld [vmem:[%s10014_s4 + $0x30] sm:$0xff]  ;;  %v8494_v60 = vpop.eup %6206 }
 0x76c   : > { %v8491_v43 = vadd.f32 %v2573_v28, %v2451_v44  ;;  %v8497_v24 = vpop.eup %6208  ;;  %v2575_v19 = vpop.f32.mrf.mxu3 }
 0x76d   : > { %v2128_v33 = vpack.c.bf16 %v2119_v41, %v2118_v3  ;;  %v8506_v47 = vadd.f32 %v2575_v19, %v8503_v25  ;;  %v2648_v19 = vmul.f32 1.442695, %v2631_v35 }
 0x76f   : > { %2192 = vmatmul.bf16.gmra.mxu1 %v2128_v33 }
 0x773   : > { %v3190_v52 = vpop.permute.xlu1 %3189 }
 0x774   : > { %5442 = vmatmul.msk.bf16.gmra.mxu3 %vm818_vm1, %v3190_v52 }
 0x775   : > { %v8486_v14 = vpop.xlane.xlu2 %2608 }
 0x77d   : > { %v2763_v56 = vpop.permute.xlu2 %2762 }
 0x77e   : > { %v2765_v30 = vpop.permute.xlu0 %2764  ;;  %2610 = vmax.xlane.f32.xlu1 %v8491_v43 }
 0x77f   : > { %2774 = vmatpush.bf16.msrb.mxu2 %v2765_v30  ;;  %v2927_v30 = vpop.f32.mrf.mxu0 }
 0x783   : > { %2775 = vmatpush.bf16.msrb.mxu2 %v2763_v56 }
 0x784   : > { %2086 = vadd.xlane.f32.xlu0 %v8494_v60 }
 0x786   : > { %2678 = vadd.xlane.f32.xlu1 %v8497_v24 }
 0x787   : > { %v2929_v10 = vpop.f32.mrf.mxu0 }
 0x78c   : > { %2612 = vmax.xlane.f32.xlu2 %v8506_v47 }
 0x798   : > { %2756 = vrot.lane.b32.xlu0 %v10115_v53, %s10065_s24 }
 0x79e   : > { %v1735_v8 = vpop.xlane.xlu1 %1734 }
 0x79f   : > { %3112 = vrot.lane.b32.xlu1 %v10116_v5, %s10149_s23  ;;  %6210 = vrcp.f32 %v1735_v8  ;;  %v2984_v8 = vsub.f32 %v8302_v26, %v8425_v49  ;;  %v8536_v49 = vadd.f32 %v2929_v10, %v8503_v25 }
 0x7a0   : > { %3191 = vrot.lane.b32.xlu0 %v7053_v39, %s6661_s17 }
 0x7a4   : > { %2754 = vrot.lane.b32.xlu2 %v10117_v9, %s10065_s24 }
 0x7a5   : > { %v6211_v3 = vpop.eup %6210 }
 0x7a6   : > { %v1767_v52 = vmul.f32 %v6211_v3, %v8432_v46  ;;  %v2985_v3 = vsub.f32 %v8319_v1, %v8423_v15 }
 0x7a8   : > { %v3002_v26 = vmul.f32 1.442695, %v2985_v3 }
 0x7a9   : > { %v1733_v62 = vpop.xlane.xlu0 %1732 }
 0x7aa   : > { %6212 = vrcp.f32 %v1733_v62  ;;  %v3000_v62 = vmul.f32 1.442695, %v2984_v8 }
 0x7ab   : > { %6214 = vpow2.f32 %v2648_v19 }
 0x7ac   : > { %6216 = vpow2.f32 %v3000_v62 }
 0x7ad   : > { %6218 = vpow2.f32 %v3002_v26  ;;  %v2632_v26 = vsub.f32 %v8368_v17, %v8463_v50  ;;  %v2453_v17 = vld [vmem:[%s10014_s4 + $0x40] sm:$0xff]  ;;  %v2987_v50 = vsub.f32 %v8376_v58, %v8473_v22 }
 0x7b0   : > { %v6213_v41 = vpop.eup %6212 }
 0x7b1   : > { %v1766_v33 = vmul.f32 %v6213_v41, %v8440_v16  ;;  %v8523_v57 = vpop.xlane.xlu0 %2960  ;;  %v8531_v61 = vpop.eup %6214 }
 0x7b2   : > { %v8540_v1 = vpop.eup %6216 }
 0x7b3   : > { %v1775_v42 = vpack.c.bf16 %v1767_v52, %v1766_v33  ;;  %v8529_v33 = vadd.f32 %v2927_v30, %v2451_v44  ;;  %v8543_v15 = vpop.eup %6218 }
 0x7b5   : > { %1843 = vmatmul.bf16.gmra.mxu2 %v1775_v42 }
 0x7b6   : > { %v8519_v32 = vpop.xlane.xlu2 %2962  ;;  %v2761_v28 = vpop.permute.xlu1 %2760 }
 0x7b7   : > { %2776 = vmatpush.bf16.msrb.mxu2 %v2761_v28  ;;  %v8560_v28 = vpop.f32.mrf.mxu1 }
 0x7b8   : > { %10151 = vst [vmem:[#allocation36_spill] sm:$0xff] %v8560_v28 }
 0x7be   : > { %v2089_v56 = vpop.xlane.xlu2 %2088  ;;  %v3117_v16 = vpop.permute.xlu1 %3116 }
 0x7bf   : > { %6220 = vrcp.f32 %v2089_v56  ;;  %v2578_v56 = vpop.f32.mrf.mxu3 }
 0x7c4   : > { %v3119_v46 = vpop.permute.xlu0 %3118 }
 0x7c5   : > { %3128 = vmatpush.bf16.msrb.mxu1 %v3119_v46  ;;  %v6221_v35 = vpop.eup %6220  ;;  %v8566_v46 = vpop.f32.mrf.mxu1 }
 0x7c6   : > { %v2759_v41 = vpop.permute.xlu2 %2758  ;;  %v3115_v52 = vpop.permute.xlu1 %3114  ;;  %10152 = vst [vmem:[#allocation22_spill] sm:$0xff] %v8566_v46 }
 0x7c7   : > { %2777 = vmatpush.bf16.msrb.mxu2 %v2759_v41  ;;  %v2580_v10 = vpop.f32.mrf.mxu3 }
 0x7c9   : > { %2964 = vmax.xlane.f32.xlu1 %v8529_v33  ;;  %3129 = vmatpush.bf16.msrb.mxu1 %v3117_v16  ;;  %v2121_v16 = vmul.f32 %v6221_v35, %v8456_v20  ;;  %v2454_v20 = vld [vmem:[%s10014_s4 + $0x48] sm:$0xff]  ;;  %v2932_v35 = vpop.f32.mrf.mxu0 }
 0x7ca   : > { %2680 = vadd.xlane.f32.xlu0 %v8531_v61 }
 0x7cc   : > { %v3542_v42 = vpop.permute.xlu0 %3541 }
 0x7cd   : > { %2966 = vmax.xlane.f32.xlu2 %v8536_v49  ;;  %3130 = vmatpush.bf16.msrb.mxu1 %v3115_v52  ;;  %v8577_v52 = vadd.f32 %v2580_v10, %v2454_v20 }
 0x7ce   : > { %5449 = vmatmul.msk.bf16.gmra.mxu0 %vm818_vm1, %v3542_v42 }
 0x7d1   : > { %3032 = vadd.xlane.f32.xlu1 %v8540_v1  ;;  %v2934_v10 = vpop.f32.mrf.mxu0 }
 0x7d2   : > { %v8597_v58 = vadd.f32 %v2934_v10, %v2454_v20  ;;  %v2455_v20 = vld [vmem:[%s10014_s4 + $0x50] sm:$0xff] }
 0x7d5   : > { %3034 = vadd.xlane.f32.xlu2 %v8543_v15 }
 0x7de   : > { %3110 = vrot.lane.b32.xlu0 %v10115_v53, %s10149_s23 }
 0x7e6   : > { %2752 = vrot.lane.b32.xlu0 %v10118_v11, %s10065_s24 }
 0x7ea   : > { %2750 = vrot.lane.b32.xlu1 %v10119_v37, %s10065_s24 }
 0x7ed   : > { %3106 = vrot.lane.b32.xlu2 %v10118_v11, %s10149_s23 }
 0x7ee   : > { %3543 = vrot.lane.b32.xlu0 %v7007_v12, %s10068_s27 }
 0x7f1   : > { %v8562_v19 = vpop.xlane.xlu1 %2610 }
 0x7f5   : > { %3545 = vrot.lane.b32.xlu2 %v7053_v39, %s10068_s27 }
 0x7f6   : > { %3108 = vrot.lane.b32.xlu0 %v10117_v9, %s10149_s23 }
 0x7f7   : > { %v2087_v44 = vpop.xlane.xlu0 %2086 }
 0x7f8   : > { %6222 = vrcp.f32 %v2087_v44  ;;  %v2650_v44 = vmul.f32 1.442695, %v2632_v26  ;;  %v2583_v26 = vpop.f32.mrf.mxu3 }
 0x7f9   : > { %v8570_v62 = vpop.xlane.xlu1 %2678 }
 0x7fa   : > { %6224 = vpow2.f32 %v2650_v44  ;;  %v8613_v44 = vadd.f32 %v2583_v26, %v2455_v20 }
 0x7fe   : > { %v6223_v30 = vpop.eup %6222 }
 0x7ff   : > { %v2120_v8 = vmul.f32 %v6223_v30, %v8494_v60  ;;  %v8568_v39 = vpop.xlane.xlu2 %2612  ;;  %v2633_v30 = vsub.f32 %v8313_v29, %v8429_v40  ;;  %v2634_v40 = vsub.f32 %v8391_v45, %v8482_v55  ;;  %v2456_v45 = vld [vmem:[%s10014_s4 + $0x58] sm:$0xff] }
 0x801   : > { %v2129_v12 = vpack.c.bf16 %v2121_v16, %v2120_v8  ;;  %v8588_v8 = vadd.f32 %v2932_v35, %v2453_v17  ;;  %v3006_v16 = vmul.f32 1.442695, %v2987_v50  ;;  %v2988_v50 = vsub.f32 %v8444_v21, %v8523_v57 }
 0x803   : > { %2197 = vmatmul.bf16.gmra.mxu1 %v2129_v12  ;;  %v8591_v12 = vpop.eup %6224  ;;  %6226 = vpow2.f32 %v3006_v16 }
 0x807   : > { %v2755_v41 = vpop.permute.xlu2 %2754 }
 0x809   : > { %v8600_v29 = vpop.eup %6226 }
 0x80a   : > { %v2757_v3 = vpop.permute.xlu0 %2756 }
 0x80b   : > { %2778 = vmatpush.bf16.msrb.mxu2 %v2757_v3  ;;  %v2652_v3 = vmul.f32 1.442695, %v2633_v30  ;;  %v2989_v30 = vsub.f32 %v8451_v54, %v8519_v32  ;;  %v2637_v32 = vsub.f32 %v8506_v47, %v8568_v39 }
 0x80d   : > { %6228 = vpow2.f32 %v2652_v3  ;;  %v3008_v3 = vmul.f32 1.442695, %v2988_v50  ;;  %v3010_v26 = vmul.f32 1.442695, %v2989_v30  ;;  %v8658_v30 = vld [vmem:[%s10014_s4 + $0x68] sm:$0xff] }
 0x80f   : > { %2779 = vmatpush.bf16.msrb.mxu2 %v2755_v41  ;;  %v8593_v41 = vadd.f32 %v2578_v56, %v2453_v17  ;;  %v2635_v56 = vsub.f32 %v8402_v0, %v8486_v14  ;;  %v2937_v0 = vpop.f32.mrf.mxu0 }
 0x810   : > { %v8632_v10 = vadd.f32 %v2937_v0, %v2455_v20 }
 0x811   : > { %v3113_v60 = vpop.permute.xlu1 %3112  ;;  %v2656_v55 = vmul.f32 1.442695, %v2635_v56 }
 0x812   : > { %v3192_v42 = vpop.permute.xlu0 %3191  ;;  %3131 = vmatpush.bf16.msrb.mxu1 %v3113_v60  ;;  %v2585_v60 = vpop.f32.mrf.mxu3 }
 0x813   : > { %5443 = vmatmul.msk.bf16.gmra.mxu3 %vm818_vm1, %v3192_v42  ;;  %v8605_v22 = vpop.eup %6228  ;;  %v2654_v42 = vmul.f32 1.442695, %v2634_v40  ;;  %v8618_v35 = vadd.f32 %v2585_v60, %v2456_v45 }
 0x814   : > { %2616 = vmax.xlane.f32.xlu1 %v8577_v52 }
 0x815   : > { %6230 = vpow2.f32 %v2654_v42  ;;  %v2457_v42 = vld [vmem:[%s10014_s4 + $0x60] sm:$0xff] }
 0x816   : > { %6232 = vpow2.f32 %v2656_v55  ;;  %v2660_v55 = vmul.f32 1.442695, %v2637_v32 }
 0x817   : > { %v2939_v16 = vpop.f32.mrf.mxu0  ;;  %6234 = vpow2.f32 %v3008_v3 }
 0x818   : > { %v8634_v40 = vadd.f32 %v2939_v16, %v2456_v45  ;;  %6236 = vpow2.f32 %v3010_v26 }
 0x819   : > { %6238 = vpow2.f32 %v2660_v55 }
 0x81a   : > { %v2588_v21 = vpop.f32.mrf.mxu3 }
 0x81b   : > { %v8622_v14 = vpop.eup %6230  ;;  %v8653_v0 = vadd.f32 %v2588_v21, %v2457_v42 }
 0x81c   : > { %2968 = vmax.xlane.f32.xlu1 %v8588_v8  ;;  %v8625_v17 = vpop.eup %6232 }
 0x81d   : > { %v8640_v56 = vpop.eup %6234 }
 0x81e   : > { %2682 = vadd.xlane.f32.xlu2 %v8591_v12  ;;  %v8643_v54 = vpop.eup %6236 }
 0x81f   : > { %v2942_v21 = vpop.f32.mrf.mxu0  ;;  %v8667_v7 = vpop.eup %6238 }
 0x820   : > { %2614 = vmax.xlane.f32.xlu0 %v8593_v41  ;;  %v8670_v46 = vadd.f32 %v2942_v21, %v2457_v42 }
 0x822   : > { %v2590_v45 = vpop.f32.mrf.mxu3 }
 0x823   : > { %v8661_v47 = vadd.f32 %v2590_v45, %v8658_v30 }
 0x824   : > { %2970 = vmax.xlane.f32.xlu1 %v8597_v58 }
 0x826   : > { %3038 = vadd.xlane.f32.xlu2 %v8600_v29 }
 0x828   : > { %2684 = vadd.xlane.f32.xlu0 %v8605_v22 }
 0x82c   : > { %2618 = vmax.xlane.f32.xlu1 %v8613_v44 }
 0x82e   : > { %2620 = vmax.xlane.f32.xlu2 %v8618_v35 }
 0x834   : > { %2686 = vadd.xlane.f32.xlu1 %v8622_v14 }
 0x836   : > { %2688 = vadd.xlane.f32.xlu2 %v8625_v17 }
 0x83c   : > { %2972 = vmax.xlane.f32.xlu1 %v8632_v10  ;;  %3104 = vrot.lane.b32.xlu0 %v10119_v37, %s10149_s23  ;;  %v2965_v50 = vpop.xlane.xlu1 %2964 }
 0x83d   : > { %v2681_v20 = vpop.xlane.xlu0 %2680  ;;  %v2990_v39 = vsub.f32 %v8529_v33, %v2965_v50  ;;  %v2593_v33 = vpop.f32.mrf.mxu3 }
 0x83e   : > { %2974 = vmax.xlane.f32.xlu2 %v8634_v40  ;;  %6240 = vrcp.f32 %v2681_v20  ;;  %v2986_v20 = vsub.f32 %v8345_v4, %v8436_v2  ;;  %v2944_v2 = vpop.f32.mrf.mxu0 }
 0x83f   : > { %v3012_v32 = vmul.f32 1.442695, %v2990_v39  ;;  %6242 = vrcp.f32 %v8570_v62 }
 0x840   : > { %v2967_v57 = vpop.xlane.xlu2 %2966 }
 0x841   : > { %v2991_v16 = vsub.f32 %v8536_v49, %v2967_v57  ;;  %6244 = vpow2.f32 %v3012_v32  ;;  %v8675_v49 = vpop.f32.mrf.mxu2 }
 0x842   : > { %10153 = vst [vmem:[#allocation16_spill] sm:$0xff] %v8675_v49 }
 0x843   : > { %v3014_v45 = vmul.f32 1.442695, %v2991_v16 }
 0x844   : > { %3040 = vadd.xlane.f32.xlu1 %v8640_v56  ;;  %v8672_v55 = vpop.xlane.xlu1 %3032  ;;  %v6241_v57 = vpop.eup %6240 }
 0x845   : > { %6246 = vpow2.f32 %v3014_v45  ;;  %v6243_v39 = vpop.eup %6242  ;;  %v2727_v42 = vmul.f32 %v6241_v57, %v8531_v61  ;;  %v8692_v45 = vld [vmem:[%s10014_s4 + $0x78] sm:$0xff]  ;;  %v2595_v61 = vpop.f32.mrf.mxu3 }
 0x846   : > { %3042 = vadd.xlane.f32.xlu2 %v8643_v54  ;;  %v2726_v21 = vmul.f32 %v6243_v39, %v8497_v24  ;;  %v2636_v24 = vsub.f32 %v8491_v43, %v8562_v19  ;;  %v2459_v43 = vld [vmem:[%s10014_s4 + $0x70] sm:$0xff] }
 0x847   : > { %v8682_v16 = vpop.eup %6244 }
 0x848   : > { %v8648_v60 = vpop.xlane.xlu2 %3034  ;;  %v2742_v4 = vpack.c.bf16 %v2727_v42, %v2726_v21  ;;  %v2947_v42 = vpop.f32.mrf.mxu0 }
 0x849   : > { %v8696_v57 = vpop.f32.mrf.mxu2  ;;  %v8709_v19 = vadd.f32 %v2947_v42, %v2459_v43 }
 0x84a   : > { %10154 = vst [vmem:[#allocation23_spill] sm:$0xff] %v8696_v57 }
 0x84b   : > { %v8686_v49 = vpop.eup %6246 }
 0x84c   : > { %2622 = vmax.xlane.f32.xlu1 %v8653_v0 }
 0x84e   : > { %2624 = vmax.xlane.f32.xlu2 %v8661_v47 }
 0x850   : > { %v3107_v3 = vpop.permute.xlu2 %3106  ;;  %v3111_v26 = vpop.permute.xlu0 %3110 }
 0x851   : > { %3132 = vmatpush.bf16.msrb.mxu1 %v3111_v26  ;;  %v3004_v26 = vmul.f32 1.442695, %v2986_v20 }
 0x853   : > { %6248 = vpow2.f32 %v3004_v26 }
 0x854   : > { %2692 = vadd.xlane.f32.xlu1 %v8667_v7 }
 0x856   : > { %2976 = vmax.xlane.f32.xlu2 %v8670_v46 }
 0x858   : > { %v3546_v50 = vpop.permute.xlu2 %3545  ;;  %v2753_v62 = vpop.permute.xlu0 %2752 }
 0x859   : > { %2780 = vmatpush.bf16.msrb.mxu2 %v2753_v62  ;;  %5451 = vmatmul.msk.bf16.vlgmr.msra.gmra.mxu3 %vm818_vm1, %v3546_v50  ;;  %v8700_v50 = vadd.f32 %v2595_v61, %v8692_v45  ;;  %v2658_v62 = vmul.f32 1.442695, %v2636_v24  ;;  %v8703_v39 = vpop.eup %6248 }
 0x85b   : > { %6250 = vpow2.f32 %v2658_v62 }
 0x85c   : > { %3044 = vadd.xlane.f32.xlu1 %v8682_v16  ;;  %v2751_v32 = vpop.permute.xlu1 %2750 }
 0x85d   : > { %2781 = vmatpush.bf16.msrb.mxu2 %v2751_v32  ;;  %v8716_v32 = vadd.f32 %v2944_v2, %v8658_v30  ;;  %v3266_v2 = vpop.f32.mrf.mxu3 }
 0x85e   : > { %3046 = vadd.xlane.f32.xlu2 %v8686_v49 }
 0x860   : > { %v3544_v20 = vpop.permute.xlu0 %3543  ;;  %2782 = vmatmul.bf16.vlgmr.msrb.gmra.mxu2 %v2742_v4  ;;  %v8719_v4 = vadd.f32 %v2593_v33, %v2459_v43 }
 0x861   : > { %5450 = vmatmul.msk.bf16.gmra.mxu0 %vm818_vm1, %v3544_v20  ;;  %v8712_v21 = vpop.eup %6250 }
 0x864   : > { %2628 = vmax.xlane.f32.xlu1 %v8700_v50 }
 0x866   : > { %3036 = vadd.xlane.f32.xlu0 %v8703_v39 }
 0x868   : > { %v3109_v26 = vpop.permute.xlu0 %3108 }
 0x869   : > { %3133 = vmatpush.bf16.msrb.mxu1 %v3109_v26 }
 0x86c   : > { %2980 = vmax.xlane.f32.xlu1 %v8709_v19 }
 0x86d   : > { %3134 = vmatpush.bf16.msrb.mxu1 %v3107_v3 }
 0x86e   : > { %2690 = vadd.xlane.f32.xlu0 %v8712_v21 }
 0x876   : > { %2978 = vmax.xlane.f32.xlu0 %v8716_v32 }
 0x87e   : > { %2626 = vmax.xlane.f32.xlu0 %v8719_v4 }
 0x887   : > { %v2617_v61 = vpop.xlane.xlu1 %2616 }
 0x888   : > { %v2639_v24 = vsub.f32 %v8577_v52, %v2617_v61 }
 0x88a   : > { %v2664_v20 = vmul.f32 1.442695, %v2639_v24 }
 0x88c   : > { %6252 = vpow2.f32 %v2664_v20  ;;  %v8733_v20 = vpop.f32.mrf.mxu2 }
 0x88d   : > { %10155 = vst [vmem:[#allocation17_spill] sm:$0xff] %v8733_v20 }
 0x88f   : > { %v2969_v62 = vpop.xlane.xlu1 %2968 }
 0x890   : > { %v2992_v42 = vsub.f32 %v8588_v8, %v2969_v62 }
 0x891   : > { %v2683_v3 = vpop.xlane.xlu2 %2682 }
 0x892   : > { %v8724_v26 = vpop.eup %6252  ;;  %v3016_v57 = vmul.f32 1.442695, %v2992_v42  ;;  %v2949_v42 = vpop.f32.mrf.mxu0 }
 0x893   : > { %v2615_v30 = vpop.xlane.xlu0 %2614  ;;  %2696 = vadd.xlane.f32.xlu0 %v8724_v26 }
 0x894   : > { %6254 = vpow2.f32 %v3016_v57  ;;  %v2638_v33 = vsub.f32 %v8593_v41, %v2615_v30  ;;  %v3268_v57 = vpop.f32.mrf.mxu3 }
 0x896   : > { %v2662_v43 = vmul.f32 1.442695, %v2638_v33  ;;  %v8741_v33 = vadd.f32 %v3268_v57, %v8272_v23  ;;  %v8753_v23 = vadd.f32 %v2949_v42, %v8692_v45 }
 0x897   : > { %v2971_v28 = vpop.xlane.xlu1 %2970 }
 0x898   : > { %6256 = vpow2.f32 %v2662_v43  ;;  %v2993_v52 = vsub.f32 %v8597_v58, %v2971_v28 }
 0x899   : > { %v8729_v61 = vpop.xlane.xlu2 %3038  ;;  %6258 = vrcp.f32 %v2683_v3 }
 0x89a   : > { %v8731_v24 = vpop.eup %6254  ;;  %v3018_v8 = vmul.f32 1.442695, %v2993_v52 }
 0x89b   : > { %v2685_v62 = vpop.xlane.xlu0 %2684  ;;  %3048 = vadd.xlane.f32.xlu0 %v8731_v24 }
 0x89c   : > { %6260 = vpow2.f32 %v3018_v8  ;;  %v3620_v8 = vpop.f32.mrf.mxu0 }
 0x89d   : > { %6262 = vrcp.f32 %v2685_v62 }
 0x89e   : > { %v8736_v41 = vpop.eup %6256  ;;  %6264 = vrcp.f32 %v8648_v60 }
 0x89f   : > { %2694 = vadd.xlane.f32.xlu2 %v8736_v41  ;;  %v2619_v28 = vpop.xlane.xlu1 %2618  ;;  %v6259_v30 = vpop.eup %6258 }
 0x8a0   : > { %v2640_v58 = vsub.f32 %v8613_v44, %v2619_v28  ;;  %v2728_v62 = vmul.f32 %v6259_v30, %v8591_v12  ;;  %v8750_v28 = vpop.f32.mrf.mxu2  ;;  %v6552_v12 = vld [vmem:[%s10014_s4] sm:$0xff] }
 0x8a1   : > { %v2621_v43 = vpop.xlane.xlu2 %2620  ;;  %10156 = vst [vmem:[#allocation25_spill] sm:$0xff] %v8750_v28 }
 0x8a2   : > { %v8743_v3 = vpop.eup %6260  ;;  %v2666_v52 = vmul.f32 1.442695, %v2640_v58  ;;  %v8757_v58 = vpop.f32.mrf.mxu1  ;;  %v2641_v38 = vsub.f32 %v8618_v35, %v2621_v43  ;;  %v8772_v43 = vadd.f32 %v6552_v12, %v3266_v2 }
 0x8a3   : > { %v6263_v20 = vpop.eup %6262  ;;  %3308 = vmax.xlane.f32.xlu0 %v8741_v33  ;;  %3050 = vadd.xlane.f32.xlu1 %v8743_v3  ;;  %10157 = vst [vmem:[#allocation26_spill] sm:$0xff] %v8757_v58 }
 0x8a4   : > { %6266 = vpow2.f32 %v2666_v52  ;;  %v2729_v44 = vmul.f32 %v6263_v20, %v8605_v22  ;;  %v6265_v52 = vpop.eup %6264  ;;  %v8763_v22 = vadd.f32 %v6552_v12, %v3620_v8  ;;  %v2668_v42 = vmul.f32 1.442695, %v2641_v38  ;;  %v6553_v38 = vld [vmem:[%s10014_s4 + $0x8] sm:$0xff] }
 0x8a5   : > { %6268 = vrcp.f32 %v8672_v55  ;;  %v3081_v35 = vmul.f32 %v6265_v52, %v8543_v15 }
 0x8a6   : > { %v2743_v57 = vpack.c.bf16 %v2729_v44, %v2728_v62  ;;  %v3622_v62 = vpop.f32.mrf.mxu0 }
 0x8a7   : > { %2982 = vmax.xlane.f32.xlu2 %v8753_v23  ;;  %v2687_v60 = vpop.xlane.xlu1 %2686  ;;  %v8780_v15 = vadd.f32 %v6553_v38, %v3622_v62 }
 0x8a8   : > { %2787 = vmatmul.bf16.gmra.mxu2 %v2743_v57  ;;  %v8770_v30 = vpop.f32.mrf.mxu2 }
 0x8a9   : > { %v2689_v45 = vpop.xlane.xlu2 %2688  ;;  %10158 = vst [vmem:[#allocation27_spill] sm:$0xff] %v8770_v30 }
 0x8aa   : > { %v8765_v20 = vpop.eup %6266  ;;  %6270 = vrcp.f32 %v2689_v45  ;;  %v8782_v52 = vpop.f32.mrf.mxu1 }
 0x8ab   : > { %v6269_v55 = vpop.eup %6268  ;;  %6272 = vrcp.f32 %v2687_v60  ;;  %3660 = vmax.xlane.f32.xlu0 %v8763_v22  ;;  %2698 = vadd.xlane.f32.xlu1 %v8765_v20  ;;  %10159 = vst [vmem:[#allocation28_spill] sm:$0xff] %v8782_v52 }
 0x8ac   : > { %v3080_v8 = vmul.f32 %v6269_v55, %v8540_v1  ;;  %6274 = vpow2.f32 %v2668_v42 }
 0x8ae   : > { %v3105_v44 = vpop.permute.xlu0 %3104  ;;  %v3096_v45 = vpack.c.bf16 %v3081_v35, %v3080_v8  ;;  %v3271_v8 = vpop.f32.mrf.mxu3 }
 0x8af   : > { %3306 = vmax.xlane.f32.xlu2 %v8772_v43  ;;  %3135 = vmatpush.bf16.msrb.mxu1 %v3105_v44  ;;  %v2973_v57 = vpop.xlane.xlu1 %2972 }
 0x8b0   : > { %v6271_v60 = vpop.eup %6270  ;;  %v2994_v28 = vsub.f32 %v8632_v10, %v2973_v57  ;;  %v8793_v57 = vpop.f32.mrf.mxu2 }
 0x8b1   : > { %v6273_v58 = vpop.eup %6272  ;;  %v2975_v2 = vpop.xlane.xlu2 %2974  ;;  %v2731_v12 = vmul.f32 %v6271_v60, %v8625_v17  ;;  %10160 = vst [vmem:[#allocation30_spill] sm:$0xff] %v8793_v57  ;;  %v8796_v17 = vadd.f32 %v3271_v8, %v8338_v59 }
 0x8b2   : > { %v2995_v1 = vsub.f32 %v8634_v40, %v2975_v2  ;;  %3136 = vmatmul.bf16.vlgmr.msrb.gmra.mxu1 %v3096_v45  ;;  %v3020_v55 = vmul.f32 1.442695, %v2994_v28  ;;  %v2730_v10 = vmul.f32 %v6273_v58, %v8622_v14  ;;  %v8788_v42 = vpop.eup %6274 }
 0x8b3   : > { %3662 = vmax.xlane.f32.xlu1 %v8780_v15 }
 0x8b4   : > { %v3022_v35 = vmul.f32 1.442695, %v2995_v1  ;;  %v2744_v62 = vpack.c.bf16 %v2731_v12, %v2730_v10  ;;  %v3625_v1 = vpop.f32.mrf.mxu0 }
 0x8b6   : > { %6276 = vpow2.f32 %v3022_v35  ;;  %v3273_v38 = vpop.f32.mrf.mxu3 }
 0x8b7   : > { %2700 = vadd.xlane.f32.xlu2 %v8788_v42  ;;  %v8791_v44 = vpop.xlane.xlu1 %3040  ;;  %6278 = vpow2.f32 %v3020_v55  ;;  %v6554_v55 = vld [vmem:[%s10014_s4 + $0x18] sm:$0xff] }
 0x8b8   : > { %2792 = vmatmul.bf16.gmra.mxu2 %v2744_v62  ;;  %v8812_v35 = vadd.f32 %v6554_v55, %v3273_v38 }
 0x8b9   : > { %v8798_v40 = vpop.xlane.xlu2 %3042 }
 0x8bb   : > { %3310 = vmax.xlane.f32.xlu1 %v8796_v17 }
 0x8bc   : > { %v8801_v14 = vpop.eup %6276 }
 0x8bd   : > { %3054 = vadd.xlane.f32.xlu0 %v8801_v14  ;;  %v8804_v28 = vpop.eup %6278 }
 0x8be   : > { %v3276_v38 = vpop.f32.mrf.mxu3 }
 0x8bf   : > { %3052 = vadd.xlane.f32.xlu2 %v8804_v28  ;;  %v2623_v58 = vpop.xlane.xlu1 %2622 }
 0x8c0   : > { %v2642_v60 = vsub.f32 %v8653_v0, %v2623_v58 }
 0x8c1   : > { %v2625_v45 = vpop.xlane.xlu2 %2624 }
 0x8c2   : > { %v2670_v2 = vmul.f32 1.442695, %v2642_v60  ;;  %v2643_v59 = vsub.f32 %v8661_v47, %v2625_v45  ;;  %v6555_v60 = vld [vmem:[%s10014_s4 + $0x10] sm:$0xff] }
 0x8c3   : > { %v8824_v45 = vadd.f32 %v6555_v60, %v3625_v1  ;;  %v8841_v60 = vadd.f32 %v3276_v38, %v8388_v18 }
 0x8c4   : > { %6280 = vpow2.f32 %v2670_v2  ;;  %v2672_v12 = vmul.f32 1.442695, %v2643_v59  ;;  %v3627_v2 = vpop.f32.mrf.mxu0 }
 0x8c6   : > { %6282 = vpow2.f32 %v2672_v12 }
 0x8c7   : > { %3312 = vmax.xlane.f32.xlu2 %v8812_v35  ;;  %v2693_v10 = vpop.xlane.xlu1 %2692 }
 0x8c9   : > { %v2977_v8 = vpop.xlane.xlu2 %2976 }
 0x8ca   : > { %v8815_v0 = vpop.eup %6280  ;;  %v2996_v62 = vsub.f32 %v8670_v46, %v2977_v8  ;;  %v8830_v46 = vadd.f32 %v6554_v55, %v3627_v2  ;;  %v8836_v8 = vpop.f32.mrf.mxu1 }
 0x8cb   : > { %2702 = vadd.xlane.f32.xlu0 %v8815_v0  ;;  %10161 = vst [vmem:[#allocation31_spill] sm:$0xff] %v8836_v8 }
 0x8cc   : > { %v8819_v47 = vpop.eup %6282  ;;  %v3024_v58 = vmul.f32 1.442695, %v2996_v62  ;;  %v3278_v62 = vpop.f32.mrf.mxu3 }
 0x8cd   : > { %2704 = vadd.xlane.f32.xlu1 %v8819_v47  ;;  %v8844_v2 = vadd.f32 %v3278_v62, %v8399_v13 }
 0x8ce   : > { %6284 = vpow2.f32 %v3024_v58 }
 0x8cf   : > { %3664 = vmax.xlane.f32.xlu2 %v8824_v45  ;;  %v8828_v59 = vpop.xlane.xlu1 %3044  ;;  %6286 = vrcp.f32 %v8729_v61 }
 0x8d2   : > { %v8848_v61 = vpop.f32.mrf.mxu1 }
 0x8d3   : > { %3666 = vmax.xlane.f32.xlu0 %v8830_v46  ;;  %10162 = vst [vmem:[#allocation32_spill] sm:$0xff] %v8848_v61 }
 0x8d4   : > { %v8833_v12 = vpop.eup %6284 }
 0x8d5   : > { %3056 = vadd.xlane.f32.xlu1 %v8833_v12  ;;  %v6287_v57 = vpop.eup %6286 }
 0x8d6   : > { %v3083_v38 = vmul.f32 %v6287_v57, %v8600_v29 }
 0x8d7   : > { %v2629_v1 = vpop.xlane.xlu1 %2628 }
 0x8d8   : > { %v2645_v58 = vsub.f32 %v8700_v50, %v2629_v1 }
 0x8d9   : > { %v3037_v30 = vpop.xlane.xlu0 %3036 }
 0x8da   : > { %v2676_v55 = vmul.f32 1.442695, %v2645_v58  ;;  %6288 = vrcp.f32 %v3037_v30  ;;  %v8852_v30 = vpop.f32.mrf.mxu2 }
 0x8db   : > { %3314 = vmax.xlane.f32.xlu0 %v8841_v60  ;;  %10163 = vst [vmem:[#allocation29_spill] sm:$0xff] %v8852_v30 }
 0x8dc   : > { %6290 = vpow2.f32 %v2676_v55  ;;  %v8859_v55 = vpop.f32.mrf.mxu1 }
 0x8dd   : > { %3316 = vmax.xlane.f32.xlu1 %v8844_v2  ;;  %6292 = vrcp.f32 %v2693_v10  ;;  %v3630_v10 = vpop.f32.mrf.mxu0  ;;  %10164 = vst [vmem:[#allocation33_spill] sm:$0xff] %v8859_v55 }
 0x8e0   : > { %v6289_v8 = vpop.eup %6288 }
 0x8e1   : > { %v2691_v50 = vpop.xlane.xlu0 %2690  ;;  %v3082_v18 = vmul.f32 %v6289_v8, %v8703_v39 }
 0x8e2   : > { %6294 = vrcp.f32 %v2691_v50  ;;  %v8854_v1 = vpop.eup %6290  ;;  %v6556_v50 = vld [vmem:[%s10014_s4 + $0x20] sm:$0xff] }
 0x8e3   : > { %v3097_v13 = vpack.c.bf16 %v3083_v38, %v3082_v18  ;;  %v6293_v62 = vpop.eup %6292  ;;  %6296 = vrcp.f32 %v8798_v40  ;;  %v8867_v18 = vadd.f32 %v6556_v50, %v3630_v10 }
 0x8e4   : > { %6298 = vrcp.f32 %v8791_v44  ;;  %v2733_v57 = vmul.f32 %v6293_v62, %v8667_v7  ;;  %v8869_v44 = vpop.f32.mrf.mxu2 }
 0x8e5   : > { %3141 = vmatmul.bf16.gmra.mxu1 %v3097_v13  ;;  %2708 = vadd.xlane.f32.xlu1 %v8854_v1  ;;  %v2981_v13 = vpop.xlane.xlu1 %2980  ;;  %10165 = vst [vmem:[#allocation13_spill] sm:$0xff] %v8869_v44  ;;  %v3632_v62 = vpop.f32.mrf.mxu0 }
 0x8e6   : > { %v2998_v7 = vsub.f32 %v8709_v19, %v2981_v13 }
 0x8e8   : > { %v6295_v58 = vpop.eup %6294 }
 0x8e9   : > { %v2979_v39 = vpop.xlane.xlu0 %2978  ;;  %v2732_v29 = vmul.f32 %v6295_v58, %v8712_v21  ;;  %v6297_v38 = vpop.eup %6296 }
 0x8ea   : > { %v2997_v8 = vsub.f32 %v8716_v32, %v2979_v39  ;;  %v6299_v21 = vpop.eup %6298  ;;  %v3085_v32 = vmul.f32 %v6297_v38, %v8643_v54  ;;  %v3047_v39 = vpop.xlane.xlu2 %3046 }
 0x8eb   : > { %v2745_v40 = vpack.c.bf16 %v2733_v57, %v2732_v29  ;;  %v3084_v10 = vmul.f32 %v6299_v21, %v8640_v56  ;;  %v8876_v57 = vpop.f32.mrf.mxu1 }
 0x8ec   : > { %v3026_v30 = vmul.f32 1.442695, %v2997_v8  ;;  %10166 = vst [vmem:[#allocation39_spill] sm:$0xff] %v8876_v57  ;;  %v3028_v8 = vmul.f32 1.442695, %v2998_v7 }
 0x8ed   : > { %2797 = vmatmul.bf16.gmra.mxu2 %v2745_v40  ;;  %3668 = vmax.xlane.f32.xlu1 %v8867_v18  ;;  %v3098_v50 = vpack.c.bf16 %v3085_v32, %v3084_v10  ;;  %v3635_v52 = vpop.f32.mrf.mxu0 }
 0x8ee   : > { %6300 = vpow2.f32 %v3026_v30  ;;  %v6557_v30 = vld [vmem:[%s10014_s4 + $0x28] sm:$0xff] }
 0x8ef   : > { %v8883_v19 = vadd.f32 %v6557_v30, %v3632_v62  ;;  %6302 = vrcp.f32 %v3047_v39 }
 0x8f1   : > { %v2627_v58 = vpop.xlane.xlu0 %2626 }
 0x8f2   : > { %v2644_v29 = vsub.f32 %v8719_v4, %v2627_v58 }
 0x8f3   : > { %v8888_v4 = vpop.f32.mrf.mxu1 }
 0x8f4   : > { %v8878_v40 = vpop.eup %6300  ;;  %v2674_v54 = vmul.f32 1.442695, %v2644_v29  ;;  %10167 = vst [vmem:[#allocation34_spill] sm:$0xff] %v8888_v4  ;;  %v8904_v29 = vpop.f32.mrf.mxu2 }
 0x8f5   : > { %3058 = vadd.xlane.f32.xlu2 %v8878_v40  ;;  %3146 = vmatmul.bf16.gmra.mxu1 %v3098_v50  ;;  %v6303_v56 = vpop.eup %6302 }
 0x8f6   : > { %6304 = vpow2.f32 %v2674_v54  ;;  %3670 = vmax.xlane.f32.xlu1 %v8883_v19  ;;  %v3087_v7 = vmul.f32 %v6303_v56, %v8686_v49 }
 0x8f7   : > { %6306 = vpow2.f32 %v3028_v8 }
 0x8f8   : > { %6308 = vrcp.f32 %v8828_v59 }
 0x8fb   : > { %v8898_v58 = vpop.f32.mrf.mxu1 }
 0x8fc   : > { %v8890_v38 = vpop.eup %6304  ;;  %10168 = vst [vmem:[#allocation11_spill] sm:$0xff] %v8898_v58 }
 0x8fd   : > { %v8892_v13 = vpop.eup %6306  ;;  %2706 = vadd.xlane.f32.xlu0 %v8890_v38 }
 0x8fe   : > { %v6309_v21 = vpop.eup %6308  ;;  %3060 = vadd.xlane.f32.xlu1 %v8892_v13 }
 0x8ff   : > { %v3086_v32 = vmul.f32 %v6309_v21, %v8682_v16 }
 0x901   : > { %v3099_v62 = vpack.c.bf16 %v3087_v7, %v3086_v32  ;;  %v8916_v32 = vpop.f32.mrf.mxu2 }
 0x903   : > { %v8910_v8 = vpop.f32.mrf.mxu1 }
 0x905   : > { %3151 = vmatmul.bf16.gmra.mxu1 %v3099_v62 }
 0x906   : > { %v2697_v59 = vpop.xlane.xlu0 %2696 }
 0x907   : > { %6310 = vrcp.f32 %v2697_v59 }
 0x90d   : > { %3472 = vrot.lane.b32.xlu2 %v10114_v36, %s10169_s25  ;;  %v6311_v16 = vpop.eup %6310 }
 0x90e   : > { %v3049_v10 = vpop.xlane.xlu0 %3048  ;;  %v2735_v56 = vmul.f32 %v6311_v16, %v8724_v26 }
 0x911   : > { %3470 = vrot.lane.b32.xlu0 %v10112_v31, %s10169_s25 }
 0x912   : > { %v2695_v39 = vpop.xlane.xlu2 %2694 }
 0x913   : > { %6312 = vrcp.f32 %v2695_v39 }
 0x914   : > { %6314 = vrcp.f32 %v3049_v10 }
 0x915   : > { %3826 = vrot.lane.b32.xlu2 %v10114_v36, %s10170_s16 }
 0x916   : > { %v3051_v49 = vpop.xlane.xlu1 %3050  ;;  %v8918_v62 = vpop.xlane.xlu0 %3308 }
 0x917   : > { %3466 = vrot.lane.b32.xlu1 %v10116_v5, %s10169_s25  ;;  %6316 = vrcp.f32 %v3051_v49  ;;  %v8924_v49 = vpop.f32.mrf.mxu1 }
 0x919   : > { %v6313_v50 = vpop.eup %6312  ;;  %3468 = vrot.lane.b32.xlu0 %v10113_v51, %s10169_s25 }
 0x91a   : > { %v2983_v30 = vpop.xlane.xlu2 %2982  ;;  %v2734_v54 = vmul.f32 %v6313_v50, %v8736_v41  ;;  %v6315_v21 = vpop.eup %6314 }
 0x91b   : > { %v3088_v59 = vmul.f32 %v6315_v21, %v8731_v24  ;;  %v8930_v24 = vpop.f32.mrf.mxu2 }
 0x91c   : > { %v2746_v7 = vpack.c.bf16 %v2735_v56, %v2734_v54  ;;  %v2999_v54 = vsub.f32 %v8753_v23, %v2983_v30 }
 0x91d   : > { %v6317_v36 = vpop.eup %6316 }
 0x91e   : > { %2802 = vmatmul.bf16.gmra.mxu2 %v2746_v7  ;;  %v3089_v10 = vmul.f32 %v6317_v36, %v8743_v3  ;;  %v2699_v26 = vpop.xlane.xlu1 %2698  ;;  %v8926_v16 = vpop.xlane.xlu0 %3660 }
 0x91f   : > { %6318 = vrcp.f32 %v2699_v26  ;;  %v3281_v7 = vpop.f32.mrf.mxu3 }
 0x920   : > { %v3100_v39 = vpack.c.bf16 %v3089_v10, %v3088_v59  ;;  %v3030_v59 = vmul.f32 1.442695, %v2999_v54 }
 0x921   : > { %3824 = vrot.lane.b32.xlu0 %v10112_v31, %s10170_s16 }
 0x922   : > { %v3307_v41 = vpop.xlane.xlu2 %3306  ;;  %3156 = vmatmul.bf16.gmra.mxu1 %v3100_v39  ;;  %v8937_v39 = vpop.f32.mrf.mxu1 }
 0x923   : > { %10171 = vst [vmem:[#allocation35_spill] sm:$0xff] %v8937_v39 }
 0x925   : > { %v6319_v31 = vpop.eup %6318 }
 0x926   : > { %v8932_v3 = vpop.xlane.xlu1 %3662  ;;  %v2736_v10 = vmul.f32 %v6319_v31, %v8765_v20 }
 0x927   : > { %v3283_v58 = vpop.f32.mrf.mxu3 }
 0x929   : > { %3822 = vrot.lane.b32.xlu0 %v10113_v51, %s10170_s16 }
 0x92a   : > { %v2701_v50 = vpop.xlane.xlu2 %2700 }
 0x92b   : > { %6320 = vrcp.f32 %v2701_v50  ;;  %v8939_v50 = vpop.f32.mrf.mxu2 }
 0x92e   : > { %v8941_v30 = vpop.xlane.xlu1 %3310 }
 0x930   : > { %v3055_v56 = vpop.xlane.xlu0 %3054 }
 0x931   : > { %v6321_v21 = vpop.eup %6320  ;;  %6322 = vrcp.f32 %v3055_v56 }
 0x932   : > { %v3053_v36 = vpop.xlane.xlu2 %3052  ;;  %v2737_v51 = vmul.f32 %v6321_v21, %v8788_v42  ;;  %v8948_v21 = vpop.f32.mrf.mxu1 }
 0x933   : > { %6324 = vrcp.f32 %v3053_v36  ;;  %10172 = vst [vmem:[#allocation38_spill] sm:$0xff] %v8948_v21  ;;  %v8951_v36 = vadd.f32 %v3283_v58, %v8503_v25  ;;  %v3338_v25 = vsub.f32 %v8772_v43, %v3307_v41 }
 0x934   : > { %v2747_v26 = vpack.c.bf16 %v2737_v51, %v2736_v10  ;;  %6326 = vpow2.f32 %v3030_v59 }
 0x935   : > { %v3354_v58 = vmul.f32 1.442695, %v3338_v25 }
 0x936   : > { %2807 = vmatmul.bf16.gmra.mxu2 %v2747_v26 }
 0x937   : > { %v6323_v23 = vpop.eup %6322 }
 0x938   : > { %v3091_v54 = vmul.f32 %v6323_v23, %v8801_v14 }
 0x939   : > { %v6325_v44 = vpop.eup %6324 }
 0x93a   : > { %v3090_v56 = vmul.f32 %v6325_v44, %v8804_v28  ;;  %v8945_v20 = vpop.eup %6326  ;;  %v8954_v28 = vpop.f32.mrf.mxu2 }
 0x93b   : > { %10173 = vst [vmem:[#allocation40_spill] sm:$0xff] %v8954_v28 }
 0x93c   : > { %v3101_v42 = vpack.c.bf16 %v3091_v54, %v3090_v56  ;;  %v8964_v56 = vld [vmem:[%s10014_s4 + $0x30] sm:$0xff] }
 0x93d   : > { %v8967_v54 = vadd.f32 %v8964_v56, %v3281_v7 }
 0x93e   : > { %3062 = vadd.xlane.f32.xlu2 %v8945_v20  ;;  %v2703_v31 = vpop.xlane.xlu0 %2702  ;;  %3161 = vmatmul.bf16.gmra.mxu1 %v3101_v42 }
 0x93f   : > { %6328 = vrcp.f32 %v2703_v31 }
 0x940   : > { %v2705_v59 = vpop.xlane.xlu1 %2704 }
 0x941   : > { %3320 = vmax.xlane.f32.xlu1 %v8951_v36  ;;  %6330 = vrcp.f32 %v2705_v59 }
 0x942   : > { %v8958_v23 = vpop.f32.mrf.mxu2  ;;  %6332 = vpow2.f32 %v3354_v58 }
 0x943   : > { %10174 = vst [vmem:[#allocation41_spill] sm:$0xff] %v8958_v23 }
 0x945   : > { %v6329_v14 = vpop.eup %6328 }
 0x946   : > { %v2738_v10 = vmul.f32 %v6329_v14, %v8815_v0  ;;  %v8979_v41 = vpop.xlane.xlu0 %3666 }
 0x947   : > { %v6331_v44 = vpop.eup %6330 }
 0x948   : > { %v2739_v51 = vmul.f32 %v6331_v44, %v8819_v47  ;;  %v3057_v0 = vpop.xlane.xlu1 %3056  ;;  %v8970_v47 = vpop.xlane.xlu2 %3312 }
 0x949   : > { %v8974_v43 = vpop.eup %6332  ;;  %6334 = vrcp.f32 %v3057_v0  ;;  %v8987_v44 = vpop.f32.mrf.mxu1 }
 0x94a   : > { %v2748_v26 = vpack.c.bf16 %v2739_v51, %v2738_v10  ;;  %10175 = vst [vmem:[#allocation42_spill] sm:$0xff] %v8987_v44 }
 0x94c   : > { %2812 = vmatmul.bf16.gmra.mxu2 %v2748_v26  ;;  %v3339_v26 = vsub.f32 %v8741_v33, %v8918_v62 }
 0x94e   : > { %v8985_v31 = vpop.xlane.xlu0 %3314  ;;  %v3356_v61 = vmul.f32 1.442695, %v3339_v26  ;;  %v3637_v26 = vpop.f32.mrf.mxu0 }
 0x94f   : > { %v6335_v10 = vpop.eup %6334 }
 0x950   : > { %v8981_v7 = vpop.xlane.xlu1 %3316  ;;  %v8983_v42 = vpop.xlane.xlu2 %3664  ;;  %v3092_v0 = vmul.f32 %v6335_v10, %v8833_v12 }
 0x953   : > { %3318 = vmax.xlane.f32.xlu0 %v8967_v54 }
 0x956   : > { %3464 = vrot.lane.b32.xlu2 %v10115_v53, %s10169_s25 }
 0x958   : > { %v2709_v14 = vpop.xlane.xlu1 %2708 }
 0x95a   : > { %3462 = vrot.lane.b32.xlu1 %v10117_v9, %s10169_s25 }
 0x95b   : > { %3386 = vadd.xlane.f32.xlu0 %v8974_v43 }
 0x960   : > { %v8997_v55 = vpop.xlane.xlu1 %3668 }
 0x968   : > { %v3059_v59 = vpop.xlane.xlu2 %3058 }
 0x969   : > { %6336 = vrcp.f32 %v3059_v59  ;;  %v8995_v59 = vpop.f32.mrf.mxu2 }
 0x96a   : > { %6338 = vrcp.f32 %v2709_v14  ;;  %10176 = vst [vmem:[#allocation43_spill] sm:$0xff] %v8995_v59  ;;  %v8999_v14 = vpop.f32.mrf.mxu1 }
 0x96b   : > { %10177 = vst [vmem:[#allocation44_spill] sm:$0xff] %v8999_v14 }
 0x96f   : > { %v6337_v51 = vpop.eup %6336  ;;  %3820 = vrot.lane.b32.xlu0 %v10116_v5, %s10170_s16 }
 0x970   : > { %v3473_v25 = vpop.permute.xlu2 %3472  ;;  %v2707_v58 = vpop.xlane.xlu0 %2706  ;;  %v3093_v4 = vmul.f32 %v6337_v51, %v8878_v40 }
 0x971   : > { %6340 = vrcp.f32 %v2707_v58  ;;  %3482 = vmatpush.bf16.msra.mxu2 %v3473_v25  ;;  %v6339_v5 = vpop.eup %6338  ;;  %v9003_v51 = vpop.f32.mrf.mxu2 }
 0x972   : > { %v3102_v57 = vpack.c.bf16 %v3093_v4, %v3092_v0  ;;  %6342 = vpow2.f32 %v3356_v61  ;;  %v2741_v40 = vmul.f32 %v6339_v5, %v8854_v1  ;;  %10178 = vst [vmem:[#allocation45_spill] sm:$0xff] %v9003_v51  ;;  %v9005_v4 = vpop.xlane.xlu1 %3670  ;;  %v6559_v61 = vld [vmem:[%s10014_s4 + $0x38] sm:$0xff]  ;;  %v3692_v5 = vsub.f32 %v8763_v22, %v8926_v16  ;;  %v9031_v16 = vpop.f32.mrf.mxu1 }
 0x973   : > { %10179 = vst [vmem:[#allocation46_spill] sm:$0xff] %v9031_v16 }
 0x974   : > { %3166 = vmatmul.bf16.gmra.mxu1 %v3102_v57  ;;  %v9013_v57 = vadd.f32 %v6559_v61, %v3637_v26 }
 0x977   : > { %v6341_v33 = vpop.eup %6340 }
 0x978   : > { %v3827_v62 = vpop.permute.xlu2 %3826  ;;  %v2740_v12 = vmul.f32 %v6341_v33, %v8890_v38  ;;  %v9007_v25 = vpop.eup %6342 }
 0x979   : > { %3836 = vmatpush.bf16.msra.mxu1 %v3827_v62  ;;  %v3708_v62 = vmul.f32 1.442695, %v3692_v5  ;;  %v3340_v5 = vsub.f32 %v8796_v17, %v8941_v30  ;;  %v3341_v17 = vsub.f32 %v8812_v35, %v8970_v47  ;;  %v3640_v30 = vpop.f32.mrf.mxu0 }
 0x97a   : > { %v2749_v10 = vpack.c.bf16 %v2741_v40, %v2740_v12  ;;  %v3061_v1 = vpop.xlane.xlu1 %3060  ;;  %v9019_v12 = vadd.f32 %v8964_v56, %v3635_v52 }
 0x97b   : > { %6344 = vpow2.f32 %v3708_v62  ;;  %v3694_v62 = vsub.f32 %v8824_v45, %v8983_v42 }
 0x97c   : > { %2817 = vmatmul.bf16.gmra.mxu2 %v2749_v10  ;;  %6346 = vrcp.f32 %v3061_v1  ;;  %v9039_v1 = vpop.f32.mrf.mxu1 }
 0x97d   : > { %10180 = vst [vmem:[#allocation47_spill] sm:$0xff] %v9039_v1 }
 0x97f   : > { %3388 = vadd.xlane.f32.xlu2 %v9007_v25 }
 0x981   : > { %v9028_v22 = vpop.eup %6344  ;;  %v3642_v47 = vpop.f32.mrf.mxu0 }
 0x983   : > { %v3471_v38 = vpop.permute.xlu0 %3470 }
 0x984   : > { %3674 = vmax.xlane.f32.xlu1 %v9013_v57  ;;  %3483 = vmatpush.bf16.msra.mxu2 %v3471_v38 }
 0x989   : > { %v3467_v0 = vpop.permute.xlu1 %3466 }
 0x98b   : > { %v3469_v58 = vpop.permute.xlu0 %3468 }
 0x98c   : > { %3484 = vmatpush.bf16.msra.mxu2 %v3469_v58 }
 0x990   : > { %3485 = vmatpush.bf16.msra.mxu2 %v3467_v0  ;;  %v3286_v0 = vpop.f32.mrf.mxu3 }
 0x993   : > { %v3825_v33 = vpop.permute.xlu0 %3824 }
 0x994   : > { %3837 = vmatpush.bf16.msra.mxu1 %v3825_v33 }
 0x997   : > { %3818 = vrot.lane.b32.xlu2 %v10115_v53, %s10170_s16  ;;  %v6347_v53 = vpop.eup %6346 }
 0x998   : > { %v3094_v26 = vmul.f32 %v6347_v53, %v8892_v13  ;;  %v6560_v13 = vld [vmem:[%s10014_s4 + $0x40] sm:$0xff] }
 0x999   : > { %3672 = vmax.xlane.f32.xlu0 %v9019_v12  ;;  %v9060_v53 = vadd.f32 %v6560_v13, %v3640_v30  ;;  %v3697_v30 = vsub.f32 %v8883_v19, %v9005_v4 }
 0x99b   : > { %v3823_v40 = vpop.permute.xlu0 %3822 }
 0x99c   : > { %3838 = vmatpush.bf16.msra.mxu1 %v3823_v40  ;;  %v3712_v40 = vmul.f32 1.442695, %v3694_v62  ;;  %v9084_v62 = vpop.f32.mrf.mxu2 }
 0x99d   : > { %3816 = vrot.lane.b32.xlu1 %v10117_v9, %s10170_s16  ;;  %v3693_v9 = vsub.f32 %v8780_v15, %v8932_v3  ;;  %v9050_v3 = vadd.f32 %v6560_v13, %v3286_v0  ;;  %v6561_v0 = vld [vmem:[%s10014_s4 + $0x58] sm:$0xff]  ;;  %v3645_v13 = vpop.f32.mrf.mxu0  ;;  %10181 = vst [vmem:[#allocation48_spill] sm:$0xff] %v9084_v62 }
 0x99f   : > { %3460 = vrot.lane.b32.xlu2 %v10118_v11, %s10169_s25  ;;  %v3710_v58 = vmul.f32 1.442695, %v3693_v9 }
 0x9a1   : > { %3740 = vadd.xlane.f32.xlu0 %v9028_v22 }
 0x9b1   : > { %v3063_v52 = vpop.xlane.xlu2 %3062 }
 0x9b2   : > { %6348 = vrcp.f32 %v3063_v52 }
 0x9b3   : > { %6350 = vpow2.f32 %v3710_v58 }
 0x9b4   : > { %v9045_v15 = vpop.xlane.xlu1 %3320 }
 0x9b5   : > { %3458 = vrot.lane.b32.xlu0 %v10119_v37, %s10169_s25 }
 0x9b8   : > { %v6349_v56 = vpop.eup %6348 }
 0x9b9   : > { %v3465_v10 = vpop.permute.xlu2 %3464  ;;  %v3095_v61 = vmul.f32 %v6349_v56, %v8945_v20  ;;  %v3358_v20 = vmul.f32 1.442695, %v3340_v5  ;;  %v9052_v33 = vpop.eup %6350  ;;  %v3360_v56 = vmul.f32 1.442695, %v3341_v17 }
 0x9ba   : > { %3486 = vmatpush.bf16.msra.mxu2 %v3465_v10 }
 0x9bb   : > { %v3103_v38 = vpack.c.bf16 %v3095_v61, %v3094_v26  ;;  %6352 = vpow2.f32 %v3358_v20  ;;  %v3343_v26 = vsub.f32 %v8844_v2, %v8981_v7  ;;  %v6562_v2 = vld [vmem:[%s10014_s4 + $0x48] sm:$0xff] }
 0x9bc   : > { %6354 = vpow2.f32 %v3712_v40  ;;  %v3647_v40 = vpop.f32.mrf.mxu0 }
 0x9bd   : > { %3814 = vrot.lane.b32.xlu0 %v10118_v11, %s10170_s16  ;;  %3171 = vmatmul.bf16.gmra.mxu1 %v3103_v38  ;;  %v3288_v11 = vpop.f32.mrf.mxu3  ;;  %6356 = vpow2.f32 %v3360_v56  ;;  %v3364_v58 = vmul.f32 1.442695, %v3343_v26  ;;  %v9097_v56 = vpop.f32.mrf.mxu2  ;;  %v9099_v26 = vadd.f32 %v6562_v2, %v3642_v47  ;;  %v6563_v47 = vld [vmem:[%s10014_s4 + $0x50] sm:$0xff] }
 0x9be   : > { %v9089_v7 = vadd.f32 %v6562_v2, %v3288_v11  ;;  %10182 = vst [vmem:[#allocation49_spill] sm:$0xff] %v9097_v56  ;;  %v9141_v1 = vadd.f32 %v6563_v47, %v3645_v13 }
 0x9bf   : > { %6358 = vpow2.f32 %v3364_v58  ;;  %v3342_v58 = vsub.f32 %v8841_v60, %v8985_v31  ;;  %v9120_v60 = vpop.f32.mrf.mxu1 }
 0x9c0   : > { %10184 = vst [vmem:[#allocation51_spill] sm:$0xff] %v9120_v60 }
 0x9c1   : > { %v9062_v9 = vpop.eup %6352  ;;  %v3362_v4 = vmul.f32 1.442695, %v3342_v58 }
 0x9c2   : > { %v9068_v42 = vpop.eup %6354 }
 0x9c3   : > { %v9070_v35 = vpop.eup %6356 }
 0x9c5   : > { %v3291_v45 = vpop.f32.mrf.mxu3  ;;  %v9091_v17 = vpop.eup %6358 }
 0x9c6   : > { %v9064_v10 = vpop.xlane.xlu0 %3318 }
 0x9c7   : > { %3322 = vmax.xlane.f32.xlu1 %v9050_v3  ;;  %v9139_v56 = vpop.f32.mrf.mxu1 }
 0x9c8   : > { %3742 = vadd.xlane.f32.xlu2 %v9052_v33  ;;  %10186 = vst [vmem:[#allocation53_spill] sm:$0xff] %v9139_v56 }
 0x9cc   : > { %v3463_v52 = vpop.permute.xlu1 %3462 }
 0x9cd   : > { %3487 = vmatpush.bf16.msra.mxu2 %v3463_v52  ;;  %v3293_v38 = vpop.f32.mrf.mxu3  ;;  %v3718_v52 = vmul.f32 1.442695, %v3697_v30  ;;  %v9125_v30 = vld [vmem:[%s10014_s4 + $0x68] sm:$0xff] }
 0x9ce   : > { %v9076_v61 = vpop.xlane.xlu0 %3386  ;;  %v9081_v5 = vadd.f32 %v6561_v0, %v3293_v38  ;;  %v9101_v38 = vadd.f32 %v6561_v0, %v3647_v40  ;;  %v9114_v0 = vadd.f32 %v6563_v47, %v3291_v45 }
 0x9cf   : > { %3676 = vmax.xlane.f32.xlu1 %v9060_v53  ;;  %6360 = vpow2.f32 %v3718_v52 }
 0x9d0   : > { %3390 = vadd.xlane.f32.xlu2 %v9062_v9  ;;  %6362 = vpow2.f32 %v3362_v4  ;;  %v3696_v4 = vsub.f32 %v8867_v18, %v8997_v55 }
 0x9d5   : > { %v3296_v11 = vpop.f32.mrf.mxu3  ;;  %v9116_v2 = vpop.eup %6360 }
 0x9d6   : > { %v9130_v52 = vpop.eup %6362 }
 0x9d7   : > { %3744 = vadd.xlane.f32.xlu1 %v9068_v42 }
 0x9d8   : > { %3392 = vadd.xlane.f32.xlu2 %v9070_v35 }
 0x9df   : > { %3328 = vmax.xlane.f32.xlu1 %v9081_v5 }
 0x9e1   : > { %v3821_v20 = vpop.permute.xlu0 %3820 }
 0x9e2   : > { %3839 = vmatpush.bf16.msra.mxu1 %v3821_v20  ;;  %v9109_v20 = vpop.f32.mrf.mxu2 }
 0x9e3   : > { %10183 = vst [vmem:[#allocation50_spill] sm:$0xff] %v9109_v20  ;;  %v3650_v20 = vpop.f32.mrf.mxu0 }
 0x9e7   : > { %3396 = vadd.xlane.f32.xlu1 %v9091_v17  ;;  %3324 = vmax.xlane.f32.xlu0 %v9089_v7 }
 0x9ea   : > { %v9132_v58 = vpop.f32.mrf.mxu2 }
 0x9eb   : > { %10185 = vst [vmem:[#allocation52_spill] sm:$0xff] %v9132_v58  ;;  %v6565_v58 = vld [vmem:[%s10014_s4 + $0x60] sm:$0xff] }
 0x9ec   : > { %v9146_v55 = vadd.f32 %v6565_v58, %v3650_v20 }
 0x9ef   : > { %3682 = vmax.xlane.f32.xlu1 %v9101_v38  ;;  %3678 = vmax.xlane.f32.xlu0 %v9099_v26 }
 0x9f0   : > { %3812 = vrot.lane.b32.xlu2 %v10119_v37, %s10170_s16  ;;  %v3298_v37 = vpop.f32.mrf.mxu3  ;;  %s486_s16 = sand.u32 1, %s6638_s19  }
 0x9f1   : > { %v9128_v45 = vadd.f32 %v9125_v30, %v3298_v37  ;;  %v3716_v37 = vmul.f32 1.442695, %v3696_v4  ;;  %v3344_v4 = vsub.f32 %v8967_v54, %v9064_v10  ;;  %s5337_s25 = sshll.u32 %s486_s16, 7 }
 0x9f2   : > { %v3389_v19 = vpop.xlane.xlu2 %3388  ;;  %v9148_v18 = vpop.f32.mrf.mxu2  ;;  %s9911_s24 = scalar_lea.vmem [#allocation2], %s5337_s25 }
 0x9f3   : > { %10187 = vst [vmem:[#allocation54_spill] sm:$0xff] %v9148_v18  ;;  %6364 = vpow2.f32 %v3716_v37  ;;  %v9170_v37 = vadd.f32 %v6565_v58, %v3296_v11  ;;  %s5268_s29 = sshll.u32 %s9911_s24, 4  ;;  %s5269_s29 = int_to_ptr.vmem [resolvable:$true] %s5268_s29 }
 0x9f7   : > { %3750 = vadd.xlane.f32.xlu1 %v9116_v2  ;;  %3326 = vmax.xlane.f32.xlu0 %v9114_v0  ;;  %v3675_v40 = vpop.xlane.xlu1 %3674 }
 0x9f9   : > { %v9156_v13 = vpop.eup %6364 }
 0x9fa   : > { %v3819_v31 = vpop.permute.xlu2 %3818 }
 0x9fb   : > { %3840 = vmatpush.bf16.msra.mxu1 %v3819_v31  ;;  %v3699_v31 = vsub.f32 %v9013_v57, %v3675_v40  ;;  %v3695_v57 = vsub.f32 %v8830_v46, %v8979_v41  ;;  %v3345_v46 = vsub.f32 %v8951_v36, %v9045_v15  ;;  %v3366_v41 = vmul.f32 1.442695, %v3344_v4  ;;  %v3301_v4 = vpop.f32.mrf.mxu3 }
 0x9fd   : > { %v3722_v62 = vmul.f32 1.442695, %v3699_v31  ;;  %v3714_v40 = vmul.f32 1.442695, %v3695_v57  ;;  %v3368_v18 = vmul.f32 1.442695, %v3345_v46 }
 0x9ff   : > { %3332 = vmax.xlane.f32.xlu1 %v9128_v45  ;;  %3394 = vadd.xlane.f32.xlu0 %v9130_v52  ;;  %6366 = vpow2.f32 %v3722_v62  ;;  %v9164_v62 = vpop.f32.mrf.mxu2 }
 0xa00   : > { %10189 = vst [vmem:[#allocation56_spill] sm:$0xff] %v9164_v62  ;;  %6368 = vpow2.f32 %v3714_v40 }
 0xa01   : > { %6370 = vpow2.f32 %v3366_v41 }
 0xa02   : > { %v3461_v60 = vpop.permute.xlu2 %3460  ;;  %6372 = vpow2.f32 %v3368_v18  ;;  %v3652_v18 = vpop.f32.mrf.mxu0 }
 0xa03   : > { %3488 = vmatpush.bf16.msra.mxu2 %v3461_v60  ;;  %v9154_v60 = vpop.f32.mrf.mxu1  ;;  %6374 = vrcp.f32 %v3389_v19  ;;  %v9191_v46 = vadd.f32 %v9125_v30, %v3652_v18  ;;  %v3303_v30 = vpop.f32.mrf.mxu3  ;;  %v6567_v18 = vld [vmem:[%s10014_s4 + $0x78] sm:$0xff] }
 0xa04   : > { %10188 = vst [vmem:[#allocation55_spill] sm:$0xff] %v9154_v60  ;;  %6376 = vrcp.f32 %v9076_v61 }
 0xa05   : > { %v9158_v47 = vpop.eup %6366 }
 0xa06   : > { %v9173_v60 = vpop.eup %6368 }
 0xa07   : > { %3684 = vmax.xlane.f32.xlu1 %v9146_v55  ;;  %3680 = vmax.xlane.f32.xlu0 %v9141_v1  ;;  %v9175_v54 = vpop.f32.mrf.mxu2  ;;  %v9181_v15 = vpop.eup %6370 }
 0xa08   : > { %10191 = vst [vmem:[#allocation58_spill] sm:$0xff] %v9175_v54  ;;  %v9185_v40 = vpop.eup %6372 }
 0xa0b   : > { %v9168_v31 = vpop.f32.mrf.mxu1 }
 0xa0c   : > { %10190 = vst [vmem:[#allocation57_spill] sm:$0xff] %v9168_v31  ;;  %v3673_v57 = vpop.xlane.xlu0 %3672 }
 0xa0d   : > { %v3698_v10 = vsub.f32 %v9019_v12, %v3673_v57 }
 0xa0f   : > { %3754 = vadd.xlane.f32.xlu1 %v9158_v47  ;;  %v3817_v20 = vpop.permute.xlu1 %3816  ;;  %3748 = vadd.xlane.f32.xlu0 %v9156_v13  ;;  %v3720_v11 = vmul.f32 1.442695, %v3698_v10  ;;  %v9188_v12 = vpop.f32.mrf.mxu2 }
 0xa10   : > { %3841 = vmatpush.bf16.msra.mxu1 %v3817_v20  ;;  %v6375_v20 = vpop.eup %6374  ;;  %10193 = vst [vmem:[#allocation60_spill] sm:$0xff] %v9188_v12 }
 0xa11   : > { %6378 = vpow2.f32 %v3720_v11  ;;  %v6377_v19 = vpop.eup %6376  ;;  %v3435_v61 = vmul.f32 %v6375_v20, %v9007_v25  ;;  %v6566_v25 = vld [vmem:[%s10014_s4 + $0x70] sm:$0xff] }
 0xa12   : > { %v3434_v57 = vmul.f32 %v6377_v19, %v8974_v43  ;;  %v9206_v20 = vadd.f32 %v6566_v25, %v3301_v4  ;;  %v9213_v19 = vadd.f32 %v6567_v18, %v3303_v30 }
 0xa13   : > { %v9179_v36 = vpop.f32.mrf.mxu1 }
 0xa14   : > { %10192 = vst [vmem:[#allocation59_spill] sm:$0xff] %v9179_v36  ;;  %v3741_v58 = vpop.xlane.xlu0 %3740  ;;  %v3450_v36 = vpack.c.bf16 %v3435_v61, %v3434_v57 }
 0xa17   : > { %3330 = vmax.xlane.f32.xlu0 %v9170_v37  ;;  %v9198_v54 = vpop.eup %6378  ;;  %v9201_v11 = vpop.f32.mrf.mxu2 }
 0xa19   : > { %3746 = vadd.xlane.f32.xlu2 %v9173_v60 }
 0xa1b   : > { %v9194_v41 = vpop.f32.mrf.mxu1 }
 0xa1c   : > { %10194 = vst [vmem:[#allocation61_spill] sm:$0xff] %v9194_v41 }
 0xa1f   : > { %3398 = vadd.xlane.f32.xlu0 %v9181_v15  ;;  %v9217_v57 = vpop.f32.mrf.mxu2 }
 0xa21   : > { %3400 = vadd.xlane.f32.xlu2 %v9185_v40 }
 0xa23   : > { %v9208_v43 = vpop.f32.mrf.mxu1 }
 0xa24   : > { %10195 = vst [vmem:[#allocation62_spill] sm:$0xff] %v9208_v43 }
 0xa27   : > { %v3459_v10 = vpop.permute.xlu0 %3458  ;;  %3686 = vmax.xlane.f32.xlu0 %v9191_v46  ;;  %v9225_v41 = vpop.f32.mrf.mxu2 }
 0xa28   : > { %3489 = vmatpush.bf16.msra.mxu2 %v3459_v10  ;;  %10197 = vst [vmem:[#allocation64_spill] sm:$0xff] %v9225_v41 }
 0xa29   : > { %3752 = vadd.xlane.f32.xlu2 %v9198_v54 }
 0xa2b   : > { %3490 = vmatmul.bf16.vlgmr.msra.gmra.mxu2 %v3450_v36  ;;  %v3655_v36 = vpop.f32.mrf.mxu3  ;;  %v9221_v4 = vpop.f32.mrf.mxu1 }
 0xa2c   : > { %v9219_v10 = vadd.f32 %v6566_v25, %v3655_v36  ;;  %10196 = vst [vmem:[#allocation63_spill] sm:$0xff] %v9221_v4 }
 0xa2f   : > { %v3815_v61 = vpop.permute.xlu0 %3814  ;;  %3334 = vmax.xlane.f32.xlu0 %v9206_v20  ;;  %v9232_v25 = vpop.f32.mrf.mxu2 }
 0xa30   : > { %3842 = vmatpush.bf16.msra.mxu1 %v3815_v61  ;;  %10198 = vst [vmem:[#allocation65_spill] sm:$0xff] %v9232_v25 }
 0xa31   : > { %3336 = vmax.xlane.f32.xlu2 %v9213_v19 }
 0xa33   : > { %v9227_v61 = vpop.f32.mrf.mxu1  ;;  %v3657_v36 = vpop.f32.mrf.mxu3 }
 0xa37   : > { %v9241_v14 = vpop.f32.mrf.mxu2 }
 0xa38   : > { %10199 = vst [vmem:[#allocation66_spill] sm:$0xff] %v9241_v14 }
 0xa39   : > { %3688 = vmax.xlane.f32.xlu2 %v9219_v10 }
 0xa3a   : > { %v3323_v43 = vpop.xlane.xlu1 %3322 }
 0xa3b   : > { %v3346_v12 = vsub.f32 %v9050_v3, %v3323_v43  ;;  %v3743_v30 = vpop.xlane.xlu2 %3742  ;;  %v9236_v43 = vpop.f32.mrf.mxu1 }
 0xa3d   : > { %v3370_v62 = vmul.f32 1.442695, %v3346_v12 }
 0xa3f   : > { %6380 = vpow2.f32 %v3370_v62  ;;  %v9238_v62 = vadd.f32 %v6567_v18, %v3657_v36  ;;  %v9249_v21 = vpop.f32.mrf.mxu2 }
 0xa40   : > { %6382 = vrcp.f32 %v3743_v30 }
 0xa41   : > { %6384 = vrcp.f32 %v3741_v58 }
 0xa42   : > { %v3677_v31 = vpop.xlane.xlu1 %3676 }
 0xa43   : > { %v3391_v56 = vpop.xlane.xlu2 %3390 }
 0xa44   : > { %6386 = vrcp.f32 %v3391_v56  ;;  %v9244_v56 = vpop.f32.mrf.mxu1 }
 0xa45   : > { %v9229_v16 = vpop.eup %6380 }
 0xa46   : > { %3402 = vadd.xlane.f32.xlu1 %v9229_v16  ;;  %v6383_v4 = vpop.eup %6382 }
 0xa47   : > { %v6385_v51 = vpop.eup %6384  ;;  %v3789_v30 = vmul.f32 %v6383_v4, %v9052_v33 }
 0xa48   : > { %v3788_v41 = vmul.f32 %v6385_v51, %v9028_v22  ;;  %v3700_v51 = vsub.f32 %v9060_v53, %v3677_v31 }
 0xa4a   : > { %v9234_v3 = vpop.xlane.xlu1 %3744  ;;  %v6387_v59 = vpop.eup %6386 }
 0xa4b   : > { %v3393_v12 = vpop.xlane.xlu2 %3392  ;;  %v3436_v18 = vmul.f32 %v6387_v59, %v9062_v9  ;;  %v3724_v9 = vmul.f32 1.442695, %v3700_v51 }
 0xa4c   : > { %6388 = vrcp.f32 %v3393_v12  ;;  %v3804_v12 = vpack.c.bf16 %v3789_v30, %v3788_v41  ;;  %v9252_v4 = vpop.f32.mrf.mxu1 }
 0xa4e   : > { %3690 = vmax.xlane.f32.xlu1 %v9238_v62 }
 0xa52   : > { %v6389_v44 = vpop.eup %6388  ;;  %v3329_v58 = vpop.xlane.xlu1 %3328 }
 0xa53   : > { %v3813_v25 = vpop.permute.xlu2 %3812  ;;  %v3437_v36 = vmul.f32 %v6389_v44, %v9070_v35  ;;  %v9255_v44 = vpop.f32.mrf.mxu2 }
 0xa54   : > { %3843 = vmatpush.bf16.msra.mxu1 %v3813_v25  ;;  %v3349_v25 = vsub.f32 %v9081_v5, %v3329_v58 }
 0xa55   : > { %v3451_v23 = vpack.c.bf16 %v3437_v36, %v3436_v18 }
 0xa56   : > { %v3376_v53 = vmul.f32 1.442695, %v3349_v25 }
 0xa57   : > { %3495 = vmatmul.bf16.gmra.mxu2 %v3451_v23  ;;  %3844 = vmatmul.bf16.vlgmr.msra.gmra.mxu1 %v3804_v12 }
 0xa5a   : > { %v3397_v28 = vpop.xlane.xlu1 %3396  ;;  %v3325_v14 = vpop.xlane.xlu0 %3324 }
 0xa5b   : > { %v3347_v33 = vsub.f32 %v9089_v7, %v3325_v14  ;;  %v9262_v14 = vpop.f32.mrf.mxu1 }
 0xa5d   : > { %v3372_v39 = vmul.f32 1.442695, %v3347_v33 }
 0xa5f   : > { %6390 = vpow2.f32 %v3372_v39 }
 0xa60   : > { %6392 = vpow2.f32 %v3724_v9 }
 0xa62   : > { %v3683_v59 = vpop.xlane.xlu1 %3682  ;;  %v3679_v22 = vpop.xlane.xlu0 %3678 }
 0xa63   : > { %v3701_v23 = vsub.f32 %v9099_v26, %v3679_v22  ;;  %v9269_v26 = vpop.f32.mrf.mxu2  ;;  %v3703_v5 = vsub.f32 %v9101_v38, %v3683_v59  ;;  %v9276_v58 = vpop.f32.mrf.mxu1 }
 0xa65   : > { %v9258_v35 = vpop.eup %6390  ;;  %v3726_v41 = vmul.f32 1.442695, %v3701_v23  ;;  %v3730_v33 = vmul.f32 1.442695, %v3703_v5 }
 0xa66   : > { %3404 = vadd.xlane.f32.xlu0 %v9258_v35  ;;  %v9267_v30 = vpop.eup %6392 }
 0xa67   : > { %6394 = vpow2.f32 %v3726_v41 }
 0xa68   : > { %6396 = vpow2.f32 %v3376_v53 }
 0xa6a   : > { %v9264_v39 = vpop.xlane.xlu1 %3750  ;;  %v3327_v7 = vpop.xlane.xlu0 %3326 }
 0xa6b   : > { %v3348_v31 = vsub.f32 %v9114_v0, %v3327_v7  ;;  %v9282_v9 = vpop.f32.mrf.mxu2 }
 0xa6c   : > { %10200 = vst [vmem:[#allocation67_spill] sm:$0xff] %v9282_v9 }
 0xa6d   : > { %v3374_v18 = vmul.f32 1.442695, %v3348_v31  ;;  %v9271_v36 = vpop.eup %6394  ;;  %v9290_v31 = vpop.f32.mrf.mxu1 }
 0xa6e   : > { %3756 = vadd.xlane.f32.xlu0 %v9267_v30  ;;  %3758 = vadd.xlane.f32.xlu2 %v9271_v36  ;;  %v9278_v51 = vpop.eup %6396 }
 0xa6f   : > { %6398 = vpow2.f32 %v3374_v18 }
 0xa70   : > { %6400 = vrcp.f32 %v3397_v28 }
 0xa72   : > { %v3333_v12 = vpop.xlane.xlu1 %3332  ;;  %v3395_v0 = vpop.xlane.xlu0 %3394 }
 0xa73   : > { %6402 = vrcp.f32 %v3395_v0 }
 0xa74   : > { %6404 = vpow2.f32 %v3730_v33  ;;  %v9295_v33 = vpop.f32.mrf.mxu2 }
 0xa75   : > { %v9280_v22 = vpop.eup %6398  ;;  %10201 = vst [vmem:[#allocation68_spill] sm:$0xff] %v9295_v33 }
 0xa76   : > { %3406 = vadd.xlane.f32.xlu1 %v9280_v22  ;;  %3408 = vadd.xlane.f32.xlu0 %v9278_v51  ;;  %v6401_v38 = vpop.eup %6400 }
 0xa77   : > { %v3439_v25 = vmul.f32 %v6401_v38, %v9091_v17 }
 0xa79   : > { %v6403_v59 = vpop.eup %6402 }
 0xa7a   : > { %v3685_v23 = vpop.xlane.xlu1 %3684  ;;  %v3681_v41 = vpop.xlane.xlu0 %3680  ;;  %v3438_v28 = vmul.f32 %v6403_v59, %v9130_v52  ;;  %v3351_v52 = vsub.f32 %v9128_v45, %v3333_v12 }
 0xa7b   : > { %v3704_v53 = vsub.f32 %v9146_v55, %v3685_v23  ;;  %v3702_v7 = vsub.f32 %v9141_v1, %v3681_v41  ;;  %v9292_v5 = vpop.eup %6404  ;;  %v9302_v59 = vpop.f32.mrf.mxu1 }
 0xa7c   : > { %v3452_v18 = vpack.c.bf16 %v3439_v25, %v3438_v28  ;;  %v3380_v55 = vmul.f32 1.442695, %v3351_v52  ;;  %v9305_v23 = vpop.f32.mrf.mxu2 }
 0xa7d   : > { %v3732_v0 = vmul.f32 1.442695, %v3704_v53  ;;  %v3728_v9 = vmul.f32 1.442695, %v3702_v7  ;;  %10202 = vst [vmem:[#allocation69_spill] sm:$0xff] %v9305_v23 }
 0xa7e   : > { %3500 = vmatmul.bf16.gmra.mxu2 %v3452_v18  ;;  %3762 = vadd.xlane.f32.xlu1 %v9292_v5 }
 0xa7f   : > { %6406 = vpow2.f32 %v3732_v0 }
 0xa80   : > { %6408 = vpow2.f32 %v3728_v9 }
 0xa81   : > { %6410 = vpow2.f32 %v3380_v55 }
 0xa82   : > { %v3749_v17 = vpop.xlane.xlu0 %3748  ;;  %6412 = vrcp.f32 %v9234_v3 }
 0xa83   : > { %v9312_v25 = vpop.f32.mrf.mxu1 }
 0xa84   : > { %v9315_v7 = vpop.f32.mrf.mxu2 }
 0xa85   : > { %v9298_v38 = vpop.eup %6406  ;;  %10203 = vst [vmem:[#allocation70_spill] sm:$0xff] %v9315_v7 }
 0xa86   : > { %v9300_v1 = vpop.eup %6408  ;;  %3764 = vadd.xlane.f32.xlu1 %v9298_v38 }
 0xa87   : > { %3760 = vadd.xlane.f32.xlu2 %v9300_v1  ;;  %v9310_v28 = vpop.eup %6410 }
 0xa88   : > { %v6413_v53 = vpop.eup %6412 }
 0xa89   : > { %v3790_v3 = vmul.f32 %v6413_v53, %v9068_v42 }
 0xa8a   : > { %v3331_v41 = vpop.xlane.xlu0 %3330 }
 0xa8b   : > { %v3350_v45 = vsub.f32 %v9170_v37, %v3331_v41 }
 0xa8c   : > { %v3747_v12 = vpop.xlane.xlu2 %3746 }
 0xa8d   : > { %v3378_v9 = vmul.f32 1.442695, %v3350_v45  ;;  %6414 = vrcp.f32 %v3747_v12  ;;  %v9322_v45 = vpop.f32.mrf.mxu1 }
 0xa8f   : > { %6416 = vpow2.f32 %v3378_v9  ;;  %3412 = vadd.xlane.f32.xlu2 %v9310_v28  ;;  %v9324_v9 = vpop.f32.mrf.mxu2 }
 0xa90   : > { %10204 = vst [vmem:[#allocation71_spill] sm:$0xff] %v9324_v9 }
 0xa92   : > { %v3399_v18 = vpop.xlane.xlu0 %3398 }
 0xa93   : > { %v6415_v0 = vpop.eup %6414  ;;  %6418 = vrcp.f32 %v3399_v18 }
 0xa94   : > { %v3401_v52 = vpop.xlane.xlu2 %3400  ;;  %v3791_v37 = vmul.f32 %v6415_v0, %v9173_v60 }
 0xa95   : > { %v9319_v55 = vpop.eup %6416  ;;  %6420 = vrcp.f32 %v3401_v52 }
 0xa96   : > { %3410 = vadd.xlane.f32.xlu0 %v9319_v55  ;;  %v3805_v41 = vpack.c.bf16 %v3791_v37, %v3790_v3  ;;  %6422 = vrcp.f32 %v3749_v17 }
 0xa97   : > { %6424 = vrcp.f32 %v9264_v39  ;;  %v9333_v33 = vpop.f32.mrf.mxu2 }
 0xa98   : > { %3849 = vmatmul.bf16.gmra.mxu1 %v3805_v41  ;;  %v9330_v41 = vpop.f32.mrf.mxu1 }
 0xa99   : > { %v6419_v12 = vpop.eup %6418 }
 0xa9a   : > { %v3687_v23 = vpop.xlane.xlu0 %3686  ;;  %v3440_v53 = vmul.f32 %v6419_v12, %v9181_v15 }
 0xa9b   : > { %v6421_v18 = vpop.eup %6420  ;;  %v3705_v42 = vsub.f32 %v9191_v46, %v3687_v23 }
 0xa9c   : > { %v3753_v60 = vpop.xlane.xlu2 %3752  ;;  %v3441_v0 = vmul.f32 %v6421_v18, %v9185_v40  ;;  %v6423_v37 = vpop.eup %6422 }
 0xa9d   : > { %v3734_v52 = vmul.f32 1.442695, %v3705_v42  ;;  %v6425_v9 = vpop.eup %6424  ;;  %v3792_v7 = vmul.f32 %v6423_v37, %v9156_v13 }
 0xa9e   : > { %v3453_v3 = vpack.c.bf16 %v3441_v0, %v3440_v53  ;;  %v3793_v15 = vmul.f32 %v6425_v9, %v9116_v2  ;;  %v3755_v53 = vpop.xlane.xlu1 %3754 }
 0xa9f   : > { %6426 = vpow2.f32 %v3734_v52 }
 0xaa0   : > { %3505 = vmatmul.bf16.gmra.mxu2 %v3453_v3  ;;  %v3806_v18 = vpack.c.bf16 %v3793_v15, %v3792_v7  ;;  %v9341_v13 = vpop.f32.mrf.mxu1 }
 0xaa2   : > { %v3335_v17 = vpop.xlane.xlu0 %3334 }
 0xaa3   : > { %v3352_v46 = vsub.f32 %v9206_v20, %v3335_v17  ;;  %v9343_v20 = vpop.f32.mrf.mxu2 }
 0xaa4   : > { %v3337_v39 = vpop.xlane.xlu2 %3336 }
 0xaa5   : > { %v9337_v23 = vpop.eup %6426  ;;  %v3382_v40 = vmul.f32 1.442695, %v3352_v46  ;;  %v3353_v12 = vsub.f32 %v9213_v19, %v3337_v39 }
 0xaa6   : > { %3766 = vadd.xlane.f32.xlu0 %v9337_v23 }
 0xaa7   : > { %6428 = vpow2.f32 %v3382_v40  ;;  %v3384_v42 = vmul.f32 1.442695, %v3353_v12 }
 0xaa8   : > { %6430 = vrcp.f32 %v3753_v60  ;;  %3854 = vmatmul.bf16.gmra.mxu1 %v3806_v18  ;;  %v9352_v3 = vpop.f32.mrf.mxu1 }
 0xaa9   : > { %6432 = vpow2.f32 %v3384_v42 }
 0xaaa   : > { %6434 = vrcp.f32 %v3755_v53 }
 0xaab   : > { %v9356_v46 = vpop.f32.mrf.mxu2 }
 0xaac   : > { %v3689_v2 = vpop.xlane.xlu2 %3688 }
 0xaad   : > { %v9345_v9 = vpop.eup %6428  ;;  %v3706_v0 = vsub.f32 %v9219_v10, %v3689_v2 }
 0xaae   : > { %v6431_v19 = vpop.eup %6430  ;;  %3414 = vadd.xlane.f32.xlu2 %v9345_v9 }
 0xaaf   : > { %v9349_v7 = vpop.eup %6432  ;;  %v3736_v52 = vmul.f32 1.442695, %v3706_v0  ;;  %v3794_v37 = vmul.f32 %v6431_v19, %v9198_v54 }
 0xab0   : > { %3416 = vadd.xlane.f32.xlu1 %v9349_v7  ;;  %v6435_v60 = vpop.eup %6434  ;;  %v9361_v40 = vpop.f32.mrf.mxu1 }
 0xab1   : > { %6436 = vpow2.f32 %v3736_v52  ;;  %v3795_v17 = vmul.f32 %v6435_v60, %v9158_v47  ;;  %v5675_v47 = vpack.i.bf16 %v9236_v43, %v9227_v61  ;;  %v5705_v43 = vpack.i.bf16 %v9276_v58, %v9262_v14 }
 0xab3   : > { %v3807_v39 = vpack.c.bf16 %v3795_v17, %v3794_v37  ;;  %v3491_v12 = vpop.f32.mrf.mxu2 }
 0xab7   : > { %v9358_v10 = vpop.eup %6436 }
 0xab8   : > { %3768 = vadd.xlane.f32.xlu0 %v9358_v10  ;;  %3859 = vmatmul.bf16.gmra.mxu1 %v3807_v39  ;;  %v9364_v53 = vpop.f32.mrf.mxu1 }
 0xab9   : > { %v3403_v15 = vpop.xlane.xlu1 %3402 }
 0xabb   : > { %v3493_v2 = vpop.f32.mrf.mxu2 }
 0xabc   : > { %v5680_v0 = vpack.i.bf16 %v3493_v2, %v3491_v12 }
 0xac0   : > { %v9373_v52 = vpop.f32.mrf.mxu1 }
 0xac1   : > { %v3691_v18 = vpop.xlane.xlu1 %3690 }
 0xac2   : > { %v3707_v42 = vsub.f32 %v9238_v62, %v3691_v18  ;;  %v5690_v62 = vpack.i.bf16 %v9252_v4, %v9244_v56  ;;  %v5720_v4 = vpack.i.bf16 %v8370_v27, %v8355_v34 }
 0xac4   : > { %v3738_v54 = vmul.f32 1.442695, %v3707_v42 }
 0xac6   : > { %6438 = vpow2.f32 %v3738_v54 }
 0xac7   : > { %6440 = vrcp.f32 %v3403_v15 }
 0xac9   : > { %5676 = vrot.lane.b32.xlu1 %v5675_v47, %s10068_s27 }
 0xacc   : > { %v9369_v19 = vpop.eup %6438  ;;  %5681 = vrot.lane.b32.xlu0 %v5680_v0, %s6661_s17 }
 0xacd   : > { %3770 = vadd.xlane.f32.xlu2 %v9369_v19  ;;  %v6441_v17 = vpop.eup %6440 }
 0xace   : > { %v3442_v42 = vmul.f32 %v6441_v17, %v9229_v16 }
 0xad4   : > { %5691 = vrot.lane.b32.xlu0 %v5690_v62, %s10068_s27  ;;  %v3845_v60 = vpop.f32.mrf.mxu1 }
 0xad9   : > { %v3405_v61 = vpop.xlane.xlu0 %3404 }
 0xada   : > { %6442 = vrcp.f32 %v3405_v61  ;;  %v3496_v37 = vpop.f32.mrf.mxu2 }
 0xadc   : > { %5706 = vrot.lane.b32.xlu0 %v5705_v43, %s10068_s27  ;;  %v3847_v12 = vpop.f32.mrf.mxu1 }
 0xadd   : > { %v5685_v47 = vpack.i.bf16 %v3847_v12, %v3845_v60 }
 0xae0   : > { %v6443_v39 = vpop.eup %6442 }
 0xae1   : > { %v3757_v18 = vpop.xlane.xlu0 %3756  ;;  %v3443_v56 = vmul.f32 %v6443_v39, %v9258_v35  ;;  %v3759_v15 = vpop.xlane.xlu2 %3758 }
 0xae2   : > { %6444 = vrcp.f32 %v3757_v18  ;;  %v3498_v54 = vpop.f32.mrf.mxu2 }
 0xae3   : > { %6446 = vrcp.f32 %v3759_v15  ;;  %v5695_v14 = vpack.i.bf16 %v3498_v54, %v3496_v37  ;;  %v3454_v58 = vpack.c.bf16 %v3443_v56, %v3442_v42 }
 0xae4   : > { %5721 = vrot.lane.b32.xlu0 %v5720_v4, %s10068_s27 }
 0xae5   : > { %5686 = vrot.lane.b32.xlu2 %v5685_v47, %s10067_s21  ;;  %5696 = vrot.lane.b32.xlu1 %v5695_v14, %s6661_s17 }
 0xae6   : > { %3510 = vmatmul.bf16.gmra.mxu2 %v3454_v58 }
 0xae8   : > { %v6445_v16 = vpop.eup %6444 }
 0xae9   : > { %v6447_v2 = vpop.eup %6446  ;;  %v3409_v35 = vpop.xlane.xlu0 %3408  ;;  %v3796_v34 = vmul.f32 %v6445_v16, %v9267_v30 }
 0xaea   : > { %v3407_v0 = vpop.xlane.xlu1 %3406  ;;  %6448 = vrcp.f32 %v3409_v35  ;;  %v3797_v27 = vmul.f32 %v6447_v2, %v9271_v36 }
 0xaeb   : > { %6450 = vrcp.f32 %v3407_v0 }
 0xaec   : > { %v3808_v62 = vpack.c.bf16 %v3797_v27, %v3796_v34  ;;  %v5740_v34 = vpack.i.bf16 %v9302_v59, %v9290_v31 }
 0xaee   : > { %3864 = vmatmul.bf16.gmra.mxu1 %v3808_v62 }
 0xaf0   : > { %v6449_v60 = vpop.eup %6448 }
 0xaf1   : > { %v6451_v61 = vpop.eup %6450  ;;  %v3445_v43 = vmul.f32 %v6449_v60, %v9278_v51 }
 0xaf2   : > { %v3444_v37 = vmul.f32 %v6451_v61, %v9280_v22  ;;  %v3763_v39 = vpop.xlane.xlu1 %3762  ;;  %v5755_v61 = vpack.i.bf16 %v8419_v63, %v8411_v48  ;;  %v5730_v63 = vpack.i.bf16 %v8924_v49, %v8910_v8 }
 0xaf3   : > { %6452 = vrcp.f32 %v3763_v39 }
 0xaf4   : > { %v3455_v17 = vpack.c.bf16 %v3445_v43, %v3444_v37 }
 0xaf6   : > { %3515 = vmatmul.bf16.gmra.mxu2 %v3455_v17 }
 0xaf9   : > { %v6453_v18 = vpop.eup %6452 }
 0xafa   : > { %v3761_v12 = vpop.xlane.xlu2 %3760  ;;  %v3799_v56 = vmul.f32 %v6453_v18, %v9292_v5  ;;  %v3765_v2 = vpop.xlane.xlu1 %3764 }
 0xafb   : > { %6454 = vrcp.f32 %v3761_v12 }
 0xb01   : > { %v6455_v30 = vpop.eup %6454  ;;  %v3501_v42 = vpop.f32.mrf.mxu2 }
 0xb02   : > { %v3798_v36 = vmul.f32 %v6455_v30, %v9300_v1  ;;  %v3413_v15 = vpop.xlane.xlu2 %3412  ;;  %v5725_v1 = vpack.i.bf16 %v8916_v32, %v8904_v29 }
 0xb03   : > { %6456 = vrcp.f32 %v3413_v15 }
 0xb04   : > { %v3809_v4 = vpack.c.bf16 %v3799_v56, %v3798_v36 }
 0xb06   : > { %3869 = vmatmul.bf16.gmra.mxu1 %v3809_v4 }
 0xb09   : > { %v3411_v51 = vpop.xlane.xlu0 %3410  ;;  %v3503_v54 = vpop.f32.mrf.mxu2 }
 0xb0a   : > { %6458 = vrcp.f32 %v3411_v51  ;;  %v5710_v22 = vpack.i.bf16 %v3503_v54, %v3501_v42  ;;  %v6457_v47 = vpop.eup %6456  ;;  %v5760_v54 = vpack.i.bf16 %v8939_v50, %v8930_v24 }
 0xb0b   : > { %v3447_v16 = vmul.f32 %v6457_v47, %v9310_v28  ;;  %6460 = vrcp.f32 %v3765_v2 }
 0xb0c   : > { %5711 = vrot.lane.b32.xlu1 %v5710_v22, %s6661_s17 }
 0xb10   : > { %v6459_v14 = vpop.eup %6458 }
 0xb11   : > { %v3446_v58 = vmul.f32 %v6459_v14, %v9319_v55  ;;  %v6461_v27 = vpop.eup %6460 }
 0xb12   : > { %v3800_v32 = vmul.f32 %v6461_v27, %v9298_v38  ;;  %v10205_v27 = vld [vmem:[#allocation37_spill] sm:$0xff] }
 0xb13   : > { %v3456_v5 = vpack.c.bf16 %v3447_v16, %v3446_v58 }
 0xb14   : > { %5726 = vrot.lane.b32.xlu1 %v5725_v1, %s6661_s17 }
 0xb15   : > { %3520 = vmatmul.bf16.gmra.mxu2 %v3456_v5  ;;  %v3850_v35 = vpop.f32.mrf.mxu1 }
 0xb19   : > { %v3767_v0 = vpop.xlane.xlu0 %3766 }
 0xb1a   : > { %6462 = vrcp.f32 %v3767_v0 }
 0xb1c   : > { %5741 = vrot.lane.b32.xlu1 %v5740_v34, %s10068_s27 }
 0xb1d   : > { %v3852_v55 = vpop.f32.mrf.mxu1 }
 0xb1e   : > { %v5700_v28 = vpack.i.bf16 %v3852_v55, %v3850_v35 }
 0xb20   : > { %v6463_v62 = vpop.eup %6462  ;;  %5701 = vrot.lane.b32.xlu2 %v5700_v28, %s10067_s21  ;;  %v5790_v28 = vpack.i.bf16 %v10205_v27, %v8471_v6  ;;  %v10215_v27 = vld [vmem:[#allocation42_spill] sm:$0xff] }
 0xb21   : > { %v3415_v29 = vpop.xlane.xlu2 %3414  ;;  %v3801_v60 = vmul.f32 %v6463_v62, %v9337_v23  ;;  %v10206_v62 = vld [vmem:[#allocation35_spill] sm:$0xff] }
 0xb22   : > { %6464 = vrcp.f32 %v3415_v29  ;;  %v10207_v29 = vld [vmem:[#allocation38_spill] sm:$0xff] }
 0xb23   : > { %v3417_v43 = vpop.xlane.xlu1 %3416  ;;  %v3810_v31 = vpack.c.bf16 %v3801_v60, %v3800_v32  ;;  %v3506_v48 = vpop.f32.mrf.mxu2  ;;  %v5765_v32 = vpack.i.bf16 %v10207_v29, %v10206_v62 }
 0xb24   : > { %6466 = vrcp.f32 %v3417_v43  ;;  %5756 = vrot.lane.b32.xlu1 %v5755_v61, %s10068_s27 }
 0xb25   : > { %v3855_v59 = vpop.f32.mrf.mxu1  ;;  %3874 = vmatmul.bf16.gmra.mxu1 %v3810_v31 }
 0xb28   : > { %v6465_v37 = vpop.eup %6464 }
 0xb29   : > { %v3448_v39 = vmul.f32 %v6465_v37, %v9345_v9 }
 0xb2a   : > { %v6467_v17 = vpop.eup %6466 }
 0xb2b   : > { %v3449_v12 = vmul.f32 %v6467_v17, %v9349_v7  ;;  %v3769_v30 = vpop.xlane.xlu0 %3768  ;;  %v3508_v42 = vpop.f32.mrf.mxu2 }
 0xb2c   : > { %v5745_v36 = vpack.i.bf16 %v3508_v42, %v3506_v48  ;;  %6468 = vrcp.f32 %v3769_v30 }
 0xb2d   : > { %v3857_v38 = vpop.f32.mrf.mxu1  ;;  %v3457_v18 = vpack.c.bf16 %v3449_v12, %v3448_v39  ;;  %v10208_v39 = vld [vmem:[#allocation40_spill] sm:$0xff]  ;;  %v10209_v12 = vld [vmem:[#allocation41_spill] sm:$0xff] }
 0xb2e   : > { %v5715_v23 = vpack.i.bf16 %v3857_v38, %v3855_v59  ;;  %v5795_v38 = vpack.i.bf16 %v10209_v12, %v10208_v39  ;;  %v10220_v39 = vld [vmem:[#allocation47_spill] sm:$0xff] }
 0xb2f   : > { %3525 = vmatmul.bf16.gmra.mxu2 %v3457_v18 }
 0xb30   : > { %5716 = vrot.lane.b32.xlu2 %v5715_v23, %s10067_s21  ;;  %v10210_v23 = vld [vmem:[#allocation65_spill] sm:$0xff] }
 0xb32   : > { %v6469_v4 = vpop.eup %6468 }
 0xb33   : > { %v3802_v58 = vmul.f32 %v6469_v4, %v9358_v10 }
 0xb35   : > { %v3860_v47 = vpop.f32.mrf.mxu1 }
 0xb38   : > { %5731 = vrot.lane.b32.xlu2 %v5730_v63, %s10067_s21  ;;  %v10211_v63 = vld [vmem:[#allocation64_spill] sm:$0xff] }
 0xb3b   : > { %v5677_v9 = vpop.permute.xlu1 %5676 }
 0xb3c   : > { %v5679_v15 = vunpack.i.h.bf16 %v5677_v9  ;;  %v5678_v51 = vunpack.i.l.bf16 %v5677_v9 }
 0xb3e   : > { %v5682_v7 = vpop.permute.xlu0 %5681  ;;  %v4078_v1 = vsel %vm818_vm1, %v9217_v57, %v5679_v15  ;;  %v4077_v5 = vsel %vm818_vm1, %v9201_v11, %v5678_v51  ;;  %v3862_v11 = vpop.f32.mrf.mxu1 }
 0xb3f   : > { %v5684_v22 = vunpack.i.h.bf16 %v5682_v7  ;;  %v5683_v8 = vunpack.i.l.bf16 %v5682_v7  ;;  %v5750_v57 = vpack.i.bf16 %v3862_v11, %v3860_v47 }
 0xb40   : > { %v3771_v56 = vpop.xlane.xlu2 %3770  ;;  %5746 = vrot.lane.b32.xlu2 %v5745_v36, %s6661_s17 }
 0xb41   : > { %6470 = vrcp.f32 %v3771_v56  ;;  %v4093_v2 = vsel %vm2411_vm2, %v4077_v5, %v5683_v8  ;;  %v4094_v35 = vsel %vm2411_vm2, %v4078_v1, %v5684_v22 }
 0xb46   : > { %v5692_v61 = vpop.permute.xlu0 %5691 }
 0xb47   : > { %v6471_v49 = vpop.eup %6470  ;;  %v5694_v31 = vunpack.i.h.bf16 %v5692_v61  ;;  %v5693_v59 = vunpack.i.l.bf16 %v5692_v61 }
 0xb48   : > { %v5687_v14 = vpop.permute.xlu2 %5686  ;;  %5761 = vrot.lane.b32.xlu2 %v5760_v54, %s6661_s17  ;;  %v3803_v16 = vmul.f32 %v6471_v49, %v9369_v19  ;;  %v5775_v19 = vpack.i.bf16 %v9322_v45, %v9312_v25  ;;  %v5810_v54 = vpack.i.bf16 %v9341_v13, %v9330_v41  ;;  %v10214_v13 = vld [vmem:[#allocation66_spill] sm:$0xff] }
 0xb49   : > { %v5689_v24 = vunpack.i.h.bf16 %v5687_v14  ;;  %v5688_v50 = vunpack.i.l.bf16 %v5687_v14  ;;  %v4080_v48 = vsel %vm818_vm1, %v10210_v23, %v5694_v31  ;;  %v4079_v30 = vsel %vm818_vm1, %v10211_v63, %v5693_v59  ;;  %v5586_v31 = vld [vmem:[%s10015_s5 + $0x8] sm:$0xff]  ;;  %v10217_v59 = vld [vmem:[#allocation43_spill] sm:$0xff]  ;;  %v10221_v63 = vld [vmem:[#allocation26_spill] sm:$0xff] }
 0xb4a   : > { %v3811_v0 = vpack.c.bf16 %v3803_v16, %v3802_v58  ;;  %v5845_v23 = vpack.i.bf16 %v9361_v40, %v9352_v3 }
 0xb4b   : > { %v4109_v34 = vsel %vm2428_vm3, %v4093_v2, %v5688_v50  ;;  %v4110_v55 = vsel %vm2428_vm3, %v4094_v35, %v5689_v24  ;;  %v10212_v24 = vld [vmem:[#allocation36_spill] sm:$0xff]  ;;  %v10213_v50 = vld [vmem:[#allocation22_spill] sm:$0xff] }
 0xb4c   : > { %v5735_v10 = vpack.i.bf16 %v4110_v55, %v4109_v34  ;;  %3879 = vmatmul.bf16.gmra.mxu1 %v3811_v0  ;;  %v5825_v2 = vpack.i.bf16 %v10213_v50, %v10212_v24 }
 0xb4e   : > { %5736 = vrot.lane.b32.xlu0 %v5735_v10, %s6657_s18  ;;  %v5707_v22 = vpop.permute.xlu0 %5706 }
 0xb4f   : > { %v5709_v47 = vunpack.i.h.bf16 %v5707_v22  ;;  %v5708_v14 = vunpack.i.l.bf16 %v5707_v22 }
 0xb50   : > { %5776 = vrot.lane.b32.xlu2 %v5775_v19, %s10068_s27 }
 0xb51   : > { %v4082_v41 = vsel %vm818_vm1, %v9249_v21, %v5709_v47  ;;  %v4081_v0 = vsel %vm818_vm1, %v10214_v13, %v5708_v14 }
 0xb56   : > { %5751 = vrot.lane.b32.xlu0 %v5750_v57, %s10067_s21 }
 0xb57   : > { %v5697_v43 = vpop.permute.xlu1 %5696 }
 0xb58   : > { %5791 = vrot.lane.b32.xlu2 %v5790_v28, %s10068_s27  ;;  %v5699_v6 = vunpack.i.h.bf16 %v5697_v43  ;;  %v5698_v17 = vunpack.i.l.bf16 %v5697_v43  ;;  %v10216_v28 = vld [vmem:[#allocation44_spill] sm:$0xff]  ;;  %v5587_v43 = vld [vmem:[%s10015_s5 + $0x10] sm:$0xff] }
 0xb59   : > { %v5800_v62 = vpack.i.bf16 %v10216_v28, %v10215_v27 }
 0xb5a   : > { %v4096_v56 = vsel %vm2411_vm2, %v4080_v48, %v5699_v6  ;;  %v4095_v9 = vsel %vm2411_vm2, %v4079_v30, %v5698_v17  ;;  %v10219_v17 = vld [vmem:[#allocation46_spill] sm:$0xff]  ;;  %v10222_v30 = vld [vmem:[#allocation28_spill] sm:$0xff] }
 0xb5b   : > { %v5835_v12 = vpack.i.bf16 %v10220_v39, %v10219_v17  ;;  %v10229_v17 = vld [vmem:[#allocation51_spill] sm:$0xff] }
 0xb5e   : > { %5766 = vrot.lane.b32.xlu0 %v5765_v32, %s10067_s21 }
 0xb69   : > { %v3511_v60 = vpop.f32.mrf.mxu2 }
 0xb6b   : > { %v3865_v37 = vpop.f32.mrf.mxu1 }
 0xb71   : > { %v3513_v25 = vpop.f32.mrf.mxu2 }
 0xb72   : > { %v5780_v45 = vpack.i.bf16 %v3513_v25, %v3511_v60  ;;  %v5588_v60 = vld [vmem:[%s10015_s5 + $0x18] sm:$0xff] }
 0xb73   : > { %v3867_v51 = vpop.f32.mrf.mxu1  ;;  %4278 = vmatpush.bf16.msrb.mxu3 %v5588_v60 }
 0xb74   : > { %5781 = vrot.lane.b32.xlu0 %v5780_v45, %s6661_s17  ;;  %v5785_v49 = vpack.i.bf16 %v3867_v51, %v3865_v37  ;;  %v10218_v37 = vld [vmem:[#allocation45_spill] sm:$0xff] }
 0xb75   : > { %v5830_v6 = vpack.i.bf16 %v10218_v37, %v10217_v59 }
 0xb77   : > { %4279 = vmatpush.bf16.msrb.mxu3 %v5587_v43 }
 0xb79   : > { %v3516_v58 = vpop.f32.mrf.mxu2 }
 0xb7a   : > { %v5702_v18 = vpop.permute.xlu2 %5701 }
 0xb7b   : > { %v5704_v42 = vunpack.i.h.bf16 %v5702_v18  ;;  %v5703_v36 = vunpack.i.l.bf16 %v5702_v18  ;;  %4280 = vmatpush.bf16.msrb.mxu3 %v5586_v31 }
 0xb7c   : > { %5796 = vrot.lane.b32.xlu0 %v5795_v38, %s6661_s17  ;;  %v5585_v38 = vld [vmem:[%s10015_s5] sm:$0xff] }
 0xb7d   : > { %v4111_v7 = vsel %vm2428_vm3, %v4095_v9, %v5703_v36  ;;  %v4112_v4 = vsel %vm2428_vm3, %v4096_v56, %v5704_v42  ;;  %v5860_v42 = vpack.i.bf16 %v10222_v30, %v10221_v63  ;;  %v10223_v36 = vld [vmem:[#allocation48_spill] sm:$0xff]  ;;  %v10224_v56 = vld [vmem:[#allocation49_spill] sm:$0xff]  ;;  %v10231_v63 = vld [vmem:[#allocation50_spill] sm:$0xff] }
 0xb7e   : > { %v5770_v15 = vpack.i.bf16 %v4112_v4, %v4111_v7  ;;  %v5712_v8 = vpop.permute.xlu1 %5711  ;;  %v5865_v9 = vpack.i.bf16 %v10224_v56, %v10223_v36  ;;  %v5880_v7 = vpack.i.bf16 %v9373_v52, %v9364_v53  ;;  %v5722_v4 = vpop.permute.xlu0 %5721  ;;  %v10232_v30 = vld [vmem:[#allocation52_spill] sm:$0xff] }
 0xb7f   : > { %v5714_v16 = vunpack.i.h.bf16 %v5712_v8  ;;  %v5713_v1 = vunpack.i.l.bf16 %v5712_v8  ;;  %4281 = vmatpush.bf16.msrb.mxu3 %v5585_v38  ;;  %v5723_v51 = vunpack.i.l.bf16 %v5722_v4  ;;  %v10225_v8 = vld [vmem:[#allocation31_spill] sm:$0xff] }
 0xb80   : > { %5771 = vrot.lane.b32.xlu1 %v5770_v15, %s6657_s18  ;;  %v5724_v15 = vunpack.i.h.bf16 %v5722_v4 }
 0xb81   : > { %v4098_v10 = vsel %vm2411_vm2, %v4082_v41, %v5714_v16  ;;  %v4097_v19 = vsel %vm2411_vm2, %v4081_v0, %v5713_v1  ;;  %v3518_v21 = vpop.f32.mrf.mxu2  ;;  %v10227_v16 = vld [vmem:[#allocation23_spill] sm:$0xff] }
 0xb82   : > { %v5815_v25 = vpack.i.bf16 %v3518_v21, %v3516_v58  ;;  %v2396_v1 = vsel %vm818_vm1, %v10227_v16, %v5724_v15 }
 0xb83   : > { %v3870_v5 = vpop.f32.mrf.mxu1 }
 0xb84   : > { %5811 = vrot.lane.b32.xlu0 %v5810_v54, %s10068_s27 }
 0xb86   : > { %v5727_v3 = vpop.permute.xlu1 %5726 }
 0xb87   : > { %v5729_v54 = vunpack.i.h.bf16 %v5727_v3  ;;  %v5728_v22 = vunpack.i.l.bf16 %v5727_v3 }
 0xb88   : > { %5786 = vrot.lane.b32.xlu1 %v5785_v49, %s10067_s21  ;;  %v10226_v49 = vld [vmem:[#allocation32_spill] sm:$0xff] }
 0xb89   : > { %v5895_v47 = vpack.i.bf16 %v10226_v49, %v10225_v8  ;;  %v2413_v24 = vsel %vm2411_vm2, %v2396_v1, %v5729_v54  ;;  %v10235_v1 = vld [vmem:[#allocation33_spill] sm:$0xff] }
 0xb8a   : > { %v5717_v35 = vpop.permute.xlu2 %5716 }
 0xb8b   : > { %v5719_v34 = vunpack.i.h.bf16 %v5717_v35  ;;  %v5718_v55 = vunpack.i.l.bf16 %v5717_v35  ;;  %v3872_v32 = vpop.f32.mrf.mxu1 }
 0xb8c   : > { %5826 = vrot.lane.b32.xlu0 %v5825_v2, %s10068_s27  ;;  %v5820_v45 = vpack.i.bf16 %v3872_v32, %v3870_v5  ;;  %v10228_v5 = vld [vmem:[#allocation16_spill] sm:$0xff] }
 0xb8d   : > { %v4113_v11 = vsel %vm2428_vm3, %v4097_v19, %v5718_v55  ;;  %v4114_v57 = vsel %vm2428_vm3, %v4098_v10, %v5719_v34  ;;  %v2395_v53 = vsel %vm818_vm1, %v10228_v5, %v5723_v51  ;;  %v10233_v51 = vld [vmem:[#allocation25_spill] sm:$0xff]  ;;  %v10236_v5 = vld [vmem:[#allocation39_spill] sm:$0xff] }
 0xb8e   : > { %v5805_v29 = vpack.i.bf16 %v4114_v57, %v4113_v11  ;;  %v2412_v50 = vsel %vm2411_vm2, %v2395_v53, %v5728_v22  ;;  %v5742_v41 = vpop.permute.xlu1 %5741  ;;  %v10234_v22 = vld [vmem:[#allocation17_spill] sm:$0xff]  ;;  %v5915_v53 = vpack.i.bf16 %v10236_v5, %v10235_v1 }
 0xb8f   : > { %v5744_v11 = vunpack.i.h.bf16 %v5742_v41  ;;  %v5743_v57 = vunpack.i.l.bf16 %v5742_v41  ;;  %v10242_v1 = vld [vmem:[#allocation69_spill] sm:$0xff] }
 0xb90   : > { %5806 = vrot.lane.b32.xlu2 %v5805_v29, %s6657_s18  ;;  %5801 = vrot.lane.b32.xlu1 %v5800_v62, %s10067_s21 }
 0xb91   : > { %v4084_v21 = vsel %vm818_vm1, %v9269_v26, %v5744_v11  ;;  %v4083_v32 = vsel %vm818_vm1, %v9255_v44, %v5743_v57  ;;  %v10230_v44 = vld [vmem:[#allocation53_spill] sm:$0xff]  ;;  %v10237_v11 = vld [vmem:[#allocation68_spill] sm:$0xff] }
 0xb92   : > { %v5732_v40 = vpop.permute.xlu2 %5731  ;;  %v5870_v39 = vpack.i.bf16 %v10230_v44, %v10229_v17  ;;  %v10239_v17 = vld [vmem:[#allocation30_spill] sm:$0xff] }
 0xb93   : > { %v5734_v14 = vunpack.i.h.bf16 %v5732_v40  ;;  %v5733_v58 = vunpack.i.l.bf16 %v5732_v40 }
 0xb95   : > { %v2429_v13 = vsel %vm2428_vm3, %v2412_v50, %v5733_v58  ;;  %v2430_v0 = vsel %vm2428_vm3, %v2413_v24, %v5734_v14 }
 0xb98   : > { %5821 = vrot.lane.b32.xlu2 %v5820_v45, %s10067_s21  ;;  %5816 = vrot.lane.b32.xlu1 %v5815_v25, %s6661_s17  ;;  %v3521_v61 = vpop.f32.mrf.mxu2 }
 0xb9a   : > { %v5747_v34 = vpop.permute.xlu2 %5746 }
 0xb9b   : > { %v5749_v27 = vunpack.i.h.bf16 %v5747_v34  ;;  %v5748_v28 = vunpack.i.l.bf16 %v5747_v34 }
 0xb9d   : > { %v4099_v45 = vsel %vm2411_vm2, %v4083_v32, %v5748_v28 }
 0xba0   : > { %5836 = vrot.lane.b32.xlu2 %v5835_v12, %s10067_s21  ;;  %5831 = vrot.lane.b32.xlu1 %v5830_v6, %s6661_s17  ;;  %v3523_v18 = vpop.f32.mrf.mxu2 }
 0xba1   : > { %v5850_v48 = vpack.i.bf16 %v3523_v18, %v3521_v61  ;;  %v4100_v61 = vsel %vm2411_vm2, %v4084_v21, %v5749_v27  ;;  %v10238_v27 = vld [vmem:[#allocation67_spill] sm:$0xff] }
 0xba2   : > { %v3875_v62 = vpop.f32.mrf.mxu1  ;;  %v5762_v38 = vpop.permute.xlu2 %5761 }
 0xba3   : > { %v5763_v4 = vunpack.i.l.bf16 %v5762_v38 }
 0xba8   : > { %5851 = vrot.lane.b32.xlu2 %v5850_v48, %s6661_s17  ;;  %5846 = vrot.lane.b32.xlu1 %v5845_v23, %s10068_s27  ;;  %v5757_v48 = vpop.permute.xlu1 %5756 }
 0xba9   : > { %v5759_v56 = vunpack.i.h.bf16 %v5757_v48 }
 0xbaa   : > { %v3877_v37 = vpop.f32.mrf.mxu1  ;;  %v5777_v36 = vpop.permute.xlu2 %5776 }
 0xbab   : > { %v5855_v6 = vpack.i.bf16 %v3877_v37, %v3875_v62  ;;  %v2398_v54 = vsel %vm818_vm1, %v10233_v51, %v5759_v56  ;;  %v5779_v41 = vunpack.i.h.bf16 %v5777_v36 }
 0xbad   : > { %v4086_v57 = vsel %vm818_vm1, %v10237_v11, %v5779_v41 }
 0xbb0   : > { %5866 = vrot.lane.b32.xlu2 %v5865_v9, %s6661_s17  ;;  %5861 = vrot.lane.b32.xlu1 %v5860_v42, %s10068_s27  ;;  %v5900_v42 = vpack.i.bf16 %v10232_v30, %v10231_v63  ;;  %v5758_v9 = vunpack.i.l.bf16 %v5757_v48 }
 0xbb2   : > { %v3526_v26 = vpop.f32.mrf.mxu2  ;;  %v2397_v8 = vsel %vm818_vm1, %v10234_v22, %v5758_v9 }
 0xbb8   : > { %5881 = vrot.lane.b32.xlu2 %v5880_v7, %s10068_s27  ;;  %v5764_v7 = vunpack.i.h.bf16 %v5762_v38 }
 0xbba   : > { %v3528_v12 = vpop.f32.mrf.mxu2  ;;  %v2415_v14 = vsel %vm2411_vm2, %v2398_v54, %v5764_v7 }
 0xbbb   : > { %v5885_v18 = vpack.i.bf16 %v3528_v12, %v3526_v26 }
 0xbc0   : > { %v5737_v52 = vpop.permute.xlu0 %5736  ;;  %5896 = vrot.lane.b32.xlu2 %v5895_v47, %s10068_s27  ;;  %v2414_v47 = vsel %vm2411_vm2, %v2397_v8, %v5763_v4 }
 0xbc1   : > { %v5739_v2 = vunpack.i.h.bf16 %v5737_v52  ;;  %v5738_v35 = vunpack.i.l.bf16 %v5737_v52 }
 0xbc3   : > { %v4191_v55 = vsel %vm4189_vm4, %v2430_v0, %v5739_v2  ;;  %v4190_v10 = vsel %vm4189_vm4, %v2429_v13, %v5738_v35  ;;  %v5778_v13 = vunpack.i.l.bf16 %v5777_v36  ;;  %v5792_v0 = vpop.permute.xlu2 %5791 }
 0xbc4   : > { %v4206_v19 = vpack.c.bf16 %v4191_v55, %v4190_v10 }
 0xbc5   : > { %v4085_v28 = vsel %vm818_vm1, %v10238_v27, %v5778_v13  ;;  %v10250_v27 = vld [vmem:[#allocation11_spill] sm:$0xff] }
 0xbc6   : > { %5468 = vmatmul.msk.bf16.vlgmr.msrb.gmra.mxu3 %vm575_vm0, %v4206_v19 }
 0xbc8   : > { %v5752_v29 = vpop.permute.xlu0 %5751 }
 0xbc9   : > { %v5754_v60 = vunpack.i.h.bf16 %v5752_v29  ;;  %v5753_v25 = vunpack.i.l.bf16 %v5752_v29  ;;  %v3880_v10 = vpop.f32.mrf.mxu1 }
 0xbcb   : > { %v4116_v43 = vsel %vm2428_vm3, %v4100_v61, %v5754_v60  ;;  %v4115_v31 = vsel %vm2428_vm3, %v4099_v45, %v5753_v25 }
 0xbcc   : > { %v5840_v59 = vpack.i.bf16 %v4116_v43, %v4115_v31  ;;  %v5794_v43 = vunpack.i.h.bf16 %v5792_v0  ;;  %v5793_v31 = vunpack.i.l.bf16 %v5792_v0  ;;  %v10245_v0 = vld [vmem:[#allocation54_spill] sm:$0xff] }
 0xbce   : > { %5841 = vrot.lane.b32.xlu0 %v5840_v59, %s6657_s18  ;;  %v2400_v44 = vsel %vm818_vm1, %v10239_v17, %v5794_v43  ;;  %v10253_v17 = vld [vmem:[#allocation13_spill] sm:$0xff] }
 0xbd0   : > { %v5767_v23 = vpop.permute.xlu0 %5766 }
 0xbd1   : > { %v5769_v3 = vunpack.i.h.bf16 %v5767_v23  ;;  %v5768_v40 = vunpack.i.l.bf16 %v5767_v23  ;;  %v3882_v38 = vpop.f32.mrf.mxu1 }
 0xbd2   : > { %v5890_v7 = vpack.i.bf16 %v3882_v38, %v3880_v10  ;;  %v10247_v10 = vld [vmem:[#allocation59_spill] sm:$0xff] }
 0xbd3   : > { %v2432_v52 = vsel %vm2428_vm3, %v2415_v14, %v5769_v3  ;;  %v2431_v24 = vsel %vm2428_vm3, %v2414_v47, %v5768_v40 }
 0xbd6   : > { %5856 = vrot.lane.b32.xlu0 %v5855_v6, %s10067_s21 }
 0xbde   : > { %5871 = vrot.lane.b32.xlu0 %v5870_v39, %s10067_s21  ;;  %v10240_v39 = vld [vmem:[#allocation27_spill] sm:$0xff] }
 0xbdf   : > { %v2399_v12 = vsel %vm818_vm1, %v10240_v39, %v5793_v31  ;;  %v10254_v39 = vld [vmem:[#allocation29_spill] sm:$0xff] }
 0xbe6   : > { %5886 = vrot.lane.b32.xlu0 %v5885_v18, %s6661_s17  ;;  %v5782_v15 = vpop.permute.xlu0 %5781 }
 0xbe7   : > { %v5784_v34 = vunpack.i.h.bf16 %v5782_v15  ;;  %v5783_v55 = vunpack.i.l.bf16 %v5782_v15 }
 0xbe9   : > { %v4102_v32 = vsel %vm2411_vm2, %v4086_v57, %v5784_v34  ;;  %v4101_v60 = vsel %vm2411_vm2, %v4085_v28, %v5783_v55  ;;  %v10246_v34 = vld [vmem:[#allocation56_spill] sm:$0xff]  ;;  %v10249_v57 = vld [vmem:[#allocation34_spill] sm:$0xff] }
 0xbea   : > { %v5807_v59 = vpop.permute.xlu2 %5806  ;;  %v5920_v55 = vpack.i.bf16 %v10246_v34, %v10245_v0  ;;  %v5935_v28 = vpack.i.bf16 %v10250_v27, %v10249_v57  ;;  %v10257_v0 = vld [vmem:[#allocation63_spill] sm:$0xff] }
 0xbeb   : > { %v5809_v48 = vunpack.i.h.bf16 %v5807_v59  ;;  %v5808_v63 = vunpack.i.l.bf16 %v5807_v59 }
 0xbee   : > { %5901 = vrot.lane.b32.xlu0 %v5900_v42, %s6661_s17  ;;  %v5797_v62 = vpop.permute.xlu0 %5796 }
 0xbef   : > { %v5799_v37 = vunpack.i.h.bf16 %v5797_v62  ;;  %v5798_v6 = vunpack.i.l.bf16 %v5797_v62  ;;  %v10251_v62 = vld [vmem:[#allocation58_spill] sm:$0xff] }
 0xbf1   : > { %v2417_v30 = vsel %vm2411_vm2, %v2400_v44, %v5799_v37  ;;  %v2416_v42 = vsel %vm2411_vm2, %v2399_v12, %v5798_v6 }
 0xbf2   : > { %v5772_v49 = vpop.permute.xlu1 %5771  ;;  %v5822_v54 = vpop.permute.xlu2 %5821 }
 0xbf3   : > { %v5774_v58 = vunpack.i.h.bf16 %v5772_v49  ;;  %v5773_v16 = vunpack.i.l.bf16 %v5772_v49  ;;  %v5824_v47 = vunpack.i.h.bf16 %v5822_v54  ;;  %v5823_v14 = vunpack.i.l.bf16 %v5822_v54 }
 0xbf5   : > { %v4192_v50 = vsel %vm4189_vm4, %v2431_v24, %v5773_v16  ;;  %v4193_v2 = vsel %vm4189_vm4, %v2432_v52, %v5774_v58  ;;  %v10241_v58 = vld [vmem:[#allocation70_spill] sm:$0xff]  ;;  %v10243_v24 = vld [vmem:[#allocation55_spill] sm:$0xff] }
 0xbf6   : > { %v4207_v35 = vpack.c.bf16 %v4193_v2, %v4192_v50  ;;  %5916 = vrot.lane.b32.xlu0 %v5915_v53, %s10068_s27  ;;  %v5812_v36 = vpop.permute.xlu0 %5811  ;;  %v10244_v50 = vld [vmem:[#allocation57_spill] sm:$0xff] }
 0xbf7   : > { %v5814_v15 = vunpack.i.h.bf16 %v5812_v36  ;;  %v5813_v51 = vunpack.i.l.bf16 %v5812_v36  ;;  %v5905_v2 = vpack.i.bf16 %v10244_v50, %v10243_v24 }
 0xbf8   : > { %5469 = vmatmul.msk.bf16.gmra.mxu3 %vm575_vm0, %v4207_v35 }
 0xbf9   : > { %v4088_v16 = vsel %vm818_vm1, %v10241_v58, %v5814_v15  ;;  %v4087_v5 = vsel %vm818_vm1, %v10242_v1, %v5813_v51 }
 0xbfa   : > { %v5787_v19 = vpop.permute.xlu1 %5786  ;;  %v5837_v37 = vpop.permute.xlu2 %5836 }
 0xbfb   : > { %v5789_v29 = vunpack.i.h.bf16 %v5787_v19  ;;  %v5788_v21 = vunpack.i.l.bf16 %v5787_v19  ;;  %v10248_v19 = vld [vmem:[#allocation61_spill] sm:$0xff] }
 0xbfc   : > { %v5925_v11 = vpack.i.bf16 %v10248_v19, %v10247_v10 }
 0xbfd   : > { %v4117_v25 = vsel %vm2428_vm3, %v4101_v60, %v5788_v21  ;;  %v4118_v45 = vsel %vm2428_vm3, %v4102_v32, %v5789_v29  ;;  %v10252_v29 = vld [vmem:[#allocation60_spill] sm:$0xff]  ;;  %v5592_v32 = vld [vmem:[%s10017_s7 + $0x18] sm:$0xff]  ;;  %v5591_v60 = vld [vmem:[%s10017_s7 + $0x10] sm:$0xff] }
 0xbfe   : > { %v5875_v61 = vpack.i.bf16 %v4118_v45, %v4117_v25  ;;  %v5940_v21 = vpack.i.bf16 %v10252_v29, %v10251_v62  ;;  %4411 = vmatpush.bf16.msrb.mxu2 %v5592_v32  ;;  %v5590_v25 = vld [vmem:[%s10017_s7 + $0x8] sm:$0xff]  ;;  %v5589_v45 = vld [vmem:[%s10017_s7] sm:$0xff]  ;;  %v5827_v43 = vpop.permute.xlu0 %5826 }
 0xbff   : > { %v5829_v31 = vunpack.i.h.bf16 %v5827_v43  ;;  %v5828_v59 = vunpack.i.l.bf16 %v5827_v43 }
 0xc00   : > { %5876 = vrot.lane.b32.xlu1 %v5875_v61, %s6657_s18 }
 0xc01   : > { %v2402_v44 = vsel %vm818_vm1, %v10253_v17, %v5829_v31  ;;  %v2401_v12 = vsel %vm818_vm1, %v10254_v39, %v5828_v59 }
 0xc02   : > { %v5802_v26 = vpop.permute.xlu1 %5801  ;;  %4412 = vmatpush.bf16.msrb.mxu2 %v5591_v60  ;;  %v5852_v51 = vpop.permute.xlu2 %5851  ;;  %v10260_v60 = vld [vmem:[#allocation21_spill] sm:$0xff] }
 0xc03   : > { %v5804_v18 = vunpack.i.h.bf16 %v5802_v26  ;;  %v5803_v23 = vunpack.i.l.bf16 %v5802_v26 }
 0xc05   : > { %v2433_v56 = vsel %vm2428_vm3, %v2416_v42, %v5803_v23  ;;  %v2434_v9 = vsel %vm2428_vm3, %v2417_v30, %v5804_v18  ;;  %v5839_v23 = vunpack.i.h.bf16 %v5837_v37 }
 0xc06   : > { %v4194_v4 = vsel %vm4189_vm4, %v2433_v56, %v5808_v63  ;;  %v4195_v3 = vsel %vm4189_vm4, %v2434_v9, %v5809_v48  ;;  %4413 = vmatpush.bf16.msrb.mxu2 %v5590_v25  ;;  %v5838_v48 = vunpack.i.l.bf16 %v5837_v37 }
 0xc07   : > { %v4208_v40 = vpack.c.bf16 %v4195_v3, %v4194_v4 }
 0xc08   : > { %5891 = vrot.lane.b32.xlu1 %v5890_v7, %s10067_s21 }
 0xc09   : > { %5470 = vmatmul.msk.bf16.gmra.mxu3 %vm575_vm0, %v4208_v40 }
 0xc0a   : > { %v5817_v22 = vpop.permute.xlu1 %5816  ;;  %4414 = vmatpush.bf16.msrb.mxu2 %v5589_v45 }
 0xc0b   : > { %v5819_v8 = vunpack.i.h.bf16 %v5817_v22  ;;  %v5818_v49 = vunpack.i.l.bf16 %v5817_v22  ;;  %v10255_v22 = vld [vmem:[#allocation71_spill] sm:$0xff] }
 0xc0d   : > { %v4103_v53 = vsel %vm2411_vm2, %v4087_v5, %v5818_v49  ;;  %v4104_v52 = vsel %vm2411_vm2, %v4088_v16, %v5819_v8  ;;  %v5854_v49 = vunpack.i.h.bf16 %v5852_v51 }
 0xc0e   : > { %v4119_v35 = vsel %vm2428_vm3, %v4103_v53, %v5823_v14  ;;  %v4120_v41 = vsel %vm2428_vm3, %v4104_v52, %v5824_v47  ;;  %v5853_v47 = vunpack.i.l.bf16 %v5852_v51 }
 0xc0f   : > { %v5910_v13 = vpack.i.bf16 %v4120_v41, %v4119_v35 }
 0xc10   : > { %5906 = vrot.lane.b32.xlu1 %v5905_v2, %s10067_s21 }
 0xc11   : > { %5911 = vrot.lane.b32.xlu2 %v5910_v13, %s6657_s18  ;;  %v10256_v13 = vld [vmem:[#allocation62_spill] sm:$0xff] }
 0xc12   : > { %v5832_v61 = vpop.permute.xlu1 %5831  ;;  %v5945_v34 = vpack.i.bf16 %v10257_v0, %v10256_v13 }
 0xc13   : > { %v5834_v6 = vunpack.i.h.bf16 %v5832_v61  ;;  %v5833_v26 = vunpack.i.l.bf16 %v5832_v61 }
 0xc15   : > { %v2418_v38 = vsel %vm2411_vm2, %v2401_v12, %v5833_v26  ;;  %v2419_v18 = vsel %vm2411_vm2, %v2402_v44, %v5834_v6 }
 0xc16   : > { %v2435_v56 = vsel %vm2428_vm3, %v2418_v38, %v5838_v48  ;;  %v2436_v9 = vsel %vm2428_vm3, %v2419_v18, %v5839_v23 }
 0xc18   : > { %5921 = vrot.lane.b32.xlu1 %v5920_v55, %s6661_s17 }
 0xc19   : > { %5926 = vrot.lane.b32.xlu2 %v5925_v11, %s10067_s21  ;;  %v5867_v11 = vpop.permute.xlu2 %5866  ;;  %s5601_s21 = sshll.u32 %s6765_s22, 7  ;;  %s5256_s22 = scalar_lea.sflag [#allocation3], %s486_s16 }
 0xc1a   : > { %v5847_v63 = vpop.permute.xlu1 %5846  ;;  %v5869_v43 = vunpack.i.h.bf16 %v5867_v11  ;;  %v5868_v31 = vunpack.i.l.bf16 %v5867_v11  ;;  %s5267_s20 = scalar_lea.hbm %s10025_s15, %s5601_s21 }
 0xc1b   : > { %v5849_v7 = vunpack.i.h.bf16 %v5847_v63  ;;  %v5848_v4 = vunpack.i.l.bf16 %v5847_v63  ;;  %s5270_s23 = sshll.u32 %s5267_s20, 4  ;;  %s5271_s23 = int_to_ptr.hbm [resolvable:$true] %s5270_s23 }
 0xc1c   : > { %s6598_s30 = sshra.s32 %s5271_s23, 4  ;;  %s6599_s30 = int_to_ptr.hbm [resolvable:$true] %s6598_s30 }
 0xc1d   : > { %v4090_v54 = vsel %vm818_vm1, %v9333_v33, %v5849_v7  ;;  %v4089_v8 = vsel %vm818_vm1, %v10255_v22, %v5848_v4  ;;  %v9629_v33 = vld [vmem:[%s10016_s6] ss:$0 sm:$0xff]  ;;  %s6600_s25 = scalar_lea.hbm %s6599_s30, 128  ;;  %p6605_p0 = scmp.lt.s32.totalorder %s6599_s30, %s10025_s15 }
 0xc1e   : > { %v4105_v5 = vsel %vm2411_vm2, %v4089_v8, %v5853_v47  ;;  %v4106_v53 = vsel %vm2411_vm2, %v4090_v54, %v5854_v49  ;;  %p6601_p11 = scmp.ne.s32.totalorder %s6599_s30, %s6600_s25 }
 0xc20   : > { %5936 = vrot.lane.b32.xlu1 %v5935_v28, %s10068_s27  ;;  %p6602_p12 = pnand %p6601_p11, %p6782_p5 }
 0xc21   : > { %5941 = vrot.lane.b32.xlu2 %v5940_v21, %s6661_s17  ;;  %s10258_s17 = smov 24   ;;  %v5882_v29 = vpop.permute.xlu2 %5881  ;;  %v10259_v21 = vld [vmem:[#allocation20_spill] sm:$0xff] }
 0xc22   : > { %v5862_v27 = vpop.permute.xlu1 %5861  ;;  %v5884_v48 = vunpack.i.h.bf16 %v5882_v29  ;;  %v5883_v63 = vunpack.i.l.bf16 %v5882_v29  ;;  %p6603_p13 = pneg %p6602_p12 }
 0xc23   : > { %v5864_v28 = vunpack.i.h.bf16 %v5862_v27  ;;  %v5863_v62 = vunpack.i.l.bf16 %v5862_v27 }
 0xc24   : > { %v4091_v7 = vsel %vm818_vm1, %v9343_v20, %v5883_v63  ;;  %v5594_v63 = vld [vmem:[%s10019_s9 + $0x8] sm:$0xff] }
 0xc25   : > { %v2404_v32 = vsel %vm818_vm1, %v10259_v21, %v5864_v28  ;;  %v2403_v25 = vsel %vm818_vm1, %v10260_v60, %v5863_v62 }
 0xc26   : > { %v2420_v6 = vsel %vm2411_vm2, %v2403_v25, %v5868_v31  ;;  %v2421_v26 = vsel %vm2411_vm2, %v2404_v32, %v5869_v43 }
 0xc40   : > { %v5842_v30 = vpop.permute.xlu0 %5841 }
 0xc41   : > { %v5844_v42 = vunpack.i.h.bf16 %v5842_v30  ;;  %v5843_v36 = vunpack.i.l.bf16 %v5842_v30 }
 0xc43   : > { %v4197_v3 = vsel %vm4189_vm4, %v2436_v9, %v5844_v42  ;;  %v4196_v40 = vsel %vm4189_vm4, %v2435_v56, %v5843_v36  ;;  %v5897_v36 = vpop.permute.xlu2 %5896  ;;  %v4092_v9 = vsel %vm818_vm1, %v9356_v46, %v5884_v48 }
 0xc44   : > { %v4209_v15 = vpack.c.bf16 %v4197_v3, %v4196_v40  ;;  %v5899_v49 = vunpack.i.h.bf16 %v5897_v36 }
 0xc46   : > { %5471 = vmatmul.msk.bf16.gmra.mxu3 %vm575_vm0, %v4209_v15 }
 0xc48   : > { %v5857_v14 = vpop.permute.xlu0 %5856 }
 0xc49   : > { %v5859_v58 = vunpack.i.h.bf16 %v5857_v14  ;;  %v5858_v16 = vunpack.i.l.bf16 %v5857_v14  ;;  %v4283_v1 = vpop.f32.mrf.mxu3  ;;  %v5898_v14 = vunpack.i.l.bf16 %v5897_v36 }
 0xc4a   : > { %v4284_v2 = vadd.f32 %v9629_v33, %v4283_v1 }
 0xc4b   : > { %v4122_v52 = vsel %vm2428_vm3, %v4106_v53, %v5859_v58  ;;  %v4121_v24 = vsel %vm2428_vm3, %v4105_v5, %v5858_v16  ;;  %v10261_v16 = vld [vmem:[#allocation18_spill] sm:$0xff] }
 0xc4c   : > { %v5930_v50 = vpack.i.bf16 %v4122_v52, %v4121_v24  ;;  %v4323_v55 = vmax.f32 %v4284_v2, 0.0  ;;  %v2406_v1 = vsel %vm818_vm1, %v10261_v16, %v5899_v49  ;;  %v10262_v52 = vld [vmem:[#allocation24_spill] sm:$0xff]  ;;  %v9704_v16 = vld [vmem:[%s10018_s8] ss:$0 sm:$0xff] }
 0xc4d   : > { %v2405_v24 = vsel %vm818_vm1, %v10262_v52, %v5898_v14 }
 0xc4e   : > { %5931 = vrot.lane.b32.xlu0 %v5930_v50, %s6657_s18 }
 0xc50   : > { %v5872_v57 = vpop.permute.xlu0 %5871 }
 0xc51   : > { %v4285_v35 = vpop.f32.mrf.mxu3  ;;  %v5874_v45 = vunpack.i.h.bf16 %v5872_v57  ;;  %v5873_v61 = vunpack.i.l.bf16 %v5872_v57 }
 0xc52   : > { %v4286_v41 = vadd.f32 %v9629_v33, %v4285_v35 }
 0xc53   : > { %v2438_v39 = vsel %vm2428_vm3, %v2421_v26, %v5874_v45  ;;  %v2437_v12 = vsel %vm2428_vm3, %v2420_v6, %v5873_v61 }
 0xc54   : > { %v4324_v10 = vmax.f32 %v4286_v41, 0.0 }
 0xc56   : > { %v4339_v19 = vpack.c.bf16 %v4324_v10, %v4323_v55  ;;  %5946 = vrot.lane.b32.xlu0 %v5945_v34, %s10258_s17 }
 0xc58   : > { %5492 = vmatmul.msk.bf16.vlgmr.msrb.gmra.mxu2 %vm575_vm0, %v4339_v19  ;;  %v5887_v59 = vpop.permute.xlu0 %5886 }
 0xc59   : > { %v5889_v30 = vunpack.i.h.bf16 %v5887_v59  ;;  %v5888_v42 = vunpack.i.l.bf16 %v5887_v59 }
 0xc5b   : > { %v4108_v15 = vsel %vm2411_vm2, %v4092_v9, %v5889_v30  ;;  %v4107_v51 = vsel %vm2411_vm2, %v4091_v7, %v5888_v42 }
 0xc60   : > { %v5902_v54 = vpop.permute.xlu0 %5901 }
 0xc61   : > { %v5904_v58 = vunpack.i.h.bf16 %v5902_v54  ;;  %v5903_v46 = vunpack.i.l.bf16 %v5902_v54 }
 0xc63   : > { %v2423_v50 = vsel %vm2411_vm2, %v2406_v1, %v5904_v58  ;;  %v2422_v13 = vsel %vm2411_vm2, %v2405_v24, %v5903_v46 }
 0xc68   : > { %v5917_v31 = vpop.permute.xlu0 %5916 }
 0xc69   : > { %v5919_v6 = vunpack.i.h.bf16 %v5917_v31  ;;  %v5918_v26 = vunpack.i.l.bf16 %v5917_v31 }
 0xc6b   : > { %v5912_v20 = vpop.permute.xlu2 %5911 }
 0xc6c   : > { %v5914_v0 = vunpack.i.h.bf16 %v5912_v20  ;;  %v5913_v34 = vunpack.i.l.bf16 %v5912_v20 }
 0xc72   : > { %v5877_v37 = vpop.permute.xlu1 %5876 }
 0xc73   : > { %v5879_v17 = vunpack.i.h.bf16 %v5877_v37  ;;  %v5878_v44 = vunpack.i.l.bf16 %v5877_v37  ;;  %v5596_v37 = vld [vmem:[%s10019_s9 + $0x18] sm:$0xff] }
 0xc74   : > { %4528 = vmatpush.bf16.msrb.mxu0 %v5596_v37 }
 0xc75   : > { %v4198_v38 = vsel %vm4189_vm4, %v2437_v12, %v5878_v44  ;;  %v4199_v18 = vsel %vm4189_vm4, %v2438_v39, %v5879_v17  ;;  %v5595_v39 = vld [vmem:[%s10019_s9 + $0x10] sm:$0xff]  ;;  %v5927_v12 = vpop.permute.xlu2 %5926 }
 0xc76   : > { %v4210_v23 = vpack.c.bf16 %v4199_v18, %v4198_v38  ;;  %v10263_v38 = vld [vmem:[#allocation15_spill] sm:$0xff]  ;;  %v5929_v36 = vunpack.i.h.bf16 %v5927_v12 }
 0xc77   : > { %v2408_v18 = vsel %vm818_vm1, %v10263_v38, %v5919_v6 }
 0xc78   : > { %5472 = vmatmul.msk.bf16.gmra.mxu3 %vm575_vm0, %v4210_v23  ;;  %v10264_v23 = vld [vmem:[#allocation19_spill] sm:$0xff]  ;;  %4529 = vmatpush.bf16.msrb.mxu0 %v5595_v39 }
 0xc79   : > { %v2407_v48 = vsel %vm818_vm1, %v10264_v23, %v5918_v26 }
 0xc7a   : > { %v5892_v56 = vpop.permute.xlu1 %5891 }
 0xc7b   : > { %v5894_v4 = vunpack.i.h.bf16 %v5892_v56  ;;  %v5893_v3 = vunpack.i.l.bf16 %v5892_v56  ;;  %v4288_v40 = vpop.f32.mrf.mxu3  ;;  %v5928_v56 = vunpack.i.l.bf16 %v5927_v12 }
 0xc7c   : > { %v4289_v5 = vadd.f32 %v9629_v33, %v4288_v40  ;;  %4530 = vmatpush.bf16.msrb.mxu0 %v5594_v63 }
 0xc7d   : > { %v4123_v22 = vsel %vm2428_vm3, %v4107_v51, %v5893_v3  ;;  %v4124_v8 = vsel %vm2428_vm3, %v4108_v15, %v5894_v4 }
 0xc7e   : > { %v5950_v47 = vpack.i.bf16 %v4124_v8, %v4123_v22  ;;  %v4325_v11 = vmax.f32 %v4289_v5, 0.0  ;;  %v5593_v22 = vld [vmem:[%s10019_s9] sm:$0xff] }
 0xc80   : > { %5951 = vrot.lane.b32.xlu1 %v5950_v47, %s6657_s18  ;;  %4531 = vmatpush.bf16.msrb.mxu0 %v5593_v22  ;;  %s10265_s18 = smov 96  }
 0xc82   : > { %v5907_v53 = vpop.permute.xlu1 %5906 }
 0xc83   : > { %v5909_v2 = vunpack.i.h.bf16 %v5907_v53  ;;  %v5908_v35 = vunpack.i.l.bf16 %v5907_v53  ;;  %v4290_v41 = vpop.f32.mrf.mxu3 }
 0xc84   : > { %v4291_v55 = vadd.f32 %v9629_v33, %v4290_v41 }
 0xc85   : > { %v2439_v10 = vsel %vm2428_vm3, %v2422_v13, %v5908_v35  ;;  %v2440_v19 = vsel %vm2428_vm3, %v2423_v50, %v5909_v2  ;;  %v5942_v13 = vpop.permute.xlu2 %5941 }
 0xc86   : > { %v4326_v57 = vmax.f32 %v4291_v55, 0.0  ;;  %v4200_v27 = vsel %vm4189_vm4, %v2439_v10, %v5913_v34  ;;  %v4201_v28 = vsel %vm4189_vm4, %v2440_v19, %v5914_v0  ;;  %v10266_v0 = vld [vmem:[#allocation12_spill] sm:$0xff]  ;;  %v10267_v55 = vld [vmem:[#allocation14_spill] sm:$0xff] }
 0xc87   : > { %v4211_v62 = vpack.c.bf16 %v4201_v28, %v4200_v27  ;;  %v5943_v27 = vunpack.i.l.bf16 %v5942_v13 }
 0xc88   : > { %v4340_v29 = vpack.c.bf16 %v4326_v57, %v4325_v11  ;;  %v5944_v57 = vunpack.i.h.bf16 %v5942_v13 }
 0xc89   : > { %5473 = vmatmul.msk.bf16.gmra.mxu3 %vm575_vm0, %v4211_v62 }
 0xc8a   : > { %5493 = vmatmul.msk.bf16.gmra.mxu2 %vm575_vm0, %v4340_v29  ;;  %v5922_v59 = vpop.permute.xlu1 %5921 }
 0xc8b   : > { %v5924_v17 = vunpack.i.h.bf16 %v5922_v59  ;;  %v5923_v44 = vunpack.i.l.bf16 %v5922_v59 }
 0xc8c   : > { %v4293_v21 = vpop.f32.mrf.mxu3 }
 0xc8d   : > { %v4294_v32 = vadd.f32 %v9629_v33, %v4293_v21  ;;  %v2424_v30 = vsel %vm2411_vm2, %v2407_v48, %v5923_v44  ;;  %v2425_v42 = vsel %vm2411_vm2, %v2408_v18, %v5924_v17 }
 0xc8e   : > { %v2441_v3 = vsel %vm2428_vm3, %v2424_v30, %v5928_v56  ;;  %v2442_v40 = vsel %vm2428_vm3, %v2425_v42, %v5929_v36 }
 0xc8f   : > { %v4327_v45 = vmax.f32 %v4294_v32, 0.0 }
 0xc92   : > { %v5937_v50 = vpop.permute.xlu1 %5936 }
 0xc93   : > { %v5939_v2 = vunpack.i.h.bf16 %v5937_v50  ;;  %v5938_v35 = vunpack.i.l.bf16 %v5937_v50 }
 0xc94   : > { %v4295_v60 = vpop.f32.mrf.mxu3 }
 0xc95   : > { %v4296_v25 = vadd.f32 %v9629_v33, %v4295_v60  ;;  %v2410_v34 = vsel %vm818_vm1, %v10266_v0, %v5939_v2  ;;  %v2409_v10 = vsel %vm818_vm1, %v10267_v55, %v5938_v35 }
 0xc96   : > { %v2426_v62 = vsel %vm2411_vm2, %v2409_v10, %v5943_v27  ;;  %v2427_v29 = vsel %vm2411_vm2, %v2410_v34, %v5944_v57  ;;  %v5597_v34 = vld [vmem:[%s10021_s11] sm:$0xff] }
 0xc97   : > { %v4328_v61 = vmax.f32 %v4296_v25, 0.0 }
 0xc99   : > { %v4341_v43 = vpack.c.bf16 %v4328_v61, %v4327_v45 }
 0xc9b   : > { %5494 = vmatmul.msk.bf16.gmra.mxu2 %vm575_vm0, %v4341_v43 }
 0xcc0   : > { %v5932_v9 = vpop.permute.xlu0 %5931 }
 0xcc1   : > { %v5934_v7 = vunpack.i.h.bf16 %v5932_v9  ;;  %v5933_v4 = vunpack.i.l.bf16 %v5932_v9 }
 0xcc3   : > { %v4203_v15 = vsel %vm4189_vm4, %v2442_v40, %v5934_v7  ;;  %v4202_v51 = vsel %vm4189_vm4, %v2441_v3, %v5933_v4 }
 0xcc4   : > { %v4212_v54 = vpack.c.bf16 %v4203_v15, %v4202_v51 }
 0xcc6   : > { %5474 = vmatmul.msk.bf16.gmra.mxu3 %vm575_vm0, %v4212_v54 }
 0xcc8   : > { %v5947_v41 = vpop.permute.xlu0 %5946 }
 0xcc9   : > { %v4298_v8 = vpop.f32.mrf.mxu3  ;;  %v5949_v19 = vunpack.i.h.bf16 %v5947_v41  ;;  %v5948_v11 = vunpack.i.l.bf16 %v5947_v41  ;;  %v5598_v41 = vld [vmem:[%s10021_s11 + $0x8] sm:$0xff] }
 0xcca   : > { %v4299_v49 = vadd.f32 %v9629_v33, %v4298_v8  ;;  %5063 = vmatpush.bf16.msrb.mxu1 %v5598_v41  ;;  %5618 = vmatpush.bf16.msra.mxu3 %v5598_v41 }
 0xccb   : > { %v2444_v60 = vsel %vm2428_vm3, %v2427_v29, %v5949_v19  ;;  %v2443_v25 = vsel %vm2428_vm3, %v2426_v62, %v5948_v11 }
 0xccc   : > { %v4329_v58 = vmax.f32 %v4299_v49, 0.0 }
 0xcce   : > { %5064 = vmatpush.bf16.msrb.mxu1 %v5597_v34  ;;  %5619 = vmatpush.bf16.msra.mxu3 %v5597_v34 }
 0xcd1   : > { %v4300_v47 = vpop.f32.mrf.mxu3 }
 0xcd2   : > { %v4301_v14 = vadd.f32 %v9629_v33, %v4300_v47 }
 0xcd4   : > { %v4330_v46 = vmax.f32 %v4301_v14, 0.0 }
 0xcd6   : > { %v4342_v20 = vpack.c.bf16 %v4330_v46, %v4329_v58 }
 0xcd8   : > { %5495 = vmatmul.msk.bf16.gmra.mxu2 %vm575_vm0, %v4342_v20  ;;  %v9773_v20 = vld [vmem:[%s10020_s10] ss:$0 sm:$0xff] }
 0xcdb   : > { %v4416_v1 = vpop.f32.mrf.mxu2 }
 0xcdc   : > { %v9707_v5 = vadd.f32 %v9704_v16, %v4416_v1 }
 0xcde   : > { %4925 = vrot.lane.b32.xlu2 %v9707_v5, %s10265_s18 }
 0xce3   : > { %v4418_v53 = vpop.f32.mrf.mxu2 }
 0xce4   : > { %v9712_v52 = vadd.f32 %v9704_v16, %v4418_v53 }
 0xce6   : > { %v4456_v24 = vpack.c.bf16 %v9712_v52, %v9707_v5  ;;  %4927 = vrot.lane.b32.xlu0 %v9712_v52, %s10265_s18 }
 0xce8   : > { %5516 = vmatmul.msk.bf16.vlgmr.msrb.gmra.mxu0 %vm575_vm0, %v4456_v24 }
 0xcf2   : > { %v5952_v28 = vpop.permute.xlu1 %5951 }
 0xcf3   : > { %v5954_v21 = vunpack.i.h.bf16 %v5952_v28  ;;  %v5953_v32 = vunpack.i.l.bf16 %v5952_v28 }
 0xcf5   : > { %v4204_v45 = vsel %vm4189_vm4, %v2443_v25, %v5953_v32  ;;  %v4205_v61 = vsel %vm4189_vm4, %v2444_v60, %v5954_v21 }
 0xcf6   : > { %v4213_v43 = vpack.c.bf16 %v4205_v61, %v4204_v45 }
 0xcf8   : > { %5475 = vmatmul.msk.bf16.gmra.mxu3 %vm575_vm0, %v4213_v43 }
 0xcfb   : > { %v4303_v31 = vpop.f32.mrf.mxu3 }
 0xcfc   : > { %v4304_v59 = vadd.f32 %v9629_v33, %v4303_v31 }
 0xcfe   : > { %v4331_v26 = vmax.f32 %v4304_v59, 0.0 }
 0xd03   : > { %v4305_v37 = vpop.f32.mrf.mxu3 }
 0xd04   : > { %v4306_v6 = vadd.f32 %v9629_v33, %v4305_v37 }
 0xd06   : > { %v4332_v17 = vmax.f32 %v4306_v6, 0.0 }
 0xd08   : > { %v4343_v44 = vpack.c.bf16 %v4332_v17, %v4331_v26 }
 0xd0a   : > { %5496 = vmatmul.msk.bf16.gmra.mxu2 %vm575_vm0, %v4343_v44 }
 0xd0c   : > { %v4308_v39 = vpop.f32.mrf.mxu3 }
 0xd0d   : > { %v4421_v12 = vpop.f32.mrf.mxu2  ;;  %v4309_v18 = vadd.f32 %v9629_v33, %v4308_v39 }
 0xd0e   : > { %v9734_v38 = vadd.f32 %v9704_v16, %v4421_v12 }
 0xd0f   : > { %v4333_v42 = vmax.f32 %v4309_v18, 0.0 }
 0xd10   : > { %4929 = vrot.lane.b32.xlu1 %v9734_v38, %s10265_s18 }
 0xd14   : > { %v4310_v23 = vpop.f32.mrf.mxu3 }
 0xd15   : > { %v4311_v48 = vadd.f32 %v9629_v33, %v4310_v23  ;;  %v4423_v63 = vpop.f32.mrf.mxu2 }
 0xd16   : > { %v9741_v30 = vadd.f32 %v9704_v16, %v4423_v63 }
 0xd17   : > { %v4334_v36 = vmax.f32 %v4311_v48, 0.0 }
 0xd18   : > { %v4457_v56 = vpack.c.bf16 %v9741_v30, %v9734_v38  ;;  %4931 = vrot.lane.b32.xlu2 %v9741_v30, %s10265_s18 }
 0xd19   : > { %v4344_v9 = vpack.c.bf16 %v4334_v36, %v4333_v42 }
 0xd1a   : > { %5517 = vmatmul.msk.bf16.gmra.mxu0 %vm575_vm0, %v4457_v56 }
 0xd1b   : > { %5497 = vmatmul.msk.bf16.gmra.mxu2 %vm575_vm0, %v4344_v9 }
 0xd1e   : > { %v4426_v7 = vpop.f32.mrf.mxu2 }
 0xd1f   : > { %v9750_v4 = vadd.f32 %v9704_v16, %v4426_v7 }
 0xd21   : > { %4933 = vrot.lane.b32.xlu0 %v9750_v4, %s10265_s18 }
 0xd26   : > { %v4428_v3 = vpop.f32.mrf.mxu2 }
 0xd27   : > { %v9755_v40 = vadd.f32 %v9704_v16, %v4428_v3 }
 0xd29   : > { %v4458_v15 = vpack.c.bf16 %v9755_v40, %v9750_v4  ;;  %4935 = vrot.lane.b32.xlu1 %v9755_v40, %s10265_s18 }
 0xd2b   : > { %5518 = vmatmul.msk.bf16.gmra.mxu0 %vm575_vm0, %v4458_v15 }
 0xd38   : > { %v4926_v9 = vpop.permute.xlu2 %4925 }
 0xd49   : > { %v4313_v51 = vpop.f32.mrf.mxu3 }
 0xd4a   : > { %v4314_v54 = vadd.f32 %v9629_v33, %v4313_v51 }
 0xd4c   : > { %v4335_v49 = vmax.f32 %v4314_v54, 0.0 }
 0xd51   : > { %v4315_v22 = vpop.f32.mrf.mxu3 }
 0xd52   : > { %v4316_v8 = vadd.f32 %v9629_v33, %v4315_v22 }
 0xd54   : > { %v4336_v47 = vmax.f32 %v4316_v8, 0.0 }
 0xd56   : > { %v4345_v14 = vpack.c.bf16 %v4336_v47, %v4335_v49 }
 0xd58   : > { %5498 = vmatmul.msk.bf16.gmra.mxu2 %vm575_vm0, %v4345_v14  ;;  %v4928_v15 = vpop.permute.xlu0 %4927 }
 0xd5b   : > { %v4431_v58 = vpop.f32.mrf.mxu2 }
 0xd5c   : > { %v9766_v46 = vadd.f32 %v9704_v16, %v4431_v58 }
 0xd5e   : > { %4937 = vrot.lane.b32.xlu2 %v9766_v46, %s10265_s18 }
 0xd63   : > { %v4433_v1 = vpop.f32.mrf.mxu2 }
 0xd64   : > { %v9776_v53 = vadd.f32 %v9704_v16, %v4433_v1 }
 0xd65   : > { %v4533_v24 = vpop.f32.mrf.mxu0 }
 0xd66   : > { %v4459_v50 = vpack.c.bf16 %v9776_v53, %v9766_v46  ;;  %v4534_v2 = vadd.f32 %v9773_v20, %v4533_v24  ;;  %4939 = vrot.lane.b32.xlu0 %v9776_v53, %s10265_s18 }
 0xd68   : > { %v5524_v35 = vmul.f32 -1.442695, %v4534_v2  ;;  %5519 = vmatmul.msk.bf16.gmra.mxu0 %vm575_vm0, %v4459_v50 }
 0xd6a   : > { %6472 = vpow2.f32 %v5524_v35 }
 0xd6d   : > { %v4535_v13 = vpop.f32.mrf.mxu0 }
 0xd6e   : > { %v4536_v0 = vadd.f32 %v9773_v20, %v4535_v13 }
 0xd70   : > { %v6473_v55 = vpop.eup %6472  ;;  %v5525_v10 = vmul.f32 -1.442695, %v4536_v0 }
 0xd71   : > { %v4621_v19 = vadd.f32 1.0, %v6473_v55 }
 0xd72   : > { %6474 = vpow2.f32 %v5525_v10 }
 0xd73   : > { %6476 = vrcp.f32 %v4621_v19  ;;  %v4648_v32 = vand.u32 2147483648, %v4621_v19  ;;  %vm4642_vm6 = vweird.f32 %v4621_v19  ;;  %v4646_v25 = vand.u32 2147483647, %v4621_v19 }
 0xd75   : > { %v4649_v59 = vor.u32 1.1754944e-38, %v4648_v32  ;;  %vm4647_vm8 = vcmp.eq.f32.partialorder %v4646_v25, 8.507059e+37 }
 0xd78   : > { %v6475_v11 = vpop.eup %6474 }
 0xd79   : > { %v6477_v57 = vpop.eup %6476  ;;  %v4622_v27 = vadd.f32 1.0, %v6475_v11 }
 0xd7a   : > { %v4638_v28 = vmul.f32 %v6477_v57, %v4621_v19  ;;  %vm4643_vm5 = vweird.f32 %v6477_v57 }
 0xd7b   : > { %6478 = vrcp.f32 %v4622_v27  ;;  %v4318_v62 = vpop.f32.mrf.mxu3  ;;  %vm4644_vm7 = vmor %vm4642_vm6, %vm4643_vm5  ;;  %v4661_v44 = vand.u32 2147483647, %v4622_v27  ;;  %v4663_v39 = vand.u32 2147483648, %v4622_v27  ;;  %vm4657_vm10 = vweird.f32 %v4622_v27 }
 0xd7c   : > { %v4639_v29 = vsub.f32 1.0, %v4638_v28  ;;  %v4319_v31 = vadd.f32 %v9629_v33, %v4318_v62 }
 0xd7d   : > { %v4664_v36 = vor.u32 1.1754944e-38, %v4663_v39  ;;  %vm4662_vm12 = vcmp.eq.f32.partialorder %v4661_v44, 8.507059e+37 }
 0xd7e   : > { %v4640_v21 = vmul.f32 %v6477_v57, %v4639_v29  ;;  %v4337_v18 = vmax.f32 %v4319_v31, 0.0 }
 0xd80   : > { %v4641_v60 = vadd.f32 %v6477_v57, %v4640_v21 }
 0xd81   : > { %v6479_v45 = vpop.eup %6478 }
 0xd82   : > { %v4645_v61 = vsel %vm4644_vm7, %v6477_v57, %v4641_v60  ;;  %v4653_v43 = vmul.f32 %v6479_v45, %v4622_v27  ;;  %vm4658_vm9 = vweird.f32 %v6479_v45 }
 0xd83   : > { %v4320_v37 = vpop.f32.mrf.mxu3  ;;  %v4650_v17 = vsel %vm4647_vm8, %v4649_v59, %v4645_v61  ;;  %vm4659_vm11 = vmor %vm4657_vm10, %vm4658_vm9 }
 0xd84   : > { %v4654_v6 = vsub.f32 1.0, %v4653_v43  ;;  %v4321_v26 = vadd.f32 %v9629_v33, %v4320_v37  ;;  %v4893_v48 = vsub.f32 1.0, %v4650_v17  ;;  %v4877_v54 = vmul.f32 %v4650_v17, %v9707_v5 }
 0xd86   : > { %v4655_v12 = vmul.f32 %v6479_v45, %v4654_v6  ;;  %v4338_v23 = vmax.f32 %v4321_v26, 0.0  ;;  %v4973_v3 = vmul.f32 %v4926_v9, %v4893_v48 }
 0xd88   : > { %v4656_v63 = vadd.f32 %v6479_v45, %v4655_v12  ;;  %v4346_v42 = vpack.c.bf16 %v4338_v23, %v4337_v18  ;;  %v4989_v47 = vadd.f32 %v4973_v3, %v4877_v54 }
 0xd8a   : > { %v4660_v56 = vsel %vm4659_vm11, %v6479_v45, %v4656_v63  ;;  %5499 = vmatmul.msk.bf16.gmra.mxu2 %vm575_vm0, %v4346_v42 }
 0xd8b   : > { %v4665_v7 = vsel %vm4662_vm12, %v4664_v36, %v4660_v56 }
 0xd8c   : > { %v4894_v33 = vsub.f32 1.0, %v4665_v7  ;;  %v4878_v22 = vmul.f32 %v4665_v7, %v9712_v52 }
 0xd8d   : > { %v4436_v51 = vpop.f32.mrf.mxu2 }
 0xd8e   : > { %v9797_v8 = vadd.f32 %v9704_v16, %v4436_v51  ;;  %v4974_v49 = vmul.f32 %v4928_v15, %v4894_v33 }
 0xd90   : > { %4941 = vrot.lane.b32.xlu1 %v9797_v8, %s10265_s18  ;;  %v4990_v14 = vadd.f32 %v4974_v49, %v4878_v22  ;;  %v4930_v22 = vpop.permute.xlu1 %4929 }
 0xd92   : > { %v5005_v58 = vpack.c.bf16 %v4990_v14, %v4989_v47 }
 0xd94   : > { %5548 = vmatmul.msk.bf16.vlgmr.msrb.gmra.mxu1 %vm4189_vm4, %v5005_v58  ;;  %v4932_v58 = vpop.permute.xlu2 %4931 }
 0xd95   : > { %v4438_v1 = vpop.f32.mrf.mxu2 }
 0xd96   : > { %v9803_v24 = vadd.f32 %v9704_v16, %v4438_v1 }
 0xd97   : > { %v4538_v50 = vpop.f32.mrf.mxu0 }
 0xd98   : > { %v4460_v5 = vpack.c.bf16 %v9803_v24, %v9797_v8  ;;  %v4539_v52 = vadd.f32 %v9773_v20, %v4538_v50  ;;  %4943 = vrot.lane.b32.xlu2 %v9803_v24, %s10265_s18 }
 0xd9a   : > { %v5526_v2 = vmul.f32 -1.442695, %v4539_v52  ;;  %5520 = vmatmul.msk.bf16.gmra.mxu0 %vm575_vm0, %v4460_v5 }
 0xd9c   : > { %6480 = vpow2.f32 %v5526_v2 }
 0xd9e   : > { %v4441_v35 = vpop.f32.mrf.mxu2 }
 0xd9f   : > { %v9812_v41 = vadd.f32 %v9704_v16, %v4441_v35  ;;  %v4540_v13 = vpop.f32.mrf.mxu0 }
 0xda0   : > { %v4541_v0 = vadd.f32 %v9773_v20, %v4540_v13 }
 0xda1   : > { %4945 = vrot.lane.b32.xlu0 %v9812_v41, %s10265_s18 }
 0xda2   : > { %v6481_v34 = vpop.eup %6480  ;;  %v5527_v55 = vmul.f32 -1.442695, %v4541_v0 }
 0xda3   : > { %v4623_v10 = vadd.f32 1.0, %v6481_v34 }
 0xda4   : > { %6482 = vpow2.f32 %v5527_v55 }
 0xda5   : > { %6484 = vrcp.f32 %v4623_v10  ;;  %v4678_v31 = vand.u32 2147483648, %v4623_v10  ;;  %vm4672_vm14 = vweird.f32 %v4623_v10  ;;  %v4676_v26 = vand.u32 2147483647, %v4623_v10 }
 0xda6   : > { %v4443_v19 = vpop.f32.mrf.mxu2 }
 0xda7   : > { %v9818_v11 = vadd.f32 %v9704_v16, %v4443_v19  ;;  %v4679_v18 = vor.u32 1.1754944e-38, %v4678_v31  ;;  %vm4677_vm1 = vcmp.eq.f32.partialorder %v4676_v26, 8.507059e+37 }
 0xda8   : > { %v4543_v57 = vpop.f32.mrf.mxu0 }
 0xda9   : > { %v4461_v27 = vpack.c.bf16 %v9818_v11, %v9812_v41  ;;  %v4544_v28 = vadd.f32 %v9773_v20, %v4543_v57  ;;  %4947 = vrot.lane.b32.xlu1 %v9818_v11, %s10265_s18 }
 0xdaa   : > { %v6483_v62 = vpop.eup %6482 }
 0xdab   : > { %v6485_v29 = vpop.eup %6484  ;;  %v4624_v21 = vadd.f32 1.0, %v6483_v62  ;;  %v5528_v32 = vmul.f32 -1.442695, %v4544_v28  ;;  %5521 = vmatmul.msk.bf16.gmra.mxu0 %vm575_vm0, %v4461_v27 }
 0xdac   : > { %v4668_v60 = vmul.f32 %v6485_v29, %v4623_v10  ;;  %vm4673_vm13 = vweird.f32 %v6485_v29 }
 0xdad   : > { %6486 = vrcp.f32 %v4624_v21  ;;  %vm4674_vm15 = vmor %vm4672_vm14, %vm4673_vm13  ;;  %v4693_v48 = vand.u32 2147483648, %v4624_v21  ;;  %v4691_v36 = vand.u32 2147483647, %v4624_v21  ;;  %vm4687_vm3 = vweird.f32 %v4624_v21 }
 0xdae   : > { %v4669_v25 = vsub.f32 1.0, %v4668_v60  ;;  %6488 = vpow2.f32 %v5528_v32 }
 0xdaf   : > { %v4694_v7 = vor.u32 1.1754944e-38, %v4693_v48  ;;  %vm4692_vm6 = vcmp.eq.f32.partialorder %v4691_v36, 8.507059e+37 }
 0xdb0   : > { %v4670_v45 = vmul.f32 %v6485_v29, %v4669_v25  ;;  %v4545_v61 = vpop.f32.mrf.mxu0 }
 0xdb1   : > { %v4546_v43 = vadd.f32 %v9773_v20, %v4545_v61  ;;  %v4934_v61 = vpop.permute.xlu0 %4933 }
 0xdb2   : > { %v4671_v59 = vadd.f32 %v6485_v29, %v4670_v45 }
 0xdb3   : > { %v6487_v37 = vpop.eup %6486  ;;  %v5529_v6 = vmul.f32 -1.442695, %v4546_v43 }
 0xdb4   : > { %v6489_v17 = vpop.eup %6488  ;;  %v4683_v44 = vmul.f32 %v6487_v37, %v4624_v21  ;;  %v4675_v12 = vsel %vm4674_vm15, %v6485_v29, %v4671_v59  ;;  %vm4688_vm2 = vweird.f32 %v6487_v37 }
 0xdb5   : > { %v4625_v39 = vadd.f32 1.0, %v6489_v17  ;;  %6490 = vpow2.f32 %v5529_v6  ;;  %v4680_v42 = vsel %vm4677_vm1, %v4679_v18, %v4675_v12  ;;  %vm4689_vm5 = vmor %vm4687_vm3, %vm4688_vm2 }
 0xdb6   : > { %v4684_v23 = vsub.f32 1.0, %v4683_v44  ;;  %v4895_v33 = vsub.f32 1.0, %v4680_v42  ;;  %v4879_v50 = vmul.f32 %v4680_v42, %v9734_v38 }
 0xdb7   : > { %6492 = vrcp.f32 %v4625_v39  ;;  %v4708_v35 = vand.u32 2147483648, %v4625_v39  ;;  %v4706_v34 = vand.u32 2147483647, %v4625_v39  ;;  %vm4702_vm8 = vweird.f32 %v4625_v39 }
 0xdb8   : > { %v4685_v63 = vmul.f32 %v6487_v37, %v4684_v23  ;;  %v4975_v14 = vmul.f32 %v4930_v22, %v4895_v33 }
 0xdb9   : > { %v4709_v27 = vor.u32 1.1754944e-38, %v4708_v35  ;;  %vm4707_vm10 = vcmp.eq.f32.partialorder %v4706_v34, 8.507059e+37 }
 0xdba   : > { %v4686_v56 = vadd.f32 %v6487_v37, %v4685_v63  ;;  %v4991_v13 = vadd.f32 %v4975_v14, %v4879_v50 }
 0xdbb   : > { %v6491_v9 = vpop.eup %6490 }
 0xdbc   : > { %v4626_v3 = vadd.f32 1.0, %v6491_v9  ;;  %v4690_v15 = vsel %vm4689_vm5, %v6487_v37, %v4686_v56  ;;  %v4936_v37 = vpop.permute.xlu1 %4935 }
 0xdbd   : > { %v6493_v51 = vpop.eup %6492  ;;  %v4695_v54 = vsel %vm4692_vm6, %v4694_v7, %v4690_v15 }
 0xdbe   : > { %v4698_v49 = vmul.f32 %v6493_v51, %v4625_v39  ;;  %6494 = vrcp.f32 %v4626_v3  ;;  %v4896_v47 = vsub.f32 1.0, %v4695_v54  ;;  %v4880_v5 = vmul.f32 %v4695_v54, %v9741_v30 }
 0xdbf   : > { %vm4703_vm7 = vweird.f32 %v6493_v51  ;;  %v4723_v38 = vand.u32 2147483648, %v4626_v3  ;;  %v4721_v21 = vand.u32 2147483647, %v4626_v3  ;;  %vm4717_vm12 = vweird.f32 %v4626_v3 }
 0xdc0   : > { %v4699_v1 = vsub.f32 1.0, %v4698_v49  ;;  %v4976_v52 = vmul.f32 %v4932_v58, %v4896_v47  ;;  %vm4704_vm9 = vmor %vm4702_vm8, %vm4703_vm7 }
 0xdc1   : > { %v4724_v25 = vor.u32 1.1754944e-38, %v4723_v38  ;;  %vm4722_vm14 = vcmp.eq.f32.partialorder %v4721_v21, 8.507059e+37 }
 0xdc2   : > { %v4700_v2 = vmul.f32 %v6493_v51, %v4699_v1  ;;  %v4992_v0 = vadd.f32 %v4976_v52, %v4880_v5 }
 0xdc4   : > { %v6495_v55 = vpop.eup %6494  ;;  %v4701_v10 = vadd.f32 %v6493_v51, %v4700_v2  ;;  %v5006_v57 = vpack.c.bf16 %v4992_v0, %v4991_v13 }
 0xdc5   : > { %v4713_v19 = vmul.f32 %v6495_v55, %v4626_v3  ;;  %vm4718_vm11 = vweird.f32 %v6495_v55 }
 0xdc6   : > { %v4705_v28 = vsel %vm4704_vm9, %v6493_v51, %v4701_v10  ;;  %5549 = vmatmul.msk.bf16.gmra.mxu1 %vm4189_vm4, %v5006_v57  ;;  %vm4719_vm13 = vmor %vm4717_vm12, %vm4718_vm11 }
 0xdc7   : > { %v4714_v62 = vsub.f32 1.0, %v4713_v19  ;;  %v4710_v30 = vsel %vm4707_vm10, %v4709_v27, %v4705_v28  ;;  %v4938_v28 = vpop.permute.xlu2 %4937 }
 0xdc8   : > { %v4897_v60 = vsub.f32 1.0, %v4710_v30  ;;  %v4881_v6 = vmul.f32 %v4710_v30, %v9750_v4 }
 0xdc9   : > { %v4715_v29 = vmul.f32 %v6495_v55, %v4714_v62 }
 0xdca   : > { %v4977_v59 = vmul.f32 %v4934_v61, %v4897_v60 }
 0xdcb   : > { %v4716_v32 = vadd.f32 %v6495_v55, %v4715_v29 }
 0xdcc   : > { %v4993_v44 = vadd.f32 %v4977_v59, %v4881_v6 }
 0xdcd   : > { %v4720_v45 = vsel %vm4719_vm13, %v6495_v55, %v4716_v32 }
 0xdce   : > { %v4725_v43 = vsel %vm4722_vm14, %v4724_v25, %v4720_v45 }
 0xdcf   : > { %v4898_v31 = vsub.f32 1.0, %v4725_v43  ;;  %v4882_v26 = vmul.f32 %v4725_v43, %v9755_v40 }
 0xdd1   : > { %v4978_v17 = vmul.f32 %v4936_v37, %v4898_v31 }
 0xdd3   : > { %v4994_v39 = vadd.f32 %v4978_v17, %v4882_v26 }
 0xdd5   : > { %v5007_v12 = vpack.c.bf16 %v4994_v39, %v4993_v44 }
 0xdd7   : > { %5550 = vmatmul.msk.bf16.gmra.mxu1 %vm4189_vm4, %v5007_v12 }
 0xdd8   : > { %v4940_v29 = vpop.permute.xlu0 %4939 }
 0xddb   : > { %v4446_v18 = vpop.f32.mrf.mxu2 }
 0xddc   : > { %v9834_v23 = vadd.f32 %v9704_v16, %v4446_v18 }
 0xdde   : > { %4949 = vrot.lane.b32.xlu2 %v9834_v23, %s10265_s18 }
 0xde3   : > { %v4448_v48 = vpop.f32.mrf.mxu2 }
 0xde4   : > { %v9839_v63 = vadd.f32 %v9704_v16, %v4448_v48 }
 0xde5   : > { %v4548_v4 = vpop.f32.mrf.mxu0 }
 0xde6   : > { %v4462_v40 = vpack.c.bf16 %v9839_v63, %v9834_v23  ;;  %v4549_v42 = vadd.f32 %v9773_v20, %v4548_v4  ;;  %4951 = vrot.lane.b32.xlu0 %v9839_v63, %s10265_s18 }
 0xde8   : > { %v5530_v36 = vmul.f32 -1.442695, %v4549_v42  ;;  %5522 = vmatmul.msk.bf16.gmra.mxu0 %vm575_vm0, %v4462_v40 }
 0xdea   : > { %6496 = vpow2.f32 %v5530_v36 }
 0xded   : > { %v4550_v56 = vpop.f32.mrf.mxu0 }
 0xdee   : > { %v4551_v9 = vadd.f32 %v9773_v20, %v4550_v56 }
 0xdf0   : > { %v6497_v7 = vpop.eup %6496  ;;  %v5531_v33 = vmul.f32 -1.442695, %v4551_v9 }
 0xdf1   : > { %v4627_v3 = vadd.f32 1.0, %v6497_v7 }
 0xdf2   : > { %6498 = vpow2.f32 %v5531_v33 }
 0xdf3   : > { %6500 = vrcp.f32 %v4627_v3  ;;  %v4738_v14 = vand.u32 2147483648, %v4627_v3  ;;  %vm4732_vm1 = vweird.f32 %v4627_v3  ;;  %v4736_v1 = vand.u32 2147483647, %v4627_v3 }
 0xdf5   : > { %v4739_v2 = vor.u32 1.1754944e-38, %v4738_v14  ;;  %vm4737_vm3 = vcmp.eq.f32.partialorder %v4736_v1, 8.507059e+37 }
 0xdf8   : > { %v6499_v15 = vpop.eup %6498 }
 0xdf9   : > { %v6501_v51 = vpop.eup %6500  ;;  %v4628_v54 = vadd.f32 1.0, %v6499_v15 }
 0xdfa   : > { %v4728_v22 = vmul.f32 %v6501_v51, %v4627_v3  ;;  %vm4733_vm15 = vweird.f32 %v6501_v51 }
 0xdfb   : > { %6502 = vrcp.f32 %v4628_v54  ;;  %vm4734_vm2 = vmor %vm4732_vm1, %vm4733_vm15  ;;  %v4753_v13 = vand.u32 2147483648, %v4628_v54  ;;  %v4751_v55 = vand.u32 2147483647, %v4628_v54  ;;  %vm4747_vm6 = vweird.f32 %v4628_v54 }
 0xdfc   : > { %v4729_v49 = vsub.f32 1.0, %v4728_v22 }
 0xdfd   : > { %v4754_v57 = vor.u32 1.1754944e-38, %v4753_v13  ;;  %vm4752_vm8 = vcmp.eq.f32.partialorder %v4751_v55, 8.507059e+37 }
 0xdfe   : > { %v4730_v47 = vmul.f32 %v6501_v51, %v4729_v49 }
 0xe00   : > { %v4731_v58 = vadd.f32 %v6501_v51, %v4730_v47 }
 0xe01   : > { %v6503_v50 = vpop.eup %6502 }
 0xe02   : > { %v4743_v5 = vmul.f32 %v6503_v50, %v4628_v54  ;;  %v4735_v52 = vsel %vm4734_vm2, %v6501_v51, %v4731_v58  ;;  %vm4748_vm5 = vweird.f32 %v6503_v50 }
 0xe03   : > { %v4740_v0 = vsel %vm4737_vm3, %v4739_v2, %v4735_v52  ;;  %vm4749_vm7 = vmor %vm4747_vm6, %vm4748_vm5 }
 0xe04   : > { %v4744_v35 = vsub.f32 1.0, %v4743_v5  ;;  %v4899_v19 = vsub.f32 1.0, %v4740_v0  ;;  %v4883_v60 = vmul.f32 %v4740_v0, %v9766_v46 }
 0xe06   : > { %v4745_v34 = vmul.f32 %v6503_v50, %v4744_v35  ;;  %v4979_v30 = vmul.f32 %v4938_v28, %v4899_v19 }
 0xe08   : > { %v4746_v10 = vadd.f32 %v6503_v50, %v4745_v34  ;;  %v4995_v61 = vadd.f32 %v4979_v30, %v4883_v60 }
 0xe0a   : > { %v4750_v27 = vsel %vm4749_vm7, %v6503_v50, %v4746_v10 }
 0xe0b   : > { %v4755_v62 = vsel %vm4752_vm8, %v4754_v57, %v4750_v27 }
 0xe0c   : > { %v4900_v38 = vsub.f32 1.0, %v4755_v62  ;;  %v4884_v25 = vmul.f32 %v4755_v62, %v9776_v53  ;;  %v4942_v62 = vpop.permute.xlu1 %4941 }
 0xe0d   : > { %v4451_v21 = vpop.f32.mrf.mxu2 }
 0xe0e   : > { %v9849_v32 = vadd.f32 %v9704_v16, %v4451_v21  ;;  %v4980_v45 = vmul.f32 %v4940_v29, %v4900_v38  ;;  %v4944_v21 = vpop.permute.xlu2 %4943 }
 0xe10   : > { %4953 = vrot.lane.b32.xlu1 %v9849_v32, %s10265_s18  ;;  %v4996_v43 = vadd.f32 %v4980_v45, %v4884_v25 }
 0xe12   : > { %v5008_v31 = vpack.c.bf16 %v4996_v43, %v4995_v61 }
 0xe14   : > { %5551 = vmatmul.msk.bf16.gmra.mxu1 %vm4189_vm4, %v5008_v31 }
 0xe15   : > { %v4453_v59 = vpop.f32.mrf.mxu2 }
 0xe16   : > { %v9857_v37 = vadd.f32 %v9704_v16, %v4453_v59 }
 0xe17   : > { %v4553_v6 = vpop.f32.mrf.mxu0 }
 0xe18   : > { %v4463_v26 = vpack.c.bf16 %v9857_v37, %v9849_v32  ;;  %v4554_v46 = vadd.f32 %v9773_v20, %v4553_v6  ;;  %4955 = vrot.lane.b32.xlu2 %v9857_v37, %s10265_s18  ;;  %s6604_s18 = scalar_lea.hbm %s10025_s15, 256 }
 0xe19   : > { %p6606_p1 = scmp.lt.s32.totalorder %s6604_s18, %s6600_s25 }
 0xe1a   : > { %v5532_v53 = vmul.f32 -1.442695, %v4554_v46  ;;  %5523 = vmatmul.msk.bf16.gmra.mxu0 %vm575_vm0, %v4463_v26 }
 0xe1b   : > { %p6607_p2 = por %p6606_p1, %p6605_p0 }
 0xe1c   : > { %6504 = vpow2.f32 %v5532_v53 }
 0xe1d   : > { %p6608_p3 = pnand %p6607_p2, %p6603_p13 }
 0xe1f   : > { %v4555_v17 = vpop.f32.mrf.mxu0 }
 0xe20   : > { %v4556_v44 = vadd.f32 %v9773_v20, %v4555_v17 }
 0xe22   : > { %v6505_v39 = vpop.eup %6504  ;;  %v5533_v12 = vmul.f32 -1.442695, %v4556_v44 }
 0xe23   : > { %v4629_v16 = vadd.f32 1.0, %v6505_v39 }
 0xe24   : > { %6506 = vpow2.f32 %v5533_v12 }
 0xe25   : > { %6508 = vrcp.f32 %v4629_v16  ;;  %v4768_v15 = vand.u32 2147483648, %v4629_v16  ;;  %vm4762_vm9 = vweird.f32 %v4629_v16  ;;  %v4766_v49 = vand.u32 2147483647, %v4629_v16 }
 0xe27   : > { %v4769_v50 = vor.u32 1.1754944e-38, %v4768_v15  ;;  %vm4767_vm11 = vcmp.eq.f32.partialorder %v4766_v49, 8.507059e+37 }
 0xe28   : > { %v4558_v18 = vpop.f32.mrf.mxu0 }
 0xe29   : > { %v4559_v48 = vadd.f32 %v9773_v20, %v4558_v18 }
 0xe2a   : > { %v6507_v4 = vpop.eup %6506 }
 0xe2b   : > { %v6509_v40 = vpop.eup %6508  ;;  %v4630_v42 = vadd.f32 1.0, %v6507_v4  ;;  %v5534_v36 = vmul.f32 -1.442695, %v4559_v48 }
 0xe2c   : > { %v4758_v56 = vmul.f32 %v6509_v40, %v4629_v16  ;;  %vm4763_vm0 = vweird.f32 %v6509_v40 }
 0xe2d   : > { %6510 = vrcp.f32 %v4630_v42  ;;  %vm4764_vm10 = vmor %vm4762_vm9, %vm4763_vm0  ;;  %v4783_v52 = vand.u32 2147483648, %v4630_v42  ;;  %v4781_v13 = vand.u32 2147483647, %v4630_v42  ;;  %vm4777_vm13 = vweird.f32 %v4630_v42 }
 0xe2e   : > { %v4759_v9 = vsub.f32 1.0, %v4758_v56  ;;  %6512 = vpow2.f32 %v5534_v36  ;;  %v4946_v56 = vpop.permute.xlu0 %4945 }
 0xe2f   : > { %v4784_v55 = vor.u32 1.1754944e-38, %v4783_v52  ;;  %vm4782_vm15 = vcmp.eq.f32.partialorder %v4781_v13, 8.507059e+37 }
 0xe30   : > { %v4760_v7 = vmul.f32 %v6509_v40, %v4759_v9  ;;  %v4560_v33 = vpop.f32.mrf.mxu0 }
 0xe31   : > { %v4561_v3 = vadd.f32 %v9773_v20, %v4560_v33 }
 0xe32   : > { %v4761_v51 = vadd.f32 %v6509_v40, %v4760_v7 }
 0xe33   : > { %v6511_v54 = vpop.eup %6510  ;;  %v5535_v22 = vmul.f32 -1.442695, %v4561_v3  ;;  %v4948_v3 = vpop.permute.xlu1 %4947 }
 0xe34   : > { %v6513_v47 = vpop.eup %6512  ;;  %v4773_v14 = vmul.f32 %v6511_v54, %v4630_v42  ;;  %v4765_v1 = vsel %vm4764_vm10, %v6509_v40, %v4761_v51  ;;  %vm4778_vm12 = vweird.f32 %v6511_v54 }
 0xe35   : > { %v4631_v58 = vadd.f32 1.0, %v6513_v47  ;;  %6514 = vpow2.f32 %v5535_v22  ;;  %v4770_v35 = vsel %vm4767_vm11, %v4769_v50, %v4765_v1  ;;  %vm4779_vm14 = vmor %vm4777_vm13, %vm4778_vm12 }
 0xe36   : > { %v4774_v5 = vsub.f32 1.0, %v4773_v14  ;;  %v4901_v10 = vsub.f32 1.0, %v4770_v35  ;;  %v4885_v25 = vmul.f32 %v4770_v35, %v9797_v8 }
 0xe37   : > { %6516 = vrcp.f32 %v4631_v58  ;;  %v4798_v31 = vand.u32 2147483648, %v4631_v58  ;;  %v4796_v26 = vand.u32 2147483647, %v4631_v58  ;;  %vm4792_vm2 = vweird.f32 %v4631_v58 }
 0xe38   : > { %v4775_v2 = vmul.f32 %v6511_v54, %v4774_v5  ;;  %v4981_v29 = vmul.f32 %v4942_v62, %v4901_v10 }
 0xe39   : > { %v4799_v39 = vor.u32 1.1754944e-38, %v4798_v31  ;;  %vm4797_vm5 = vcmp.eq.f32.partialorder %v4796_v26, 8.507059e+37 }
 0xe3a   : > { %v4776_v0 = vadd.f32 %v6511_v54, %v4775_v2  ;;  %v4997_v59 = vadd.f32 %v4981_v29, %v4885_v25 }
 0xe3b   : > { %v6515_v34 = vpop.eup %6514 }
 0xe3c   : > { %v4632_v19 = vadd.f32 1.0, %v6515_v34  ;;  %v4780_v57 = vsel %vm4779_vm14, %v6511_v54, %v4776_v0 }
 0xe3d   : > { %v6517_v27 = vpop.eup %6516  ;;  %v4785_v28 = vsel %vm4782_vm15, %v4784_v55, %v4780_v57 }
 0xe3e   : > { %v4788_v38 = vmul.f32 %v6517_v27, %v4631_v58  ;;  %6518 = vrcp.f32 %v4632_v19  ;;  %v4902_v30 = vsub.f32 1.0, %v4785_v28  ;;  %v4886_v45 = vmul.f32 %v4785_v28, %v9803_v24 }
 0xe3f   : > { %vm4793_vm1 = vweird.f32 %v6517_v27  ;;  %v4813_v8 = vand.u32 2147483648, %v4632_v19  ;;  %v4811_v48 = vand.u32 2147483647, %v4632_v19  ;;  %vm4807_vm7 = vweird.f32 %v4632_v19 }
 0xe40   : > { %v4789_v60 = vsub.f32 1.0, %v4788_v38  ;;  %v4982_v61 = vmul.f32 %v4944_v21, %v4902_v30  ;;  %vm4794_vm3 = vmor %vm4792_vm2, %vm4793_vm1 }
 0xe41   : > { %v4814_v42 = vor.u32 1.1754944e-38, %v4813_v8  ;;  %vm4812_vm0 = vcmp.eq.f32.partialorder %v4811_v48, 8.507059e+37 }
 0xe42   : > { %v4790_v43 = vmul.f32 %v6517_v27, %v4789_v60  ;;  %v4998_v6 = vadd.f32 %v4982_v61, %v4886_v45 }
 0xe44   : > { %v6519_v46 = vpop.eup %6518  ;;  %v4791_v53 = vadd.f32 %v6517_v27, %v4790_v43  ;;  %v5009_v44 = vpack.c.bf16 %v4998_v6, %v4997_v59  ;;  %v4950_v59 = vpop.permute.xlu2 %4949 }
 0xe45   : > { %v4803_v17 = vmul.f32 %v6519_v46, %v4632_v19  ;;  %vm4808_vm6 = vweird.f32 %v6519_v46 }
 0xe46   : > { %v4795_v12 = vsel %vm4794_vm3, %v6517_v27, %v4791_v53  ;;  %5552 = vmatmul.msk.bf16.gmra.mxu1 %vm4189_vm4, %v5009_v44  ;;  %vm4809_vm8 = vmor %vm4807_vm7, %vm4808_vm6 }
 0xe47   : > { %v4804_v16 = vsub.f32 1.0, %v4803_v17  ;;  %v4800_v24 = vsel %vm4797_vm5, %v4799_v39, %v4795_v12 }
 0xe48   : > { %v4903_v40 = vsub.f32 1.0, %v4800_v24  ;;  %v4887_v15 = vmul.f32 %v4800_v24, %v9812_v41 }
 0xe49   : > { %v4805_v18 = vmul.f32 %v6519_v46, %v4804_v16 }
 0xe4a   : > { %v4983_v33 = vmul.f32 %v4946_v56, %v4903_v40 }
 0xe4b   : > { %v4806_v4 = vadd.f32 %v6519_v46, %v4805_v18 }
 0xe4c   : > { %v4999_v22 = vadd.f32 %v4983_v33, %v4887_v15  ;;  %v5600_v15 = vld [vmem:[%s10023_s13 + $0x8] sm:$0xff] }
 0xe4d   : > { %v4810_v36 = vsel %vm4809_vm8, %v6519_v46, %v4806_v4  ;;  %5180 = vmatpush.bf16.msrb.mxu3 %v5600_v15 }
 0xe4e   : > { %v4815_v9 = vsel %vm4812_vm0, %v4814_v42, %v4810_v36 }
 0xe4f   : > { %v4904_v7 = vsub.f32 1.0, %v4815_v9  ;;  %v4888_v51 = vmul.f32 %v4815_v9, %v9818_v11 }
 0xe51   : > { %v4984_v54 = vmul.f32 %v4948_v3, %v4904_v7  ;;  %v5066_v3 = vpop.f32.mrf.mxu1 }
 0xe53   : > { %v5000_v49 = vadd.f32 %v4984_v54, %v4888_v51 }
 0xe55   : > { %v5010_v47 = vpack.c.bf16 %v5000_v49, %v4999_v22 }
 0xe57   : > { %5553 = vmatmul.msk.bf16.gmra.mxu1 %vm4189_vm4, %v5010_v47 }
 0xe58   : > { %v4952_v53 = vpop.permute.xlu0 %4951 }
 0xe65   : > { %v4563_v14 = vpop.f32.mrf.mxu0 }
 0xe66   : > { %v4564_v58 = vadd.f32 %v9773_v20, %v4563_v14 }
 0xe68   : > { %v5536_v1 = vmul.f32 -1.442695, %v4564_v58 }
 0xe6a   : > { %6520 = vpow2.f32 %v5536_v1 }
 0xe6d   : > { %v4565_v50 = vpop.f32.mrf.mxu0 }
 0xe6e   : > { %v4566_v5 = vadd.f32 %v9773_v20, %v4565_v50 }
 0xe70   : > { %v6521_v52 = vpop.eup %6520  ;;  %v5537_v2 = vmul.f32 -1.442695, %v4566_v5 }
 0xe71   : > { %v4633_v35 = vadd.f32 1.0, %v6521_v52 }
 0xe72   : > { %6522 = vpow2.f32 %v5537_v2 }
 0xe73   : > { %6524 = vrcp.f32 %v4633_v35  ;;  %v4828_v10 = vand.u32 2147483648, %v4633_v35  ;;  %vm4822_vm10 = vweird.f32 %v4633_v35  ;;  %v4826_v57 = vand.u32 2147483647, %v4633_v35 }
 0xe75   : > { %v4829_v38 = vor.u32 1.1754944e-38, %v4828_v10  ;;  %vm4827_vm12 = vcmp.eq.f32.partialorder %v4826_v57, 8.507059e+37 }
 0xe78   : > { %v6523_v41 = vpop.eup %6522 }
 0xe79   : > { %v6525_v11 = vpop.eup %6524  ;;  %v4634_v13 = vadd.f32 1.0, %v6523_v41  ;;  %v5068_v41 = vpop.f32.mrf.mxu1 }
 0xe7a   : > { %v4818_v0 = vmul.f32 %v6525_v11, %v4633_v35  ;;  %vm4823_vm9 = vweird.f32 %v6525_v11 }
 0xe7b   : > { %6526 = vrcp.f32 %v4634_v13  ;;  %vm4824_vm11 = vmor %vm4822_vm10, %vm4823_vm9  ;;  %v4843_v29 = vand.u32 2147483648, %v4634_v13  ;;  %v4841_v25 = vand.u32 2147483647, %v4634_v13  ;;  %vm4837_vm14 = vweird.f32 %v4634_v13 }
 0xe7c   : > { %v4819_v34 = vsub.f32 1.0, %v4818_v0 }
 0xe7d   : > { %v4844_v43 = vor.u32 1.1754944e-38, %v4843_v29  ;;  %vm4842_vm1 = vcmp.eq.f32.partialorder %v4841_v25, 8.507059e+37  ;;  %v5958_v25 = vld [vmem:[%s10022_s12] ss:$0 sm:$0xff] }
 0xe7e   : > { %v4820_v55 = vmul.f32 %v6525_v11, %v4819_v34 }
 0xe80   : > { %v4821_v19 = vadd.f32 %v6525_v11, %v4820_v55 }
 0xe81   : > { %v6527_v27 = vpop.eup %6526 }
 0xe82   : > { %v4833_v28 = vmul.f32 %v6527_v27, %v4634_v13  ;;  %v4825_v62 = vsel %vm4824_vm11, %v6525_v11, %v4821_v19  ;;  %vm4838_vm13 = vweird.f32 %v6527_v27  ;;  %v4954_v55 = vpop.permute.xlu1 %4953 }
 0xe83   : > { %v4830_v21 = vsel %vm4827_vm12, %v4829_v38, %v4825_v62  ;;  %vm4839_vm15 = vmor %vm4837_vm14, %vm4838_vm13 }
 0xe84   : > { %v4834_v30 = vsub.f32 1.0, %v4833_v28  ;;  %v4905_v61 = vsub.f32 1.0, %v4830_v21  ;;  %v4889_v17 = vmul.f32 %v4830_v21, %v9834_v23 }
 0xe86   : > { %v4835_v60 = vmul.f32 %v6527_v27, %v4834_v30  ;;  %v4985_v46 = vmul.f32 %v4950_v59, %v4905_v61  ;;  %v5071_v30 = vpop.f32.mrf.mxu1  ;;  %v5069_v61 = vadd.f32 %v5958_v25, %v5068_v41 }
 0xe88   : > { %v4836_v45 = vadd.f32 %v6527_v27, %v4835_v60  ;;  %v5001_v12 = vadd.f32 %v4985_v46, %v4889_v17 }
 0xe8a   : > { %v4840_v31 = vsel %vm4839_vm15, %v6527_v27, %v4836_v45  ;;  %v4956_v27 = vpop.permute.xlu2 %4955 }
 0xe8b   : > { %v4845_v6 = vsel %vm4842_vm1, %v4844_v43, %v4840_v31  ;;  %v5067_v43 = vadd.f32 %v5958_v25, %v5066_v3  ;;  %v5107_v31 = vmax.f32 %v5069_v61, 0.0 }
 0xe8c   : > { %v4906_v26 = vsub.f32 1.0, %v4845_v6  ;;  %v4890_v44 = vmul.f32 %v4845_v6, %v9839_v63 }
 0xe8d   : > { %v5106_v59 = vmax.f32 %v5067_v43, 0.0 }
 0xe8e   : > { %v4986_v39 = vmul.f32 %v4952_v53, %v4906_v26  ;;  %v5073_v45 = vpop.f32.mrf.mxu1  ;;  %v5072_v26 = vadd.f32 %v5958_v25, %v5071_v30 }
 0xe8f   : > { %v5122_v6 = vpack.c.bf16 %v5107_v31, %v5106_v59  ;;  %v6571_v59 = vld [vmem:[%s6844_s26 + $0x18] sm:$0xff] }
 0xe90   : > { %v5002_v16 = vadd.f32 %v4986_v39, %v4890_v44  ;;  %v5108_v17 = vmax.f32 %v5072_v26, 0.0  ;;  %v6572_v26 = vld [vmem:[%s6844_s26 + $0x20] sm:$0xff] }
 0xe92   : > { %v5011_v8 = vpack.c.bf16 %v5002_v16, %v5001_v12 }
 0xe94   : > { %5554 = vmatmul.msk.bf16.gmra.mxu1 %vm4189_vm4, %v5011_v8 }
 0xe97   : > { %v4568_v24 = vpop.f32.mrf.mxu0 }
 0xe98   : > { %v4569_v18 = vadd.f32 %v9773_v20, %v4568_v24 }
 0xe9a   : > { %v5538_v48 = vmul.f32 -1.442695, %v4569_v18 }
 0xe9c   : > { %6528 = vpow2.f32 %v5538_v48 }
 0xe9f   : > { %v4570_v4 = vpop.f32.mrf.mxu0 }
 0xea0   : > { %v4571_v40 = vadd.f32 %v9773_v20, %v4570_v4  ;;  %v5599_v20 = vld [vmem:[%s10023_s13] sm:$0xff] }
 0xea1   : > { %5181 = vmatpush.bf16.msrb.mxu3 %v5599_v20 }
 0xea2   : > { %v6529_v42 = vpop.eup %6528  ;;  %v5539_v36 = vmul.f32 -1.442695, %v4571_v40 }
 0xea3   : > { %v4635_v56 = vadd.f32 1.0, %v6529_v42 }
 0xea4   : > { %6530 = vpow2.f32 %v5539_v36 }
 0xea5   : > { %6532 = vrcp.f32 %v4635_v56  ;;  %v4858_v54 = vand.u32 2147483648, %v4635_v56  ;;  %vm4852_vm3 = vweird.f32 %v4635_v56  ;;  %v4856_v49 = vand.u32 2147483647, %v4635_v56 }
 0xea7   : > { %v4859_v1 = vor.u32 1.1754944e-38, %v4858_v54  ;;  %vm4857_vm6 = vcmp.eq.f32.partialorder %v4856_v49, 8.507059e+37 }
 0xeaa   : > { %v6531_v23 = vpop.eup %6530 }
 0xeab   : > { %v6533_v63 = vpop.eup %6532  ;;  %v4636_v9 = vadd.f32 1.0, %v6531_v23 }
 0xeac   : > { %v4848_v7 = vmul.f32 %v6533_v63, %v4635_v56  ;;  %vm4853_vm2 = vweird.f32 %v6533_v63 }
 0xead   : > { %6534 = vrcp.f32 %v4636_v9  ;;  %vm4854_vm5 = vmor %vm4852_vm3, %vm4853_vm2  ;;  %v4873_v52 = vand.u32 2147483648, %v4636_v9  ;;  %v4871_v35 = vand.u32 2147483647, %v4636_v9  ;;  %vm4867_vm8 = vweird.f32 %v4636_v9 }
 0xeae   : > { %v4849_v33 = vsub.f32 1.0, %v4848_v7 }
 0xeaf   : > { %v4874_v0 = vor.u32 1.1754944e-38, %v4873_v52  ;;  %vm4872_vm9 = vcmp.eq.f32.partialorder %v4871_v35, 8.507059e+37 }
 0xeb0   : > { %v4850_v51 = vmul.f32 %v6533_v63, %v4849_v33 }
 0xeb2   : > { %v4851_v22 = vadd.f32 %v6533_v63, %v4850_v51 }
 0xeb3   : > { %v6535_v47 = vpop.eup %6534 }
 0xeb4   : > { %v4855_v14 = vsel %vm4854_vm5, %v6533_v63, %v4851_v22  ;;  %v4863_v58 = vmul.f32 %v6535_v47, %v4636_v9  ;;  %vm4868_vm7 = vweird.f32 %v6535_v47 }
 0xeb5   : > { %v4860_v5 = vsel %vm4857_vm6, %v4859_v1, %v4855_v14  ;;  %vm4869_vm0 = vmor %vm4867_vm8, %vm4868_vm7 }
 0xeb6   : > { %v4864_v50 = vsub.f32 1.0, %v4863_v58  ;;  %v4907_v11 = vsub.f32 1.0, %v4860_v5  ;;  %v4891_v28 = vmul.f32 %v4860_v5, %v9849_v32  ;;  %v5076_v32 = vpop.f32.mrf.mxu1 }
 0xeb7   : > { %v5077_v16 = vadd.f32 %v5958_v25, %v5076_v32 }
 0xeb8   : > { %v4865_v2 = vmul.f32 %v6535_v47, %v4864_v50  ;;  %v4987_v57 = vmul.f32 %v4954_v55, %v4907_v11 }
 0xeb9   : > { %v5110_v18 = vmax.f32 %v5077_v16, 0.0 }
 0xeba   : > { %v4866_v13 = vadd.f32 %v6535_v47, %v4865_v2  ;;  %v5003_v29 = vadd.f32 %v4987_v57, %v4891_v28  ;;  %v6568_v28 = vld [vmem:[%s6844_s26] sm:$0xff] }
 0xebc   : > { %v4870_v34 = vsel %vm4869_vm0, %v6535_v47, %v4866_v13 }
 0xebd   : > { %v4875_v10 = vsel %vm4872_vm9, %v4874_v0, %v4870_v34 }
 0xebe   : > { %v4908_v19 = vsub.f32 1.0, %v4875_v10  ;;  %v4892_v62 = vmul.f32 %v4875_v10, %v9857_v37  ;;  %v5074_v37 = vadd.f32 %v5958_v25, %v5073_v45  ;;  %v5078_v46 = vpop.f32.mrf.mxu1  ;;  %v6570_v45 = vld [vmem:[%s6844_s26 + $0x10] sm:$0xff] }
 0xebf   : > { %v5079_v12 = vadd.f32 %v5958_v25, %v5078_v46 }
 0xec0   : > { %v4988_v38 = vmul.f32 %v4956_v27, %v4908_v19  ;;  %v5109_v53 = vmax.f32 %v5074_v37, 0.0  ;;  %v9904_v19 = vld [vmem:[%s10024_s14] ss:$0 sm:$0xff] }
 0xec1   : > { %v5111_v8 = vmax.f32 %v5079_v12, 0.0 }
 0xec2   : > { %v5004_v21 = vadd.f32 %v4988_v38, %v4892_v62  ;;  %v5123_v44 = vpack.c.bf16 %v5109_v53, %v5108_v17 }
 0xec3   : > { %v5124_v48 = vpack.c.bf16 %v5111_v8, %v5110_v18  ;;  %v6574_v8 = vld [vmem:[%s6844_s26 + $0x30] sm:$0xff] }
 0xec4   : > { %v5012_v60 = vpack.c.bf16 %v5004_v21, %v5003_v29  ;;  %v6569_v29 = vld [vmem:[%s6844_s26 + $0x8] sm:$0xff] }
 0xec6   : > { %5555 = vmatmul.msk.bf16.vlgmr.msra.gmra.mxu3 %vm4189_vm4, %v5012_v60  ;;  %v5081_v39 = vpop.f32.mrf.mxu1 }
 0xec7   : > { %v5082_v42 = vadd.f32 %v5958_v25, %v5081_v39 }
 0xec9   : > { %v5112_v56 = vmax.f32 %v5082_v42, 0.0 }
 0xece   : > { %v5083_v24 = vpop.f32.mrf.mxu1 }
 0xecf   : > { %v5084_v40 = vadd.f32 %v5958_v25, %v5083_v24 }
 0xed1   : > { %v5113_v36 = vmax.f32 %v5084_v40, 0.0 }
 0xed3   : > { %v5125_v63 = vpack.c.bf16 %v5113_v36, %v5112_v56  ;;  %v6576_v56 = vld [vmem:[%s6844_s26 + $0x40] sm:$0xff] }
 0xed6   : > { %5564 = vmatmul.msk.bf16.vlgmr.msrb.gmra.mxu3 %vm4189_vm4, %v5122_v6  ;;  %v5086_v4 = vpop.f32.mrf.mxu1 }
 0xed7   : > { %v5087_v33 = vadd.f32 %v5958_v25, %v5086_v4  ;;  %v6575_v4 = vld [vmem:[%s6844_s26 + $0x38] sm:$0xff] }
 0xed9   : > { %v5114_v15 = vmax.f32 %v5087_v33, 0.0 }
 0xede   : > { %v5088_v23 = vpop.f32.mrf.mxu1 }
 0xedf   : > { %v5089_v9 = vadd.f32 %v5958_v25, %v5088_v23 }
 0xee1   : > { %v5115_v3 = vmax.f32 %v5089_v9, 0.0 }
 0xee3   : > { %v5126_v51 = vpack.c.bf16 %v5115_v3, %v5114_v15 }
 0xee6   : > { %5565 = vmatmul.msk.bf16.gmra.mxu3 %vm4189_vm4, %v5123_v44  ;;  %v5091_v7 = vpop.f32.mrf.mxu1  ;;  %v6573_v44 = vld [vmem:[%s6844_s26 + $0x28] sm:$0xff] }
 0xee7   : > { %v5092_v22 = vadd.f32 %v5958_v25, %v5091_v7  ;;  %v6577_v7 = vld [vmem:[%s6844_s26 + $0x48] sm:$0xff] }
 0xee9   : > { %v5116_v14 = vmax.f32 %v5092_v22, 0.0 }
 0xeee   : > { %v5093_v54 = vpop.f32.mrf.mxu1 }
 0xeef   : > { %v5094_v20 = vadd.f32 %v5958_v25, %v5093_v54 }
 0xef1   : > { %v5117_v47 = vmax.f32 %v5094_v20, 0.0 }
 0xef3   : > { %v5127_v58 = vpack.c.bf16 %v5117_v47, %v5116_v14 }
 0xef6   : > { %5566 = vmatmul.msk.bf16.gmra.mxu3 %vm4189_vm4, %v5124_v48 }
 0xf06   : > { %5567 = vmatmul.msk.bf16.gmra.mxu3 %vm4189_vm4, %v5125_v63 }
 0xf11   : > { %v5096_v49 = vpop.f32.mrf.mxu1 }
 0xf12   : > { %v5097_v5 = vadd.f32 %v5958_v25, %v5096_v49  ;;  %v6579_v49 = vld [vmem:[%s6844_s26 + $0x58] sm:$0xff] }
 0xf14   : > { %v5118_v2 = vmax.f32 %v5097_v5, 0.0 }
 0xf16   : > { %5568 = vmatmul.msk.bf16.gmra.mxu3 %vm4189_vm4, %v5126_v51  ;;  %v6578_v51 = vld [vmem:[%s6844_s26 + $0x50] sm:$0xff] }
 0xf19   : > { %v5098_v1 = vpop.f32.mrf.mxu1 }
 0xf1a   : > { %v5099_v50 = vadd.f32 %v5958_v25, %v5098_v1  ;;  %v6580_v1 = vld [vmem:[%s6844_s26 + $0x60] sm:$0xff] }
 0xf1c   : > { %v5119_v52 = vmax.f32 %v5099_v50, 0.0 }
 0xf1e   : > { %v5128_v35 = vpack.c.bf16 %v5119_v52, %v5118_v2  ;;  %v6581_v2 = vld [vmem:[%s6844_s26 + $0x68] sm:$0xff] }
 0xf26   : > { %5569 = vmatmul.msk.bf16.gmra.mxu3 %vm4189_vm4, %v5127_v58 }
 0xf36   : > { %5570 = vmatmul.msk.bf16.gmra.mxu3 %vm4189_vm4, %v5128_v35 }
 0xf49   : > { %v5101_v41 = vpop.f32.mrf.mxu3 }
 0xf4a   : > { %v5102_v11 = vadd.f32 %v5958_v25, %v5101_v41 }
 0xf4c   : > { %v5120_v34 = vmax.f32 %v5102_v11, 0.0 }
 0xf51   : > { %v5103_v13 = vpop.f32.mrf.mxu3 }
 0xf52   : > { %v5104_v0 = vadd.f32 %v5958_v25, %v5103_v13  ;;  %v6582_v13 = vld [vmem:[%s6844_s26 + $0x70] sm:$0xff] }
 0xf54   : > { %v5121_v55 = vmax.f32 %v5104_v0, 0.0 }
 0xf56   : > { %v5129_v10 = vpack.c.bf16 %v5121_v55, %v5120_v34 }
 0xf58   : > { %5571 = vmatmul.msk.bf16.gmra.mxu3 %vm4189_vm4, %v5129_v10  ;;  %v6583_v10 = vld [vmem:[%s6844_s26 + $0x78] sm:$0xff] }
 0xf59   : > { %v5183_v57 = vpop.f32.mrf.mxu3 }
 0xf5a   : > { %v5184_v27 = vadd.f32 %v9904_v19, %v5183_v57 }
 0xf5c   : > { %v5223_v62 = vadd.f32 %v6568_v28, %v5184_v27 }
 0xf5e   : > { %5239 = vst.msk [vmem:[%s9911_s24] sm:$0xff] %vm4189_vm4, %v5223_v62 }
 0xf61   : > { %v5185_v38 = vpop.f32.mrf.mxu3 }
 0xf62   : > { %v5186_v30 = vadd.f32 %v9904_v19, %v5185_v38 }
 0xf64   : > { %v5224_v21 = vadd.f32 %v6569_v29, %v5186_v30 }
 0xf66   : > { %5240 = vst.msk [vmem:[%s9911_s24 + $0x8] sm:$0xff] %vm4189_vm4, %v5224_v21 }
 0xf69   : > { %v5188_v60 = vpop.f32.mrf.mxu3 }
 0xf6a   : > { %v5189_v25 = vadd.f32 %v9904_v19, %v5188_v60 }
 0xf6c   : > { %v5225_v61 = vadd.f32 %v6570_v45, %v5189_v25 }
 0xf6e   : > { %5241 = vst.msk [vmem:[%s9911_s24 + $0x10] sm:$0xff] %vm4189_vm4, %v5225_v61 }
 0xf71   : > { %v5190_v43 = vpop.f32.mrf.mxu3 }
 0xf72   : > { %v5191_v31 = vadd.f32 %v9904_v19, %v5190_v43 }
 0xf74   : > { %v5226_v6 = vadd.f32 %v6571_v59, %v5191_v31 }
 0xf76   : > { %5242 = vst.msk [vmem:[%s9911_s24 + $0x18] sm:$0xff] %vm4189_vm4, %v5226_v6 }
 0xf79   : > { %v5193_v32 = vpop.f32.mrf.mxu3 }
 0xf7a   : > { %v5194_v37 = vadd.f32 %v9904_v19, %v5193_v32 }
 0xf7c   : > { %v5227_v46 = vadd.f32 %v6572_v26, %v5194_v37 }
 0xf7e   : > { %5243 = vst.msk [vmem:[%s9911_s24 + $0x20] sm:$0xff] %vm4189_vm4, %v5227_v46 }
 0xf81   : > { %v5195_v53 = vpop.f32.mrf.mxu3 }
 0xf82   : > { %v5196_v17 = vadd.f32 %v9904_v19, %v5195_v53 }
 0xf84   : > { %v5228_v39 = vadd.f32 %v6573_v44, %v5196_v17 }
 0xf86   : > { %5244 = vst.msk [vmem:[%s9911_s24 + $0x28] sm:$0xff] %vm4189_vm4, %v5228_v39 }
 0xf89   : > { %v5198_v12 = vpop.f32.mrf.mxu3 }
 0xf8a   : > { %v5199_v16 = vadd.f32 %v9904_v19, %v5198_v12 }
 0xf8c   : > { %v5229_v24 = vadd.f32 %v6574_v8, %v5199_v16 }
 0xf8e   : > { %5245 = vst.msk [vmem:[%s9911_s24 + $0x30] sm:$0xff] %vm4189_vm4, %v5229_v24 }
 0xf91   : > { %v5200_v18 = vpop.f32.mrf.mxu3 }
 0xf92   : > { %v5201_v48 = vadd.f32 %v9904_v19, %v5200_v18 }
 0xf94   : > { %v5230_v40 = vadd.f32 %v6575_v4, %v5201_v48 }
 0xf96   : > { %5246 = vst.msk [vmem:[%s9911_s24 + $0x38] sm:$0xff] %vm4189_vm4, %v5230_v40 }
 0xf99   : > { %v5203_v42 = vpop.f32.mrf.mxu3 }
 0xf9a   : > { %v5204_v36 = vadd.f32 %v9904_v19, %v5203_v42 }
 0xf9c   : > { %v5231_v23 = vadd.f32 %v6576_v56, %v5204_v36 }
 0xf9e   : > { %5247 = vst.msk [vmem:[%s9911_s24 + $0x40] sm:$0xff] %vm4189_vm4, %v5231_v23 }
 0xfa1   : > { %v5205_v63 = vpop.f32.mrf.mxu3 }
 0xfa2   : > { %v5206_v9 = vadd.f32 %v9904_v19, %v5205_v63 }
 0xfa4   : > { %v5232_v33 = vadd.f32 %v6577_v7, %v5206_v9 }
 0xfa6   : > { %5248 = vst.msk [vmem:[%s9911_s24 + $0x48] sm:$0xff] %vm4189_vm4, %v5232_v33 }
 0xfa9   : > { %v5208_v3 = vpop.f32.mrf.mxu3 }
 0xfaa   : > { %v5209_v15 = vadd.f32 %v9904_v19, %v5208_v3 }
 0xfac   : > { %v5233_v54 = vadd.f32 %v6578_v51, %v5209_v15 }
 0xfae   : > { %5249 = vst.msk [vmem:[%s9911_s24 + $0x50] sm:$0xff] %vm4189_vm4, %v5233_v54 }
 0xfb1   : > { %v5210_v20 = vpop.f32.mrf.mxu3 }
 0xfb2   : > { %v5211_v22 = vadd.f32 %v9904_v19, %v5210_v20 }
 0xfb4   : > { %v5234_v47 = vadd.f32 %v6579_v49, %v5211_v22 }
 0xfb6   : > { %5250 = vst.msk [vmem:[%s9911_s24 + $0x58] sm:$0xff] %vm4189_vm4, %v5234_v47 }
 0xfb9   : > { %v5213_v14 = vpop.f32.mrf.mxu3 }
 0xfba   : > { %v5214_v58 = vadd.f32 %v9904_v19, %v5213_v14 }
 0xfbc   : > { %v5235_v50 = vadd.f32 %v6580_v1, %v5214_v58 }
 0xfbe   : > { %5251 = vst.msk [vmem:[%s9911_s24 + $0x60] sm:$0xff] %vm4189_vm4, %v5235_v50 }
 0xfc1   : > { %v5215_v5 = vpop.f32.mrf.mxu3 }
 0xfc2   : > { %v5216_v52 = vadd.f32 %v9904_v19, %v5215_v5 }
 0xfc4   : > { %v5236_v35 = vadd.f32 %v6581_v2, %v5216_v52 }
 0xfc6   : > { %5252 = vst.msk [vmem:[%s9911_s24 + $0x68] sm:$0xff] %vm4189_vm4, %v5236_v35 }
 0xfdb   : > { %v5218_v41 = vpop.f32.mrf.mxu3 }
 0xfdc   : > { %v5219_v11 = vadd.f32 %v9904_v19, %v5218_v41 }
 0xfde   : > { %v5237_v0 = vadd.f32 %v6582_v13, %v5219_v11 }
 0xfe0   : > { %5253 = vst.msk [vmem:[%s9911_s24 + $0x70] sm:$0xff] %vm4189_vm4, %v5237_v0 }
 0xfe3   : > { %v5220_v34 = vpop.f32.mrf.mxu3 }
 0xfe4   : > { %v5221_v55 = vadd.f32 %v9904_v19, %v5220_v34 }
 0xfe6   : > { %v5238_v57 = vadd.f32 %v6583_v10, %v5221_v55 }
 0xfe8   : > { %5254 = vst.msk [vmem:[%s9911_s24 + $0x78] sm:$0xff] %vm4189_vm4, %v5238_v57 }
 0xfe9   : > { %6611 = shalt.err (!%p6608_p3)
}
 0xfea   : > { %s6663_s26 = smov 128   ;;  %s10268_s16 = smov 8  }
 0xfeb   : > { %5620 = dma.vmem_to_hbm [thread:$0]  (%p6782_p5), %s5269_s29, 2048, %s5271_s23, %s5256_s22, %s6663_s26, %s6663_s26, %s10268_s16  }
 0xfec PF: > { %s10269_s24 = sld [smem:[#allocation7_spill]] }
 0xfed   : > { %s10270_s0 = sld [smem:[#allocation5_spill]] }
 0xff2   : > { %p5626_p4 = scmp.ge.s32.totalorder %s10269_s24, 2 }
 0xff3   : > { %s5285_s21 = sand.u32 1, %s10270_s0  }
 0xff4   : > { %p5623_p7 = pnand %p5626_p4, %p6786_p6  ;;  %s5286_s27 = scalar_lea.sflag [#allocation3], %s5285_s21 }
 0xff6   : > { %p5624_p8 = pneg %p5623_p7 }
 0xff8   : > { %6629 = dma.done.wait (%p5624_p8), %s5286_s27, 2048  }
 0xff9   : > { %6631 = vsyncadd (%p5624_p8), %s5286_s27, 4294965248  ;;  %s10272_s21 = sld [smem:[#allocation8_spill]]  ;;  %s10275_s18 = smov %s6638_s19 }
 0xffa   : > { %s10273_s30 = sld [smem:[#allocation6_spill]] }
 0xffb   : > { %s10274_s20 = sld [smem:[#allocation9_spill]] }
 0xfff   : > { %p25_p9 = scmp.ge.s32.totalorder %s10272_s21, 4  }
0x1000   : > { %s10276_s19 = smov %s10273_s30 }
0x1001   :  { %27 = sbr.rel (!%p25_p9) target bundleno = 6 (0x6), region = 115 }
0x1006   :  { %5292 = vsyncpa [#allocation3], 1 }
0x1007   :  { %5294 = vsyncpa [#allocation3 + $0x1], 1 }

</bundles_post_ra>
